<compile_context>
chip_gen: v7x
topology: tpu7x:2x2x1
jax: 0.10.0
libtpu: 0.0.40
codegen_flags: <defaults>
</compile_context>

<pallas_src>
import functools
import math

import jax
import jax.numpy as jnp
from jax import lax
from jax.experimental import pallas as pl
from jax.experimental.pallas import tpu as pltpu


# ----------------------------------------------------------------------------
# Small-scale WavLM-like config (base model scaled down).
# ----------------------------------------------------------------------------
CFG = dict(
    conv_dims=(16, 16),      # wavlm-base: 7 x 512
    conv_kernels=(10, 3),    # wavlm-base: (10,3,3,3,3,2,2)
    conv_strides=(5, 2),     # wavlm-base: (5,2,2,2,2,2,2)
    hidden=32,               # wavlm-base: 768
    heads=4,                 # wavlm-base: 12
    ffn=64,                  # wavlm-base: 3072
    layers=2,                # wavlm-base: 12
    pos_kernel=16,           # wavlm-base: 128
    pos_groups=4,            # wavlm-base: 16
    num_buckets=32,          # wavlm-base: 320
    max_distance=64,         # wavlm-base: 800
    out_dims=10,
    eps=1e-5,
)


def _params():
    # 64 MiB scoped VMEM fits every generation (v7x physical = 64 MiB).
    return pltpu.CompilerParams(dimension_semantics=("parallel",),
                                vmem_limit_bytes=64 * 1024 * 1024)


def _const_spec(shape):
    return pl.BlockSpec(shape, lambda i, _s=shape: (0,) * len(_s))


def _row(v, n):
    return v.reshape(1, n).astype(jnp.float32)


# ----------------------------------------------------------------------------
# In-kernel helpers
# ----------------------------------------------------------------------------
def _gelu(x):
    # tanh-approx GELU (see TODO above).
    return 0.5 * x * (1.0 + jnp.tanh(0.7978845608028654 * (x + 0.044715 * x * x * x)))


def _ln(x, g, b, eps):
    mean = jnp.mean(x, axis=-1, keepdims=True)
    var = jnp.mean(jnp.square(x - mean), axis=-1, keepdims=True)
    return (x - mean) * lax.rsqrt(var + eps) * g + b


# ----------------------------------------------------------------------------
# Pallas kernels (grid over batch; block = one batch element)
# ----------------------------------------------------------------------------
def _linear3d_kernel(x_ref, w_ref, b_ref, o_ref, *, activation):
    y = jnp.dot(x_ref[0], w_ref[...], preferred_element_type=jnp.float32) + b_ref[...]
    if activation == "gelu":
        y = _gelu(y)
    o_ref[0] = y.astype(o_ref.dtype)


def _conv0_gn_kernel(p_ref, w_ref, g_ref, b_ref, o_ref, *, eps):
    # conv0 matmul + GroupNorm(num_groups=C) == per-channel norm over time + GELU
    x = jnp.dot(p_ref[0], w_ref[...], preferred_element_type=jnp.float32)   # (T, C)
    mean = jnp.mean(x, axis=0, keepdims=True)
    var = jnp.mean(jnp.square(x - mean), axis=0, keepdims=True)
    xhat = (x - mean) * lax.rsqrt(var + eps)
    o_ref[0] = _gelu(xhat * g_ref[...] + b_ref[...]).astype(o_ref.dtype)


def _conv_fp_kernel(p_ref, w_ref, lng_ref, lnb_ref, fpw_ref, fpb_ref, o_ref, *, eps):
    # last feature-encoder conv + GELU + feature-projection LayerNorm + Linear
    x = jnp.dot(p_ref[0], w_ref[...], preferred_element_type=jnp.float32)   # (T, Cf)
    x = _gelu(x)
    xhat = _ln(x, lng_ref[...], lnb_ref[...], eps)
    y = jnp.dot(xhat.astype(fpw_ref.dtype), fpw_ref[...],
                preferred_element_type=jnp.float32) + fpb_ref[...]
    o_ref[0] = y.astype(o_ref.dtype)


def _posconv_res_ln_kernel(h_ref, p_ref, w_ref, cb_ref, g_ref, bt_ref, o_ref,
                           *, groups, eps):
    # grouped positional conv as per-group matmuls + GELU + residual + LN
    h = h_ref[0]                                                            # (T, C) f32
    parts = [jnp.dot(p_ref[0, gi], w_ref[gi], preferred_element_type=jnp.float32)
             for gi in range(groups)]
    y = jnp.concatenate(parts, axis=-1) + cb_ref[...]
    x = h + _gelu(y)
    o_ref[0] = _ln(x, g_ref[...], bt_ref[...], eps).astype(o_ref.dtype)


def _encoder_layer_kernel(h_ref, wqkv_ref, bqkv_ref, gw_ref, gb_ref, gc_ref,
                          pos_ref, wo_ref, bo_ref, ln1g_ref, ln1b_ref,
                          w1_ref, b1_ref, w2_ref, b2_ref, ln2g_ref, ln2b_ref,
                          o_ref, *, heads, dh, scale, eps):
    """Whole encoder layer fused: QKV | gated-bias attention | out-proj acc
    + residual + LN | FFN + residual + LN.  Everything stays in VMEM/vregs."""
    h = h_ref[0]                                                            # (T, C) f32
    c = heads * dh

    # fused QKV projection (single MXU matmul, f32 accumulate)
    qkv = jnp.dot(h.astype(wqkv_ref.dtype), wqkv_ref[...],
                  preferred_element_type=jnp.float32) + bqkv_ref[...]       # (T, 3C)

    # per-head attention; out-projection accumulated directly (no concat).
    x1 = h + bo_ref[...]
    for hh in range(heads):
        q = qkv[:, hh * dh:(hh + 1) * dh]
        k = qkv[:, c + hh * dh:c + (hh + 1) * dh]
        v = qkv[:, 2 * c + hh * dh:2 * c + (hh + 1) * dh]

        # gated relative position bias, formed in-kernel from the shared
        # bf16 (H, T, T) bias and a folded (Dh, 2) gate projection.
        xh = h[:, hh * dh:(hh + 1) * dh]                                    # (T, Dh)
        pa = jnp.sum(xh * gw_ref[0:1, :], axis=-1, keepdims=True) + gb_ref[0:1, 0:1]
        pb = jnp.sum(xh * gw_ref[1:2, :], axis=-1, keepdims=True) + gb_ref[0:1, 1:2]
        gate = (jax.nn.sigmoid(pa)
                * (jax.nn.sigmoid(pb) * gc_ref[0:1, hh:hh + 1] - 1.0) + 2.0)  # (T, 1)
        bias = gate * pos_ref[hh].astype(jnp.float32)                       # (T, T)

        # TODO(synk): KV-tiled online softmax for long sequences.
        s = lax.dot_general(q.astype(jnp.bfloat16), k.astype(jnp.bfloat16),
                            (((1,), (1,)), ((), ())),
                            preferred_element_type=jnp.float32) * scale + bias
        s = s - jnp.max(s, axis=-1, keepdims=True)
        p = jnp.exp(s)
        p = p * pl.reciprocal(jnp.sum(p, axis=-1, keepdims=True), approx=True)
        ctx = jnp.dot(p.astype(jnp.bfloat16), v.astype(jnp.bfloat16),
                      preferred_element_type=jnp.float32)                   # (T, Dh)
        # attn_out @ wo == sum_h ctx_h @ wo[h*Dh:(h+1)*Dh, :]
        x1 = x1 + jnp.dot(ctx.astype(wo_ref.dtype),
                          wo_ref[hh * dh:(hh + 1) * dh, :],
                          preferred_element_type=jnp.float32)

    h1 = _ln(x1, ln1g_ref[...], ln1b_ref[...], eps)

    # FFN + residual + LN
    z = jnp.dot(h1.astype(w1_ref.dtype), w1_ref[...],
                preferred_element_type=jnp.float32) + b1_ref[...]
    z = _gelu(z)
    y = jnp.dot(z.astype(w2_ref.dtype), w2_ref[...],
                preferred_element_type=jnp.float32) + b2_ref[...]
    x2 = h1 + y
    o_ref[0] = _ln(x2, ln2g_ref[...], ln2b_ref[...], eps).astype(o_ref.dtype)


# ----------------------------------------------------------------------------
# Pallas wrappers
# ----------------------------------------------------------------------------
def pallas_linear3d(x, w, b, activation=None):
    # x: (B, T, K), w: (K, N) bf16, b: (1, N) f32 -> (B, T, N) f32
    B, T, K = x.shape
    N = w.shape[1]
    kern = functools.partial(_linear3d_kernel, activation=activation)
    return pl.pallas_call(
        kern,
        out_shape=jax.ShapeDtypeStruct((B, T, N), jnp.float32),
        grid=(B,),
        in_specs=[
            pl.BlockSpec((1, T, K), lambda i: (i, 0, 0)),
            _const_spec((K, N)),
            _const_spec((1, N)),
        ],
        out_specs=pl.BlockSpec((1, T, N), lambda i: (i, 0, 0)),
        compiler_params=_params(),
    )(x.astype(jnp.bfloat16), w, b)


def pallas_conv0_gn(patches, w, g, b, eps):
    # patches: (B, T, K*Cin) bf16, w: (K*Cin, C) bf16 -> (B, T, C) f32
    B, T, CK = patches.shape
    C = w.shape[1]
    kern = functools.partial(_conv0_gn_kernel, eps=eps)
    return pl.pallas_call(
        kern,
        out_shape=jax.ShapeDtypeStruct((B, T, C), jnp.float32),
        grid=(B,),
        in_specs=[
            pl.BlockSpec((1, T, CK), lambda i: (i, 0, 0)),
            _const_spec((CK, C)),
            _const_spec((1, C)),
            _const_spec((1, C)),
        ],
        out_specs=pl.BlockSpec((1, T, C), lambda i: (i, 0, 0)),
        compiler_params=_params(),
    )(patches, w, g, b)


def pallas_conv_fp(patches, wconv, ln_g, ln_b, fp_w, fp_b, eps):
    # last conv + GELU + LayerNorm + feature-projection Linear, fused.
    B, T, CK = patches.shape
    Cf = wconv.shape[1]
    Hd = fp_w.shape[1]
    kern = functools.partial(_conv_fp_kernel, eps=eps)
    return pl.pallas_call(
        kern,
        out_shape=jax.ShapeDtypeStruct((B, T, Hd), jnp.float32),
        grid=(B,),
        in_specs=[
            pl.BlockSpec((1, T, CK), lambda i: (i, 0, 0)),
            _const_spec((CK, Cf)),
            _const_spec((1, Cf)),
            _const_spec((1, Cf)),
            _const_spec((Cf, Hd)),
            _const_spec((1, Hd)),
        ],
        out_specs=pl.BlockSpec((1, T, Hd), lambda i: (i, 0, 0)),
        compiler_params=_params(),
    )(patches, wconv, ln_g, ln_b, fp_w, fp_b)


def pallas_posconv_res_ln(h, patches_g, w_groups, cb, g, bt, eps):
    # h: (B, T, C) residual; patches_g: (B, G, T, K*Cg) bf16;
    # w_groups: (G, K*Cg, Cg) bf16
    B, T, C = h.shape
    G, KCg, Cg = w_groups.shape
    kern = functools.partial(_posconv_res_ln_kernel, groups=G, eps=eps)
    return pl.pallas_call(
        kern,
        out_shape=jax.ShapeDtypeStruct((B, T, C), jnp.float32),
        grid=(B,),
        in_specs=[
            pl.BlockSpec((1, T, C), lambda i: (i, 0, 0)),
            pl.BlockSpec((1, G, T, KCg), lambda i: (i, 0, 0, 0)),
            _const_spec((G, KCg, Cg)),
            _const_spec((1, C)),
            _const_spec((1, C)),
            _const_spec((1, C)),
        ],
        out_specs=pl.BlockSpec((1, T, C), lambda i: (i, 0, 0)),
        compiler_params=_params(),
        input_output_aliases={0: 0},        # residual buffer reused for output
    )(h, patches_g, w_groups, cb, g, bt)


def pallas_encoder_layer(h, lw, pos_bias, eps, heads):
    # One pallas_call per encoder layer.  h: (B, T, C) f32, pos_bias: (H,T,T) bf16
    B, T, C = h.shape
    Dh = C // heads
    F = lw["w1"].shape[1]
    kern = functools.partial(_encoder_layer_kernel, heads=heads, dh=Dh,
                             scale=Dh ** -0.5, eps=eps)
    flops = B * (2 * T * C * (3 * C)            # qkv projection
                 + heads * 4 * T * T * Dh       # scores + p@v
                 + 2 * T * C * C                # per-head out-proj accumulation
                 + 4 * T * C * F)               # ffn (two matmuls)
    trans = B * (heads * T * T + 2 * heads * T + T * F)
    bytes_acc = (4 * B * T * C * 2
                 + 2 * (C * 3 * C + C * C + 2 * C * F)
                 + 2 * heads * T * T
                 + 4 * (3 * C + 6 * C + F + 2 * Dh + heads + 2))
    return pl.pallas_call(
        kern,
        out_shape=jax.ShapeDtypeStruct((B, T, C), jnp.float32),
        grid=(B,),
        in_specs=[
            pl.BlockSpec((1, T, C), lambda i: (i, 0, 0)),   # h (residual + gate input)
            _const_spec((C, 3 * C)),                        # wqkv bf16
            _const_spec((1, 3 * C)),                        # bqkv
            _const_spec((2, Dh)),                           # folded gate weight
            _const_spec((1, 2)),                            # folded gate bias
            _const_spec((1, heads)),                        # gru_rel_pos constants
            _const_spec((heads, T, T)),                     # shared position bias bf16
            _const_spec((C, C)),                            # wo bf16
            _const_spec((1, C)),                            # bo
            _const_spec((1, C)),                            # ln1 gamma
            _const_spec((1, C)),                            # ln1 beta
            _const_spec((C, F)),                            # w1 bf16
            _const_spec((1, F)),                            # b1
            _const_spec((F, C)),                            # w2 bf16
            _const_spec((1, C)),                            # b2
            _const_spec((1, C)),                            # ln2 gamma
            _const_spec((1, C)),                            # ln2 beta
        ],
        out_specs=pl.BlockSpec((1, T, C), lambda i: (i, 0, 0)),
        compiler_params=_params(),
        cost_estimate=pl.CostEstimate(flops=flops, transcendentals=trans,
                                      bytes_accessed=bytes_acc),
        input_output_aliases={0: 0},        # layer input buffer reused for output
    )(h, lw["wqkv"], lw["bqkv"], lw["gw"], lw["gb"], lw["gc"], pos_bias,
      lw["wo"], lw["bo"], lw["ln1_g"], lw["ln1_b"],
      lw["w1"], lw["b1"], lw["w2"], lw["b2"], lw["ln2_g"], lw["ln2_b"])


# ----------------------------------------------------------------------------
# Glue: channel-last im2col (no NCW transposes anywhere)
# ----------------------------------------------------------------------------
def _im2col_cl(x, kernel, stride, t_out=None):
    # x: (B, L, C) -> (B, T, K*C), flattened (k, c) order
    B, L, C = x.shape
    if t_out is None:
        t_out = (L - kernel) // stride + 1
    idx = jnp.arange(t_out)[:, None] * stride + jnp.arange(kernel)[None, :]  # (T, K)
    patches = x[:, idx, :]                         # (B, T, K, C)
    return patches.reshape(B, t_out, kernel * C)


def _conv_weight_cl(w):
    # PyTorch (C_out, C_in, K) -> (K*C_in, C_out) matching (k, c) patch order
    C_out, C_in, K = w.shape
    return w.transpose(2, 1, 0).reshape(K * C_in, C_out)


# ----------------------------------------------------------------------------
# WavLM pieces
# ----------------------------------------------------------------------------
def _relative_position_bucket(rel, num_buckets, max_distance):
    num_buckets = num_buckets // 2
    ret = (rel > 0).astype(jnp.int32) * num_buckets
    n = jnp.abs(rel)
    max_exact = num_buckets // 2
    is_small = n < max_exact
    val_if_large = max_exact + (
        jnp.log(jnp.maximum(n, 1).astype(jnp.float32) / max_exact)
        / math.log(max_distance / max_exact)
        * (num_buckets - max_exact)
    ).astype(jnp.int32)
    val_if_large = jnp.minimum(val_if_large, num_buckets - 1)
    return ret + jnp.where(is_small, n, val_if_large)


def compute_position_bias(T, rel_embed):
    ctx = jnp.arange(T)[:, None]
    mem = jnp.arange(T)[None, :]
    rel = mem - ctx
    buckets = _relative_position_bucket(rel, CFG["num_buckets"], CFG["max_distance"])
    values = rel_embed[buckets]                    # (T, T, H)
    return values.transpose(2, 0, 1)               # (H, T, T)


def feature_encoder_and_projection(prep, feat, eps):
    """(B, L) waveform -> (B, T, Hd): conv stack + feature projection."""
    x = feat[:, :, None]                                                # (B, L, 1)
    k0, s0 = CFG["conv_kernels"][0], CFG["conv_strides"][0]
    p0 = _im2col_cl(x, k0, s0).astype(jnp.bfloat16)                     # bf16 patches
    x = pallas_conv0_gn(p0, prep["conv0_w"], prep["gn_g"], prep["gn_b"], eps)

    n_conv = len(CFG["conv_dims"])
    for li in range(1, n_conv - 1):                                     # middle convs
        k, s = CFG["conv_kernels"][li], CFG["conv_strides"][li]
        p = _im2col_cl(x, k, s).astype(jnp.bfloat16)
        zero_b = jnp.zeros((1, CFG["conv_dims"][li]), jnp.float32)
        x = pallas_linear3d(p, prep[f"conv{li}_w"], zero_b, activation="gelu")

    # last conv fused with feature-projection LayerNorm + Linear
    k, s = CFG["conv_kernels"][-1], CFG["conv_strides"][-1]
    p = _im2col_cl(x, k, s).astype(jnp.bfloat16)
    return pallas_conv_fp(p, prep[f"conv{n_conv-1}_w"], prep["fp_ln_g"],
                          prep["fp_ln_b"], prep["fp_w"], prep["fp_b"], eps)


def pos_conv_res_ln(prep, h, eps):
    """h -> LayerNorm(h + grouped_pos_conv(h)); single fused kernel."""
    B, T, C = h.shape
    G = CFG["pos_groups"]
    Cg = C // G
    K = CFG["pos_kernel"]
    pad = K // 2
    xp = jnp.pad(h, ((0, 0), (pad, pad), (0, 0)))
    # even-kernel same-pad: keep the first T of T+1 valid positions (== [:-1])
    idx = jnp.arange(T)[:, None] + jnp.arange(K)[None, :]               # (T, K)
    patches = xp[:, idx, :]                                             # (B, T, K, C)
    patches = patches.reshape(B, T, K, G, Cg).transpose(0, 3, 1, 2, 4)  # (B,G,T,K,Cg)
    patches = patches.reshape(B, G, T, K * Cg).astype(jnp.bfloat16)
    return pallas_posconv_res_ln(h, patches, prep["pos_wg"], prep["pos_b"],
                                 prep["enc_ln_g"], prep["enc_ln_b"], eps)


def wavlm_ctc_forward(prep, feat):
    """feat: (B, samples) float32 raw waveform -> (B, T, out_dims)."""
    eps = CFG["eps"]

    # ---- frozen feature encoder + feature projection (2 kernels) ----
    h = feature_encoder_and_projection(prep, feat, eps)                # (B, T, Hd)
    T = h.shape[1]

    # ---- encoder: positional conv + residual + LayerNorm (1 kernel) ----
    h = pos_conv_res_ln(prep, h, eps)
    pos_bias = compute_position_bias(T, prep["rel_embed"]).astype(jnp.bfloat16)

    # ---- encoder layers: 1 fused kernel each ----
    for lw in prep["layers"]:
        h = pallas_encoder_layer(h, lw, pos_bias, eps, CFG["heads"])

    # ---- CTC projection head: pre-padded to 128 lanes, sliced outside ----
    out = pallas_linear3d(h, prep["proj_w"], prep["proj_b"])            # (B, T, 128)
    return out[..., :CFG["out_dims"]]


# ----------------------------------------------------------------------------
# Parameters: deterministic synthetic init + one-time packing for the kernels
# ----------------------------------------------------------------------------
def init_params(key):
    keys = iter(jax.random.split(key, 256))

    def nrm(shape, scale=0.02):
        return scale * jax.random.normal(next(keys), shape, dtype=jnp.float32)

    Hd = CFG["hidden"]
    Dh = Hd // CFG["heads"]
    Cf = CFG["conv_dims"][-1]
    Cg = Hd // CFG["pos_groups"]

    p = {}
    c_in = 1
    for i, (cd, k) in enumerate(zip(CFG["conv_dims"], CFG["conv_kernels"])):
        p[f"conv{i}_w"] = nrm((cd, c_in, k))
        c_in = cd
    C0 = CFG["conv_dims"][0]
    p["gn_g"] = jnp.ones((C0,), jnp.float32)
    p["gn_b"] = jnp.zeros((C0,), jnp.float32)
    p["fp_ln_g"] = jnp.ones((Cf,), jnp.float32)
    p["fp_ln_b"] = jnp.zeros((Cf,), jnp.float32)
    p["fp_w"] = nrm((Cf, Hd))
    p["fp_b"] = jnp.zeros((Hd,), jnp.float32)
    p["pos_w"] = nrm((Hd, Cg, CFG["pos_kernel"]))
    p["pos_b"] = jnp.zeros((Hd,), jnp.float32)
    p["enc_ln_g"] = jnp.ones((Hd,), jnp.float32)
    p["enc_ln_b"] = jnp.zeros((Hd,), jnp.float32)
    p["rel_embed"] = nrm((CFG["num_buckets"], CFG["heads"]))

    layers = []
    for _ in range(CFG["layers"]):
        layers.append(dict(
            wq=nrm((Hd, Hd)), bq=jnp.zeros((Hd,), jnp.float32),
            wk=nrm((Hd, Hd)), bk=jnp.zeros((Hd,), jnp.float32),
            wv=nrm((Hd, Hd)), bv=jnp.zeros((Hd,), jnp.float32),
            wo=nrm((Hd, Hd)), bo=jnp.zeros((Hd,), jnp.float32),
            gru_w=nrm((Dh, 8)), gru_b=jnp.zeros((8,), jnp.float32),
            gru_const=jnp.ones((CFG["heads"],), jnp.float32),
            ln1_g=jnp.ones((Hd,), jnp.float32), ln1_b=jnp.zeros((Hd,), jnp.float32),
            w1=nrm((Hd, CFG["ffn"])), b1=jnp.zeros((CFG["ffn"],), jnp.float32),
            w2=nrm((CFG["ffn"], Hd)), b2=jnp.zeros((Hd,), jnp.float32),
            ln2_g=jnp.ones((Hd,), jnp.float32), ln2_b=jnp.zeros((Hd,), jnp.float32),
        ))
    p["layers"] = layers
    p["proj_w"] = nrm((Hd, CFG["out_dims"]))
    p["proj_b"] = jnp.zeros((CFG["out_dims"],), jnp.float32)
    return p


def prepare_params(p):
    """One-time packing: fused QKV, per-group pos-conv weights, folded gate
    projection, padded CTC head, bf16 weights, (1, N) bias/LN rows."""
    Hd = CFG["hidden"]
    H = CFG["heads"]
    Dh = Hd // H
    Cf = CFG["conv_dims"][-1]
    G = CFG["pos_groups"]
    Cg = Hd // G
    K = CFG["pos_kernel"]
    C0 = CFG["conv_dims"][0]
    F = CFG["ffn"]

    prep = {}
    prep["conv0_w"] = _conv_weight_cl(p["conv0_w"]).astype(jnp.bfloat16)
    prep["gn_g"] = _row(p["gn_g"], C0)
    prep["gn_b"] = _row(p["gn_b"], C0)
    for li in range(1, len(CFG["conv_dims"])):
        prep[f"conv{li}_w"] = _conv_weight_cl(p[f"conv{li}_w"]).astype(jnp.bfloat16)
    prep["fp_ln_g"] = _row(p["fp_ln_g"], Cf)
    prep["fp_ln_b"] = _row(p["fp_ln_b"], Cf)
    prep["fp_w"] = p["fp_w"].astype(jnp.bfloat16)
    prep["fp_b"] = _row(p["fp_b"], Hd)

    # grouped positional-conv weights: (G, K*Cg_in, Cg_out)
    wg = p["pos_w"].reshape(G, Cg, Cg, K)          # (g, co, ci, k)
    wg = wg.transpose(0, 3, 2, 1)                  # (g, k, ci, co)
    prep["pos_wg"] = wg.reshape(G, K * Cg, Cg).astype(jnp.bfloat16)
    prep["pos_b"] = _row(p["pos_b"], Hd)
    prep["enc_ln_g"] = _row(p["enc_ln_g"], Hd)
    prep["enc_ln_b"] = _row(p["enc_ln_b"], Hd)
    prep["rel_embed"] = p["rel_embed"]

    layers = []
    for lp in p["layers"]:
        # fold the 8 -> 2 grouped sum of the gated-rel-pos projection
        gru_w2 = lp["gru_w"].reshape(Dh, 2, 4).sum(-1)          # (Dh, 2)
        gru_b2 = lp["gru_b"].reshape(2, 4).sum(-1)              # (2,)
        layers.append(dict(
            wqkv=jnp.concatenate([lp["wq"], lp["wk"], lp["wv"]],
                                 axis=1).astype(jnp.bfloat16),
            bqkv=jnp.concatenate([lp["bq"], lp["bk"], lp["bv"]]
                                 ).reshape(1, 3 * Hd).astype(jnp.float32),
            gw=gru_w2.T.astype(jnp.float32),                     # (2, Dh)
            gb=gru_b2.reshape(1, 2).astype(jnp.float32),
            gc=lp["gru_const"].reshape(1, H).astype(jnp.float32),
            wo=lp["wo"].astype(jnp.bfloat16), bo=_row(lp["bo"], Hd),
            ln1_g=_row(lp["ln1_g"], Hd), ln1_b=_row(lp["ln1_b"], Hd),
            w1=lp["w1"].astype(jnp.bfloat16), b1=_row(lp["b1"], F),
            w2=lp["w2"].astype(jnp.bfloat16), b2=_row(lp["b2"], Hd),
            ln2_g=_row(lp["ln2_g"], Hd), ln2_b=_row(lp["ln2_b"], Hd),
        ))
    prep["layers"] = layers

    # CTC head padded to 128 lanes (lane-dense output slab), sliced outside.
    N = CFG["out_dims"]
    Np = max(128, ((N + 127) // 128) * 128)
    prep["proj_w"] = (jnp.zeros((Hd, Np), jnp.float32)
                      .at[:, :N].set(p["proj_w"]).astype(jnp.bfloat16))
    prep["proj_b"] = jnp.zeros((1, Np), jnp.float32).at[:, :N].set(
        p["proj_b"].reshape(1, N))
    return prep


# ----------------------------------------------------------------------------
if __name__ == "__main__":
    key = jax.random.PRNGKey(0)
    pkey, dkey = jax.random.split(key)
    prep = prepare_params(init_params(pkey))
    feat = jax.random.normal(dkey, (2, 400), dtype=jnp.float32)   # (B, samples)

    fwd = jax.jit(wavlm_ctc_forward)
    out = fwd(prep, feat)                                         # (2, 39, 10)
    jax.block_until_ready(out)
    assert out.shape == (2, 39, CFG["out_dims"])
    print("KERNEL_OK")
</pallas_src>

<mosaic_0001>
module attributes {stable_mosaic.version = 11 : i64} {
  func.func @_conv0_gn_kernel(%arg0: i32, %arg1: memref<1x79x10xbf16, #tpu.memory_space<vmem>>, %arg2: memref<10x16xbf16, #tpu.memory_space<vmem>>, %arg3: memref<1x16xf32, #tpu.memory_space<vmem>>, %arg4: memref<1x16xf32, #tpu.memory_space<vmem>>, %arg5: memref<1x79x16xf32, #tpu.memory_space<vmem>>) attributes {dimension_semantics = [#tpu.dimension_semantics<parallel>], iteration_bounds = array<i64: 2>, scalar_prefetch = 0 : i64, scratch_operands = 0 : i64, tpu.core_type = #tpu.core_type<tc>, window_params = [{transform_indices = @transform_0, window_bounds = array<i64: 1, 79, 10>}, {pipeline_mode = #tpu.pipeline_mode<synchronous>, transform_indices = @transform_1, window_bounds = array<i64: 10, 16>}, {pipeline_mode = #tpu.pipeline_mode<synchronous>, transform_indices = @transform_2, window_bounds = array<i64: 1, 16>}, {pipeline_mode = #tpu.pipeline_mode<synchronous>, transform_indices = @transform_3, window_bounds = array<i64: 1, 16>}, {transform_indices = @transform_4, window_bounds = array<i64: 1, 79, 16>}]} {
    %c0 = arith.constant 0 : index
    %c0_0 = arith.constant 0 : index
    %c0_1 = arith.constant 0 : index
    %0 = vector.load %arg1[%c0, %c0_0, %c0_1] : memref<1x79x10xbf16, #tpu.memory_space<vmem>>, vector<1x79x10xbf16>
    %1 = vector.shape_cast %0 : vector<1x79x10xbf16> to vector<79x10xbf16>
    %c0_2 = arith.constant 0 : index
    %c0_3 = arith.constant 0 : index
    %2 = vector.load %arg2[%c0_2, %c0_3] : memref<10x16xbf16, #tpu.memory_space<vmem>>, vector<10x16xbf16>
    %cst = arith.constant dense<0.000000e+00> : vector<79x16xf32>
    %3 = tpu.matmul %1, %2, %cst {dimension_numbers = #tpu.dot_dimension_numbers<[1], [0], [0], [1], [0, 0, 1, 1], [], []>} : vector<79x10xbf16>, vector<10x16xbf16>, vector<79x16xf32> -> vector<79x16xf32>
    %cst_4 = arith.constant dense<0.000000e+00> : vector<16xf32>
    %4 = vector.multi_reduction <add>, %3, %cst_4 [0] : vector<79x16xf32> to vector<16xf32>
    %5 = vector.shape_cast %4 : vector<16xf32> to vector<1x16xf32>
    %cst_5 = arith.constant 7.900000e+01 : f32
    %6 = vector.broadcast %cst_5 : f32 to vector<1x16xf32>
    %7 = arith.divf %5, %6 : vector<1x16xf32>
    %8 = vector.broadcast %7 : vector<1x16xf32> to vector<79x16xf32>
    %9 = arith.subf %3, %8 : vector<79x16xf32>
    %10 = arith.mulf %9, %9 : vector<79x16xf32>
    %cst_6 = arith.constant dense<0.000000e+00> : vector<16xf32>
    %11 = vector.multi_reduction <add>, %10, %cst_6 [0] : vector<79x16xf32> to vector<16xf32>
    %12 = vector.shape_cast %11 : vector<16xf32> to vector<1x16xf32>
    %cst_7 = arith.constant 7.900000e+01 : f32
    %13 = vector.broadcast %cst_7 : f32 to vector<1x16xf32>
    %14 = arith.divf %12, %13 : vector<1x16xf32>
    %15 = vector.broadcast %7 : vector<1x16xf32> to vector<79x16xf32>
    %16 = arith.subf %3, %15 : vector<79x16xf32>
    %cst_8 = arith.constant 9.99999974E-6 : f32
    %17 = vector.broadcast %cst_8 : f32 to vector<1x16xf32>
    %18 = arith.addf %14, %17 : vector<1x16xf32>
    %19 = math.rsqrt %18 : vector<1x16xf32>
    %20 = vector.broadcast %19 : vector<1x16xf32> to vector<79x16xf32>
    %21 = arith.mulf %16, %20 : vector<79x16xf32>
    %c0_9 = arith.constant 0 : index
    %c0_10 = arith.constant 0 : index
    %22 = vector.load %arg3[%c0_9, %c0_10] : memref<1x16xf32, #tpu.memory_space<vmem>>, vector<1x16xf32>
    %23 = vector.broadcast %22 : vector<1x16xf32> to vector<79x16xf32>
    %24 = arith.mulf %21, %23 : vector<79x16xf32>
    %c0_11 = arith.constant 0 : index
    %c0_12 = arith.constant 0 : index
    %25 = vector.load %arg4[%c0_11, %c0_12] : memref<1x16xf32, #tpu.memory_space<vmem>>, vector<1x16xf32>
    %26 = vector.broadcast %25 : vector<1x16xf32> to vector<79x16xf32>
    %27 = arith.addf %24, %26 : vector<79x16xf32>
    %cst_13 = arith.constant 5.000000e-01 : f32
    %28 = vector.broadcast %cst_13 : f32 to vector<79x16xf32>
    %29 = arith.mulf %28, %27 : vector<79x16xf32>
    %cst_14 = arith.constant 4.471500e-02 : f32
    %30 = vector.broadcast %cst_14 : f32 to vector<79x16xf32>
    %31 = arith.mulf %30, %27 : vector<79x16xf32>
    %32 = arith.mulf %31, %27 : vector<79x16xf32>
    %33 = arith.mulf %32, %27 : vector<79x16xf32>
    %34 = arith.addf %27, %33 : vector<79x16xf32>
    %cst_15 = arith.constant 0.797884583 : f32
    %35 = vector.broadcast %cst_15 : f32 to vector<79x16xf32>
    %36 = arith.mulf %35, %34 : vector<79x16xf32>
    %37 = math.tanh %36 : vector<79x16xf32>
    %cst_16 = arith.constant 1.000000e+00 : f32
    %38 = vector.broadcast %cst_16 : f32 to vector<79x16xf32>
    %39 = arith.addf %38, %37 : vector<79x16xf32>
    %40 = arith.mulf %29, %39 : vector<79x16xf32>
    %c0_17 = arith.constant 0 : index
    %c0_18 = arith.constant 0 : index
    %c0_19 = arith.constant 0 : index
    %41 = vector.load %arg5[%c0_17, %c0_18, %c0_19] : memref<1x79x16xf32, #tpu.memory_space<vmem>>, vector<1x79x16xf32>
    %42 = vector.shape_cast %41 : vector<1x79x16xf32> to vector<79x16xf32>
    %43 = vector.shape_cast %40 : vector<79x16xf32> to vector<1x79x16xf32>
    tpu.vector_store %arg5[%c0_17, %c0_18, %c0_19], %43 {strides = array<i32>} : memref<1x79x16xf32, #tpu.memory_space<vmem>>, vector<1x79x16xf32>,
    return
  }
  func.func @transform_0(%arg0: i32) -> (i32, i32, i32) {
    %c0_i32 = arith.constant 0 : i32
    %c0_i32_0 = arith.constant 0 : i32
    %c0_i32_1 = arith.constant 0 : i32
    return %arg0, %c0_i32, %c0_i32_0 : i32, i32, i32
  }
  func.func @transform_1(%arg0: i32) -> (i32, i32) {
    %c0_i32 = arith.constant 0 : i32
    %c0_i32_0 = arith.constant 0 : i32
    %c0_i32_1 = arith.constant 0 : i32
    return %c0_i32, %c0_i32_0 : i32, i32
  }
  func.func @transform_2(%arg0: i32) -> (i32, i32) {
    %c0_i32 = arith.constant 0 : i32
    %c0_i32_0 = arith.constant 0 : i32
    %c0_i32_1 = arith.constant 0 : i32
    return %c0_i32, %c0_i32_0 : i32, i32
  }
  func.func @transform_3(%arg0: i32) -> (i32, i32) {
    %c0_i32 = arith.constant 0 : i32
    %c0_i32_0 = arith.constant 0 : i32
    %c0_i32_1 = arith.constant 0 : i32
    return %c0_i32, %c0_i32_0 : i32, i32
  }
  func.func @transform_4(%arg0: i32) -> (i32, i32, i32) {
    %c0_i32 = arith.constant 0 : i32
    %c0_i32_0 = arith.constant 0 : i32
    %c0_i32_1 = arith.constant 0 : i32
    return %arg0, %c0_i32, %c0_i32_0 : i32, i32, i32
  }
}

module attributes {stable_mosaic.version = 11 : i64} {
  func.func @_conv_fp_kernel(%arg0: i32, %arg1: memref<1x39x48xbf16, #tpu.memory_space<vmem>>, %arg2: memref<48x16xbf16, #tpu.memory_space<vmem>>, %arg3: memref<1x16xf32, #tpu.memory_space<vmem>>, %arg4: memref<1x16xf32, #tpu.memory_space<vmem>>, %arg5: memref<16x32xbf16, #tpu.memory_space<vmem>>, %arg6: memref<1x32xf32, #tpu.memory_space<vmem>>, %arg7: memref<1x39x32xf32, #tpu.memory_space<vmem>>) attributes {dimension_semantics = [#tpu.dimension_semantics<parallel>], iteration_bounds = array<i64: 2>, scalar_prefetch = 0 : i64, scratch_operands = 0 : i64, tpu.core_type = #tpu.core_type<tc>, window_params = [{transform_indices = @transform_0, window_bounds = array<i64: 1, 39, 48>}, {pipeline_mode = #tpu.pipeline_mode<synchronous>, transform_indices = @transform_1, window_bounds = array<i64: 48, 16>}, {pipeline_mode = #tpu.pipeline_mode<synchronous>, transform_indices = @transform_2, window_bounds = array<i64: 1, 16>}, {pipeline_mode = #tpu.pipeline_mode<synchronous>, transform_indices = @transform_3, window_bounds = array<i64: 1, 16>}, {pipeline_mode = #tpu.pipeline_mode<synchronous>, transform_indices = @transform_4, window_bounds = array<i64: 16, 32>}, {pipeline_mode = #tpu.pipeline_mode<synchronous>, transform_indices = @transform_5, window_bounds = array<i64: 1, 32>}, {transform_indices = @transform_6, window_bounds = array<i64: 1, 39, 32>}]} {
    %c0 = arith.constant 0 : index
    %c0_0 = arith.constant 0 : index
    %c0_1 = arith.constant 0 : index
    %0 = vector.load %arg1[%c0, %c0_0, %c0_1] : memref<1x39x48xbf16, #tpu.memory_space<vmem>>, vector<1x39x48xbf16>
    %1 = vector.shape_cast %0 : vector<1x39x48xbf16> to vector<39x48xbf16>
    %c0_2 = arith.constant 0 : index
    %c0_3 = arith.constant 0 : index
    %2 = vector.load %arg2[%c0_2, %c0_3] : memref<48x16xbf16, #tpu.memory_space<vmem>>, vector<48x16xbf16>
    %cst = arith.constant dense<0.000000e+00> : vector<39x16xf32>
    %3 = tpu.matmul %1, %2, %cst {dimension_numbers = #tpu.dot_dimension_numbers<[1], [0], [0], [1], [0, 0, 1, 1], [], []>} : vector<39x48xbf16>, vector<48x16xbf16>, vector<39x16xf32> -> vector<39x16xf32>
    %cst_4 = arith.constant 5.000000e-01 : f32
    %4 = vector.broadcast %cst_4 : f32 to vector<39x16xf32>
    %5 = arith.mulf %4, %3 : vector<39x16xf32>
    %cst_5 = arith.constant 4.471500e-02 : f32
    %6 = vector.broadcast %cst_5 : f32 to vector<39x16xf32>
    %7 = arith.mulf %6, %3 : vector<39x16xf32>
    %8 = arith.mulf %7, %3 : vector<39x16xf32>
    %9 = arith.mulf %8, %3 : vector<39x16xf32>
    %10 = arith.addf %3, %9 : vector<39x16xf32>
    %cst_6 = arith.constant 0.797884583 : f32
    %11 = vector.broadcast %cst_6 : f32 to vector<39x16xf32>
    %12 = arith.mulf %11, %10 : vector<39x16xf32>
    %13 = math.tanh %12 : vector<39x16xf32>
    %cst_7 = arith.constant 1.000000e+00 : f32
    %14 = vector.broadcast %cst_7 : f32 to vector<39x16xf32>
    %15 = arith.addf %14, %13 : vector<39x16xf32>
    %16 = arith.mulf %5, %15 : vector<39x16xf32>
    %c0_8 = arith.constant 0 : index
    %c0_9 = arith.constant 0 : index
    %17 = vector.load %arg3[%c0_8, %c0_9] : memref<1x16xf32, #tpu.memory_space<vmem>>, vector<1x16xf32>
    %c0_10 = arith.constant 0 : index
    %c0_11 = arith.constant 0 : index
    %18 = vector.load %arg4[%c0_10, %c0_11] : memref<1x16xf32, #tpu.memory_space<vmem>>, vector<1x16xf32>
    %cst_12 = arith.constant dense<0.000000e+00> : vector<39xf32>
    %19 = vector.multi_reduction <add>, %16, %cst_12 [1] : vector<39x16xf32> to vector<39xf32>
    %20 = vector.shape_cast %19 : vector<39xf32> to vector<39x1xf32>
    %cst_13 = arith.constant 1.600000e+01 : f32
    %21 = vector.broadcast %cst_13 : f32 to vector<39x1xf32>
    %22 = arith.divf %20, %21 : vector<39x1xf32>
    %23 = vector.broadcast %22 : vector<39x1xf32> to vector<39x16xf32>
    %24 = arith.subf %16, %23 : vector<39x16xf32>
    %25 = arith.mulf %24, %24 : vector<39x16xf32>
    %cst_14 = arith.constant dense<0.000000e+00> : vector<39xf32>
    %26 = vector.multi_reduction <add>, %25, %cst_14 [1] : vector<39x16xf32> to vector<39xf32>
    %27 = vector.shape_cast %26 : vector<39xf32> to vector<39x1xf32>
    %cst_15 = arith.constant 1.600000e+01 : f32
    %28 = vector.broadcast %cst_15 : f32 to vector<39x1xf32>
    %29 = arith.divf %27, %28 : vector<39x1xf32>
    %30 = vector.broadcast %22 : vector<39x1xf32> to vector<39x16xf32>
    %31 = arith.subf %16, %30 : vector<39x16xf32>
    %cst_16 = arith.constant 9.99999974E-6 : f32
    %32 = vector.broadcast %cst_16 : f32 to vector<39x1xf32>
    %33 = arith.addf %29, %32 : vector<39x1xf32>
    %34 = math.rsqrt %33 : vector<39x1xf32>
    %35 = vector.broadcast %34 : vector<39x1xf32> to vector<39x16xf32>
    %36 = arith.mulf %31, %35 : vector<39x16xf32>
    %37 = vector.broadcast %17 : vector<1x16xf32> to vector<39x16xf32>
    %38 = arith.mulf %36, %37 : vector<39x16xf32>
    %39 = vector.broadcast %18 : vector<1x16xf32> to vector<39x16xf32>
    %40 = arith.addf %38, %39 : vector<39x16xf32>
    %41 = arith.truncf %40 : vector<39x16xf32> to vector<39x16xbf16>
    %c0_17 = arith.constant 0 : index
    %c0_18 = arith.constant 0 : index
    %42 = vector.load %arg5[%c0_17, %c0_18] : memref<16x32xbf16, #tpu.memory_space<vmem>>, vector<16x32xbf16>
    %cst_19 = arith.constant dense<0.000000e+00> : vector<39x32xf32>
    %43 = tpu.matmul %41, %42, %cst_19 {dimension_numbers = #tpu.dot_dimension_numbers<[1], [0], [0], [1], [0, 0, 1, 1], [], []>} : vector<39x16xbf16>, vector<16x32xbf16>, vector<39x32xf32> -> vector<39x32xf32>
    %c0_20 = arith.constant 0 : index
    %c0_21 = arith.constant 0 : index
    %44 = vector.load %arg6[%c0_20, %c0_21] : memref<1x32xf32, #tpu.memory_space<vmem>>, vector<1x32xf32>
    %45 = vector.broadcast %44 : vector<1x32xf32> to vector<39x32xf32>
    %46 = arith.addf %43, %45 : vector<39x32xf32>
    %c0_22 = arith.constant 0 : index
    %c0_23 = arith.constant 0 : index
    %c0_24 = arith.constant 0 : index
    %47 = vector.load %arg7[%c0_22, %c0_23, %c0_24] : memref<1x39x32xf32, #tpu.memory_space<vmem>>, vector<1x39x32xf32>
    %48 = vector.shape_cast %47 : vector<1x39x32xf32> to vector<39x32xf32>
    %49 = vector.shape_cast %46 : vector<39x32xf32> to vector<1x39x32xf32>
    tpu.vector_store %arg7[%c0_22, %c0_23, %c0_24], %49 {strides = array<i32>} : memref<1x39x32xf32, #tpu.memory_space<vmem>>, vector<1x39x32xf32>,
    return
  }
  func.func @transform_0(%arg0: i32) -> (i32, i32, i32) {
    %c0_i32 = arith.constant 0 : i32
    %c0_i32_0 = arith.constant 0 : i32
    %c0_i32_1 = arith.constant 0 : i32
    return %arg0, %c0_i32, %c0_i32_0 : i32, i32, i32
  }
  func.func @transform_1(%arg0: i32) -> (i32, i32) {
    %c0_i32 = arith.constant 0 : i32
    %c0_i32_0 = arith.constant 0 : i32
    %c0_i32_1 = arith.constant 0 : i32
    return %c0_i32, %c0_i32_0 : i32, i32
  }
  func.func @transform_2(%arg0: i32) -> (i32, i32) {
    %c0_i32 = arith.constant 0 : i32
    %c0_i32_0 = arith.constant 0 : i32
    %c0_i32_1 = arith.constant 0 : i32
    return %c0_i32, %c0_i32_0 : i32, i32
  }
  func.func @transform_3(%arg0: i32) -> (i32, i32) {
    %c0_i32 = arith.constant 0 : i32
    %c0_i32_0 = arith.constant 0 : i32
    %c0_i32_1 = arith.constant 0 : i32
    return %c0_i32, %c0_i32_0 : i32, i32
  }
  func.func @transform_4(%arg0: i32) -> (i32, i32) {
    %c0_i32 = arith.constant 0 : i32
    %c0_i32_0 = arith.constant 0 : i32
    %c0_i32_1 = arith.constant 0 : i32
    return %c0_i32, %c0_i32_0 : i32, i32
  }
  func.func @transform_5(%arg0: i32) -> (i32, i32) {
    %c0_i32 = arith.constant 0 : i32
    %c0_i32_0 = arith.constant 0 : i32
    %c0_i32_1 = arith.constant 0 : i32
    return %c0_i32, %c0_i32_0 : i32, i32
  }
  func.func @transform_6(%arg0: i32) -> (i32, i32, i32) {
    %c0_i32 = arith.constant 0 : i32
    %c0_i32_0 = arith.constant 0 : i32
    %c0_i32_1 = arith.constant 0 : i32
    return %arg0, %c0_i32, %c0_i32_0 : i32, i32, i32
  }
}

module attributes {stable_mosaic.version = 11 : i64} {
  func.func @_posconv_res_ln_kernel(%arg0: i32, %arg1: memref<1x39x32xf32, #tpu.memory_space<vmem>>, %arg2: memref<1x4x39x128xbf16, #tpu.memory_space<vmem>>, %arg3: memref<4x128x8xbf16, #tpu.memory_space<vmem>>, %arg4: memref<1x32xf32, #tpu.memory_space<vmem>>, %arg5: memref<1x32xf32, #tpu.memory_space<vmem>>, %arg6: memref<1x32xf32, #tpu.memory_space<vmem>>, %arg7: memref<1x39x32xf32, #tpu.memory_space<vmem>>) attributes {dimension_semantics = [#tpu.dimension_semantics<parallel>], iteration_bounds = array<i64: 2>, scalar_prefetch = 0 : i64, scratch_operands = 0 : i64, tpu.core_type = #tpu.core_type<tc>, window_params = [{transform_indices = @transform_0, window_bounds = array<i64: 1, 39, 32>}, {transform_indices = @transform_1, window_bounds = array<i64: 1, 4, 39, 128>}, {pipeline_mode = #tpu.pipeline_mode<synchronous>, transform_indices = @transform_2, window_bounds = array<i64: 4, 128, 8>}, {pipeline_mode = #tpu.pipeline_mode<synchronous>, transform_indices = @transform_3, window_bounds = array<i64: 1, 32>}, {pipeline_mode = #tpu.pipeline_mode<synchronous>, transform_indices = @transform_4, window_bounds = array<i64: 1, 32>}, {pipeline_mode = #tpu.pipeline_mode<synchronous>, transform_indices = @transform_5, window_bounds = array<i64: 1, 32>}, {transform_indices = @transform_6, window_bounds = array<i64: 1, 39, 32>}]} {
    %c0 = arith.constant 0 : index
    %c0_0 = arith.constant 0 : index
    %c0_1 = arith.constant 0 : index
    %0 = vector.load %arg1[%c0, %c0_0, %c0_1] : memref<1x39x32xf32, #tpu.memory_space<vmem>>, vector<1x39x32xf32>
    %1 = vector.shape_cast %0 : vector<1x39x32xf32> to vector<39x32xf32>
    %c0_2 = arith.constant 0 : index
    %c0_3 = arith.constant 0 : index
    %c0_4 = arith.constant 0 : index
    %c0_5 = arith.constant 0 : index
    %2 = vector.load %arg2[%c0_2, %c0_3, %c0_4, %c0_5] : memref<1x4x39x128xbf16, #tpu.memory_space<vmem>>, vector<1x1x39x128xbf16>
    %3 = vector.shape_cast %2 : vector<1x1x39x128xbf16> to vector<39x128xbf16>
    %c0_6 = arith.constant 0 : index
    %c0_7 = arith.constant 0 : index
    %c0_8 = arith.constant 0 : index
    %4 = vector.load %arg3[%c0_6, %c0_7, %c0_8] : memref<4x128x8xbf16, #tpu.memory_space<vmem>>, vector<1x128x8xbf16>
    %5 = vector.shape_cast %4 : vector<1x128x8xbf16> to vector<128x8xbf16>
    %cst = arith.constant dense<0.000000e+00> : vector<39x8xf32>
    %6 = tpu.matmul %3, %5, %cst {dimension_numbers = #tpu.dot_dimension_numbers<[1], [0], [0], [1], [0, 0, 1, 1], [], []>} : vector<39x128xbf16>, vector<128x8xbf16>, vector<39x8xf32> -> vector<39x8xf32>
    %c0_9 = arith.constant 0 : index
    %c1 = arith.constant 1 : index
    %c0_10 = arith.constant 0 : index
    %c0_11 = arith.constant 0 : index
    %7 = vector.load %arg2[%c0_9, %c1, %c0_10, %c0_11] : memref<1x4x39x128xbf16, #tpu.memory_space<vmem>>, vector<1x1x39x128xbf16>
    %8 = vector.shape_cast %7 : vector<1x1x39x128xbf16> to vector<39x128xbf16>
    %c1_12 = arith.constant 1 : index
    %c0_13 = arith.constant 0 : index
    %c0_14 = arith.constant 0 : index
    %9 = vector.load %arg3[%c1_12, %c0_13, %c0_14] : memref<4x128x8xbf16, #tpu.memory_space<vmem>>, vector<1x128x8xbf16>
    %10 = vector.shape_cast %9 : vector<1x128x8xbf16> to vector<128x8xbf16>
    %cst_15 = arith.constant dense<0.000000e+00> : vector<39x8xf32>
    %11 = tpu.matmul %8, %10, %cst_15 {dimension_numbers = #tpu.dot_dimension_numbers<[1], [0], [0], [1], [0, 0, 1, 1], [], []>} : vector<39x128xbf16>, vector<128x8xbf16>, vector<39x8xf32> -> vector<39x8xf32>
    %c0_16 = arith.constant 0 : index
    %c2 = arith.constant 2 : index
    %c0_17 = arith.constant 0 : index
    %c0_18 = arith.constant 0 : index
    %12 = vector.load %arg2[%c0_16, %c2, %c0_17, %c0_18] : memref<1x4x39x128xbf16, #tpu.memory_space<vmem>>, vector<1x1x39x128xbf16>
    %13 = vector.shape_cast %12 : vector<1x1x39x128xbf16> to vector<39x128xbf16>
    %c2_19 = arith.constant 2 : index
    %c0_20 = arith.constant 0 : index
    %c0_21 = arith.constant 0 : index
    %14 = vector.load %arg3[%c2_19, %c0_20, %c0_21] : memref<4x128x8xbf16, #tpu.memory_space<vmem>>, vector<1x128x8xbf16>
    %15 = vector.shape_cast %14 : vector<1x128x8xbf16> to vector<128x8xbf16>
    %cst_22 = arith.constant dense<0.000000e+00> : vector<39x8xf32>
    %16 = tpu.matmul %13, %15, %cst_22 {dimension_numbers = #tpu.dot_dimension_numbers<[1], [0], [0], [1], [0, 0, 1, 1], [], []>} : vector<39x128xbf16>, vector<128x8xbf16>, vector<39x8xf32> -> vector<39x8xf32>
    %c0_23 = arith.constant 0 : index
    %c3 = arith.constant 3 : index
    %c0_24 = arith.constant 0 : index
    %c0_25 = arith.constant 0 : index
    %17 = vector.load %arg2[%c0_23, %c3, %c0_24, %c0_25] : memref<1x4x39x128xbf16, #tpu.memory_space<vmem>>, vector<1x1x39x128xbf16>
    %18 = vector.shape_cast %17 : vector<1x1x39x128xbf16> to vector<39x128xbf16>
    %c3_26 = arith.constant 3 : index
    %c0_27 = arith.constant 0 : index
    %c0_28 = arith.constant 0 : index
    %19 = vector.load %arg3[%c3_26, %c0_27, %c0_28] : memref<4x128x8xbf16, #tpu.memory_space<vmem>>, vector<1x128x8xbf16>
    %20 = vector.shape_cast %19 : vector<1x128x8xbf16> to vector<128x8xbf16>
    %cst_29 = arith.constant dense<0.000000e+00> : vector<39x8xf32>
    %21 = tpu.matmul %18, %20, %cst_29 {dimension_numbers = #tpu.dot_dimension_numbers<[1], [0], [0], [1], [0, 0, 1, 1], [], []>} : vector<39x128xbf16>, vector<128x8xbf16>, vector<39x8xf32> -> vector<39x8xf32>
    %22 = tpu.concatenate %6, %11, %16, %21 in 1 : vector<39x8xf32>, vector<39x8xf32>, vector<39x8xf32>, vector<39x8xf32> -> vector<39x32xf32>
    %c0_30 = arith.constant 0 : index
    %c0_31 = arith.constant 0 : index
    %23 = vector.load %arg4[%c0_30, %c0_31] : memref<1x32xf32, #tpu.memory_space<vmem>>, vector<1x32xf32>
    %24 = vector.broadcast %23 : vector<1x32xf32> to vector<39x32xf32>
    %25 = arith.addf %22, %24 : vector<39x32xf32>
    %cst_32 = arith.constant 5.000000e-01 : f32
    %26 = vector.broadcast %cst_32 : f32 to vector<39x32xf32>
    %27 = arith.mulf %26, %25 : vector<39x32xf32>
    %cst_33 = arith.constant 4.471500e-02 : f32
    %28 = vector.broadcast %cst_33 : f32 to vector<39x32xf32>
    %29 = arith.mulf %28, %25 : vector<39x32xf32>
    %30 = arith.mulf %29, %25 : vector<39x32xf32>
    %31 = arith.mulf %30, %25 : vector<39x32xf32>
    %32 = arith.addf %25, %31 : vector<39x32xf32>
    %cst_34 = arith.constant 0.797884583 : f32
    %33 = vector.broadcast %cst_34 : f32 to vector<39x32xf32>
    %34 = arith.mulf %33, %32 : vector<39x32xf32>
    %35 = math.tanh %34 : vector<39x32xf32>
    %cst_35 = arith.constant 1.000000e+00 : f32
    %36 = vector.broadcast %cst_35 : f32 to vector<39x32xf32>
    %37 = arith.addf %36, %35 : vector<39x32xf32>
    %38 = arith.mulf %27, %37 : vector<39x32xf32>
    %39 = arith.addf %1, %38 : vector<39x32xf32>
    %c0_36 = arith.constant 0 : index
    %c0_37 = arith.constant 0 : index
    %40 = vector.load %arg5[%c0_36, %c0_37] : memref<1x32xf32, #tpu.memory_space<vmem>>, vector<1x32xf32>
    %c0_38 = arith.constant 0 : index
    %c0_39 = arith.constant 0 : index
    %41 = vector.load %arg6[%c0_38, %c0_39] : memref<1x32xf32, #tpu.memory_space<vmem>>, vector<1x32xf32>
    %cst_40 = arith.constant dense<0.000000e+00> : vector<39xf32>
    %42 = vector.multi_reduction <add>, %39, %cst_40 [1] : vector<39x32xf32> to vector<39xf32>
    %43 = vector.shape_cast %42 : vector<39xf32> to vector<39x1xf32>
    %cst_41 = arith.constant 3.200000e+01 : f32
    %44 = vector.broadcast %cst_41 : f32 to vector<39x1xf32>
    %45 = arith.divf %43, %44 : vector<39x1xf32>
    %46 = vector.broadcast %45 : vector<39x1xf32> to vector<39x32xf32>
    %47 = arith.subf %39, %46 : vector<39x32xf32>
    %48 = arith.mulf %47, %47 : vector<39x32xf32>
    %cst_42 = arith.constant dense<0.000000e+00> : vector<39xf32>
    %49 = vector.multi_reduction <add>, %48, %cst_42 [1] : vector<39x32xf32> to vector<39xf32>
    %50 = vector.shape_cast %49 : vector<39xf32> to vector<39x1xf32>
    %cst_43 = arith.constant 3.200000e+01 : f32
    %51 = vector.broadcast %cst_43 : f32 to vector<39x1xf32>
    %52 = arith.divf %50, %51 : vector<39x1xf32>
    %53 = vector.broadcast %45 : vector<39x1xf32> to vector<39x32xf32>
    %54 = arith.subf %39, %53 : vector<39x32xf32>
    %cst_44 = arith.constant 9.99999974E-6 : f32
    %55 = vector.broadcast %cst_44 : f32 to vector<39x1xf32>
    %56 = arith.addf %52, %55 : vector<39x1xf32>
    %57 = math.rsqrt %56 : vector<39x1xf32>
    %58 = vector.broadcast %57 : vector<39x1xf32> to vector<39x32xf32>
    %59 = arith.mulf %54, %58 : vector<39x32xf32>
    %60 = vector.broadcast %40 : vector<1x32xf32> to vector<39x32xf32>
    %61 = arith.mulf %59, %60 : vector<39x32xf32>
    %62 = vector.broadcast %41 : vector<1x32xf32> to vector<39x32xf32>
    %63 = arith.addf %61, %62 : vector<39x32xf32>
    %c0_45 = arith.constant 0 : index
    %c0_46 = arith.constant 0 : index
    %c0_47 = arith.constant 0 : index
    %64 = vector.load %arg7[%c0_45, %c0_46, %c0_47] : memref<1x39x32xf32, #tpu.memory_space<vmem>>, vector<1x39x32xf32>
    %65 = vector.shape_cast %64 : vector<1x39x32xf32> to vector<39x32xf32>
    %66 = vector.shape_cast %63 : vector<39x32xf32> to vector<1x39x32xf32>
    tpu.vector_store %arg7[%c0_45, %c0_46, %c0_47], %66 {strides = array<i32>} : memref<1x39x32xf32, #tpu.memory_space<vmem>>, vector<1x39x32xf32>,
    return
  }
  func.func @transform_0(%arg0: i32) -> (i32, i32, i32) {
    %c0_i32 = arith.constant 0 : i32
    %c0_i32_0 = arith.constant 0 : i32
    %c0_i32_1 = arith.constant 0 : i32
    return %arg0, %c0_i32, %c0_i32_0 : i32, i32, i32
  }
  func.func @transform_1(%arg0: i32) -> (i32, i32, i32, i32) {
    %c0_i32 = arith.constant 0 : i32
    %c0_i32_0 = arith.constant 0 : i32
    %c0_i32_1 = arith.constant 0 : i32
    %c0_i32_2 = arith.constant 0 : i32
    return %arg0, %c0_i32, %c0_i32_0, %c0_i32_1 : i32, i32, i32, i32
  }
  func.func @transform_2(%arg0: i32) -> (i32, i32, i32) {
    %c0_i32 = arith.constant 0 : i32
    %c0_i32_0 = arith.constant 0 : i32
    %c0_i32_1 = arith.constant 0 : i32
    %c0_i32_2 = arith.constant 0 : i32
    return %c0_i32, %c0_i32_0, %c0_i32_1 : i32, i32, i32
  }
  func.func @transform_3(%arg0: i32) -> (i32, i32) {
    %c0_i32 = arith.constant 0 : i32
    %c0_i32_0 = arith.constant 0 : i32
    %c0_i32_1 = arith.constant 0 : i32
    return %c0_i32, %c0_i32_0 : i32, i32
  }
  func.func @transform_4(%arg0: i32) -> (i32, i32) {
    %c0_i32 = arith.constant 0 : i32
    %c0_i32_0 = arith.constant 0 : i32
    %c0_i32_1 = arith.constant 0 : i32
    return %c0_i32, %c0_i32_0 : i32, i32
  }
  func.func @transform_5(%arg0: i32) -> (i32, i32) {
    %c0_i32 = arith.constant 0 : i32
    %c0_i32_0 = arith.constant 0 : i32
    %c0_i32_1 = arith.constant 0 : i32
    return %c0_i32, %c0_i32_0 : i32, i32
  }
  func.func @transform_6(%arg0: i32) -> (i32, i32, i32) {
    %c0_i32 = arith.constant 0 : i32
    %c0_i32_0 = arith.constant 0 : i32
    %c0_i32_1 = arith.constant 0 : i32
    return %arg0, %c0_i32, %c0_i32_0 : i32, i32, i32
  }
}

module attributes {stable_mosaic.version = 11 : i64} {
  func.func @_encoder_layer_kernel(%arg0: i32, %arg1: memref<1x39x32xf32, #tpu.memory_space<vmem>>, %arg2: memref<32x96xbf16, #tpu.memory_space<vmem>>, %arg3: memref<1x96xf32, #tpu.memory_space<vmem>>, %arg4: memref<2x8xf32, #tpu.memory_space<vmem>>, %arg5: memref<1x2xf32, #tpu.memory_space<vmem>>, %arg6: memref<1x4xf32, #tpu.memory_space<vmem>>, %arg7: memref<4x39x39xbf16, #tpu.memory_space<vmem>>, %arg8: memref<32x32xbf16, #tpu.memory_space<vmem>>, %arg9: memref<1x32xf32, #tpu.memory_space<vmem>>, %arg10: memref<1x32xf32, #tpu.memory_space<vmem>>, %arg11: memref<1x32xf32, #tpu.memory_space<vmem>>, %arg12: memref<32x64xbf16, #tpu.memory_space<vmem>>, %arg13: memref<1x64xf32, #tpu.memory_space<vmem>>, %arg14: memref<64x32xbf16, #tpu.memory_space<vmem>>, %arg15: memref<1x32xf32, #tpu.memory_space<vmem>>, %arg16: memref<1x32xf32, #tpu.memory_space<vmem>>, %arg17: memref<1x32xf32, #tpu.memory_space<vmem>>, %arg18: memref<1x39x32xf32, #tpu.memory_space<vmem>>) attributes {dimension_semantics = [#tpu.dimension_semantics<parallel>], iteration_bounds = array<i64: 2>, scalar_prefetch = 0 : i64, scratch_operands = 0 : i64, tpu.core_type = #tpu.core_type<tc>, window_params = [{transform_indices = @transform_0, window_bounds = array<i64: 1, 39, 32>}, {pipeline_mode = #tpu.pipeline_mode<synchronous>, transform_indices = @transform_1, window_bounds = array<i64: 32, 96>}, {pipeline_mode = #tpu.pipeline_mode<synchronous>, transform_indices = @transform_2, window_bounds = array<i64: 1, 96>}, {pipeline_mode = #tpu.pipeline_mode<synchronous>, transform_indices = @transform_3, window_bounds = array<i64: 2, 8>}, {pipeline_mode = #tpu.pipeline_mode<synchronous>, transform_indices = @transform_4, window_bounds = array<i64: 1, 2>}, {pipeline_mode = #tpu.pipeline_mode<synchronous>, transform_indices = @transform_5, window_bounds = array<i64: 1, 4>}, {pipeline_mode = #tpu.pipeline_mode<synchronous>, transform_indices = @transform_6, window_bounds = array<i64: 4, 39, 39>}, {pipeline_mode = #tpu.pipeline_mode<synchronous>, transform_indices = @transform_7, window_bounds = array<i64: 32, 32>}, {pipeline_mode = #tpu.pipeline_mode<synchronous>, transform_indices = @transform_8, window_bounds = array<i64: 1, 32>}, {pipeline_mode = #tpu.pipeline_mode<synchronous>, transform_indices = @transform_9, window_bounds = array<i64: 1, 32>}, {pipeline_mode = #tpu.pipeline_mode<synchronous>, transform_indices = @transform_10, window_bounds = array<i64: 1, 32>}, {pipeline_mode = #tpu.pipeline_mode<synchronous>, transform_indices = @transform_11, window_bounds = array<i64: 32, 64>}, {pipeline_mode = #tpu.pipeline_mode<synchronous>, transform_indices = @transform_12, window_bounds = array<i64: 1, 64>}, {pipeline_mode = #tpu.pipeline_mode<synchronous>, transform_indices = @transform_13, window_bounds = array<i64: 64, 32>}, {pipeline_mode = #tpu.pipeline_mode<synchronous>, transform_indices = @transform_14, window_bounds = array<i64: 1, 32>}, {pipeline_mode = #tpu.pipeline_mode<synchronous>, transform_indices = @transform_15, window_bounds = array<i64: 1, 32>}, {pipeline_mode = #tpu.pipeline_mode<synchronous>, transform_indices = @transform_16, window_bounds = array<i64: 1, 32>}, {transform_indices = @transform_17, window_bounds = array<i64: 1, 39, 32>}]} {
    %c0 = arith.constant 0 : index
    %c0_0 = arith.constant 0 : index
    %c0_1 = arith.constant 0 : index
    %0 = vector.load %arg1[%c0, %c0_0, %c0_1] : memref<1x39x32xf32, #tpu.memory_space<vmem>>, vector<1x39x32xf32>
    %1 = vector.shape_cast %0 : vector<1x39x32xf32> to vector<39x32xf32>
    %2 = arith.truncf %1 : vector<39x32xf32> to vector<39x32xbf16>
    %c0_2 = arith.constant 0 : index
    %c0_3 = arith.constant 0 : index
    %3 = vector.load %arg2[%c0_2, %c0_3] : memref<32x96xbf16, #tpu.memory_space<vmem>>, vector<32x96xbf16>
    %cst = arith.constant dense<0.000000e+00> : vector<39x96xf32>
    %4 = tpu.matmul %2, %3, %cst {dimension_numbers = #tpu.dot_dimension_numbers<[1], [0], [0], [1], [0, 0, 1, 1], [], []>} : vector<39x32xbf16>, vector<32x96xbf16>, vector<39x96xf32> -> vector<39x96xf32>
    %c0_4 = arith.constant 0 : index
    %c0_5 = arith.constant 0 : index
    %5 = vector.load %arg3[%c0_4, %c0_5] : memref<1x96xf32, #tpu.memory_space<vmem>>, vector<1x96xf32>
    %6 = vector.broadcast %5 : vector<1x96xf32> to vector<39x96xf32>
    %7 = arith.addf %4, %6 : vector<39x96xf32>
    %c0_6 = arith.constant 0 : index
    %c0_7 = arith.constant 0 : index
    %8 = vector.load %arg9[%c0_6, %c0_7] : memref<1x32xf32, #tpu.memory_space<vmem>>, vector<1x32xf32>
    %9 = vector.broadcast %8 : vector<1x32xf32> to vector<39x32xf32>
    %10 = arith.addf %1, %9 : vector<39x32xf32>
    %11 = vector.extract_strided_slice %7 {offsets = [0, 0], sizes = [39, 8], strides = [1, 1]} : vector<39x96xf32> to vector<39x8xf32>
    %12 = vector.extract_strided_slice %7 {offsets = [0, 32], sizes = [39, 8], strides = [1, 1]} : vector<39x96xf32> to vector<39x8xf32>
    %13 = vector.extract_strided_slice %7 {offsets = [0, 64], sizes = [39, 8], strides = [1, 1]} : vector<39x96xf32> to vector<39x8xf32>
    %14 = vector.extract_strided_slice %1 {offsets = [0, 0], sizes = [39, 8], strides = [1, 1]} : vector<39x32xf32> to vector<39x8xf32>
    %c0_8 = arith.constant 0 : index
    %c0_9 = arith.constant 0 : index
    %15 = vector.load %arg4[%c0_8, %c0_9] : memref<2x8xf32, #tpu.memory_space<vmem>>, vector<1x8xf32>
    %16 = vector.broadcast %15 : vector<1x8xf32> to vector<39x8xf32>
    %17 = arith.mulf %14, %16 : vector<39x8xf32>
    %cst_10 = arith.constant dense<0.000000e+00> : vector<39xf32>
    %18 = vector.multi_reduction <add>, %17, %cst_10 [1] : vector<39x8xf32> to vector<39xf32>
    %19 = vector.shape_cast %18 : vector<39xf32> to vector<39x1xf32>
    %c0_11 = arith.constant 0 : index
    %c0_12 = arith.constant 0 : index
    %20 = vector.load %arg5[%c0_11, %c0_12] : memref<1x2xf32, #tpu.memory_space<vmem>>, vector<1x1xf32>
    %21 = vector.broadcast %20 : vector<1x1xf32> to vector<39x1xf32>
    %22 = arith.addf %19, %21 : vector<39x1xf32>
    %c1 = arith.constant 1 : index
    %c0_13 = arith.constant 0 : index
    %23 = vector.load %arg4[%c1, %c0_13] : memref<2x8xf32, #tpu.memory_space<vmem>>, vector<1x8xf32>
    %24 = vector.broadcast %23 : vector<1x8xf32> to vector<39x8xf32>
    %25 = arith.mulf %14, %24 : vector<39x8xf32>
    %cst_14 = arith.constant dense<0.000000e+00> : vector<39xf32>
    %26 = vector.multi_reduction <add>, %25, %cst_14 [1] : vector<39x8xf32> to vector<39xf32>
    %27 = vector.shape_cast %26 : vector<39xf32> to vector<39x1xf32>
    %c0_15 = arith.constant 0 : index
    %c1_16 = arith.constant 1 : index
    %28 = vector.load %arg5[%c0_15, %c1_16] : memref<1x2xf32, #tpu.memory_space<vmem>>, vector<1x1xf32>
    %29 = vector.broadcast %28 : vector<1x1xf32> to vector<39x1xf32>
    %30 = arith.addf %27, %29 : vector<39x1xf32>
    %31 = arith.negf %22 : vector<39x1xf32>
    %32 = math.exp %31 : vector<39x1xf32>
    %cst_17 = arith.constant 1.000000e+00 : f32
    %33 = vector.broadcast %cst_17 : f32 to vector<39x1xf32>
    %34 = arith.addf %33, %32 : vector<39x1xf32>
    %35 = arith.divf %33, %34 : vector<39x1xf32>
    %36 = arith.negf %30 : vector<39x1xf32>
    %37 = math.exp %36 : vector<39x1xf32>
    %cst_18 = arith.constant 1.000000e+00 : f32
    %38 = vector.broadcast %cst_18 : f32 to vector<39x1xf32>
    %39 = arith.addf %38, %37 : vector<39x1xf32>
    %40 = arith.divf %38, %39 : vector<39x1xf32>
    %c0_19 = arith.constant 0 : index
    %c0_20 = arith.constant 0 : index
    %41 = vector.load %arg6[%c0_19, %c0_20] : memref<1x4xf32, #tpu.memory_space<vmem>>, vector<1x1xf32>
    %42 = vector.broadcast %41 : vector<1x1xf32> to vector<39x1xf32>
    %43 = arith.mulf %40, %42 : vector<39x1xf32>
    %cst_21 = arith.constant 1.000000e+00 : f32
    %44 = vector.broadcast %cst_21 : f32 to vector<39x1xf32>
    %45 = arith.subf %43, %44 : vector<39x1xf32>
    %46 = arith.mulf %35, %45 : vector<39x1xf32>
    %cst_22 = arith.constant 2.000000e+00 : f32
    %47 = vector.broadcast %cst_22 : f32 to vector<39x1xf32>
    %48 = arith.addf %46, %47 : vector<39x1xf32>
    %c0_23 = arith.constant 0 : index
    %c0_24 = arith.constant 0 : index
    %c0_25 = arith.constant 0 : index
    %49 = vector.load %arg7[%c0_23, %c0_24, %c0_25] : memref<4x39x39xbf16, #tpu.memory_space<vmem>>, vector<1x39x39xbf16>
    %50 = vector.shape_cast %49 : vector<1x39x39xbf16> to vector<39x39xbf16>
    %51 = arith.extf %50 : vector<39x39xbf16> to vector<39x39xf32>
    %52 = vector.broadcast %48 : vector<39x1xf32> to vector<39x39xf32>
    %53 = arith.mulf %52, %51 : vector<39x39xf32>
    %54 = arith.truncf %11 : vector<39x8xf32> to vector<39x8xbf16>
    %55 = arith.truncf %12 : vector<39x8xf32> to vector<39x8xbf16>
    %cst_26 = arith.constant dense<0.000000e+00> : vector<39x39xf32>
    %56 = tpu.matmul %54, %55, %cst_26 {dimension_numbers = #tpu.dot_dimension_numbers<[1], [1], [0], [0], [0, 0, 1, 0], [], []>} : vector<39x8xbf16>, vector<39x8xbf16>, vector<39x39xf32> -> vector<39x39xf32>
    %cst_27 = arith.constant 0.353553385 : f32
    %57 = vector.broadcast %cst_27 : f32 to vector<39x39xf32>
    %58 = arith.mulf %56, %57 : vector<39x39xf32>
    %59 = arith.addf %58, %53 : vector<39x39xf32>
    %cst_28 = arith.constant dense<0xFF800000> : vector<39xf32>
    %60 = vector.multi_reduction <maximumf>, %59, %cst_28 [1] : vector<39x39xf32> to vector<39xf32>
    %61 = vector.shape_cast %60 : vector<39xf32> to vector<39x1xf32>
    %62 = vector.broadcast %61 : vector<39x1xf32> to vector<39x39xf32>
    %63 = arith.subf %59, %62 : vector<39x39xf32>
    %64 = math.exp %63 : vector<39x39xf32>
    %cst_29 = arith.constant dense<0.000000e+00> : vector<39xf32>
    %65 = vector.multi_reduction <add>, %64, %cst_29 [1] : vector<39x39xf32> to vector<39xf32>
    %66 = vector.shape_cast %65 : vector<39xf32> to vector<39x1xf32>
    %67 = tpu.reciprocal %66 {approx = true} : vector<39x1xf32> -> vector<39x1xf32>
    %68 = vector.broadcast %67 : vector<39x1xf32> to vector<39x39xf32>
    %69 = arith.mulf %64, %68 : vector<39x39xf32>
    %70 = arith.truncf %69 : vector<39x39xf32> to vector<39x39xbf16>
    %71 = arith.truncf %13 : vector<39x8xf32> to vector<39x8xbf16>
    %cst_30 = arith.constant dense<0.000000e+00> : vector<39x8xf32>
    %72 = tpu.matmul %70, %71, %cst_30 {dimension_numbers = #tpu.dot_dimension_numbers<[1], [0], [0], [1], [0, 0, 1, 1], [], []>} : vector<39x39xbf16>, vector<39x8xbf16>, vector<39x8xf32> -> vector<39x8xf32>
    %73 = arith.truncf %72 : vector<39x8xf32> to vector<39x8xbf16>
    %c0_31 = arith.constant 0 : index
    %c0_32 = arith.constant 0 : index
    %74 = vector.load %arg8[%c0_31, %c0_32] : memref<32x32xbf16, #tpu.memory_space<vmem>>, vector<8x32xbf16>
    %cst_33 = arith.constant dense<0.000000e+00> : vector<39x32xf32>
    %75 = tpu.matmul %73, %74, %cst_33 {dimension_numbers = #tpu.dot_dimension_numbers<[1], [0], [0], [1], [0, 0, 1, 1], [], []>} : vector<39x8xbf16>, vector<8x32xbf16>, vector<39x32xf32> -> vector<39x32xf32>
    %76 = arith.addf %10, %75 : vector<39x32xf32>
    %77 = vector.extract_strided_slice %7 {offsets = [0, 8], sizes = [39, 8], strides = [1, 1]} : vector<39x96xf32> to vector<39x8xf32>
    %78 = vector.extract_strided_slice %7 {offsets = [0, 40], sizes = [39, 8], strides = [1, 1]} : vector<39x96xf32> to vector<39x8xf32>
    %79 = vector.extract_strided_slice %7 {offsets = [0, 72], sizes = [39, 8], strides = [1, 1]} : vector<39x96xf32> to vector<39x8xf32>
    %80 = vector.extract_strided_slice %1 {offsets = [0, 8], sizes = [39, 8], strides = [1, 1]} : vector<39x32xf32> to vector<39x8xf32>
    %c0_34 = arith.constant 0 : index
    %c0_35 = arith.constant 0 : index
    %81 = vector.load %arg4[%c0_34, %c0_35] : memref<2x8xf32, #tpu.memory_space<vmem>>, vector<1x8xf32>
    %82 = vector.broadcast %81 : vector<1x8xf32> to vector<39x8xf32>
    %83 = arith.mulf %80, %82 : vector<39x8xf32>
    %cst_36 = arith.constant dense<0.000000e+00> : vector<39xf32>
    %84 = vector.multi_reduction <add>, %83, %cst_36 [1] : vector<39x8xf32> to vector<39xf32>
    %85 = vector.shape_cast %84 : vector<39xf32> to vector<39x1xf32>
    %c0_37 = arith.constant 0 : index
    %c0_38 = arith.constant 0 : index
    %86 = vector.load %arg5[%c0_37, %c0_38] : memref<1x2xf32, #tpu.memory_space<vmem>>, vector<1x1xf32>
    %87 = vector.broadcast %86 : vector<1x1xf32> to vector<39x1xf32>
    %88 = arith.addf %85, %87 : vector<39x1xf32>
    %c1_39 = arith.constant 1 : index
    %c0_40 = arith.constant 0 : index
    %89 = vector.load %arg4[%c1_39, %c0_40] : memref<2x8xf32, #tpu.memory_space<vmem>>, vector<1x8xf32>
    %90 = vector.broadcast %89 : vector<1x8xf32> to vector<39x8xf32>
    %91 = arith.mulf %80, %90 : vector<39x8xf32>
    %cst_41 = arith.constant dense<0.000000e+00> : vector<39xf32>
    %92 = vector.multi_reduction <add>, %91, %cst_41 [1] : vector<39x8xf32> to vector<39xf32>
    %93 = vector.shape_cast %92 : vector<39xf32> to vector<39x1xf32>
    %c0_42 = arith.constant 0 : index
    %c1_43 = arith.constant 1 : index
    %94 = vector.load %arg5[%c0_42, %c1_43] : memref<1x2xf32, #tpu.memory_space<vmem>>, vector<1x1xf32>
    %95 = vector.broadcast %94 : vector<1x1xf32> to vector<39x1xf32>
    %96 = arith.addf %93, %95 : vector<39x1xf32>
    %97 = arith.negf %88 : vector<39x1xf32>
    %98 = math.exp %97 : vector<39x1xf32>
    %cst_44 = arith.constant 1.000000e+00 : f32
    %99 = vector.broadcast %cst_44 : f32 to vector<39x1xf32>
    %100 = arith.addf %99, %98 : vector<39x1xf32>
    %101 = arith.divf %99, %100 : vector<39x1xf32>
    %102 = arith.negf %96 : vector<39x1xf32>
    %103 = math.exp %102 : vector<39x1xf32>
    %cst_45 = arith.constant 1.000000e+00 : f32
    %104 = vector.broadcast %cst_45 : f32 to vector<39x1xf32>
    %105 = arith.addf %104, %103 : vector<39x1xf32>
    %106 = arith.divf %104, %105 : vector<39x1xf32>
    %c0_46 = arith.constant 0 : index
    %c1_47 = arith.constant 1 : index
    %107 = vector.load %arg6[%c0_46, %c1_47] : memref<1x4xf32, #tpu.memory_space<vmem>>, vector<1x1xf32>
    %108 = vector.broadcast %107 : vector<1x1xf32> to vector<39x1xf32>
    %109 = arith.mulf %106, %108 : vector<39x1xf32>
    %cst_48 = arith.constant 1.000000e+00 : f32
    %110 = vector.broadcast %cst_48 : f32 to vector<39x1xf32>
    %111 = arith.subf %109, %110 : vector<39x1xf32>
    %112 = arith.mulf %101, %111 : vector<39x1xf32>
    %cst_49 = arith.constant 2.000000e+00 : f32
    %113 = vector.broadcast %cst_49 : f32 to vector<39x1xf32>
    %114 = arith.addf %112, %113 : vector<39x1xf32>
    %c1_50 = arith.constant 1 : index
    %c0_51 = arith.constant 0 : index
    %c0_52 = arith.constant 0 : index
    %115 = vector.load %arg7[%c1_50, %c0_51, %c0_52] : memref<4x39x39xbf16, #tpu.memory_space<vmem>>, vector<1x39x39xbf16>
    %116 = vector.shape_cast %115 : vector<1x39x39xbf16> to vector<39x39xbf16>
    %117 = arith.extf %116 : vector<39x39xbf16> to vector<39x39xf32>
    %118 = vector.broadcast %114 : vector<39x1xf32> to vector<39x39xf32>
    %119 = arith.mulf %118, %117 : vector<39x39xf32>
    %120 = arith.truncf %77 : vector<39x8xf32> to vector<39x8xbf16>
    %121 = arith.truncf %78 : vector<39x8xf32> to vector<39x8xbf16>
    %cst_53 = arith.constant dense<0.000000e+00> : vector<39x39xf32>
    %122 = tpu.matmul %120, %121, %cst_53 {dimension_numbers = #tpu.dot_dimension_numbers<[1], [1], [0], [0], [0, 0, 1, 0], [], []>} : vector<39x8xbf16>, vector<39x8xbf16>, vector<39x39xf32> -> vector<39x39xf32>
    %cst_54 = arith.constant 0.353553385 : f32
    %123 = vector.broadcast %cst_54 : f32 to vector<39x39xf32>
    %124 = arith.mulf %122, %123 : vector<39x39xf32>
    %125 = arith.addf %124, %119 : vector<39x39xf32>
    %cst_55 = arith.constant dense<0xFF800000> : vector<39xf32>
    %126 = vector.multi_reduction <maximumf>, %125, %cst_55 [1] : vector<39x39xf32> to vector<39xf32>
    %127 = vector.shape_cast %126 : vector<39xf32> to vector<39x1xf32>
    %128 = vector.broadcast %127 : vector<39x1xf32> to vector<39x39xf32>
    %129 = arith.subf %125, %128 : vector<39x39xf32>
    %130 = math.exp %129 : vector<39x39xf32>
    %cst_56 = arith.constant dense<0.000000e+00> : vector<39xf32>
    %131 = vector.multi_reduction <add>, %130, %cst_56 [1] : vector<39x39xf32> to vector<39xf32>
    %132 = vector.shape_cast %131 : vector<39xf32> to vector<39x1xf32>
    %133 = tpu.reciprocal %132 {approx = true} : vector<39x1xf32> -> vector<39x1xf32>
    %134 = vector.broadcast %133 : vector<39x1xf32> to vector<39x39xf32>
    %135 = arith.mulf %130, %134 : vector<39x39xf32>
    %136 = arith.truncf %135 : vector<39x39xf32> to vector<39x39xbf16>
    %137 = arith.truncf %79 : vector<39x8xf32> to vector<39x8xbf16>
    %cst_57 = arith.constant dense<0.000000e+00> : vector<39x8xf32>
    %138 = tpu.matmul %136, %137, %cst_57 {dimension_numbers = #tpu.dot_dimension_numbers<[1], [0], [0], [1], [0, 0, 1, 1], [], []>} : vector<39x39xbf16>, vector<39x8xbf16>, vector<39x8xf32> -> vector<39x8xf32>
    %139 = arith.truncf %138 : vector<39x8xf32> to vector<39x8xbf16>
    %c8 = arith.constant 8 : index
    %c0_58 = arith.constant 0 : index
    %140 = vector.load %arg8[%c8, %c0_58] : memref<32x32xbf16, #tpu.memory_space<vmem>>, vector<8x32xbf16>
    %cst_59 = arith.constant dense<0.000000e+00> : vector<39x32xf32>
    %141 = tpu.matmul %139, %140, %cst_59 {dimension_numbers = #tpu.dot_dimension_numbers<[1], [0], [0], [1], [0, 0, 1, 1], [], []>} : vector<39x8xbf16>, vector<8x32xbf16>, vector<39x32xf32> -> vector<39x32xf32>
    %142 = arith.addf %76, %141 : vector<39x32xf32>
    %143 = vector.extract_strided_slice %7 {offsets = [0, 16], sizes = [39, 8], strides = [1, 1]} : vector<39x96xf32> to vector<39x8xf32>
    %144 = vector.extract_strided_slice %7 {offsets = [0, 48], sizes = [39, 8], strides = [1, 1]} : vector<39x96xf32> to vector<39x8xf32>
    %145 = vector.extract_strided_slice %7 {offsets = [0, 80], sizes = [39, 8], strides = [1, 1]} : vector<39x96xf32> to vector<39x8xf32>
    %146 = vector.extract_strided_slice %1 {offsets = [0, 16], sizes = [39, 8], strides = [1, 1]} : vector<39x32xf32> to vector<39x8xf32>
    %c0_60 = arith.constant 0 : index
    %c0_61 = arith.constant 0 : index
    %147 = vector.load %arg4[%c0_60, %c0_61] : memref<2x8xf32, #tpu.memory_space<vmem>>, vector<1x8xf32>
    %148 = vector.broadcast %147 : vector<1x8xf32> to vector<39x8xf32>
    %149 = arith.mulf %146, %148 : vector<39x8xf32>
    %cst_62 = arith.constant dense<0.000000e+00> : vector<39xf32>
    %150 = vector.multi_reduction <add>, %149, %cst_62 [1] : vector<39x8xf32> to vector<39xf32>
    %151 = vector.shape_cast %150 : vector<39xf32> to vector<39x1xf32>
    %c0_63 = arith.constant 0 : index
    %c0_64 = arith.constant 0 : index
    %152 = vector.load %arg5[%c0_63, %c0_64] : memref<1x2xf32, #tpu.memory_space<vmem>>, vector<1x1xf32>
    %153 = vector.broadcast %152 : vector<1x1xf32> to vector<39x1xf32>
    %154 = arith.addf %151, %153 : vector<39x1xf32>
    %c1_65 = arith.constant 1 : index
    %c0_66 = arith.constant 0 : index
    %155 = vector.load %arg4[%c1_65, %c0_66] : memref<2x8xf32, #tpu.memory_space<vmem>>, vector<1x8xf32>
    %156 = vector.broadcast %155 : vector<1x8xf32> to vector<39x8xf32>
    %157 = arith.mulf %146, %156 : vector<39x8xf32>
    %cst_67 = arith.constant dense<0.000000e+00> : vector<39xf32>
    %158 = vector.multi_reduction <add>, %157, %cst_67 [1] : vector<39x8xf32> to vector<39xf32>
    %159 = vector.shape_cast %158 : vector<39xf32> to vector<39x1xf32>
    %c0_68 = arith.constant 0 : index
    %c1_69 = arith.constant 1 : index
    %160 = vector.load %arg5[%c0_68, %c1_69] : memref<1x2xf32, #tpu.memory_space<vmem>>, vector<1x1xf32>
    %161 = vector.broadcast %160 : vector<1x1xf32> to vector<39x1xf32>
    %162 = arith.addf %159, %161 : vector<39x1xf32>
    %163 = arith.negf %154 : vector<39x1xf32>
    %164 = math.exp %163 : vector<39x1xf32>
    %cst_70 = arith.constant 1.000000e+00 : f32
    %165 = vector.broadcast %cst_70 : f32 to vector<39x1xf32>
    %166 = arith.addf %165, %164 : vector<39x1xf32>
    %167 = arith.divf %165, %166 : vector<39x1xf32>
    %168 = arith.negf %162 : vector<39x1xf32>
    %169 = math.exp %168 : vector<39x1xf32>
    %cst_71 = arith.constant 1.000000e+00 : f32
    %170 = vector.broadcast %cst_71 : f32 to vector<39x1xf32>
    %171 = arith.addf %170, %169 : vector<39x1xf32>
    %172 = arith.divf %170, %171 : vector<39x1xf32>
    %c0_72 = arith.constant 0 : index
    %c2 = arith.constant 2 : index
    %173 = vector.load %arg6[%c0_72, %c2] : memref<1x4xf32, #tpu.memory_space<vmem>>, vector<1x1xf32>
    %174 = vector.broadcast %173 : vector<1x1xf32> to vector<39x1xf32>
    %175 = arith.mulf %172, %174 : vector<39x1xf32>
    %cst_73 = arith.constant 1.000000e+00 : f32
    %176 = vector.broadcast %cst_73 : f32 to vector<39x1xf32>
    %177 = arith.subf %175, %176 : vector<39x1xf32>
    %178 = arith.mulf %167, %177 : vector<39x1xf32>
    %cst_74 = arith.constant 2.000000e+00 : f32
    %179 = vector.broadcast %cst_74 : f32 to vector<39x1xf32>
    %180 = arith.addf %178, %179 : vector<39x1xf32>
    %c2_75 = arith.constant 2 : index
    %c0_76 = arith.constant 0 : index
    %c0_77 = arith.constant 0 : index
    %181 = vector.load %arg7[%c2_75, %c0_76, %c0_77] : memref<4x39x39xbf16, #tpu.memory_space<vmem>>, vector<1x39x39xbf16>
    %182 = vector.shape_cast %181 : vector<1x39x39xbf16> to vector<39x39xbf16>
    %183 = arith.extf %182 : vector<39x39xbf16> to vector<39x39xf32>
    %184 = vector.broadcast %180 : vector<39x1xf32> to vector<39x39xf32>
    %185 = arith.mulf %184, %183 : vector<39x39xf32>
    %186 = arith.truncf %143 : vector<39x8xf32> to vector<39x8xbf16>
    %187 = arith.truncf %144 : vector<39x8xf32> to vector<39x8xbf16>
    %cst_78 = arith.constant dense<0.000000e+00> : vector<39x39xf32>
    %188 = tpu.matmul %186, %187, %cst_78 {dimension_numbers = #tpu.dot_dimension_numbers<[1], [1], [0], [0], [0, 0, 1, 0], [], []>} : vector<39x8xbf16>, vector<39x8xbf16>, vector<39x39xf32> -> vector<39x39xf32>
    %cst_79 = arith.constant 0.353553385 : f32
    %189 = vector.broadcast %cst_79 : f32 to vector<39x39xf32>
    %190 = arith.mulf %188, %189 : vector<39x39xf32>
    %191 = arith.addf %190, %185 : vector<39x39xf32>
    %cst_80 = arith.constant dense<0xFF800000> : vector<39xf32>
    %192 = vector.multi_reduction <maximumf>, %191, %cst_80 [1] : vector<39x39xf32> to vector<39xf32>
    %193 = vector.shape_cast %192 : vector<39xf32> to vector<39x1xf32>
    %194 = vector.broadcast %193 : vector<39x1xf32> to vector<39x39xf32>
    %195 = arith.subf %191, %194 : vector<39x39xf32>
    %196 = math.exp %195 : vector<39x39xf32>
    %cst_81 = arith.constant dense<0.000000e+00> : vector<39xf32>
    %197 = vector.multi_reduction <add>, %196, %cst_81 [1] : vector<39x39xf32> to vector<39xf32>
    %198 = vector.shape_cast %197 : vector<39xf32> to vector<39x1xf32>
    %199 = tpu.reciprocal %198 {approx = true} : vector<39x1xf32> -> vector<39x1xf32>
    %200 = vector.broadcast %199 : vector<39x1xf32> to vector<39x39xf32>
    %201 = arith.mulf %196, %200 : vector<39x39xf32>
    %202 = arith.truncf %201 : vector<39x39xf32> to vector<39x39xbf16>
    %203 = arith.truncf %145 : vector<39x8xf32> to vector<39x8xbf16>
    %cst_82 = arith.constant dense<0.000000e+00> : vector<39x8xf32>
    %204 = tpu.matmul %202, %203, %cst_82 {dimension_numbers = #tpu.dot_dimension_numbers<[1], [0], [0], [1], [0, 0, 1, 1], [], []>} : vector<39x39xbf16>, vector<39x8xbf16>, vector<39x8xf32> -> vector<39x8xf32>
    %205 = arith.truncf %204 : vector<39x8xf32> to vector<39x8xbf16>
    %c16 = arith.constant 16 : index
    %c0_83 = arith.constant 0 : index
    %206 = vector.load %arg8[%c16, %c0_83] : memref<32x32xbf16, #tpu.memory_space<vmem>>, vector<8x32xbf16>
    %cst_84 = arith.constant dense<0.000000e+00> : vector<39x32xf32>
    %207 = tpu.matmul %205, %206, %cst_84 {dimension_numbers = #tpu.dot_dimension_numbers<[1], [0], [0], [1], [0, 0, 1, 1], [], []>} : vector<39x8xbf16>, vector<8x32xbf16>, vector<39x32xf32> -> vector<39x32xf32>
    %208 = arith.addf %142, %207 : vector<39x32xf32>
    %209 = vector.extract_strided_slice %7 {offsets = [0, 24], sizes = [39, 8], strides = [1, 1]} : vector<39x96xf32> to vector<39x8xf32>
    %210 = vector.extract_strided_slice %7 {offsets = [0, 56], sizes = [39, 8], strides = [1, 1]} : vector<39x96xf32> to vector<39x8xf32>
    %211 = vector.extract_strided_slice %7 {offsets = [0, 88], sizes = [39, 8], strides = [1, 1]} : vector<39x96xf32> to vector<39x8xf32>
    %212 = vector.extract_strided_slice %1 {offsets = [0, 24], sizes = [39, 8], strides = [1, 1]} : vector<39x32xf32> to vector<39x8xf32>
    %c0_85 = arith.constant 0 : index
    %c0_86 = arith.constant 0 : index
    %213 = vector.load %arg4[%c0_85, %c0_86] : memref<2x8xf32, #tpu.memory_space<vmem>>, vector<1x8xf32>
    %214 = vector.broadcast %213 : vector<1x8xf32> to vector<39x8xf32>
    %215 = arith.mulf %212, %214 : vector<39x8xf32>
    %cst_87 = arith.constant dense<0.000000e+00> : vector<39xf32>
    %216 = vector.multi_reduction <add>, %215, %cst_87 [1] : vector<39x8xf32> to vector<39xf32>
    %217 = vector.shape_cast %216 : vector<39xf32> to vector<39x1xf32>
    %c0_88 = arith.constant 0 : index
    %c0_89 = arith.constant 0 : index
    %218 = vector.load %arg5[%c0_88, %c0_89] : memref<1x2xf32, #tpu.memory_space<vmem>>, vector<1x1xf32>
    %219 = vector.broadcast %218 : vector<1x1xf32> to vector<39x1xf32>
    %220 = arith.addf %217, %219 : vector<39x1xf32>
    %c1_90 = arith.constant 1 : index
    %c0_91 = arith.constant 0 : index
    %221 = vector.load %arg4[%c1_90, %c0_91] : memref<2x8xf32, #tpu.memory_space<vmem>>, vector<1x8xf32>
    %222 = vector.broadcast %221 : vector<1x8xf32> to vector<39x8xf32>
    %223 = arith.mulf %212, %222 : vector<39x8xf32>
    %cst_92 = arith.constant dense<0.000000e+00> : vector<39xf32>
    %224 = vector.multi_reduction <add>, %223, %cst_92 [1] : vector<39x8xf32> to vector<39xf32>
    %225 = vector.shape_cast %224 : vector<39xf32> to vector<39x1xf32>
    %c0_93 = arith.constant 0 : index
    %c1_94 = arith.constant 1 : index
    %226 = vector.load %arg5[%c0_93, %c1_94] : memref<1x2xf32, #tpu.memory_space<vmem>>, vector<1x1xf32>
    %227 = vector.broadcast %226 : vector<1x1xf32> to vector<39x1xf32>
    %228 = arith.addf %225, %227 : vector<39x1xf32>
    %229 = arith.negf %220 : vector<39x1xf32>
    %230 = math.exp %229 : vector<39x1xf32>
    %cst_95 = arith.constant 1.000000e+00 : f32
    %231 = vector.broadcast %cst_95 : f32 to vector<39x1xf32>
    %232 = arith.addf %231, %230 : vector<39x1xf32>
    %233 = arith.divf %231, %232 : vector<39x1xf32>
    %234 = arith.negf %228 : vector<39x1xf32>
    %235 = math.exp %234 : vector<39x1xf32>
    %cst_96 = arith.constant 1.000000e+00 : f32
    %236 = vector.broadcast %cst_96 : f32 to vector<39x1xf32>
    %237 = arith.addf %236, %235 : vector<39x1xf32>
    %238 = arith.divf %236, %237 : vector<39x1xf32>
    %c0_97 = arith.constant 0 : index
    %c3 = arith.constant 3 : index
    %239 = vector.load %arg6[%c0_97, %c3] : memref<1x4xf32, #tpu.memory_space<vmem>>, vector<1x1xf32>
    %240 = vector.broadcast %239 : vector<1x1xf32> to vector<39x1xf32>
    %241 = arith.mulf %238, %240 : vector<39x1xf32>
    %cst_98 = arith.constant 1.000000e+00 : f32
    %242 = vector.broadcast %cst_98 : f32 to vector<39x1xf32>
    %243 = arith.subf %241, %242 : vector<39x1xf32>
    %244 = arith.mulf %233, %243 : vector<39x1xf32>
    %cst_99 = arith.constant 2.000000e+00 : f32
    %245 = vector.broadcast %cst_99 : f32 to vector<39x1xf32>
    %246 = arith.addf %244, %245 : vector<39x1xf32>
    %c3_100 = arith.constant 3 : index
    %c0_101 = arith.constant 0 : index
    %c0_102 = arith.constant 0 : index
    %247 = vector.load %arg7[%c3_100, %c0_101, %c0_102] : memref<4x39x39xbf16, #tpu.memory_space<vmem>>, vector<1x39x39xbf16>
    %248 = vector.shape_cast %247 : vector<1x39x39xbf16> to vector<39x39xbf16>
    %249 = arith.extf %248 : vector<39x39xbf16> to vector<39x39xf32>
    %250 = vector.broadcast %246 : vector<39x1xf32> to vector<39x39xf32>
    %251 = arith.mulf %250, %249 : vector<39x39xf32>
    %252 = arith.truncf %209 : vector<39x8xf32> to vector<39x8xbf16>
    %253 = arith.truncf %210 : vector<39x8xf32> to vector<39x8xbf16>
    %cst_103 = arith.constant dense<0.000000e+00> : vector<39x39xf32>
    %254 = tpu.matmul %252, %253, %cst_103 {dimension_numbers = #tpu.dot_dimension_numbers<[1], [1], [0], [0], [0, 0, 1, 0], [], []>} : vector<39x8xbf16>, vector<39x8xbf16>, vector<39x39xf32> -> vector<39x39xf32>
    %cst_104 = arith.constant 0.353553385 : f32
    %255 = vector.broadcast %cst_104 : f32 to vector<39x39xf32>
    %256 = arith.mulf %254, %255 : vector<39x39xf32>
    %257 = arith.addf %256, %251 : vector<39x39xf32>
    %cst_105 = arith.constant dense<0xFF800000> : vector<39xf32>
    %258 = vector.multi_reduction <maximumf>, %257, %cst_105 [1] : vector<39x39xf32> to vector<39xf32>
    %259 = vector.shape_cast %258 : vector<39xf32> to vector<39x1xf32>
    %260 = vector.broadcast %259 : vector<39x1xf32> to vector<39x39xf32>
    %261 = arith.subf %257, %260 : vector<39x39xf32>
    %262 = math.exp %261 : vector<39x39xf32>
    %cst_106 = arith.constant dense<0.000000e+00> : vector<39xf32>
    %263 = vector.multi_reduction <add>, %262, %cst_106 [1] : vector<39x39xf32> to vector<39xf32>
    %264 = vector.shape_cast %263 : vector<39xf32> to vector<39x1xf32>
    %265 = tpu.reciprocal %264 {approx = true} : vector<39x1xf32> -> vector<39x1xf32>
    %266 = vector.broadcast %265 : vector<39x1xf32> to vector<39x39xf32>
    %267 = arith.mulf %262, %266 : vector<39x39xf32>
    %268 = arith.truncf %267 : vector<39x39xf32> to vector<39x39xbf16>
    %269 = arith.truncf %211 : vector<39x8xf32> to vector<39x8xbf16>
    %cst_107 = arith.constant dense<0.000000e+00> : vector<39x8xf32>
    %270 = tpu.matmul %268, %269, %cst_107 {dimension_numbers = #tpu.dot_dimension_numbers<[1], [0], [0], [1], [0, 0, 1, 1], [], []>} : vector<39x39xbf16>, vector<39x8xbf16>, vector<39x8xf32> -> vector<39x8xf32>
    %271 = arith.truncf %270 : vector<39x8xf32> to vector<39x8xbf16>
    %c24 = arith.constant 24 : index
    %c0_108 = arith.constant 0 : index
    %272 = vector.load %arg8[%c24, %c0_108] : memref<32x32xbf16, #tpu.memory_space<vmem>>, vector<8x32xbf16>
    %cst_109 = arith.constant dense<0.000000e+00> : vector<39x32xf32>
    %273 = tpu.matmul %271, %272, %cst_109 {dimension_numbers = #tpu.dot_dimension_numbers<[1], [0], [0], [1], [0, 0, 1, 1], [], []>} : vector<39x8xbf16>, vector<8x32xbf16>, vector<39x32xf32> -> vector<39x32xf32>
    %274 = arith.addf %208, %273 : vector<39x32xf32>
    %c0_110 = arith.constant 0 : index
    %c0_111 = arith.constant 0 : index
    %275 = vector.load %arg10[%c0_110, %c0_111] : memref<1x32xf32, #tpu.memory_space<vmem>>, vector<1x32xf32>
    %c0_112 = arith.constant 0 : index
    %c0_113 = arith.constant 0 : index
    %276 = vector.load %arg11[%c0_112, %c0_113] : memref<1x32xf32, #tpu.memory_space<vmem>>, vector<1x32xf32>
    %cst_114 = arith.constant dense<0.000000e+00> : vector<39xf32>
    %277 = vector.multi_reduction <add>, %274, %cst_114 [1] : vector<39x32xf32> to vector<39xf32>
    %278 = vector.shape_cast %277 : vector<39xf32> to vector<39x1xf32>
    %cst_115 = arith.constant 3.200000e+01 : f32
    %279 = vector.broadcast %cst_115 : f32 to vector<39x1xf32>
    %280 = arith.divf %278, %279 : vector<39x1xf32>
    %281 = vector.broadcast %280 : vector<39x1xf32> to vector<39x32xf32>
    %282 = arith.subf %274, %281 : vector<39x32xf32>
    %283 = arith.mulf %282, %282 : vector<39x32xf32>
    %cst_116 = arith.constant dense<0.000000e+00> : vector<39xf32>
    %284 = vector.multi_reduction <add>, %283, %cst_116 [1] : vector<39x32xf32> to vector<39xf32>
    %285 = vector.shape_cast %284 : vector<39xf32> to vector<39x1xf32>
    %cst_117 = arith.constant 3.200000e+01 : f32
    %286 = vector.broadcast %cst_117 : f32 to vector<39x1xf32>
    %287 = arith.divf %285, %286 : vector<39x1xf32>
    %288 = vector.broadcast %280 : vector<39x1xf32> to vector<39x32xf32>
    %289 = arith.subf %274, %288 : vector<39x32xf32>
    %cst_118 = arith.constant 9.99999974E-6 : f32
    %290 = vector.broadcast %cst_118 : f32 to vector<39x1xf32>
    %291 = arith.addf %287, %290 : vector<39x1xf32>
    %292 = math.rsqrt %291 : vector<39x1xf32>
    %293 = vector.broadcast %292 : vector<39x1xf32> to vector<39x32xf32>
    %294 = arith.mulf %289, %293 : vector<39x32xf32>
    %295 = vector.broadcast %275 : vector<1x32xf32> to vector<39x32xf32>
    %296 = arith.mulf %294, %295 : vector<39x32xf32>
    %297 = vector.broadcast %276 : vector<1x32xf32> to vector<39x32xf32>
    %298 = arith.addf %296, %297 : vector<39x32xf32>
    %299 = arith.truncf %298 : vector<39x32xf32> to vector<39x32xbf16>
    %c0_119 = arith.constant 0 : index
    %c0_120 = arith.constant 0 : index
    %300 = vector.load %arg12[%c0_119, %c0_120] : memref<32x64xbf16, #tpu.memory_space<vmem>>, vector<32x64xbf16>
    %cst_121 = arith.constant dense<0.000000e+00> : vector<39x64xf32>
    %301 = tpu.matmul %299, %300, %cst_121 {dimension_numbers = #tpu.dot_dimension_numbers<[1], [0], [0], [1], [0, 0, 1, 1], [], []>} : vector<39x32xbf16>, vector<32x64xbf16>, vector<39x64xf32> -> vector<39x64xf32>
    %c0_122 = arith.constant 0 : index
    %c0_123 = arith.constant 0 : index
    %302 = vector.load %arg13[%c0_122, %c0_123] : memref<1x64xf32, #tpu.memory_space<vmem>>, vector<1x64xf32>
    %303 = vector.broadcast %302 : vector<1x64xf32> to vector<39x64xf32>
    %304 = arith.addf %301, %303 : vector<39x64xf32>
    %cst_124 = arith.constant 5.000000e-01 : f32
    %305 = vector.broadcast %cst_124 : f32 to vector<39x64xf32>
    %306 = arith.mulf %305, %304 : vector<39x64xf32>
    %cst_125 = arith.constant 4.471500e-02 : f32
    %307 = vector.broadcast %cst_125 : f32 to vector<39x64xf32>
    %308 = arith.mulf %307, %304 : vector<39x64xf32>
    %309 = arith.mulf %308, %304 : vector<39x64xf32>
    %310 = arith.mulf %309, %304 : vector<39x64xf32>
    %311 = arith.addf %304, %310 : vector<39x64xf32>
    %cst_126 = arith.constant 0.797884583 : f32
    %312 = vector.broadcast %cst_126 : f32 to vector<39x64xf32>
    %313 = arith.mulf %312, %311 : vector<39x64xf32>
    %314 = math.tanh %313 : vector<39x64xf32>
    %cst_127 = arith.constant 1.000000e+00 : f32
    %315 = vector.broadcast %cst_127 : f32 to vector<39x64xf32>
    %316 = arith.addf %315, %314 : vector<39x64xf32>
    %317 = arith.mulf %306, %316 : vector<39x64xf32>
    %318 = arith.truncf %317 : vector<39x64xf32> to vector<39x64xbf16>
    %c0_128 = arith.constant 0 : index
    %c0_129 = arith.constant 0 : index
    %319 = vector.load %arg14[%c0_128, %c0_129] : memref<64x32xbf16, #tpu.memory_space<vmem>>, vector<64x32xbf16>
    %cst_130 = arith.constant dense<0.000000e+00> : vector<39x32xf32>
    %320 = tpu.matmul %318, %319, %cst_130 {dimension_numbers = #tpu.dot_dimension_numbers<[1], [0], [0], [1], [0, 0, 1, 1], [], []>} : vector<39x64xbf16>, vector<64x32xbf16>, vector<39x32xf32> -> vector<39x32xf32>
    %c0_131 = arith.constant 0 : index
    %c0_132 = arith.constant 0 : index
    %321 = vector.load %arg15[%c0_131, %c0_132] : memref<1x32xf32, #tpu.memory_space<vmem>>, vector<1x32xf32>
    %322 = vector.broadcast %321 : vector<1x32xf32> to vector<39x32xf32>
    %323 = arith.addf %320, %322 : vector<39x32xf32>
    %324 = arith.addf %298, %323 : vector<39x32xf32>
    %c0_133 = arith.constant 0 : index
    %c0_134 = arith.constant 0 : index
    %325 = vector.load %arg16[%c0_133, %c0_134] : memref<1x32xf32, #tpu.memory_space<vmem>>, vector<1x32xf32>
    %c0_135 = arith.constant 0 : index
    %c0_136 = arith.constant 0 : index
    %326 = vector.load %arg17[%c0_135, %c0_136] : memref<1x32xf32, #tpu.memory_space<vmem>>, vector<1x32xf32>
    %cst_137 = arith.constant dense<0.000000e+00> : vector<39xf32>
    %327 = vector.multi_reduction <add>, %324, %cst_137 [1] : vector<39x32xf32> to vector<39xf32>
    %328 = vector.shape_cast %327 : vector<39xf32> to vector<39x1xf32>
    %cst_138 = arith.constant 3.200000e+01 : f32
    %329 = vector.broadcast %cst_138 : f32 to vector<39x1xf32>
    %330 = arith.divf %328, %329 : vector<39x1xf32>
    %331 = vector.broadcast %330 : vector<39x1xf32> to vector<39x32xf32>
    %332 = arith.subf %324, %331 : vector<39x32xf32>
    %333 = arith.mulf %332, %332 : vector<39x32xf32>
    %cst_139 = arith.constant dense<0.000000e+00> : vector<39xf32>
    %334 = vector.multi_reduction <add>, %333, %cst_139 [1] : vector<39x32xf32> to vector<39xf32>
    %335 = vector.shape_cast %334 : vector<39xf32> to vector<39x1xf32>
    %cst_140 = arith.constant 3.200000e+01 : f32
    %336 = vector.broadcast %cst_140 : f32 to vector<39x1xf32>
    %337 = arith.divf %335, %336 : vector<39x1xf32>
    %338 = vector.broadcast %330 : vector<39x1xf32> to vector<39x32xf32>
    %339 = arith.subf %324, %338 : vector<39x32xf32>
    %cst_141 = arith.constant 9.99999974E-6 : f32
    %340 = vector.broadcast %cst_141 : f32 to vector<39x1xf32>
    %341 = arith.addf %337, %340 : vector<39x1xf32>
    %342 = math.rsqrt %341 : vector<39x1xf32>
    %343 = vector.broadcast %342 : vector<39x1xf32> to vector<39x32xf32>
    %344 = arith.mulf %339, %343 : vector<39x32xf32>
    %345 = vector.broadcast %325 : vector<1x32xf32> to vector<39x32xf32>
    %346 = arith.mulf %344, %345 : vector<39x32xf32>
    %347 = vector.broadcast %326 : vector<1x32xf32> to vector<39x32xf32>
    %348 = arith.addf %346, %347 : vector<39x32xf32>
    %c0_142 = arith.constant 0 : index
    %c0_143 = arith.constant 0 : index
    %c0_144 = arith.constant 0 : index
    %349 = vector.load %arg18[%c0_142, %c0_143, %c0_144] : memref<1x39x32xf32, #tpu.memory_space<vmem>>, vector<1x39x32xf32>
    %350 = vector.shape_cast %349 : vector<1x39x32xf32> to vector<39x32xf32>
    %351 = vector.shape_cast %348 : vector<39x32xf32> to vector<1x39x32xf32>
    tpu.vector_store %arg18[%c0_142, %c0_143, %c0_144], %351 {strides = array<i32>} : memref<1x39x32xf32, #tpu.memory_space<vmem>>, vector<1x39x32xf32>,
    return
  }
  func.func @transform_0(%arg0: i32) -> (i32, i32, i32) {
    %c0_i32 = arith.constant 0 : i32
    %c0_i32_0 = arith.constant 0 : i32
    %c0_i32_1 = arith.constant 0 : i32
    return %arg0, %c0_i32, %c0_i32_0 : i32, i32, i32
  }
  func.func @transform_1(%arg0: i32) -> (i32, i32) {
    %c0_i32 = arith.constant 0 : i32
    %c0_i32_0 = arith.constant 0 : i32
    %c0_i32_1 = arith.constant 0 : i32
    return %c0_i32, %c0_i32_0 : i32, i32
  }
  func.func @transform_2(%arg0: i32) -> (i32, i32) {
    %c0_i32 = arith.constant 0 : i32
    %c0_i32_0 = arith.constant 0 : i32
    %c0_i32_1 = arith.constant 0 : i32
    return %c0_i32, %c0_i32_0 : i32, i32
  }
  func.func @transform_3(%arg0: i32) -> (i32, i32) {
    %c0_i32 = arith.constant 0 : i32
    %c0_i32_0 = arith.constant 0 : i32
    %c0_i32_1 = arith.constant 0 : i32
    return %c0_i32, %c0_i32_0 : i32, i32
  }
  func.func @transform_4(%arg0: i32) -> (i32, i32) {
    %c0_i32 = arith.constant 0 : i32
    %c0_i32_0 = arith.constant 0 : i32
    %c0_i32_1 = arith.constant 0 : i32
    return %c0_i32, %c0_i32_0 : i32, i32
  }
  func.func @transform_5(%arg0: i32) -> (i32, i32) {
    %c0_i32 = arith.constant 0 : i32
    %c0_i32_0 = arith.constant 0 : i32
    %c0_i32_1 = arith.constant 0 : i32
    return %c0_i32, %c0_i32_0 : i32, i32
  }
  func.func @transform_6(%arg0: i32) -> (i32, i32, i32) {
    %c0_i32 = arith.constant 0 : i32
    %c0_i32_0 = arith.constant 0 : i32
    %c0_i32_1 = arith.constant 0 : i32
    %c0_i32_2 = arith.constant 0 : i32
    return %c0_i32, %c0_i32_0, %c0_i32_1 : i32, i32, i32
  }
  func.func @transform_7(%arg0: i32) -> (i32, i32) {
    %c0_i32 = arith.constant 0 : i32
    %c0_i32_0 = arith.constant 0 : i32
    %c0_i32_1 = arith.constant 0 : i32
    return %c0_i32, %c0_i32_0 : i32, i32
  }
  func.func @transform_8(%arg0: i32) -> (i32, i32) {
    %c0_i32 = arith.constant 0 : i32
    %c0_i32_0 = arith.constant 0 : i32
    %c0_i32_1 = arith.constant 0 : i32
    return %c0_i32, %c0_i32_0 : i32, i32
  }
  func.func @transform_9(%arg0: i32) -> (i32, i32) {
    %c0_i32 = arith.constant 0 : i32
    %c0_i32_0 = arith.constant 0 : i32
    %c0_i32_1 = arith.constant 0 : i32
    return %c0_i32, %c0_i32_0 : i32, i32
  }
  func.func @transform_10(%arg0: i32) -> (i32, i32) {
    %c0_i32 = arith.constant 0 : i32
    %c0_i32_0 = arith.constant 0 : i32
    %c0_i32_1 = arith.constant 0 : i32
    return %c0_i32, %c0_i32_0 : i32, i32
  }
  func.func @transform_11(%arg0: i32) -> (i32, i32) {
    %c0_i32 = arith.constant 0 : i32
    %c0_i32_0 = arith.constant 0 : i32
    %c0_i32_1 = arith.constant 0 : i32
    return %c0_i32, %c0_i32_0 : i32, i32
  }
  func.func @transform_12(%arg0: i32) -> (i32, i32) {
    %c0_i32 = arith.constant 0 : i32
    %c0_i32_0 = arith.constant 0 : i32
    %c0_i32_1 = arith.constant 0 : i32
    return %c0_i32, %c0_i32_0 : i32, i32
  }
  func.func @transform_13(%arg0: i32) -> (i32, i32) {
    %c0_i32 = arith.constant 0 : i32
    %c0_i32_0 = arith.constant 0 : i32
    %c0_i32_1 = arith.constant 0 : i32
    return %c0_i32, %c0_i32_0 : i32, i32
  }
  func.func @transform_14(%arg0: i32) -> (i32, i32) {
    %c0_i32 = arith.constant 0 : i32
    %c0_i32_0 = arith.constant 0 : i32
    %c0_i32_1 = arith.constant 0 : i32
    return %c0_i32, %c0_i32_0 : i32, i32
  }
  func.func @transform_15(%arg0: i32) -> (i32, i32) {
    %c0_i32 = arith.constant 0 : i32
    %c0_i32_0 = arith.constant 0 : i32
    %c0_i32_1 = arith.constant 0 : i32
    return %c0_i32, %c0_i32_0 : i32, i32
  }
  func.func @transform_16(%arg0: i32) -> (i32, i32) {
    %c0_i32 = arith.constant 0 : i32
    %c0_i32_0 = arith.constant 0 : i32
    %c0_i32_1 = arith.constant 0 : i32
    return %c0_i32, %c0_i32_0 : i32, i32
  }
  func.func @transform_17(%arg0: i32) -> (i32, i32, i32) {
    %c0_i32 = arith.constant 0 : i32
    %c0_i32_0 = arith.constant 0 : i32
    %c0_i32_1 = arith.constant 0 : i32
    return %arg0, %c0_i32, %c0_i32_0 : i32, i32, i32
  }
}

module attributes {stable_mosaic.version = 11 : i64} {
  func.func @_linear3d_kernel(%arg0: i32, %arg1: memref<1x39x32xbf16, #tpu.memory_space<vmem>>, %arg2: memref<32x128xbf16, #tpu.memory_space<vmem>>, %arg3: memref<1x128xf32, #tpu.memory_space<vmem>>, %arg4: memref<1x39x128xf32, #tpu.memory_space<vmem>>) attributes {dimension_semantics = [#tpu.dimension_semantics<parallel>], iteration_bounds = array<i64: 2>, scalar_prefetch = 0 : i64, scratch_operands = 0 : i64, tpu.core_type = #tpu.core_type<tc>, window_params = [{transform_indices = @transform_0, window_bounds = array<i64: 1, 39, 32>}, {pipeline_mode = #tpu.pipeline_mode<synchronous>, transform_indices = @transform_1, window_bounds = array<i64: 32, 128>}, {pipeline_mode = #tpu.pipeline_mode<synchronous>, transform_indices = @transform_2, window_bounds = array<i64: 1, 128>}, {transform_indices = @transform_3, window_bounds = array<i64: 1, 39, 128>}]} {
    %c0 = arith.constant 0 : index
    %c0_0 = arith.constant 0 : index
    %c0_1 = arith.constant 0 : index
    %0 = vector.load %arg1[%c0, %c0_0, %c0_1] : memref<1x39x32xbf16, #tpu.memory_space<vmem>>, vector<1x39x32xbf16>
    %1 = vector.shape_cast %0 : vector<1x39x32xbf16> to vector<39x32xbf16>
    %c0_2 = arith.constant 0 : index
    %c0_3 = arith.constant 0 : index
    %2 = vector.load %arg2[%c0_2, %c0_3] : memref<32x128xbf16, #tpu.memory_space<vmem>>, vector<32x128xbf16>
    %cst = arith.constant dense<0.000000e+00> : vector<39x128xf32>
    %3 = tpu.matmul %1, %2, %cst {dimension_numbers = #tpu.dot_dimension_numbers<[1], [0], [0], [1], [0, 0, 1, 1], [], []>} : vector<39x32xbf16>, vector<32x128xbf16>, vector<39x128xf32> -> vector<39x128xf32>
    %c0_4 = arith.constant 0 : index
    %c0_5 = arith.constant 0 : index
    %4 = vector.load %arg3[%c0_4, %c0_5] : memref<1x128xf32, #tpu.memory_space<vmem>>, vector<1x128xf32>
    %5 = vector.broadcast %4 : vector<1x128xf32> to vector<39x128xf32>
    %6 = arith.addf %3, %5 : vector<39x128xf32>
    %c0_6 = arith.constant 0 : index
    %c0_7 = arith.constant 0 : index
    %c0_8 = arith.constant 0 : index
    %7 = vector.load %arg4[%c0_6, %c0_7, %c0_8] : memref<1x39x128xf32, #tpu.memory_space<vmem>>, vector<1x39x128xf32>
    %8 = vector.shape_cast %7 : vector<1x39x128xf32> to vector<39x128xf32>
    %9 = vector.shape_cast %6 : vector<39x128xf32> to vector<1x39x128xf32>
    tpu.vector_store %arg4[%c0_6, %c0_7, %c0_8], %9 {strides = array<i32>} : memref<1x39x128xf32, #tpu.memory_space<vmem>>, vector<1x39x128xf32>,
    return
  }
  func.func @transform_0(%arg0: i32) -> (i32, i32, i32) {
    %c0_i32 = arith.constant 0 : i32
    %c0_i32_0 = arith.constant 0 : i32
    %c0_i32_1 = arith.constant 0 : i32
    return %arg0, %c0_i32, %c0_i32_0 : i32, i32, i32
  }
  func.func @transform_1(%arg0: i32) -> (i32, i32) {
    %c0_i32 = arith.constant 0 : i32
    %c0_i32_0 = arith.constant 0 : i32
    %c0_i32_1 = arith.constant 0 : i32
    return %c0_i32, %c0_i32_0 : i32, i32
  }
  func.func @transform_2(%arg0: i32) -> (i32, i32) {
    %c0_i32 = arith.constant 0 : i32
    %c0_i32_0 = arith.constant 0 : i32
    %c0_i32_1 = arith.constant 0 : i32
    return %c0_i32, %c0_i32_0 : i32, i32
  }
  func.func @transform_3(%arg0: i32) -> (i32, i32, i32) {
    %c0_i32 = arith.constant 0 : i32
    %c0_i32_0 = arith.constant 0 : i32
    %c0_i32_1 = arith.constant 0 : i32
    return %arg0, %c0_i32, %c0_i32_0 : i32, i32, i32
  }
}

</mosaic_0001>

<bundles_post_ra>
// kernel: wavlm_ctc_forward.6
= control target key start
LH: loop header
LB: loop body
LE: loop exit
PB: predicated region body
PF: predicated region fallthrough
CT: control target
= control target key end

     0   :  { %9 = vsyncpa [#allocation3], 0  ;;  %s1513_s0 = inlined_call_operand.hbm [shape: bf16[2,79,10], index: 0, kind: input, shape index: {}]   ;;  %s1514_s1 = inlined_call_operand.hbm [shape: bf16[10,16], index: 1, kind: input, shape index: {}]   ;;  %s1515_s2 = inlined_call_operand.hbm [shape: f32[1,16], index: 2, kind: input, shape index: {}]   ;;  %s1516_s3 = inlined_call_operand.hbm [shape: f32[1,16], index: 3, kind: input, shape index: {}]   ;;  %s1517_s4 = inlined_call_operand.hbm [shape: f32[2,79,16], index: 4, kind: output, shape index: {}]  }
   0x1   :  { %11 = vsyncpa [#allocation3 + $0x1], 0 }
   0x2   :  { %12 = vsyncpa [#allocation6], 0 }
   0x3   :  { %13 = vsyncpa [#allocation9], 0 }
   0x4   :  { %14 = vsyncpa [#allocation4], 0 }
   0x5   :  { %16 = vsyncpa [#allocation4 + $0x1], 0  ;;  %s1128_s15 = smov 0   ;;  %s1130_s16 = smov 0  }
   0x6   :  { %s1132_s17 = smov 0   ;;  %s1134_s18 = smov 0  }
   0x7 LB: > { %s1149_s19 = sadd.s32 4294967295, %s1090_s18   ;;  %s729_s20 = sadd.s32 4294967294, %s1090_s18   ;;  %s1090_s18 = sphi %s1134_s18, %s1540_s18   ;;  %s1086_s17 = sphi %s1132_s17, %s1539_s17   ;;  %s1082_s16 = sphi %s1130_s16, %s1538_s16   ;;  %s1078_s15 = sphi %s1128_s15, %s1537_s15  }
   0x8   : > { %p42_p0 = scmp.ne.s32.totalorder %s1082_s16, %s1078_s15  ;;  %p1518_p1 = scmp.eq.s32.totalorder %s1149_s19, 0 }
   0x9   : > { %p135_p3 = scmp.eq.s32.totalorder %s729_s20, 1  ;;  %p730_p5 = scmp.ge.s32.totalorder %s1090_s18, 1 }
   0xa   : > { %p1158_p4 = por %p1518_p1, %p42_p0  ;;  %p142_p7 = scmp.lt.s32.totalorder %s1090_s18, 3 }
   0xb   : > { %p1163_p6 = por %p135_p3, %p42_p0  ;;  %s1092_s24 = smov [#allocation5]  }
   0xc   : > { %s1521_s21 = scalar_select %p1158_p4, 1, 0 }
   0xd   : > { %s1522_s22 = scalar_select %p1163_p6, 1, 0 }
   0xe   : > { %p1168_p8 = pnand %p730_p5, %p142_p7  ;;  %s154_s25 = sshll.u32 %s1092_s24, 4  ;;  %s1172_s25 = int_to_ptr.vmem [resolvable:$true] %s154_s25 }
   0xf   : > { %s1093_s27 = smov [#allocation7]   ;;  %s1094_s29 = smov [#allocation8]  }
  0x10   : > { %s1523_s23 = scalar_select %p1168_p8, 1, 0 }
  0x11   : > { %p807_p9 = pneg %p1168_p8  ;;  %s168_s28 = sshll.u32 %s1093_s27, 4  ;;  %s1183_s28 = int_to_ptr.vmem [resolvable:$true] %s168_s28 }
  0x12   : > { %s1185_s30 = sshll.u32 %s1094_s29, 4  ;;  %s902_s7 = scalar_lea.hbm %s1514_s1, 128  ;;  %s180_s30 = int_to_ptr.vmem [resolvable:$true] %s1185_s30 }
  0x13   : > { %p1179_p11 = pnand %p807_p9, %p1518_p1  ;;  %p903_p12 = scmp.ne.s32.totalorder %s1514_s1, %s902_s7 }
  0x14   : > { %p909_p5 = scmp.lt.u32.totalorder %s902_s7, %s1514_s1 }
  0x15   : > { %p1195_p13 = pneg %p1179_p11 }
  0x17   : > { %p905_p0 = pnand %p1195_p13, %p903_p12 }
  0x19   : > { %p906_p3 = pneg %p905_p0 }
  0x1b   : > { %p911_p7 = pnand %p909_p5, %p906_p3 }
  0x1d   : > { %914 = shalt.err (!%p911_p7)
}
  0x1e   : > { %s915_s13 = scalar_lea.vmem %s1172_s25, 128  ;;  %p923_p2 = scmp.lt.s32.totalorder %s1172_s25, %s1172_s25 }
  0x1f   : > { %p916_p9 = scmp.ne.s32.totalorder %s1172_s25, %s915_s13  ;;  %p924_p6 = scmp.lt.s32.totalorder %s915_s13, %s915_s13 }
  0x21   : > { %p918_p10 = pnand %p916_p9, %p1195_p13  ;;  %p925_p12 = por %p924_p6, %p923_p2 }
  0x23   : > { %p919_p1 = pneg %p918_p10 }
  0x25   : > { %p926_p0 = pnand %p925_p12, %p919_p1 }
  0x27   : > { %929 = shalt.err (!%p926_p0)
}
  0x28   : > { %s1095_s14 = smov 64   ;;  %s1096_s20 = smov 4  }
  0x29   : > { %810 = dma.hbm_to_vmem [thread:$0]  (!%p1179_p11), %s1514_s1, 128, %s1172_s25, [#allocation6], %s1095_s14, %s1095_s14, %s1096_s20  }
  0x2a   : > { %s930_s6 = scalar_lea.hbm %s1515_s2, 16 }
  0x2b   : > { %p931_p1 = scmp.ne.s32.totalorder %s1515_s2, %s930_s6  ;;  %p937_p10 = scmp.lt.u32.totalorder %s930_s6, %s1515_s2 }
  0x2d   : > { %p933_p2 = pnand %p931_p1, %p1195_p13 }
  0x2f   : > { %p934_p6 = pneg %p933_p2 }
  0x31   : > { %p939_p3 = pnand %p937_p10, %p934_p6 }
  0x33   : > { %942 = shalt.err (!%p939_p3)
}
  0x34   : > { %s943_s25 = scalar_lea.vmem %s1183_s28, 16  ;;  %s950_s12 = scalar_lea.vmem %s1183_s28, 32 }
  0x35   : > { %p944_p5 = scmp.ne.s32.totalorder %s1183_s28, %s943_s25  ;;  %p951_p12 = scmp.lt.s32.totalorder %s1183_s28, %s1183_s28 }
  0x36   : > { %p952_p0 = scmp.lt.s32.totalorder %s950_s12, %s943_s25 }
  0x37   : > { %p946_p7 = pnand %p944_p5, %p1195_p13 }
  0x38   : > { %p953_p1 = por %p952_p0, %p951_p12 }
  0x39   : > { %p947_p9 = pneg %p946_p7 }
  0x3b   : > { %p954_p2 = pnand %p953_p1, %p947_p9 }
  0x3d   : > { %957 = shalt.err (!%p954_p2)
}
  0x3e   : > { %813 = dma.hbm_to_vmem [thread:$0]  (!%p1179_p11), %s1515_s2, 16, %s1183_s28, [#allocation6]  }
  0x3f   : > { %s958_s5 = scalar_lea.hbm %s1516_s3, 16 }
  0x40   : > { %p959_p6 = scmp.ne.s32.totalorder %s1516_s3, %s958_s5  ;;  %p965_p5 = scmp.lt.u32.totalorder %s958_s5, %s1516_s3 }
  0x42   : > { %p961_p10 = pnand %p959_p6, %p1195_p13 }
  0x44   : > { %p962_p3 = pneg %p961_p10 }
  0x46   : > { %p967_p7 = pnand %p965_p5, %p962_p3 }
  0x48   : > { %970 = shalt.err (!%p967_p7)
}
  0x49   : > { %s971_s11 = scalar_lea.vmem %s180_s30, 16  ;;  %s978_s28 = scalar_lea.vmem %s180_s30, 32 }
  0x4a   : > { %p972_p9 = scmp.ne.s32.totalorder %s180_s30, %s971_s11  ;;  %p979_p1 = scmp.lt.s32.totalorder %s180_s30, %s180_s30 }
  0x4b   : > { %p980_p2 = scmp.lt.s32.totalorder %s978_s28, %s971_s11 }
  0x4c   : > { %p974_p12 = pnand %p972_p9, %p1195_p13 }
  0x4d   : > { %p981_p4 = por %p980_p2, %p979_p1 }
  0x4e   : > { %p975_p0 = pneg %p974_p12 }
  0x50   : > { %p982_p8 = pnand %p981_p4, %p975_p0 }
  0x52   : > { %985 = shalt.err (!%p982_p8)
}
  0x53   : > { %816 = dma.hbm_to_vmem [thread:$0]  (!%p1179_p11), %s1516_s3, 16, %s180_s30, [#allocation9]  }
  0x54   : > { %s1263_s10 = sadd.s32 1, %s1090_s18   ;;  %s29_s26 = sadd.s32 1, %s1086_s17 }
  0x55   : > { %s26_s13 = ssub.s32 %s1090_s18, %s1263_s10  ;;  %p36_p8 = scmp.ne.s32.totalorder %s1086_s17, %s1082_s16 }
  0x56   : > { %p27_p4 = scmp.eq.s32.totalorder %s26_s13, 0  ;;  %p37_p13 = scmp.eq.s32.totalorder %s1090_s18, 0 }
  0x57   : > { %p828_p6 = scmp.lt.s32.totalorder %s1090_s18, 2  ;;  %p1526_p3 = scmp.eq.s32.totalorder %s1149_s19, 1 }
  0x58   : > { %s1273_s24 = scalar_select %p27_p4, %s1086_s17, %s29_s26  }
  0x59   : > { %p38_p10 = por %p37_p13, %p36_p8  ;;  %p1277_p5 = por %p1526_p3, %p36_p8 }
  0x5a   : > { %s190_s29 = sand.u32 1, %s1086_s17   ;;  %s787_s5 = smul.u32 640, %s1090_s18 }
  0x5b   : > { %s786_s30 = smul.u32 40, %s190_s29  ;;  %p1283_p11 = pnand %p828_p6, %p38_p10 }
  0x5c   : > { %s1290_s9 = scalar_lea.hbm %s1513_s0, %s787_s5  ;;  %s1294_s25 = scalar_lea.sflag [#allocation3], %s190_s29 }
  0x5d   : > { %s194_s11 = scalar_lea.vmem [#allocation2], %s786_s30  ;;  %s986_s12 = scalar_lea.hbm %s1290_s9, 640 }
  0x5e   : > { %s201_s28 = sshll.u32 %s194_s11, 4  ;;  %p987_p7 = scmp.ne.s32.totalorder %s1290_s9, %s986_s12  ;;  %s1292_s28 = int_to_ptr.vmem [resolvable:$true] %s201_s28 }
  0x5f   : > { %p988_p9 = pneg %p1283_p11  ;;  %s991_s5 = scalar_lea.hbm %s1513_s0, 1280 }
  0x60   : > { %p992_p1 = scmp.lt.u32.totalorder %s1290_s9, %s1513_s0  ;;  %p993_p2 = scmp.lt.u32.totalorder %s991_s5, %s986_s12 }
  0x61   : > { %p989_p12 = pnand %p988_p9, %p987_p7  ;;  %p995_p8 = scmp.lt.u32.totalorder %s986_s12, %s1290_s9 }
  0x62   : > { %p994_p4 = por %p993_p2, %p992_p1 }
  0x63   : > { %p990_p0 = pneg %p989_p12 }
  0x64   : > { %p996_p13 = por %p995_p8, %p994_p4 }
  0x66   : > { %p997_p6 = pnand %p996_p13, %p990_p0 }
  0x68   : > { %1000 = shalt.err (!%p997_p6)
}
  0x69   : > { %s1001_s29 = scalar_lea.vmem %s1292_s28, 640  ;;  %s1097_s30 = smov [#allocation2]  }
  0x6a   : > { %p1002_p10 = scmp.ne.s32.totalorder %s1292_s28, %s1001_s29  ;;  %s1006_s11 = sshll.u32 %s1097_s30, 4  ;;  %s1007_s11 = int_to_ptr.vmem [resolvable:$false] %s1006_s11 }
  0x6b   : > { %s1008_s13 = scalar_lea.vmem %s1007_s11, 1280  ;;  %p1009_p12 = scmp.lt.s32.totalorder %s1292_s28, %s1007_s11 }
  0x6c   : > { %p1004_p3 = pnand %p1002_p10, %p988_p9  ;;  %p1010_p1 = scmp.lt.s32.totalorder %s1008_s13, %s1001_s29 }
  0x6e   : > { %p1005_p7 = pneg %p1004_p3  ;;  %p1011_p2 = por %p1010_p1, %p1009_p12 }
  0x70   : > { %p1012_p4 = pnand %p1011_p2, %p1005_p7 }
  0x72   : > { %1015 = shalt.err (!%p1012_p4)
}
  0x73   : > { %820 = dma.hbm_to_vmem [thread:$0]  (!%p1283_p11), %s1290_s9, 640, %s1292_s28, %s1294_s25, %s1095_s14, %s1095_s14, %s1096_s20  }
  0x74   : > { %p1529_p9 = scmp.ne.s32.totalorder %s1523_s23, 0 }
  0x75   : > { %s1328_s12 = sand.u32 (!%p1529_p9), 1, %s1082_s16   ;;  %p1530_p0 = scmp.ne.s32.totalorder (!%p1529_p9), %s1521_s21, 0 }
  0x76   : > { %213 = sbr.rel (%p1529_p9) target bundleno = 501 (0x1f5), region = 36  ;;  %s216_s5 = scalar_lea.sflag (!%p1529_p9), [#allocation3], %s1328_s12 }
  0x77   : > { %s788_s26 = smul.u32 (!%p1529_p9), 40, %s1328_s12 }
  0x79   : > { %s219_s7 = scalar_lea.vmem (!%p1529_p9), [#allocation2], %s788_s26 }
  0x7d   : > { %1061 = dma.done.wait (%p1530_p0), %s216_s5, 640  }
  0x7e   : > { %1063 = vsyncadd (%p1530_p0), %s216_s5, 4294966656  ;;  %p1531_p8 = scmp.eq.s32.totalorder %s1149_s19, 0 }
  0x80   : > { %1065 = dma.done.wait (%p1531_p8), [#allocation6], 144   ;;  %p1532_p11 = pmov %p1531_p8 }
  0x81   : > { %p1533_p13 = pmov %p1531_p8 }
  0x82   : > { %1067 = vsyncadd (%p1532_p11), [#allocation6], 4294967152 }
  0x83   : > { %1069 = dma.done.wait (%p1533_p13), [#allocation9], 16   ;;  %p1534_p6 = pmov %p1531_p8 }
  0x84   : > { %v1098_v0 = vmov 0.0   ;;  %vm1099_vm0 = vmmov 0   ;;  %vm315_vm1 = vcmask 1044480   ;;  %v874_v1 = vld [vmem:[#allocation5] sm:$0x1f]   ;;  %v875_v3 = vld [vmem:[%s219_s7] sm:$0xff]  }
  0x85   : > { %1071 = vsyncadd (%p1534_p6), [#allocation9], 4294967280  ;;  %762 = vmatprep.subr.bf16.mxu0 %v1098_v0  ;;  %764 = vmatprep.mubr.msk.bf16.mxu0 %vm1099_vm0, %v1098_v0  ;;  %v317_v2 = vsel %vm315_vm1, %v874_v1, 0  ;;  %vm299_vm2 = vcmask 80896   ;;  %v877_v4 = vld [vmem:[%s219_s7 + $0x18] sm:$0xff]   ;;  %v876_v5 = vld [vmem:[%s219_s7 + $0x8] sm:$0xff]  }
  0x86   : > { %784 = vmatprep.subr.bf16.mxu1 %v1098_v0  ;;  %776 = vmatprep.mubr.msk.bf16.mxu1 %vm1099_vm0, %v1098_v0  ;;  %v879_v6 = vld [vmem:[%s219_s7 + $0x20] sm:$0xff]   ;;  %v878_v7 = vld [vmem:[%s219_s7 + $0x10] sm:$0xff]   ;;  %vm392_vm3 = vcmask 130048   ;;  %vm410_vm4 = vcmask 129024   ;;  %s789_s21 = smul.u32 80, %s1328_s12  ;;  %s614_s28 = scalar_lea.sflag [#allocation4], %s1328_s12 }
  0x87   : > { %763 = vmatpush3.bf16.msra.mxu0 %v317_v2  ;;  %785 = vmatpush3.bf16.msra.mxu1 %v317_v2  ;;  %s790_s14 = smul.u32 1280, %s1149_s19  ;;  %s1100_s8 = smov [#allocation10]  }
  0x88   : > { %s1435_s23 = scalar_lea.vmem [#allocation10], %s789_s21  ;;  %s1020_s29 = sshll.u32 %s1100_s8, 4  ;;  %s1021_s29 = int_to_ptr.vmem [resolvable:$false] %s1020_s29 }
  0x89   : > { %s627_s20 = sshll.u32 %s1435_s23, 4  ;;  %s1461_s9 = scalar_lea.hbm %s1517_s4, %s790_s14  ;;  %s1463_s20 = int_to_ptr.vmem [resolvable:$true] %s627_s20 }
  0x8a   : > { %765 = vmatmul.mubr.msk.bf16.vlgmr.msra.gmra.mrb[0].mxu0 %vm299_vm2, %v875_v3  ;;  %777 = vmatmul.mubr.msk.bf16.vlgmr.msra.gmra.mrb[0].mxu1 %vm299_vm2, %v877_v4  ;;  %s1016_s25 = scalar_lea.vmem %s1463_s20, 1280  ;;  %s1022_s30 = scalar_lea.vmem %s1021_s29, 2560 }
  0x8b   : > { %768 = vmatprep.mubr.msk.bf16.mxu0 %vm1099_vm0, %v1098_v0  ;;  %780 = vmatprep.mubr.msk.bf16.mxu1 %vm1099_vm0, %v1098_v0  ;;  %p1017_p10 = scmp.ne.s32.totalorder %s1463_s20, %s1016_s25  ;;  %p1023_p12 = scmp.lt.s32.totalorder %s1463_s20, %s1021_s29 }
  0x8c   : > { %p1024_p1 = scmp.lt.s32.totalorder %s1022_s30, %s1016_s25 }
  0x8d   : > { %p1018_p3 = pnand %p1017_p10, %p1277_p5 }
  0x8e   : > { %p1025_p2 = por %p1024_p1, %p1023_p12 }
  0x8f   : > { %p1019_p7 = pneg %p1018_p3 }
  0x91   : > { %p1026_p4 = pnand %p1025_p2, %p1019_p7 }
  0x92   : > { %769 = vmatmul.mubr.msk.bf16.gmra.mrb[4].mxu0 %vm299_vm2, %v876_v5  ;;  %781 = vmatmul.mubr.msk.bf16.gmra.mrb[4].mxu1 %vm299_vm2, %v879_v6 }
  0x93   : > { %772 = vmatprep.mubr.msk.bf16.mxu0 %vm1099_vm0, %v1098_v0 }
  0x9a   : > { %773 = vmatmul.mubr.msk.bf16.gmra.mrb[8].mxu0 %vm299_vm2, %v878_v7 }
 0x15d   : > { %v353_v8 = vpop.f32.mrb[0].mxu0  ;;  %v377_v9 = vpop.f32.mrb[0].mxu1 }
 0x15e   : > { %v766_v10 = vpop.f32.mrb[1].mxu0  ;;  %v778_v11 = vpop.f32.mrb[1].mxu1  ;;  %v393_v14 = vsel %vm392_vm3, %v353_v8, 0.0  ;;  %v404_v39 = vsel %vm392_vm3, %v377_v9, 0.0 }
 0x15f   : > { %v356_v12 = vpop.f32.mrb[2].mxu0  ;;  %v380_v13 = vpop.f32.mrb[2].mxu1 }
 0x160   : > { %v394_v15 = vsel %vm392_vm3, %v356_v12, 0.0  ;;  %v767_v16 = vpop.f32.mrb[3].mxu0  ;;  %v779_v17 = vpop.f32.mrb[3].mxu1  ;;  %v406_v41 = vsel %vm392_vm3, %v380_v13, 0.0 }
 0x161   : > { %v395_v18 = vadd.f32 %v394_v15, %v393_v14 }
 0x165   : > { %v361_v19 = vpop.f32.mrb[4].mxu0  ;;  %v385_v20 = vpop.f32.mrb[4].mxu1 }
 0x166   : > { %v396_v21 = vsel %vm392_vm3, %v361_v19, 0.0  ;;  %v770_v22 = vpop.f32.mrb[5].mxu0  ;;  %v782_v23 = vpop.f32.mrb[5].mxu1  ;;  %v408_v42 = vsel %vm392_vm3, %v385_v20, 0.0 }
 0x167   : > { %v397_v24 = vadd.f32 %v396_v21, %v395_v18  ;;  %v364_v25 = vpop.f32.mrb[6].mxu0  ;;  %v388_v26 = vpop.f32.mrb[6].mxu1 }
 0x168   : > { %v398_v27 = vsel %vm392_vm3, %v364_v25, 0.0  ;;  %v771_v28 = vpop.f32.mrb[7].mxu0  ;;  %v783_v29 = vpop.f32.mrb[7].mxu1  ;;  %v411_v45 = vsel %vm410_vm4, %v388_v26, 0.0 }
 0x169   : > { %v399_v30 = vadd.f32 %v398_v27, %v397_v24 }
 0x16d   : > { %v369_v31 = vpop.f32.mrb[8].mxu0 }
 0x16e   : > { %v400_v32 = vsel %vm392_vm3, %v369_v31, 0.0  ;;  %v774_v33 = vpop.f32.mrb[9].mxu0 }
 0x16f   : > { %v401_v34 = vadd.f32 %v400_v32, %v399_v30  ;;  %v372_v35 = vpop.f32.mrb[10].mxu0 }
 0x170   : > { %v402_v36 = vsel %vm392_vm3, %v372_v35, 0.0  ;;  %v775_v37 = vpop.f32.mrb[11].mxu0 }
 0x171   : > { %v403_v38 = vadd.f32 %v402_v36, %v401_v34 }
 0x173   : > { %v405_v40 = vadd.f32 %v404_v39, %v403_v38  ;;  %v751_v38 = vld [vmem:[#allocation7] ss:$0 sm:$0xff] }
 0x175   : > { %v407_v43 = vadd.f32 %v406_v41, %v405_v40 }
 0x177   : > { %v409_v44 = vadd.f32 %v408_v42, %v407_v43 }
 0x179   : > { %v412_v46 = vadd.f32 %v411_v45, %v409_v44 }
 0x17b   : > { %v413_v47 = vrot.slane %v412_v46, 4 }
 0x17d   : > { %v414_v48 = vadd.f32 %v413_v47, %v412_v46 }
 0x17f   : > { %v415_v49 = vrot.slane %v414_v48, 2 }
 0x181   : > { %v416_v50 = vadd.f32 %v415_v49, %v414_v48 }
 0x183   : > { %v417_v51 = vrot.slane %v416_v50, 1 }
 0x185   : > { %v418_v52 = vadd.f32 %v417_v51, %v416_v50 }
 0x187   : > { %v420_v53 = vmul.f32 0.012658228, %v418_v52 }
 0x189   : > { %v421_v54 = vsub.f32 %v353_v8, %v420_v53  ;;  %v422_v55 = vsub.f32 %v356_v12, %v420_v53  ;;  %v423_v56 = vsub.f32 %v361_v19, %v420_v53  ;;  %v424_v57 = vsub.f32 %v364_v25, %v420_v53 }
 0x18a   : > { %v425_v58 = vsub.f32 %v369_v31, %v420_v53  ;;  %v426_v59 = vsub.f32 %v372_v35, %v420_v53  ;;  %v427_v60 = vsub.f32 %v377_v9, %v420_v53  ;;  %v428_v61 = vsub.f32 %v380_v13, %v420_v53 }
 0x18b   : > { %v429_v62 = vsub.f32 %v385_v20, %v420_v53  ;;  %v430_v63 = vsub.f32 %v388_v26, %v420_v53  ;;  %v431_v0 = vmul.f32 %v421_v54, %v421_v54  ;;  %v432_v1 = vmul.f32 %v422_v55, %v422_v55 }
 0x18c   : > { %v433_v2 = vmul.f32 %v423_v56, %v423_v56  ;;  %v434_v3 = vmul.f32 %v424_v57, %v424_v57  ;;  %v435_v7 = vmul.f32 %v425_v58, %v425_v58  ;;  %v436_v11 = vmul.f32 %v426_v59, %v426_v59 }
 0x18d   : > { %v441_v4 = vsel %vm392_vm3, %v431_v0, 0.0  ;;  %v442_v5 = vsel %vm392_vm3, %v432_v1, 0.0  ;;  %v437_v13 = vmul.f32 %v427_v60, %v427_v60  ;;  %v438_v16 = vmul.f32 %v428_v61, %v428_v61  ;;  %v752_v1 = vld [vmem:[#allocation8] ss:$0 sm:$0xff] }
 0x18e   : > { %v443_v6 = vadd.f32 %v442_v5, %v441_v4  ;;  %v444_v8 = vsel %vm392_vm3, %v433_v2, 0.0  ;;  %v446_v12 = vsel %vm392_vm3, %v434_v3, 0.0  ;;  %v448_v14 = vsel %vm392_vm3, %v435_v7, 0.0 }
 0x18f   : > { %v450_v17 = vsel %vm392_vm3, %v436_v11, 0.0  ;;  %v439_v19 = vmul.f32 %v429_v62, %v429_v62  ;;  %v452_v20 = vsel %vm392_vm3, %v437_v13, 0.0  ;;  %v440_v22 = vmul.f32 %v430_v63, %v430_v63 }
 0x190   : > { %v445_v10 = vadd.f32 %v444_v8, %v443_v6  ;;  %v454_v23 = vsel %vm392_vm3, %v438_v16, 0.0 }
 0x191   : > { %v456_v25 = vsel %vm392_vm3, %v439_v19, 0.0  ;;  %v458_v27 = vsel %vm410_vm4, %v440_v22, 0.0 }
 0x192   : > { %v447_v9 = vadd.f32 %v446_v12, %v445_v10 }
 0x194   : > { %v449_v15 = vadd.f32 %v448_v14, %v447_v9 }
 0x196   : > { %v451_v18 = vadd.f32 %v450_v17, %v449_v15 }
 0x198   : > { %v453_v21 = vadd.f32 %v452_v20, %v451_v18 }
 0x19a   : > { %v455_v24 = vadd.f32 %v454_v23, %v453_v21 }
 0x19c   : > { %v457_v26 = vadd.f32 %v456_v25, %v455_v24 }
 0x19e   : > { %v459_v28 = vadd.f32 %v458_v27, %v457_v26 }
 0x1a0   : > { %v460_v29 = vrot.slane %v459_v28, 4 }
 0x1a2   : > { %v461_v30 = vadd.f32 %v460_v29, %v459_v28 }
 0x1a4   : > { %v462_v31 = vrot.slane %v461_v30, 2 }
 0x1a6   : > { %v463_v32 = vadd.f32 %v462_v31, %v461_v30 }
 0x1a8   : > { %v464_v33 = vrot.slane %v463_v32, 1 }
 0x1aa   : > { %v465_v34 = vadd.f32 %v464_v33, %v463_v32 }
 0x1ac   : > { %v466_v35 = vmul.f32 0.012658228, %v465_v34 }
 0x1ae   : > { %v467_v36 = vadd.f32 1e-05, %v466_v35 }
 0x1b0   : > { %880 = vrsqrt.f32 %v467_v36 }
 0x1ba   : > { %v881_v37 = vpop.eup %880 }
 0x1bb   : > { %v469_v39 = vmul.f32 %v881_v37, %v421_v54  ;;  %v470_v40 = vmul.f32 %v881_v37, %v422_v55  ;;  %v471_v41 = vmul.f32 %v881_v37, %v423_v56  ;;  %v472_v42 = vmul.f32 %v881_v37, %v424_v57 }
 0x1bc   : > { %v473_v43 = vmul.f32 %v881_v37, %v425_v58  ;;  %v474_v44 = vmul.f32 %v881_v37, %v426_v59  ;;  %v475_v45 = vmul.f32 %v881_v37, %v427_v60  ;;  %v476_v46 = vmul.f32 %v881_v37, %v428_v61 }
 0x1bd   : > { %v477_v47 = vmul.f32 %v881_v37, %v429_v62  ;;  %v478_v48 = vmul.f32 %v881_v37, %v430_v63  ;;  %v486_v49 = vmul.f32 %v751_v38, %v469_v39  ;;  %v487_v50 = vmul.f32 %v751_v38, %v470_v40 }
 0x1be   : > { %v488_v51 = vmul.f32 %v751_v38, %v471_v41  ;;  %v489_v52 = vmul.f32 %v751_v38, %v472_v42  ;;  %v490_v53 = vmul.f32 %v751_v38, %v473_v43  ;;  %v491_v0 = vmul.f32 %v751_v38, %v474_v44 }
 0x1bf   : > { %v492_v2 = vmul.f32 %v751_v38, %v475_v45  ;;  %v493_v3 = vmul.f32 %v751_v38, %v476_v46  ;;  %v494_v4 = vmul.f32 %v751_v38, %v477_v47  ;;  %v495_v54 = vmul.f32 %v751_v38, %v478_v48 }
 0x1c0   : > { %v1369_v55 = vadd.f32 %v752_v1, %v486_v49  ;;  %v1371_v56 = vadd.f32 %v752_v1, %v487_v50  ;;  %v1373_v57 = vadd.f32 %v752_v1, %v488_v51  ;;  %v1375_v58 = vadd.f32 %v752_v1, %v489_v52 }
 0x1c1   : > { %v1377_v59 = vadd.f32 %v752_v1, %v490_v53  ;;  %v1379_v60 = vadd.f32 %v752_v1, %v491_v0  ;;  %v1381_v61 = vadd.f32 %v752_v1, %v492_v2  ;;  %v1383_v62 = vadd.f32 %v752_v1, %v493_v3 }
 0x1c2   : > { %v1385_v63 = vadd.f32 %v752_v1, %v494_v4  ;;  %v1387_v5 = vadd.f32 %v752_v1, %v495_v54  ;;  %v523_v6 = vmul.f32 0.044715, %v1369_v55  ;;  %v524_v7 = vmul.f32 0.044715, %v1371_v56 }
 0x1c3   : > { %v525_v8 = vmul.f32 0.044715, %v1373_v57  ;;  %v526_v10 = vmul.f32 0.044715, %v1375_v58  ;;  %v527_v11 = vmul.f32 0.044715, %v1377_v59 }
 0x1c4   : > { %v528_v12 = vmul.f32 0.044715, %v1379_v60  ;;  %v529_v9 = vmul.f32 0.044715, %v1381_v61  ;;  %v530_v13 = vmul.f32 0.044715, %v1383_v62  ;;  %v533_v15 = vmul.f32 %v523_v6, %v1369_v55 }
 0x1c5   : > { %v531_v14 = vmul.f32 0.044715, %v1385_v63  ;;  %v532_v16 = vmul.f32 0.044715, %v1387_v5  ;;  %v534_v17 = vmul.f32 %v524_v7, %v1371_v56  ;;  %v535_v18 = vmul.f32 %v525_v8, %v1373_v57 }
 0x1c6   : > { %v536_v19 = vmul.f32 %v526_v10, %v1375_v58  ;;  %v537_v20 = vmul.f32 %v527_v11, %v1377_v59  ;;  %v538_v21 = vmul.f32 %v528_v12, %v1379_v60  ;;  %v539_v22 = vmul.f32 %v529_v9, %v1381_v61 }
 0x1c7   : > { %v540_v23 = vmul.f32 %v530_v13, %v1383_v62  ;;  %v541_v24 = vmul.f32 %v531_v14, %v1385_v63  ;;  %v542_v25 = vmul.f32 %v532_v16, %v1387_v5  ;;  %v543_v26 = vmul.f32 %v533_v15, %v1369_v55 }
 0x1c8   : > { %v544_v27 = vmul.f32 %v534_v17, %v1371_v56  ;;  %v545_v28 = vmul.f32 %v535_v18, %v1373_v57  ;;  %v546_v29 = vmul.f32 %v536_v19, %v1375_v58  ;;  %v547_v30 = vmul.f32 %v537_v20, %v1377_v59 }
 0x1c9   : > { %v548_v31 = vmul.f32 %v538_v21, %v1379_v60  ;;  %v549_v32 = vmul.f32 %v539_v22, %v1381_v61  ;;  %v550_v33 = vmul.f32 %v540_v23, %v1383_v62  ;;  %v551_v34 = vmul.f32 %v541_v24, %v1385_v63 }
 0x1ca   : > { %v553_v35 = vadd.f32 %v543_v26, %v1369_v55  ;;  %v554_v36 = vadd.f32 %v544_v27, %v1371_v56  ;;  %v555_v37 = vadd.f32 %v545_v28, %v1373_v57  ;;  %v556_v38 = vadd.f32 %v546_v29, %v1375_v58 }
 0x1cb   : > { %v552_v39 = vmul.f32 %v542_v25, %v1387_v5  ;;  %v557_v40 = vadd.f32 %v547_v30, %v1377_v59  ;;  %v558_v41 = vadd.f32 %v548_v31, %v1379_v60  ;;  %v559_v42 = vadd.f32 %v549_v32, %v1381_v61 }
 0x1cc   : > { %v563_v43 = vmul.f32 0.7978846, %v553_v35  ;;  %v564_v44 = vmul.f32 0.7978846, %v554_v36  ;;  %v560_v45 = vadd.f32 %v550_v33, %v1383_v62  ;;  %v565_v46 = vmul.f32 0.7978846, %v555_v37 }
 0x1cd   : > { %v566_v47 = vmul.f32 0.7978846, %v556_v38  ;;  %v561_v48 = vadd.f32 %v551_v34, %v1385_v63  ;;  %v567_v49 = vmul.f32 0.7978846, %v557_v40  ;;  %v562_v50 = vadd.f32 %v552_v39, %v1387_v5 }
 0x1ce   : > { %882 = vtanh.f32 %v563_v43  ;;  %v568_v51 = vmul.f32 0.7978846, %v558_v41  ;;  %v569_v52 = vmul.f32 0.7978846, %v559_v42  ;;  %v570_v53 = vmul.f32 0.7978846, %v560_v45 }
 0x1cf   : > { %884 = vtanh.f32 %v564_v44  ;;  %v571_v0 = vmul.f32 0.7978846, %v561_v48  ;;  %v572_v1 = vmul.f32 0.7978846, %v562_v50  ;;  %v513_v4 = vmul.f32 0.5, %v1369_v55 }
 0x1d0   : > { %886 = vtanh.f32 %v565_v46  ;;  %v514_v7 = vmul.f32 0.5, %v1371_v56  ;;  %v515_v11 = vmul.f32 0.5, %v1373_v57  ;;  %v516_v14 = vmul.f32 0.5, %v1375_v58 }
 0x1d1   : > { %888 = vtanh.f32 %v566_v47  ;;  %v517_v18 = vmul.f32 0.5, %v1377_v59  ;;  %v518_v57 = vmul.f32 0.5, %v1379_v60  ;;  %v519_v59 = vmul.f32 0.5, %v1381_v61 }
 0x1d2   : > { %890 = vtanh.f32 %v567_v49  ;;  %v520_v25 = vmul.f32 0.5, %v1383_v62  ;;  %v521_v61 = vmul.f32 0.5, %v1385_v63  ;;  %v522_v30 = vmul.f32 0.5, %v1387_v5 }
 0x1d3   : > { %892 = vtanh.f32 %v568_v51 }
 0x1d4   : > { %894 = vtanh.f32 %v569_v52 }
 0x1d5   : > { %896 = vtanh.f32 %v570_v53 }
 0x1d6   : > { %898 = vtanh.f32 %v571_v0 }
 0x1d7   : > { %900 = vtanh.f32 %v572_v1 }
 0x1d8   : > { %v883_v2 = vpop.eup %882 }
 0x1d9   : > { %v885_v3 = vpop.eup %884  ;;  %v583_v54 = vadd.f32 1.0, %v883_v2 }
 0x1da   : > { %v887_v6 = vpop.eup %886  ;;  %v584_v8 = vadd.f32 1.0, %v885_v3 }
 0x1db   : > { %v889_v10 = vpop.eup %888  ;;  %v585_v12 = vadd.f32 1.0, %v887_v6  ;;  %v593_v9 = vmul.f32 %v583_v54, %v513_v4 }
 0x1dc   : > { %v891_v13 = vpop.eup %890  ;;  %v586_v15 = vadd.f32 1.0, %v889_v10  ;;  %v594_v16 = vmul.f32 %v584_v8, %v514_v7 }
 0x1dd   : > { %v893_v17 = vpop.eup %892  ;;  %v587_v55 = vadd.f32 1.0, %v891_v13  ;;  %v595_v19 = vmul.f32 %v585_v12, %v515_v11  ;;  %603 = vst.msk [vmem:[%s1435_s23] sm:$0xff] %vm392_vm3, %v593_v9 }
 0x1de   : > { %v895_v56 = vpop.eup %894  ;;  %v588_v58 = vadd.f32 1.0, %v893_v17  ;;  %v596_v20 = vmul.f32 %v586_v15, %v516_v14  ;;  %604 = vst.msk [vmem:[%s1435_s23 + $0x8] sm:$0xff] %vm392_vm3, %v594_v16 }
 0x1df   : > { %v897_v21 = vpop.eup %896  ;;  %v589_v22 = vadd.f32 1.0, %v895_v56  ;;  %v597_v23 = vmul.f32 %v587_v55, %v517_v18  ;;  %605 = vst.msk [vmem:[%s1435_s23 + $0x10] sm:$0xff] %vm392_vm3, %v595_v19 }
 0x1e0   : > { %v899_v24 = vpop.eup %898  ;;  %v590_v26 = vadd.f32 1.0, %v897_v21  ;;  %v598_v60 = vmul.f32 %v588_v58, %v518_v57  ;;  %606 = vst.msk [vmem:[%s1435_s23 + $0x18] sm:$0xff] %vm392_vm3, %v596_v20 }
 0x1e1   : > { %v901_v27 = vpop.eup %900  ;;  %v591_v28 = vadd.f32 1.0, %v899_v24  ;;  %v599_v29 = vmul.f32 %v589_v22, %v519_v59  ;;  %607 = vst.msk [vmem:[%s1435_s23 + $0x20] sm:$0xff] %vm392_vm3, %v597_v23 }
 0x1e2   : > { %v592_v62 = vadd.f32 1.0, %v901_v27  ;;  %v600_v31 = vmul.f32 %v590_v26, %v520_v25  ;;  %608 = vst.msk [vmem:[%s1435_s23 + $0x28] sm:$0xff] %vm392_vm3, %v598_v60 }
 0x1e3   : > { %v601_v32 = vmul.f32 %v591_v28, %v521_v61  ;;  %609 = vst.msk [vmem:[%s1435_s23 + $0x30] sm:$0xff] %vm392_vm3, %v599_v29 }
 0x1e4   : > { %v602_v63 = vmul.f32 %v592_v62, %v522_v30  ;;  %610 = vst.msk [vmem:[%s1435_s23 + $0x38] sm:$0xff] %vm392_vm3, %v600_v31 }
 0x1e5   : > { %611 = vst.msk [vmem:[%s1435_s23 + $0x40] sm:$0xff] %vm392_vm3, %v601_v32 }
 0x1e6   : > { %612 = vst.msk [vmem:[%s1435_s23 + $0x48] sm:$0x7f] %vm410_vm4, %v602_v63 }
 0x1e7   : > { %1029 = shalt.err (!%p1026_p4)
}
 0x1e8   : > { %s1030_s11 = scalar_lea.hbm %s1461_s9, 1280  ;;  %s1034_s5 = scalar_lea.hbm %s1517_s4, 2560 }
 0x1e9   : > { %p1031_p9 = scmp.ne.s32.totalorder %s1461_s9, %s1030_s11  ;;  %p1035_p11 = scmp.lt.u32.totalorder %s1461_s9, %s1517_s4 }
 0x1ea   : > { %p1036_p13 = scmp.lt.u32.totalorder %s1034_s5, %s1030_s11  ;;  %p1038_p10 = scmp.lt.u32.totalorder %s1030_s11, %s1461_s9 }
 0x1eb   : > { %p1032_p0 = pnand %p1031_p9, %p1277_p5 }
 0x1ec   : > { %p1037_p6 = por %p1036_p13, %p1035_p11 }
 0x1ed   : > { %p1033_p8 = pneg %p1032_p0 }
 0x1ee   : > { %p1039_p3 = por %p1038_p10, %p1037_p6 }
 0x1f0   : > { %p1040_p7 = pnand %p1039_p3, %p1033_p8 }
 0x1f2   : > { %1043 = shalt.err (!%p1040_p7)
}
 0x1f3   : > { %s1101_s23 = smov 128   ;;  %s1102_s14 = smov 8  }
 0x1f4   : > { %805 = dma.vmem_to_hbm [thread:$0]  (%p1277_p5), %s1463_s20, 1280, %s1461_s9, %s614_s28, %s1101_s23, %s1101_s23, %s1102_s14  }
 0x1f5 PF: > { %s642_s19 = sand.u32 1, %s1078_s15   ;;  %p1535_p12 = scmp.ne.s32.totalorder %s1522_s22, 0 }
 0x1f6   : > { %p1536_p1 = scmp.ge.s32.totalorder %s1090_s18, 2  ;;  %s643_s6 = scalar_lea.sflag [#allocation4], %s642_s19 }
 0x1f8   : > { %p822_p2 = pnand %p1536_p1, %p1535_p12 }
 0x1fa   : > { %1073 = dma.done.wait (!%p822_p2), %s643_s6, 1280  }
 0x1fb   : > { %1075 = vsyncadd (!%p822_p2), %s643_s6, 4294966016  ;;  %p19_p4 = scmp.ge.s32.totalorder %s1263_s10, 4   ;;  %s1537_s15 = smov %s1082_s16 }
 0x1fc   : > { %s1538_s16 = smov %s1086_s17  ;;  %s1539_s17 = smov %s1273_s24 }
 0x1fd   : > { %s1540_s18 = smov %s1263_s10  ;;  %21 = sbr.rel (!%p19_p4) target bundleno = 7 (0x7), region = 93 }
 0x204   :  { %648 = vsyncpa [#allocation3], 1 }
 0x205   :  { %650 = vsyncpa [#allocation3 + $0x1], 1 }
 0x206   :  { %651 = vsyncpa [#allocation6], 1 }
 0x207   :  { %652 = vsyncpa [#allocation9], 1 }
 0x208   :  { %653 = vsyncpa [#allocation4], 1 }
 0x209   :  { %655 = vsyncpa [#allocation4 + $0x1], 1 }

// kernel: wavlm_ctc_forward.7
= control target key start
LH: loop header
LB: loop body
LE: loop exit
PB: predicated region body
PF: predicated region fallthrough
CT: control target
= control target key end

     0   :  { %11 = vsyncpa [#allocation3], 0  ;;  %s1663_s0 = inlined_call_operand.hbm [shape: bf16[2,39,48], index: 0, kind: input, shape index: {}]   ;;  %s1664_s1 = inlined_call_operand.hbm [shape: bf16[48,16], index: 1, kind: input, shape index: {}]   ;;  %s1665_s2 = inlined_call_operand.hbm [shape: f32[1,16], index: 2, kind: input, shape index: {}]   ;;  %s1666_s3 = inlined_call_operand.hbm [shape: f32[1,16], index: 3, kind: input, shape index: {}]   ;;  %s1667_s4 = inlined_call_operand.hbm [shape: bf16[16,32], index: 4, kind: input, shape index: {}]   ;;  %s1668_s5 = inlined_call_operand.hbm [shape: f32[1,32], index: 5, kind: input, shape index: {}]   ;;  %s1669_s6 = inlined_call_operand.hbm [shape: f32[2,39,32], index: 6, kind: output, shape index: {}]  }
   0x1   :  { %13 = vsyncpa [#allocation3 + $0x1], 0 }
   0x2   :  { %14 = vsyncpa [#allocation6], 0 }
   0x3   :  { %15 = vsyncpa [#allocation9], 0 }
   0x4   :  { %16 = vsyncpa [#allocation12], 0 }
   0x5   :  { %17 = vsyncpa [#allocation4], 0 }
   0x6   :  { %19 = vsyncpa [#allocation4 + $0x1], 0  ;;  %s1317_s21 = smov 0   ;;  %s1319_s22 = smov 0  }
   0x7   :  { %s1321_s23 = smov 0   ;;  %s1323_s24 = smov 0  }
   0x8 LB: > { %s1269_s25 = smov [#allocation5]   ;;  %s1338_s27 = sadd.s32 4294967295, %s1267_s24   ;;  %s1267_s24 = sphi %s1323_s24, %s1698_s24   ;;  %s1263_s23 = sphi %s1321_s23, %s1697_s23   ;;  %s1259_s22 = sphi %s1319_s22, %s1696_s22   ;;  %s1255_s21 = sphi %s1317_s21, %s1695_s21  }
   0x9   : > { %s199_s26 = sshll.u32 %s1269_s25, 4  ;;  %p809_p0 = scmp.ge.s32.totalorder %s1267_s24, 1  ;;  %s1343_s26 = int_to_ptr.vmem [resolvable:$true] %s199_s26 }
   0xa   : > { %p1670_p1 = scmp.eq.s32.totalorder %s1338_s27, 0  ;;  %p187_p2 = scmp.lt.s32.totalorder %s1267_s24, 3 }
   0xb   : > { %s1270_s29 = smov [#allocation8]   ;;  %s1271_s8 = smov [#allocation7]  }
   0xc   : > { %p1345_p3 = pnand %p809_p0, %p187_p2  ;;  %s224_s30 = sshll.u32 %s1270_s29, 4  ;;  %s1358_s30 = int_to_ptr.vmem [resolvable:$true] %s224_s30 }
   0xd   : > { %s213_s9 = sshll.u32 %s1271_s8, 4  ;;  %s1019_s12 = scalar_lea.hbm %s1664_s1, 384  ;;  %s1360_s9 = int_to_ptr.vmem [resolvable:$true] %s213_s9 }
   0xe   : > { %s1675_s28 = scalar_select %p1345_p3, 1, 0 }
   0xf   : > { %p913_p5 = pneg %p1345_p3  ;;  %p1020_p7 = scmp.ne.s32.totalorder %s1664_s1, %s1019_s12 }
  0x10   : > { %p1026_p11 = scmp.lt.u32.totalorder %s1019_s12, %s1664_s1 }
  0x11   : > { %p1354_p6 = pnand %p913_p5, %p1670_p1 }
  0x13   : > { %p1370_p8 = pneg %p1354_p6 }
  0x15   : > { %p1022_p9 = pnand %p1370_p8, %p1020_p7 }
  0x17   : > { %p1023_p10 = pneg %p1022_p9 }
  0x19   : > { %p1028_p12 = pnand %p1026_p11, %p1023_p10 }
  0x1b   : > { %1031 = shalt.err (!%p1028_p12)
}
  0x1c   : > { %s1032_s18 = scalar_lea.vmem %s1343_s26, 384  ;;  %p1040_p5 = scmp.lt.s32.totalorder %s1343_s26, %s1343_s26 }
  0x1d   : > { %p1033_p13 = scmp.ne.s32.totalorder %s1343_s26, %s1032_s18  ;;  %p1041_p4 = scmp.lt.s32.totalorder %s1032_s18, %s1032_s18 }
  0x1f   : > { %p1035_p0 = pnand %p1033_p13, %p1370_p8  ;;  %p1042_p7 = por %p1041_p4, %p1040_p5 }
  0x21   : > { %p1036_p2 = pneg %p1035_p0 }
  0x23   : > { %p1043_p9 = pnand %p1042_p7, %p1036_p2 }
  0x25   : > { %1046 = shalt.err (!%p1043_p9)
}
  0x26   : > { %s1672_s19 = smov 64   ;;  %s1673_s20 = smov 4  }
  0x27   : > { %916 = dma.hbm_to_vmem [thread:$0]  (!%p1354_p6), %s1664_s1, 384, %s1343_s26, [#allocation6], %s1672_s19, %s1672_s19, %s1673_s20  }
  0x28   : > { %s1047_s11 = scalar_lea.hbm %s1666_s3, 16 }
  0x29   : > { %p1048_p4 = scmp.ne.s32.totalorder %s1666_s3, %s1047_s11  ;;  %p1054_p12 = scmp.lt.u32.totalorder %s1047_s11, %s1666_s3 }
  0x2b   : > { %p1050_p10 = pnand %p1048_p4, %p1370_p8 }
  0x2d   : > { %p1051_p11 = pneg %p1050_p10 }
  0x2f   : > { %p1056_p13 = pnand %p1054_p12, %p1051_p11 }
  0x31   : > { %1059 = shalt.err (!%p1056_p13)
}
  0x32   : > { %s1060_s26 = scalar_lea.vmem %s1358_s30, 16  ;;  %s1067_s17 = scalar_lea.vmem %s1358_s30, 32 }
  0x33   : > { %p1061_p0 = scmp.ne.s32.totalorder %s1358_s30, %s1060_s26  ;;  %p1068_p7 = scmp.lt.s32.totalorder %s1358_s30, %s1358_s30 }
  0x34   : > { %p1069_p9 = scmp.lt.s32.totalorder %s1067_s17, %s1060_s26 }
  0x35   : > { %p1063_p2 = pnand %p1061_p0, %p1370_p8 }
  0x36   : > { %p1070_p4 = por %p1069_p9, %p1068_p7 }
  0x37   : > { %p1064_p5 = pneg %p1063_p2 }
  0x39   : > { %p1071_p10 = pnand %p1070_p4, %p1064_p5 }
  0x3b   : > { %1074 = shalt.err (!%p1071_p10)
}
  0x3c   : > { %922 = dma.hbm_to_vmem [thread:$0]  (!%p1354_p6), %s1666_s3, 16, %s1358_s30, [#allocation9]  }
  0x3d   : > { %s1075_s10 = scalar_lea.hbm %s1665_s2, 16 }
  0x3e   : > { %p1076_p11 = scmp.ne.s32.totalorder %s1665_s2, %s1075_s10  ;;  %p1082_p0 = scmp.lt.u32.totalorder %s1075_s10, %s1665_s2 }
  0x40   : > { %p1078_p12 = pnand %p1076_p11, %p1370_p8 }
  0x42   : > { %p1079_p13 = pneg %p1078_p12 }
  0x44   : > { %p1084_p2 = pnand %p1082_p0, %p1079_p13 }
  0x46   : > { %1087 = shalt.err (!%p1084_p2)
}
  0x47   : > { %s1088_s30 = scalar_lea.vmem %s1360_s9, 16  ;;  %s1095_s16 = scalar_lea.vmem %s1360_s9, 32 }
  0x48   : > { %p1089_p5 = scmp.ne.s32.totalorder %s1360_s9, %s1088_s30  ;;  %p1096_p4 = scmp.lt.s32.totalorder %s1360_s9, %s1360_s9 }
  0x49   : > { %p1097_p10 = scmp.lt.s32.totalorder %s1095_s16, %s1088_s30 }
  0x4a   : > { %p1091_p7 = pnand %p1089_p5, %p1370_p8 }
  0x4b   : > { %p1098_p11 = por %p1097_p10, %p1096_p4 }
  0x4c   : > { %p1092_p9 = pneg %p1091_p7 }
  0x4e   : > { %p1099_p12 = pnand %p1098_p11, %p1092_p9 }
  0x50   : > { %1102 = shalt.err (!%p1099_p12)
}
  0x51   : > { %919 = dma.hbm_to_vmem [thread:$0]  (!%p1354_p6), %s1665_s2, 16, %s1360_s9, [#allocation6]  }
  0x52   : > { %s1274_s18 = smov [#allocation10]   ;;  %s1275_s29 = smov [#allocation11]  }
  0x53   : > { %s234_s25 = sshll.u32 %s1274_s18, 4  ;;  %s248_s8 = sshll.u32 %s1275_s29, 4  ;;  %s235_s25 = int_to_ptr.vmem [resolvable:$true] %s234_s25  ;;  %s249_s8 = int_to_ptr.vmem [resolvable:$true] %s248_s8 }
  0x54   : > { %s1103_s12 = scalar_lea.hbm %s1667_s4, 128 }
  0x55   : > { %p1104_p13 = scmp.ne.s32.totalorder %s1667_s4, %s1103_s12  ;;  %p1110_p5 = scmp.lt.u32.totalorder %s1103_s12, %s1667_s4 }
  0x57   : > { %p1106_p0 = pnand %p1104_p13, %p1370_p8 }
  0x59   : > { %p1107_p2 = pneg %p1106_p0 }
  0x5b   : > { %p1112_p7 = pnand %p1110_p5, %p1107_p2 }
  0x5d   : > { %1115 = shalt.err (!%p1112_p7)
}
  0x5e   : > { %s1116_s9 = scalar_lea.vmem %s235_s25, 128  ;;  %p1124_p11 = scmp.lt.s32.totalorder %s235_s25, %s235_s25 }
  0x5f   : > { %p1117_p9 = scmp.ne.s32.totalorder %s235_s25, %s1116_s9  ;;  %p1125_p12 = scmp.lt.s32.totalorder %s1116_s9, %s1116_s9 }
  0x61   : > { %p1119_p4 = pnand %p1117_p9, %p1370_p8  ;;  %p1126_p1 = por %p1125_p12, %p1124_p11 }
  0x63   : > { %p1120_p10 = pneg %p1119_p4 }
  0x65   : > { %p1127_p3 = pnand %p1126_p1, %p1120_p10 }
  0x67   : > { %1130 = shalt.err (!%p1127_p3)
}
  0x68   : > { %925 = dma.hbm_to_vmem [thread:$0]  (!%p1354_p6), %s1667_s4, 128, %s235_s25, [#allocation9], %s1672_s19, %s1672_s19, %s1673_s20  }
  0x69   : > { %s1131_s10 = scalar_lea.hbm %s1668_s5, 16 }
  0x6a   : > { %p1132_p1 = scmp.ne.s32.totalorder %s1668_s5, %s1131_s10  ;;  %p1138_p0 = scmp.lt.u32.totalorder %s1131_s10, %s1668_s5 }
  0x6c   : > { %p1134_p3 = pnand %p1132_p1, %p1370_p8 }
  0x6e   : > { %p1135_p13 = pneg %p1134_p3 }
  0x70   : > { %p1140_p2 = pnand %p1138_p0, %p1135_p13 }
  0x72   : > { %1143 = shalt.err (!%p1140_p2)
}
  0x73   : > { %s1144_s30 = scalar_lea.vmem %s249_s8, 16  ;;  %s1151_s25 = scalar_lea.vmem %s249_s8, 32 }
  0x74   : > { %p1145_p5 = scmp.ne.s32.totalorder %s249_s8, %s1144_s30  ;;  %p1152_p4 = scmp.lt.s32.totalorder %s249_s8, %s249_s8 }
  0x75   : > { %p1153_p10 = scmp.lt.s32.totalorder %s1151_s25, %s1144_s30 }
  0x76   : > { %p1147_p7 = pnand %p1145_p5, %p1370_p8 }
  0x77   : > { %p1154_p11 = por %p1153_p10, %p1152_p4 }
  0x78   : > { %p1148_p9 = pneg %p1147_p7 }
  0x7a   : > { %p1155_p12 = pnand %p1154_p11, %p1148_p9 }
  0x7c   : > { %1158 = shalt.err (!%p1155_p12)
}
  0x7d   : > { %928 = dma.hbm_to_vmem [thread:$0]  (!%p1354_p6), %s1668_s5, 16, %s249_s8, [#allocation12]  }
  0x7e   : > { %s808_s15 = sadd.s32 4294967294, %s1267_s24   ;;  %s1483_s7 = sadd.s32 1, %s1267_s24  }
  0x7f   : > { %s32_s26 = sadd.s32 1, %s1263_s23  ;;  %s29_s17 = ssub.s32 %s1267_s24, %s1483_s7 }
  0x80   : > { %p39_p8 = scmp.ne.s32.totalorder %s1263_s23, %s1259_s22  ;;  %p30_p1 = scmp.eq.s32.totalorder %s29_s17, 0 }
  0x81   : > { %p40_p3 = scmp.eq.s32.totalorder %s1267_s24, 0  ;;  %p45_p13 = scmp.ne.s32.totalorder %s1259_s22, %s1255_s21 }
  0x82   : > { %p174_p0 = scmp.eq.s32.totalorder %s1338_s27, 1  ;;  %p1678_p5 = scmp.eq.s32.totalorder %s1338_s27, 0 }
  0x83   : > { %s1495_s18 = scalar_select %p30_p1, %s1263_s23, %s32_s26  }
  0x84   : > { %p41_p2 = por %p40_p3, %p39_p8  ;;  %p1499_p7 = por %p1678_p5, %p45_p13 }
  0x85   : > { %p1503_p6 = por %p174_p0, %p39_p8  ;;  %p180_p9 = scmp.eq.s32.totalorder %s808_s15, 1 }
  0x86   : > { %p942_p4 = scmp.lt.s32.totalorder %s1267_s24, 2  ;;  %s259_s10 = sand.u32 1, %s1263_s23  }
  0x87   : > { %s1680_s8 = scalar_select %p1503_p6, 1, 0 }
  0x88   : > { %p1509_p10 = por %p180_p9, %p45_p13  ;;  %s884_s12 = smul.u32 20, %s259_s10 }
  0x89   : > { %p1513_p11 = pnand %p942_p4, %p41_p2  ;;  %s885_s14 = smul.u32 320, %s1267_s24 }
  0x8a   : > { %s1681_s11 = scalar_select %p1509_p10, 1, 0 }
  0x8b   : > { %s1521_s16 = scalar_lea.hbm %s1663_s0, %s885_s14  ;;  %s263_s9 = scalar_lea.vmem [#allocation2], %s884_s12 }
  0x8c   : > { %s270_s15 = sshll.u32 %s263_s9, 4  ;;  %s1525_s26 = scalar_lea.sflag [#allocation3], %s259_s10  ;;  %s1523_s15 = int_to_ptr.vmem [resolvable:$true] %s270_s15 }
  0x8d   : > { %s1159_s17 = scalar_lea.hbm %s1521_s16, 320  ;;  %p1161_p8 = pneg %p1513_p11 }
  0x8e   : > { %p1160_p12 = scmp.ne.s32.totalorder %s1521_s16, %s1159_s17  ;;  %s1164_s25 = scalar_lea.hbm %s1663_s0, 640 }
  0x8f   : > { %p1165_p13 = scmp.lt.u32.totalorder %s1521_s16, %s1663_s0  ;;  %p1166_p0 = scmp.lt.u32.totalorder %s1164_s25, %s1159_s17 }
  0x90   : > { %p1162_p1 = pnand %p1161_p8, %p1160_p12  ;;  %p1168_p5 = scmp.lt.u32.totalorder %s1159_s17, %s1521_s16 }
  0x91   : > { %p1167_p2 = por %p1166_p0, %p1165_p13 }
  0x92   : > { %p1163_p3 = pneg %p1162_p1 }
  0x93   : > { %p1169_p9 = por %p1168_p5, %p1167_p2 }
  0x95   : > { %p1170_p4 = pnand %p1169_p9, %p1163_p3 }
  0x97   : > { %1173 = shalt.err (!%p1170_p4)
}
  0x98   : > { %s1174_s10 = scalar_lea.vmem %s1523_s15, 320  ;;  %s1276_s12 = smov [#allocation2]  }
  0x99   : > { %p1175_p12 = scmp.ne.s32.totalorder %s1523_s15, %s1174_s10  ;;  %s1179_s9 = sshll.u32 %s1276_s12, 4  ;;  %s1180_s9 = int_to_ptr.vmem [resolvable:$false] %s1179_s9 }
  0x9a   : > { %s1181_s19 = scalar_lea.vmem %s1180_s9, 640  ;;  %p1182_p6 = scmp.lt.s32.totalorder %s1523_s15, %s1180_s9 }
  0x9b   : > { %p1177_p1 = pnand %p1175_p12, %p1161_p8  ;;  %p1183_p13 = scmp.lt.s32.totalorder %s1181_s19, %s1174_s10 }
  0x9d   : > { %p1178_p10 = pneg %p1177_p1  ;;  %p1184_p0 = por %p1183_p13, %p1182_p6 }
  0x9f   : > { %p1185_p2 = pnand %p1184_p0, %p1178_p10 }
  0xa1   : > { %1188 = shalt.err (!%p1185_p2)
}
  0xa2   : > { %s1683_s20 = smov 4   ;;  %s1684_s17 = smov 64  }
  0xa3   : > { %932 = dma.hbm_to_vmem [thread:$0]  (!%p1513_p11), %s1521_s16, 320, %s1523_s15, %s1525_s26, %s1684_s17, %s1684_s17, %s1683_s20  }
  0xa4   : > { %p1685_p8 = scmp.ne.s32.totalorder %s1675_s28, 0 }
  0xa5   : > { %s1559_s14 = sand.u32 (!%p1685_p8), 1, %s1259_s22  }
  0xa6   : > { %282 = sbr.rel (%p1685_p8) target bundleno = 999 (0x3e7), region = 44  ;;  %s285_s25 = scalar_lea.sflag (!%p1685_p8), [#allocation3], %s1559_s14 }
  0xa7   : > { %s886_s30 = smul.u32 (!%p1685_p8), 20, %s1559_s14 }
  0xa9   : > { %s288_s10 = scalar_lea.vmem (!%p1685_p8), [#allocation2], %s886_s30 }
  0xad   : > { %1234 = dma.done.wait (%p1499_p7), %s285_s25, 320  }
  0xae   : > { %1236 = vsyncadd (%p1499_p7), %s285_s25, 4294966976  ;;  %p1686_p6 = scmp.eq.s32.totalorder %s1338_s27, 0 }
  0xb0   : > { %1238 = dma.done.wait (%p1686_p6), [#allocation6], 400   ;;  %p1687_p10 = pmov %p1686_p6 }
  0xb1   : > { %p1688_p11 = pmov %p1686_p6 }
  0xb2   : > { %1240 = vsyncadd (%p1687_p10), [#allocation6], 4294966896 }
  0xb3   : > { %1242 = dma.done.wait (%p1688_p11), [#allocation9], 144   ;;  %p1689_p3 = pmov %p1686_p6 }
  0xb5   : > { %1244 = vsyncadd (%p1689_p3), [#allocation9], 4294967152  ;;  %p1690_p5 = pmov %p1689_p3 }
  0xb6   : > { %p1691_p9 = pmov %p1689_p3 }
  0xb7   : > { %1246 = dma.done.wait (%p1690_p5), [#allocation12], 16  }
  0xb8   : > { %1248 = vsyncadd (%p1691_p9), [#allocation12], 4294967280  ;;  %v1277_v0 = vmov 0.0   ;;  %vm1278_vm0 = vmmov 0   ;;  %v992_v1 = vld [vmem:[#allocation5] sm:$0xff]   ;;  %v993_v2 = vld [vmem:[#allocation5 + $0x8] sm:$0xff]  }
  0xb9   : > { %852 = vmatprep.subr.bf16.mxu0 %v1277_v0  ;;  %858 = vmatprep.mubr.msk.bf16.mxu0 %vm1278_vm0, %v1277_v0  ;;  %v994_v3 = vld [vmem:[#allocation5 + $0x10] sm:$0xff]   ;;  %vm380_vm1 = vcmask 392192   ;;  %v997_v6 = vld [vmem:[%s288_s10 + $0x10] ss:$0 sps:$4 sm:$0xff]   ;;  %vm493_vm2 = vcmask 130048   ;;  %vm506_vm3 = vcmask 129024  }
  0xba   : > { %870 = vmatprep.subr.bf16.mxu1 %v1277_v0  ;;  %872 = vmatprep.mubr.msk.bf16.mxu1 %vm1278_vm0, %v1277_v0  ;;  %v995_v4 = vld [vmem:[%s288_s10] sm:$0xff]   ;;  %v996_v5 = vld [vmem:[%s288_s10 + $0x8] sm:$0xff]   ;;  %s887_s28 = smul.u32 40, %s1559_s14  ;;  %vm666_vm4 = vcmask 261120   ;;  %vm671_vm5 = vcmask 260096   ;;  %s674_s9 = scalar_lea.sflag [#allocation4], %s1559_s14 }
  0xbb   : > { %853 = vmatpush3.bf16.msra.mxu0 %v992_v1  ;;  %s888_s16 = smul.u32 640, %s1338_s27  ;;  %p1692_p4 = scmp.ne.s32.totalorder %s1680_s8, 0 }
  0xbc   : > { %854 = vmatprep.subr.bf16.mxu0 %v1277_v0  ;;  %s336_s29 = scalar_lea.vmem [#allocation13], %s887_s28  ;;  %s1279_s27 = smov [#allocation13]  }
  0xbd   : > { %s687_s13 = sshll.u32 %s336_s29, 4  ;;  %s1619_s12 = scalar_lea.hbm %s1669_s6, %s888_s16  ;;  %s1614_s13 = int_to_ptr.vmem [resolvable:$true] %s687_s13 }
  0xbe   : > { %s1189_s19 = scalar_lea.vmem %s1614_s13, 640  ;;  %s1193_s20 = sshll.u32 %s1279_s27, 4  ;;  %s1194_s20 = int_to_ptr.vmem [resolvable:$false] %s1193_s20 }
  0xbf   : > { %855 = vmatpush3.bf16.msra.mxu0 %v993_v2  ;;  %p1190_p7 = scmp.ne.s32.totalorder %s1614_s13, %s1189_s19  ;;  %s1195_s17 = scalar_lea.vmem %s1194_s20, 1280 }
  0xc0   : > { %856 = vmatprep.subr.bf16.mxu0 %v1277_v0  ;;  %p1196_p13 = scmp.lt.s32.totalorder %s1614_s13, %s1194_s20  ;;  %p1197_p0 = scmp.lt.s32.totalorder %s1195_s17, %s1189_s19 }
  0xc1   : > { %p1191_p12 = pnand %p1190_p7, %p1692_p4 }
  0xc2   : > { %p1198_p2 = por %p1197_p0, %p1196_p13 }
  0xc3   : > { %857 = vmatpush3.bf16.msra.mxu0 %v994_v3  ;;  %p1192_p1 = pneg %p1191_p12 }
  0xc5   : > { %p1199_p8 = pnand %p1198_p2, %p1192_p1 }
  0xc6   : > { %859 = vmatmul.mubr.msk.bf16.vlgmr.msra.gmra.mrb[0].mxu0 %vm380_vm1, %v995_v4 }
  0xc7   : > { %862 = vmatprep.mubr.msk.bf16.mxu0 %vm1278_vm0, %v1277_v0 }
  0xce   : > { %863 = vmatmul.mubr.msk.bf16.gmra.mrb[4].mxu0 %vm380_vm1, %v996_v5 }
  0xcf   : > { %866 = vmatprep.mubr.msk.bf16.mxu0 %vm1278_vm0, %v1277_v0 }
  0xd6   : > { %867 = vmatmul.mubr.msk.bf16.gmra.mrb[8].mxu0 %vm380_vm1, %v997_v6 }
 0x199   : > { %v424_v7 = vpop.f32.mrb[0].mxu0 }
 0x19a   : > { %v451_v8 = vmul.f32 0.044715, %v424_v7  ;;  %v860_v9 = vpop.f32.mrb[1].mxu0  ;;  %v446_v43 = vmul.f32 0.5, %v424_v7 }
 0x19b   : > { %v427_v10 = vpop.f32.mrb[2].mxu0 }
 0x19c   : > { %v456_v11 = vmul.f32 %v451_v8, %v424_v7  ;;  %v452_v12 = vmul.f32 0.044715, %v427_v10  ;;  %v861_v13 = vpop.f32.mrb[3].mxu0  ;;  %v447_v48 = vmul.f32 0.5, %v427_v10 }
 0x19e   : > { %v461_v14 = vmul.f32 %v456_v11, %v424_v7  ;;  %v457_v15 = vmul.f32 %v452_v12, %v427_v10 }
 0x1a0   : > { %v462_v16 = vmul.f32 %v457_v15, %v427_v10  ;;  %v466_v17 = vadd.f32 %v461_v14, %v424_v7 }
 0x1a1   : > { %v432_v18 = vpop.f32.mrb[4].mxu0 }
 0x1a2   : > { %v453_v19 = vmul.f32 0.044715, %v432_v18  ;;  %v864_v20 = vpop.f32.mrb[5].mxu0  ;;  %v471_v21 = vmul.f32 0.7978846, %v466_v17  ;;  %v467_v22 = vadd.f32 %v462_v16, %v427_v10  ;;  %v448_v55 = vmul.f32 0.5, %v432_v18 }
 0x1a3   : > { %v435_v23 = vpop.f32.mrb[6].mxu0 }
 0x1a4   : > { %v458_v24 = vmul.f32 %v453_v19, %v432_v18  ;;  %v454_v25 = vmul.f32 0.044715, %v435_v23  ;;  %v865_v26 = vpop.f32.mrb[7].mxu0  ;;  %999 = vtanh.f32 %v471_v21  ;;  %v472_v27 = vmul.f32 0.7978846, %v467_v22 }
 0x1a5   : > { %v449_v59 = vmul.f32 0.5, %v435_v23 }
 0x1a6   : > { %v463_v28 = vmul.f32 %v458_v24, %v432_v18  ;;  %v459_v29 = vmul.f32 %v454_v25, %v435_v23  ;;  %1001 = vtanh.f32 %v472_v27 }
 0x1a8   : > { %v464_v30 = vmul.f32 %v459_v29, %v435_v23  ;;  %v468_v31 = vadd.f32 %v463_v28, %v432_v18 }
 0x1a9   : > { %v440_v32 = vpop.f32.mrb[8].mxu0 }
 0x1aa   : > { %v455_v33 = vmul.f32 0.044715, %v440_v32  ;;  %v868_v34 = vpop.f32.mrb[9].mxu0  ;;  %v473_v35 = vmul.f32 0.7978846, %v468_v31  ;;  %v469_v36 = vadd.f32 %v464_v30, %v435_v23  ;;  %v450_v2 = vmul.f32 0.5, %v440_v32 }
 0x1ab   : > { %v443_v37 = vpop.f32.mrb[10].mxu0  ;;  %v998_v31 = vld [vmem:[#allocation10] sm:$0xff]  }
 0x1ac   : > { %v460_v38 = vmul.f32 %v455_v33, %v440_v32  ;;  %v869_v39 = vpop.f32.mrb[11].mxu0  ;;  %1003 = vtanh.f32 %v473_v35  ;;  %v474_v40 = vmul.f32 0.7978846, %v469_v36  ;;  %871 = vmatpush3.bf16.msra.mxu1 %v998_v31 }
 0x1ae   : > { %v1000_v41 = vpop.eup %999  ;;  %v465_v42 = vmul.f32 %v460_v38, %v440_v32  ;;  %1005 = vtanh.f32 %v474_v40 }
 0x1af   : > { %v481_v44 = vadd.f32 1.0, %v1000_v41 }
 0x1b0   : > { %v1002_v45 = vpop.eup %1001  ;;  %v470_v46 = vadd.f32 %v465_v42, %v440_v32 }
 0x1b1   : > { %v486_v47 = vmul.f32 %v481_v44, %v446_v43  ;;  %v482_v49 = vadd.f32 1.0, %v1002_v45 }
 0x1b2   : > { %v475_v50 = vmul.f32 0.7978846, %v470_v46 }
 0x1b3   : > { %v494_v51 = vsel %vm493_vm2, %v486_v47, 0.0  ;;  %v487_v52 = vmul.f32 %v482_v49, %v447_v48  ;;  %v832_v48 = vld [vmem:[#allocation7] ss:$0 sm:$0xff] }
 0x1b4   : > { %495 = vadd.xlane.f32.xlu0 %v494_v51  ;;  %1007 = vtanh.f32 %v475_v50 }
 0x1b5   : > { %v497_v54 = vsel %vm493_vm2, %v487_v52, 0.0 }
 0x1b6   : > { %v1004_v53 = vpop.eup %1003 }
 0x1b7   : > { %v483_v56 = vadd.f32 1.0, %v1004_v53  ;;  %v833_v53 = vld [vmem:[#allocation8] ss:$0 sm:$0xff] }
 0x1b8   : > { %v1006_v57 = vpop.eup %1005  ;;  %498 = vadd.xlane.f32.xlu0 %v497_v54 }
 0x1b9   : > { %v488_v58 = vmul.f32 %v483_v56, %v448_v55  ;;  %v484_v60 = vadd.f32 1.0, %v1006_v57 }
 0x1bb   : > { %v500_v61 = vsel %vm493_vm2, %v488_v58, 0.0  ;;  %v489_v62 = vmul.f32 %v484_v60, %v449_v59 }
 0x1bc   : > { %501 = vadd.xlane.f32.xlu1 %v500_v61 }
 0x1bd   : > { %v503_v1 = vsel %vm493_vm2, %v489_v62, 0.0 }
 0x1be   : > { %v1008_v63 = vpop.eup %1007 }
 0x1bf   : > { %v485_v3 = vadd.f32 1.0, %v1008_v63 }
 0x1c0   : > { %504 = vadd.xlane.f32.xlu1 %v503_v1 }
 0x1c1   : > { %v490_v4 = vmul.f32 %v485_v3, %v450_v2 }
 0x1c3   : > { %v507_v5 = vsel %vm506_vm3, %v490_v4, 0.0 }
 0x1c4   : > { %508 = vadd.xlane.f32.xlu0 %v507_v5 }
 0x241   : > { %v496_v6 = vpop.xlane.xlu0 %495 }
 0x242   : > { %v511_v7 = vmul.f32 0.0625, %v496_v6 }
 0x244   : > { %v516_v8 = vsub.f32 %v486_v47, %v511_v7 }
 0x245   : > { %v499_v9 = vpop.xlane.xlu0 %498 }
 0x246   : > { %v512_v10 = vmul.f32 0.0625, %v499_v9  ;;  %v521_v11 = vmul.f32 %v516_v8, %v516_v8  ;;  %v834_v9 = vld [vmem:[#allocation11] ss:$0 sm:$0xff] }
 0x248   : > { %v517_v12 = vsub.f32 %v487_v52, %v512_v10  ;;  %v526_v13 = vsel %vm493_vm2, %v521_v11, 0.0 }
 0x249   : > { %v502_v14 = vpop.xlane.xlu1 %501  ;;  %527 = vadd.xlane.f32.xlu1 %v526_v13 }
 0x24a   : > { %v513_v15 = vmul.f32 0.0625, %v502_v14  ;;  %v522_v16 = vmul.f32 %v517_v12, %v517_v12 }
 0x24c   : > { %v518_v17 = vsub.f32 %v488_v58, %v513_v15  ;;  %v529_v18 = vsel %vm493_vm2, %v522_v16, 0.0 }
 0x24d   : > { %v505_v19 = vpop.xlane.xlu1 %504  ;;  %530 = vadd.xlane.f32.xlu0 %v529_v18 }
 0x24e   : > { %v514_v20 = vmul.f32 0.0625, %v505_v19  ;;  %v523_v21 = vmul.f32 %v518_v17, %v518_v17 }
 0x250   : > { %v519_v22 = vsub.f32 %v489_v62, %v514_v20  ;;  %v532_v23 = vsel %vm493_vm2, %v523_v21, 0.0 }
 0x251   : > { %533 = vadd.xlane.f32.xlu1 %v532_v23  ;;  %v509_v24 = vpop.xlane.xlu0 %508 }
 0x252   : > { %v515_v25 = vmul.f32 0.0625, %v509_v24  ;;  %v524_v26 = vmul.f32 %v519_v22, %v519_v22 }
 0x254   : > { %v520_v27 = vsub.f32 %v490_v4, %v515_v25  ;;  %v535_v28 = vsel %vm493_vm2, %v524_v26, 0.0 }
 0x255   : > { %536 = vadd.xlane.f32.xlu0 %v535_v28 }
 0x256   : > { %v525_v29 = vmul.f32 %v520_v27, %v520_v27 }
 0x258   : > { %v538_v30 = vsel %vm506_vm3, %v525_v29, 0.0 }
 0x259   : > { %539 = vadd.xlane.f32.xlu1 %v538_v30 }
 0x2d6   : > { %v528_v32 = vpop.xlane.xlu1 %527 }
 0x2d7   : > { %v541_v33 = vmul.f32 0.0625, %v528_v32 }
 0x2d9   : > { %v546_v34 = vadd.f32 1e-05, %v541_v33 }
 0x2da   : > { %v531_v35 = vpop.xlane.xlu0 %530 }
 0x2db   : > { %1009 = vrsqrt.f32 %v546_v34  ;;  %v542_v36 = vmul.f32 0.0625, %v531_v35 }
 0x2dd   : > { %v547_v37 = vadd.f32 1e-05, %v542_v36 }
 0x2de   : > { %v534_v38 = vpop.xlane.xlu1 %533 }
 0x2df   : > { %1011 = vrsqrt.f32 %v547_v37  ;;  %v543_v39 = vmul.f32 0.0625, %v534_v38 }
 0x2e1   : > { %v548_v40 = vadd.f32 1e-05, %v543_v39 }
 0x2e2   : > { %v537_v41 = vpop.xlane.xlu0 %536 }
 0x2e3   : > { %1013 = vrsqrt.f32 %v548_v40  ;;  %v544_v42 = vmul.f32 0.0625, %v537_v41 }
 0x2e5   : > { %v1010_v43 = vpop.eup %1009  ;;  %v549_v44 = vadd.f32 1e-05, %v544_v42 }
 0x2e6   : > { %v556_v45 = vmul.f32 %v1010_v43, %v516_v8  ;;  %v540_v46 = vpop.xlane.xlu1 %539 }
 0x2e7   : > { %1015 = vrsqrt.f32 %v549_v44  ;;  %v545_v47 = vmul.f32 0.0625, %v540_v46 }
 0x2e8   : > { %v567_v52 = vmul.f32 %v832_v48, %v556_v45 }
 0x2e9   : > { %v1012_v49 = vpop.eup %1011  ;;  %v550_v50 = vadd.f32 1e-05, %v545_v47 }
 0x2ea   : > { %v557_v51 = vmul.f32 %v1012_v49, %v517_v12  ;;  %v578_v57 = vadd.f32 %v833_v53, %v567_v52 }
 0x2eb   : > { %1017 = vrsqrt.f32 %v550_v50 }
 0x2ec   : > { %v568_v54 = vmul.f32 %v832_v48, %v557_v51 }
 0x2ed   : > { %v1014_v55 = vpop.eup %1013 }
 0x2ee   : > { %v558_v56 = vmul.f32 %v1014_v55, %v518_v17  ;;  %v579_v58 = vadd.f32 %v833_v53, %v568_v54 }
 0x2f0   : > { %v583_v59 = vpack.c.bf16 %v579_v58, %v578_v57  ;;  %v569_v62 = vmul.f32 %v832_v48, %v558_v56 }
 0x2f1   : > { %v1016_v60 = vpop.eup %1015 }
 0x2f2   : > { %v559_v61 = vmul.f32 %v1016_v60, %v519_v22  ;;  %873 = vmatmul.mubr.msk.bf16.vlgmr.msra.gmra.mrb[0].mxu1 %vm493_vm2, %v583_v59  ;;  %v580_v3 = vadd.f32 %v833_v53, %v569_v62 }
 0x2f3   : > { %876 = vmatprep.mubr.msk.bf16.mxu1 %vm1278_vm0, %v1277_v0 }
 0x2f4   : > { %v570_v63 = vmul.f32 %v832_v48, %v559_v61 }
 0x2f5   : > { %v1018_v1 = vpop.eup %1017 }
 0x2f6   : > { %v560_v2 = vmul.f32 %v1018_v1, %v520_v27  ;;  %v581_v4 = vadd.f32 %v833_v53, %v570_v63 }
 0x2f8   : > { %v584_v5 = vpack.c.bf16 %v581_v4, %v580_v3  ;;  %v571_v6 = vmul.f32 %v832_v48, %v560_v2 }
 0x2fa   : > { %877 = vmatmul.mubr.msk.bf16.gmra.mrb[4].mxu1 %vm493_vm2, %v584_v5  ;;  %v582_v7 = vadd.f32 %v833_v53, %v571_v6 }
 0x2fb   : > { %880 = vmatprep.mubr.msk.bf16.mxu1 %vm1278_vm0, %v1277_v0 }
 0x2fc   : > { %v585_v8 = vpack.c.bf16 %v582_v7, %v582_v7 }
 0x302   : > { %881 = vmatmul.mubr.msk.bf16.gmra.mrb[8].mxu1 %vm493_vm2, %v585_v8 }
 0x3c5   : > { %v644_v10 = vpop.f32.mrb[0].mxu1 }
 0x3c6   : > { %v645_v11 = vadd.f32 %v834_v9, %v644_v10  ;;  %v874_v12 = vpop.f32.mrb[1].mxu1 }
 0x3c7   : > { %v647_v13 = vpop.f32.mrb[2].mxu1 }
 0x3c8   : > { %667 = vst.msk [vmem:[%s336_s29] sm:$0xff] %vm666_vm4, %v645_v11  ;;  %v648_v14 = vadd.f32 %v834_v9, %v647_v13  ;;  %v875_v15 = vpop.f32.mrb[3].mxu1 }
 0x3ca   : > { %668 = vst.msk [vmem:[%s336_s29 + $0x8] sm:$0xff] %vm666_vm4, %v648_v14 }
 0x3cd   : > { %v652_v0 = vpop.f32.mrb[4].mxu1 }
 0x3ce   : > { %v653_v16 = vadd.f32 %v834_v9, %v652_v0  ;;  %v878_v17 = vpop.f32.mrb[5].mxu1 }
 0x3cf   : > { %v655_v18 = vpop.f32.mrb[6].mxu1 }
 0x3d0   : > { %669 = vst.msk [vmem:[%s336_s29 + $0x10] sm:$0xff] %vm666_vm4, %v653_v16  ;;  %v656_v19 = vadd.f32 %v834_v9, %v655_v18  ;;  %v879_v20 = vpop.f32.mrb[7].mxu1 }
 0x3d2   : > { %670 = vst.msk [vmem:[%s336_s29 + $0x18] sm:$0xff] %vm666_vm4, %v656_v19 }
 0x3d5   : > { %v660_v21 = vpop.f32.mrb[8].mxu1 }
 0x3d6   : > { %v661_v22 = vadd.f32 %v834_v9, %v660_v21  ;;  %v882_v23 = vpop.f32.mrb[9].mxu1 }
 0x3d7   : > { %v663_v24 = vpop.f32.mrb[10].mxu1 }
 0x3d8   : > { %672 = vst.msk [vmem:[%s336_s29 + $0x20] sm:$0x7f] %vm671_vm5, %v661_v22  ;;  %v883_v25 = vpop.f32.mrb[11].mxu1 }
 0x3d9   : > { %1202 = shalt.err (!%p1199_p8)
}
 0x3da   : > { %s1203_s30 = scalar_lea.hbm %s1619_s12, 640  ;;  %s1207_s28 = scalar_lea.hbm %s1669_s6, 1280 }
 0x3db   : > { %p1204_p6 = scmp.ne.s32.totalorder %s1619_s12, %s1203_s30  ;;  %p1208_p3 = scmp.lt.u32.totalorder %s1619_s12, %s1669_s6 }
 0x3dc   : > { %p1209_p5 = scmp.lt.u32.totalorder %s1207_s28, %s1203_s30  ;;  %p1211_p7 = scmp.lt.u32.totalorder %s1203_s30, %s1619_s12 }
 0x3dd   : > { %p1205_p10 = pnand %p1204_p6, %p1692_p4 }
 0x3de   : > { %p1210_p9 = por %p1209_p5, %p1208_p3 }
 0x3df   : > { %p1206_p11 = pneg %p1205_p10 }
 0x3e0   : > { %p1212_p12 = por %p1211_p7, %p1210_p9 }
 0x3e2   : > { %p1213_p1 = pnand %p1212_p12, %p1206_p11 }
 0x3e4   : > { %1216 = shalt.err (!%p1213_p1)
}
 0x3e5   : > { %s1280_s15 = smov 128   ;;  %s1281_s26 = smov 8  }
 0x3e6   : > { %911 = dma.vmem_to_hbm [thread:$0]  (%p1692_p4), %s1614_s13, 640, %s1619_s12, %s674_s9, %s1280_s15, %s1280_s15, %s1281_s26  }
 0x3e7 PF: > { %s702_s19 = sand.u32 1, %s1255_s21   ;;  %p1693_p13 = scmp.ne.s32.totalorder %s1681_s11, 0 }
 0x3e8   : > { %p1694_p0 = scmp.ge.s32.totalorder %s1267_s24, 2  ;;  %s703_s27 = scalar_lea.sflag [#allocation4], %s702_s19 }
 0x3ea   : > { %p934_p2 = pnand %p1694_p0, %p1693_p13 }
 0x3ec   : > { %1250 = dma.done.wait (!%p934_p2), %s703_s27, 640  }
 0x3ed   : > { %1252 = vsyncadd (!%p934_p2), %s703_s27, 4294966656  ;;  %p22_p8 = scmp.ge.s32.totalorder %s1483_s7, 4   ;;  %s1695_s21 = smov %s1259_s22 }
 0x3ee   : > { %s1696_s22 = smov %s1263_s23  ;;  %s1697_s23 = smov %s1495_s18 }
 0x3ef   : > { %s1698_s24 = smov %s1483_s7  ;;  %24 = sbr.rel (!%p22_p8) target bundleno = 8 (0x8), region = 109 }
 0x3f6   :  { %708 = vsyncpa [#allocation3], 1 }
 0x3f7   :  { %710 = vsyncpa [#allocation3 + $0x1], 1 }
 0x3f8   :  { %711 = vsyncpa [#allocation6], 1 }
 0x3f9   :  { %712 = vsyncpa [#allocation9], 1 }
 0x3fa   :  { %713 = vsyncpa [#allocation12], 1 }
 0x3fb   :  { %714 = vsyncpa [#allocation4], 1 }
 0x3fc   :  { %716 = vsyncpa [#allocation4 + $0x1], 1 }

// kernel: wavlm_ctc_forward.8
= control target key start
LH: loop header
LB: loop body
LE: loop exit
PB: predicated region body
PF: predicated region fallthrough
CT: control target
= control target key end

     0   :  { %s2506_s0 = inlined_call_operand.hbm [shape: f32[2,39,32], index: 0, kind: input, shape index: {}, may-alias: {0,6}]   ;;  %s2507_s1 = inlined_call_operand.hbm [shape: bf16[2,4,39,128], index: 1, kind: input, shape index: {}]   ;;  %s2508_s2 = inlined_call_operand.hbm [shape: bf16[4,128,8], index: 2, kind: input, shape index: {}]   ;;  %s2509_s3 = inlined_call_operand.hbm [shape: f32[1,32], index: 3, kind: input, shape index: {}]   ;;  %s2510_s4 = inlined_call_operand.hbm [shape: f32[1,32], index: 4, kind: input, shape index: {}]   ;;  %s2511_s5 = inlined_call_operand.hbm [shape: f32[1,32], index: 5, kind: input, shape index: {}]   ;;  %s2512_s6 = inlined_call_operand.hbm [shape: f32[2,39,32], index: 6, kind: output, shape index: {}, may-alias: {0,6}]  }
   0x1   :  { %2518 = sst [smem:[#allocation20_spill]] %s2506_s0 }
   0x2   :  { %2519 = sst [smem:[#allocation21_spill]] %s2508_s2 }
   0x3   :  { %2520 = sst [smem:[#allocation22_spill]] %s2509_s3 }
   0x4   :  { %2521 = sst [smem:[#allocation23_spill]] %s2510_s4 }
   0x5   :  { %11 = vsyncpa [#allocation3], 0 }
   0x6   :  { %13 = vsyncpa [#allocation3 + $0x1], 0 }
   0x7   :  { %14 = vsyncpa [#allocation6], 0 }
   0x8   :  { %16 = vsyncpa [#allocation6 + $0x1], 0 }
   0x9   :  { %17 = vsyncpa [#allocation9], 0 }
   0xa   :  { %18 = vsyncpa [#allocation12], 0 }
   0xb   :  { %19 = vsyncpa [#allocation4], 0 }
   0xc   :  { %21 = vsyncpa [#allocation4 + $0x1], 0  ;;  %s2039_s21 = smov 0   ;;  %s2041_s22 = smov 0  }
   0xd   :  { %s2043_s23 = smov 0   ;;  %s2045_s24 = smov 0  }
   0xe LB: > { %s2060_s25 = sadd.s32 4294967295, %s1985_s24   ;;  %s1323_s26 = sadd.s32 4294967294, %s1985_s24   ;;  %s1985_s24 = sphi %s2045_s24, %s2550_s24   ;;  %s1981_s23 = sphi %s2043_s23, %s2549_s23   ;;  %s1977_s22 = sphi %s2041_s22, %s2548_s22   ;;  %s1973_s21 = sphi %s2039_s21, %s2547_s21  }
   0xf   : > { %p47_p0 = scmp.ne.s32.totalorder %s1977_s22, %s1973_s21  ;;  %p2513_p1 = scmp.eq.s32.totalorder %s2060_s25, 0 }
  0x10   : > { %p187_p3 = scmp.eq.s32.totalorder %s1323_s26, 1  ;;  %p1324_p5 = scmp.ge.s32.totalorder %s1985_s24, 1 }
  0x11   : > { %p2069_p4 = por %p2513_p1, %p47_p0  ;;  %p194_p7 = scmp.lt.s32.totalorder %s1985_s24, 3 }
  0x12   : > { %p2074_p6 = por %p187_p3, %p47_p0  ;;  %s1987_s30 = smov [#allocation7]  }
  0x13   : > { %s2522_s27 = scalar_select %p2069_p4, 1, 0 }
  0x14   : > { %s2523_s28 = scalar_select %p2074_p6, 1, 0 }
  0x15   : > { %p2079_p8 = pnand %p1324_p5, %p194_p7  ;;  %s206_s7 = sshll.u32 %s1987_s30, 4  ;;  %s2083_s7 = int_to_ptr.vmem [resolvable:$true] %s206_s7 }
  0x16   : > { %s1988_s9 = smov [#allocation8]   ;;  %s1989_s11 = smov [#allocation10]  }
  0x17   : > { %s2524_s29 = scalar_select %p2079_p8, 1, 0 }
  0x18   : > { %p1587_p9 = pneg %p2079_p8  ;;  %s220_s10 = sshll.u32 %s1988_s9, 4  ;;  %s2094_s10 = int_to_ptr.vmem [resolvable:$true] %s220_s10 }
  0x19   : > { %s2096_s12 = sshll.u32 %s1989_s11, 4  ;;  %s2526_s2 = sld [smem:[#allocation21_spill]]  ;;  %s232_s12 = int_to_ptr.vmem [resolvable:$true] %s2096_s12 }
  0x1a   : > { %p2090_p11 = pnand %p1587_p9, %p2513_p1 }
  0x1c   : > { %p2106_p13 = pneg %p2090_p11 }
  0x1f   : > { %s1731_s15 = scalar_lea.hbm %s2526_s2, 4096 }
  0x20   : > { %p1732_p12 = scmp.ne.s32.totalorder %s2526_s2, %s1731_s15  ;;  %p1738_p5 = scmp.lt.u32.totalorder %s1731_s15, %s2526_s2 }
  0x22   : > { %p1734_p0 = pnand %p2106_p13, %p1732_p12 }
  0x24   : > { %p1735_p3 = pneg %p1734_p0 }
  0x26   : > { %p1740_p7 = pnand %p1738_p5, %p1735_p3 }
  0x28   : > { %1743 = shalt.err (!%p1740_p7)
}
  0x29   : > { %s1744_s26 = scalar_lea.vmem %s2083_s7, 4096  ;;  %p1752_p2 = scmp.lt.s32.totalorder %s2083_s7, %s2083_s7 }
  0x2a   : > { %p1745_p9 = scmp.ne.s32.totalorder %s2083_s7, %s1744_s26  ;;  %p1753_p6 = scmp.lt.s32.totalorder %s1744_s26, %s1744_s26 }
  0x2c   : > { %p1747_p10 = pnand %p1745_p9, %p2106_p13  ;;  %p1754_p12 = por %p1753_p6, %p1752_p2 }
  0x2e   : > { %p1748_p1 = pneg %p1747_p10 }
  0x30   : > { %p1755_p0 = pnand %p1754_p12, %p1748_p1 }
  0x32   : > { %1758 = shalt.err (!%p1755_p0)
}
  0x33   : > { %s2516_s30 = smov 64   ;;  %s2517_s9 = smov 4  }
  0x34   : > { %1590 = dma.hbm_to_vmem [thread:$0]  (!%p2090_p11), %s2526_s2, 4096, %s2083_s7, [#allocation6], %s2516_s30, %s2516_s30, %s2517_s9  }
  0x35   : > { %s2528_s3 = sld [smem:[#allocation22_spill]] }
  0x3b   : > { %s1759_s16 = scalar_lea.hbm %s2528_s3, 16 }
  0x3c   : > { %p1760_p1 = scmp.ne.s32.totalorder %s2528_s3, %s1759_s16  ;;  %p1766_p10 = scmp.lt.u32.totalorder %s1759_s16, %s2528_s3 }
  0x3e   : > { %p1762_p2 = pnand %p1760_p1, %p2106_p13 }
  0x40   : > { %p1763_p6 = pneg %p1762_p2 }
  0x42   : > { %p1768_p3 = pnand %p1766_p10, %p1763_p6 }
  0x44   : > { %1771 = shalt.err (!%p1768_p3)
}
  0x45   : > { %s1772_s7 = scalar_lea.vmem %s2094_s10, 16  ;;  %s1779_s11 = scalar_lea.vmem %s2094_s10, 32 }
  0x46   : > { %p1773_p5 = scmp.ne.s32.totalorder %s2094_s10, %s1772_s7  ;;  %p1780_p12 = scmp.lt.s32.totalorder %s2094_s10, %s2094_s10 }
  0x47   : > { %p1781_p0 = scmp.lt.s32.totalorder %s1779_s11, %s1772_s7 }
  0x48   : > { %p1775_p7 = pnand %p1773_p5, %p2106_p13 }
  0x49   : > { %p1782_p1 = por %p1781_p0, %p1780_p12 }
  0x4a   : > { %p1776_p9 = pneg %p1775_p7 }
  0x4c   : > { %p1783_p2 = pnand %p1782_p1, %p1776_p9 }
  0x4e   : > { %1786 = shalt.err (!%p1783_p2)
}
  0x4f   : > { %1593 = dma.hbm_to_vmem [thread:$0]  (!%p2090_p11), %s2528_s3, 16, %s2094_s10, [#allocation9]  }
  0x50   : > { %s2529_s4 = sld [smem:[#allocation23_spill]] }
  0x56   : > { %s1787_s17 = scalar_lea.hbm %s2529_s4, 16 }
  0x57   : > { %p1788_p6 = scmp.ne.s32.totalorder %s2529_s4, %s1787_s17  ;;  %p1794_p5 = scmp.lt.u32.totalorder %s1787_s17, %s2529_s4 }
  0x59   : > { %p1790_p10 = pnand %p1788_p6, %p2106_p13 }
  0x5b   : > { %p1791_p3 = pneg %p1790_p10 }
  0x5d   : > { %p1796_p7 = pnand %p1794_p5, %p1791_p3 }
  0x5f   : > { %1799 = shalt.err (!%p1796_p7)
}
  0x60   : > { %s1800_s11 = scalar_lea.vmem %s232_s12, 16  ;;  %s1807_s10 = scalar_lea.vmem %s232_s12, 32 }
  0x61   : > { %p1801_p9 = scmp.ne.s32.totalorder %s232_s12, %s1800_s11  ;;  %p1808_p1 = scmp.lt.s32.totalorder %s232_s12, %s232_s12 }
  0x62   : > { %p1809_p2 = scmp.lt.s32.totalorder %s1807_s10, %s1800_s11 }
  0x63   : > { %p1803_p12 = pnand %p1801_p9, %p2106_p13 }
  0x64   : > { %p1810_p4 = por %p1809_p2, %p1808_p1 }
  0x65   : > { %p1804_p0 = pneg %p1803_p12 }
  0x67   : > { %p1811_p8 = pnand %p1810_p4, %p1804_p0 }
  0x69   : > { %1814 = shalt.err (!%p1811_p8)
}
  0x6a   : > { %1596 = dma.hbm_to_vmem [thread:$0]  (!%p2090_p11), %s2529_s4, 16, %s232_s12, [#allocation9]  }
  0x6b   : > { %s1992_s15 = smov [#allocation11]   ;;  %s1815_s20 = scalar_lea.hbm %s2511_s5, 16 }
  0x6c   : > { %s242_s16 = sshll.u32 %s1992_s15, 4  ;;  %p1816_p6 = scmp.ne.s32.totalorder %s2511_s5, %s1815_s20  ;;  %s243_s16 = int_to_ptr.vmem [resolvable:$true] %s242_s16 }
  0x6d   : > { %p1822_p10 = scmp.lt.u32.totalorder %s1815_s20, %s2511_s5 }
  0x6e   : > { %p1818_p4 = pnand %p1816_p6, %p2106_p13 }
  0x70   : > { %p1819_p8 = pneg %p1818_p4 }
  0x72   : > { %p1824_p3 = pnand %p1822_p10, %p1819_p8 }
  0x74   : > { %1827 = shalt.err (!%p1824_p3)
}
  0x75   : > { %s1828_s12 = scalar_lea.vmem %s243_s16, 16  ;;  %s1835_s13 = scalar_lea.vmem %s243_s16, 32 }
  0x76   : > { %p1829_p5 = scmp.ne.s32.totalorder %s243_s16, %s1828_s12  ;;  %p1836_p12 = scmp.lt.s32.totalorder %s243_s16, %s243_s16 }
  0x77   : > { %p1837_p0 = scmp.lt.s32.totalorder %s1835_s13, %s1828_s12 }
  0x78   : > { %p1831_p7 = pnand %p1829_p5, %p2106_p13 }
  0x79   : > { %p1838_p1 = por %p1837_p0, %p1836_p12 }
  0x7a   : > { %p1832_p9 = pneg %p1831_p7 }
  0x7c   : > { %p1839_p2 = pnand %p1838_p1, %p1832_p9 }
  0x7e   : > { %1842 = shalt.err (!%p1839_p2)
}
  0x7f   : > { %1599 = dma.hbm_to_vmem [thread:$0]  (!%p2090_p11), %s2511_s5, 16, %s243_s16, [#allocation12]  }
  0x80   : > { %s2192_s18 = sadd.s32 1, %s1985_s24   ;;  %s34_s17 = sadd.s32 1, %s1981_s23 }
  0x81   : > { %s31_s8 = ssub.s32 %s1985_s24, %s2192_s18  ;;  %p41_p13 = scmp.ne.s32.totalorder %s1981_s23, %s1977_s22 }
  0x82   : > { %p32_p6 = scmp.eq.s32.totalorder %s31_s8, 0  ;;  %p42_p4 = scmp.eq.s32.totalorder %s1985_s24, 0 }
  0x83   : > { %p2530_p8 = scmp.eq.s32.totalorder %s2060_s25, 1  ;;  %p1615_p3 = scmp.lt.s32.totalorder %s1985_s24, 2 }
  0x84   : > { %s2208_s20 = scalar_select %p32_p6, %s1981_s23, %s34_s17  }
  0x85   : > { %p2202_p10 = por %p2530_p8, %p41_p13  ;;  %p43_p5 = por %p42_p4, %p41_p13 }
  0x86   : > { %s2211_s26 = sand.u32 1, %s1981_s23   ;;  %s1559_s7 = smul.u32 640, %s1985_s24 }
  0x87   : > { %s1558_s16 = smul.u32 40, %s2211_s26  ;;  %p2215_p11 = pnand %p1615_p3, %p43_p5 }
  0x88   : > { %s2533_s0 = sld [smem:[#allocation20_spill]]  ;;  %s254_s8 = scalar_lea.sflag [#allocation3], %s2211_s26 }
  0x89   : > { %s257_s14 = scalar_lea.vmem [#allocation2], %s1558_s16  ;;  %p1845_p9 = pneg %p2215_p11 }
  0x8a   : > { %s264_s15 = sshll.u32 %s257_s14, 4  ;;  %s2224_s15 = int_to_ptr.vmem [resolvable:$true] %s264_s15 }
  0x8e   : > { %s2222_s13 = scalar_lea.hbm %s2533_s0, %s1559_s7  ;;  %s1848_s12 = scalar_lea.hbm %s2533_s0, 1280 }
  0x8f   : > { %s1843_s30 = scalar_lea.hbm %s2222_s13, 640  ;;  %p1849_p1 = scmp.lt.u32.totalorder %s2222_s13, %s2533_s0 }
  0x90   : > { %p1844_p7 = scmp.ne.s32.totalorder %s2222_s13, %s1843_s30  ;;  %p1850_p2 = scmp.lt.u32.totalorder %s1848_s12, %s1843_s30 }
  0x91   : > { %p1852_p6 = scmp.lt.u32.totalorder %s1843_s30, %s2222_s13 }
  0x92   : > { %p1846_p12 = pnand %p1845_p9, %p1844_p7  ;;  %p1851_p13 = por %p1850_p2, %p1849_p1 }
  0x94   : > { %p1847_p0 = pneg %p1846_p12  ;;  %p1853_p4 = por %p1852_p6, %p1851_p13 }
  0x96   : > { %p1854_p8 = pnand %p1853_p4, %p1847_p0 }
  0x98   : > { %1857 = shalt.err (!%p1854_p8)
}
  0x99   : > { %s1858_s16 = scalar_lea.vmem %s2224_s15, 640  ;;  %s1993_s14 = smov [#allocation2]  }
  0x9a   : > { %p1859_p3 = scmp.ne.s32.totalorder %s2224_s15, %s1858_s16  ;;  %s1863_s7 = sshll.u32 %s1993_s14, 4  ;;  %s1864_s7 = int_to_ptr.vmem [resolvable:$false] %s1863_s7 }
  0x9b   : > { %s1865_s2 = scalar_lea.vmem %s1864_s7, 1280  ;;  %p1866_p12 = scmp.lt.s32.totalorder %s2224_s15, %s1864_s7 }
  0x9c   : > { %p1861_p5 = pnand %p1859_p3, %p1845_p9  ;;  %p1867_p1 = scmp.lt.s32.totalorder %s1865_s2, %s1858_s16 }
  0x9e   : > { %p1862_p7 = pneg %p1861_p5  ;;  %p1868_p2 = por %p1867_p1, %p1866_p12 }
  0xa0   : > { %p1869_p13 = pnand %p1868_p2, %p1862_p7 }
  0xa2   : > { %1872 = shalt.err (!%p1869_p13)
}
  0xa3   : > { %s1994_s30 = smov 128   ;;  %s1995_s9 = smov 8  }
  0xa4   : > { %1603 = dma.hbm_to_vmem [thread:$0]  (!%p2215_p11), %s2222_s13, 640, %s2224_s15, %s254_s8, %s1994_s30, %s1994_s30, %s1995_s9  }
  0xa5   : > { %s1560_s10 = smul.u32 80, %s2211_s26  ;;  %s2534_s0 = sand.u32 1, %s1985_s24  }
  0xa6   : > { %s1561_s12 = smul.u32 1280, %s1985_s24  ;;  %s2266_s3 = scalar_lea.sflag [#allocation6], %s2534_s0 }
  0xa7   : > { %s278_s2 = scalar_lea.vmem [#allocation5], %s1560_s10  ;;  %s1878_s15 = scalar_lea.hbm %s2507_s1, 2560 }
  0xa8   : > { %s2260_s7 = scalar_lea.hbm %s2507_s1, %s1561_s12  ;;  %s285_s17 = sshll.u32 %s278_s2, 4  ;;  %s2262_s17 = int_to_ptr.vmem [resolvable:$true] %s285_s17 }
  0xa9   : > { %s1873_s4 = scalar_lea.hbm %s2260_s7, 1280  ;;  %p1879_p8 = scmp.lt.u32.totalorder %s2260_s7, %s2507_s1 }
  0xaa   : > { %p1874_p0 = scmp.ne.s32.totalorder %s2260_s7, %s1873_s4  ;;  %p1880_p3 = scmp.lt.u32.totalorder %s1878_s15, %s1873_s4 }
  0xab   : > { %p1882_p7 = scmp.lt.u32.totalorder %s1873_s4, %s2260_s7 }
  0xac   : > { %p1876_p6 = pnand %p1874_p0, %p1845_p9  ;;  %p1881_p5 = por %p1880_p3, %p1879_p8 }
  0xae   : > { %p1877_p4 = pneg %p1876_p6  ;;  %p1883_p12 = por %p1882_p7, %p1881_p5 }
  0xb0   : > { %p1884_p1 = pnand %p1883_p12, %p1877_p4 }
  0xb2   : > { %1887 = shalt.err (!%p1884_p1)
}
  0xb3   : > { %s1888_s0 = scalar_lea.vmem %s2262_s17, 1280  ;;  %s1996_s9 = smov [#allocation5]  }
  0xb4   : > { %p1889_p2 = scmp.ne.s32.totalorder %s2262_s17, %s1888_s0  ;;  %s1893_s10 = sshll.u32 %s1996_s9, 4  ;;  %s1894_s10 = int_to_ptr.vmem [resolvable:$false] %s1893_s10 }
  0xb5   : > { %s1895_s12 = scalar_lea.vmem %s1894_s10, 2560  ;;  %p1896_p6 = scmp.lt.s32.totalorder %s2262_s17, %s1894_s10 }
  0xb6   : > { %p1891_p13 = pnand %p1889_p2, %p1845_p9  ;;  %p1897_p8 = scmp.lt.s32.totalorder %s1895_s12, %s1888_s0 }
  0xb8   : > { %p1892_p0 = pneg %p1891_p13  ;;  %p1898_p3 = por %p1897_p8, %p1896_p6 }
  0xba   : > { %p1899_p5 = pnand %p1898_p3, %p1892_p0 }
  0xbc   : > { %1902 = shalt.err (!%p1899_p5)
}
  0xbd   : > { %s2535_s4 = smov 4   ;;  %s2536_s14 = smov 64  }
  0xbe   : > { %1606 = dma.hbm_to_vmem [thread:$0]  (!%p2215_p11), %s2260_s7, 1280, %s2262_s17, %s2266_s3, %s2536_s14, %s2536_s14, %s2535_s4  }
  0xbf   : > { %p2537_p9 = scmp.ne.s32.totalorder %s2524_s29, 0 }
  0xc0   : > { %s2298_s16 = sand.u32 (!%p2537_p9), 1, %s1977_s22   ;;  %p2538_p4 = scmp.ne.s32.totalorder (!%p2537_p9), %s2522_s27, 0 }
  0xc1   : > { %297 = sbr.rel (%p2537_p9) target bundleno = 986 (0x3da), region = 44  ;;  %s300_s26 = scalar_lea.sflag (!%p2537_p9), [#allocation3], %s2298_s16 }
  0xc2   : > { %s1562_s2 = smul.u32 (!%p2537_p9), 40, %s2298_s16 }
  0xc4   : > { %s2304_s11 = scalar_lea.vmem (!%p2537_p9), [#allocation2], %s1562_s2 }
  0xc8   : > { %1948 = dma.done.wait (%p2538_p4), %s300_s26, 640  }
  0xc9   : > { %1950 = vsyncadd (%p2538_p4), %s300_s26, 4294966656  ;;  %s308_s3 = sand.u32 1, %s2060_s25   ;;  %s1563_s29 = smul.u32 80, %s2298_s16 }
  0xca   : > { %s309_s17 = scalar_lea.sflag [#allocation6], %s308_s3 }
  0xcb   : > { %s2312_s7 = scalar_lea.vmem [#allocation5], %s1563_s29 }
  0xcc   : > { %1952 = dma.done.wait (%p2538_p4), %s309_s17, 1280  }
  0xcd   : > { %1954 = vsyncadd (%p2538_p4), %s309_s17, 4294966016  ;;  %p2539_p11 = scmp.eq.s32.totalorder %s2060_s25, 0 }
  0xcf   : > { %1956 = dma.done.wait (%p2539_p11), [#allocation6], 4096   ;;  %p2540_p7 = pmov %p2539_p11 }
  0xd1   : > { %1958 = vsyncadd (%p2540_p7), [#allocation6], 4294963200  ;;  %p2541_p12 = pmov %p2540_p7 }
  0xd2   : > { %p2542_p1 = pmov %p2540_p7 }
  0xd3   : > { %1960 = dma.done.wait (%p2541_p12), [#allocation9], 32  }
  0xd4   : > { %1962 = vsyncadd (%p2542_p1), [#allocation9], 4294967264  ;;  %p2543_p2 = pmov %p2542_p1 }
  0xd5   : > { %p2544_p13 = pmov %p2542_p1 }
  0xd6   : > { %1964 = dma.done.wait (%p2543_p2), [#allocation12], 16  }
  0xd7   : > { %1966 = vsyncadd (%p2544_p13), [#allocation12], 4294967280  ;;  %v1997_v0 = vmov 0.0   ;;  %vm1998_vm0 = vmmov 0   ;;  %v1667_v1 = vld [vmem:[#allocation7] sm:$0xff]   ;;  %v1669_v3 = vld [vmem:[#allocation7 + $0x8] sm:$0xff]  }
  0xd8   : > { %1446 = vmatprep.subr.bf16.mxu0 %v1997_v0  ;;  %1474 = vmatprep.subr.bf16.mxu1 %v1997_v0  ;;  %v1668_v2 = vld [vmem:[#allocation7 + $0x40] sm:$0xff]   ;;  %v1670_v4 = vld [vmem:[#allocation7 + $0x48] sm:$0xff]   ;;  %v1671_v5 = vld [vmem:[#allocation7 + $0x10] sm:$0xff]   ;;  %s1999_s27 = smov 8   ;;  %s2000_s13 = smov 16   ;;  %vm998_vm1 = vcmask 64512  }
  0xd9   : > { %1462 = vmatprep.mubr.msk.bf16.mxu0 %vm1998_vm0, %v1997_v0  ;;  %1490 = vmatprep.mubr.msk.bf16.mxu1 %vm1998_vm0, %v1997_v0  ;;  %v1672_v6 = vld [vmem:[#allocation7 + $0x50] sm:$0xff]   ;;  %v1673_v7 = vld [vmem:[#allocation7 + $0x18] sm:$0xff]   ;;  %v1675_v9 = vld [vmem:[#allocation7 + $0x20] sm:$0xff]   ;;  %s2001_s15 = smov 24   ;;  %vm1004_vm2 = vcmask 130048   ;;  %vm1010_vm3 = vcmask 195584  }
  0xda   : > { %1447 = vmatpush3.bf16.msra.mxu0 %v1667_v1  ;;  %1475 = vmatpush3.bf16.msra.mxu1 %v1668_v2  ;;  %v1674_v8 = vld [vmem:[#allocation7 + $0x58] sm:$0xff]   ;;  %v1676_v10 = vld [vmem:[#allocation7 + $0x60] sm:$0xff]   ;;  %v1677_v11 = vld [vmem:[#allocation7 + $0x28] sm:$0xff]   ;;  %vm1080_vm4 = vcmask 261120   ;;  %vm1093_vm5 = vcmask 260096   ;;  %s361_s8 = scalar_lea.vmem [#allocation13], %s1562_s2 }
  0xdb   : > { %1448 = vmatprep.subr.bf16.mxu0 %v1997_v0  ;;  %1476 = vmatprep.subr.bf16.mxu1 %v1997_v0  ;;  %v1678_v12 = vld [vmem:[#allocation7 + $0x68] sm:$0xff]   ;;  %v1679_v13 = vld [vmem:[#allocation7 + $0x30] sm:$0xff]   ;;  %v1681_v15 = vld [vmem:[#allocation7 + $0x38] sm:$0xff]   ;;  %s1564_s30 = smul.u32 640, %s2060_s25  ;;  %s1189_s0 = sshll.u32 %s361_s8, 4  ;;  %s2460_s0 = int_to_ptr.vmem [resolvable:$true] %s1189_s0 }
  0xdc   : > { %v1680_v14 = vld [vmem:[#allocation7 + $0x70] sm:$0xff]   ;;  %v1682_v16 = vld [vmem:[#allocation7 + $0x78] sm:$0xff]   ;;  %v1685_v19 = vld [vmem:[#allocation7 + $0x80] sm:$0xff]   ;;  %s1176_s25 = scalar_lea.sflag [#allocation4], %s2298_s16  ;;  %s1903_s4 = scalar_lea.vmem %s2460_s0, 640 }
  0xdd   : > { %v1683_v17 = vld [vmem:[%s2312_s7] sm:$0xff]   ;;  %v1684_v18 = vld [vmem:[%s2312_s7 + $0x14] sm:$0xff]   ;;  %v1692_v24 = vld [vmem:[%s2312_s7 + $0x8] sm:$0xff]   ;;  %s2458_s12 = scalar_lea.hbm %s2512_s6, %s1564_s30  ;;  %p1904_p0 = scmp.ne.s32.totalorder %s2460_s0, %s1903_s4 }
  0xde   : > { %1449 = vmatpush3.bf16.msra.mxu0 %v1669_v3  ;;  %1477 = vmatpush3.bf16.msra.mxu1 %v1670_v4  ;;  %v1686_v20 = vld [vmem:[#allocation7 + $0xc0] sm:$0xff]   ;;  %v1687_v21 = vld [vmem:[#allocation7 + $0x88] sm:$0xff]   ;;  %v1690_v25 = vld [vmem:[#allocation7 + $0x90] sm:$0xff]   ;;  %s2002_s14 = smov [#allocation13]  }
  0xdf   : > { %1450 = vmatprep.subr.bf16.mxu0 %v1997_v0  ;;  %1478 = vmatprep.subr.bf16.mxu1 %v1997_v0  ;;  %v1688_v22 = vld [vmem:[#allocation7 + $0xc8] sm:$0xff]   ;;  %v1691_v26 = vld [vmem:[#allocation7 + $0xd0] sm:$0xff]   ;;  %v1693_v27 = vld [vmem:[#allocation7 + $0x98] sm:$0xff]   ;;  %p1905_p6 = pnand %p1904_p0, %p2202_p10  ;;  %s1907_s2 = sshll.u32 %s2002_s14, 4  ;;  %s1908_s2 = int_to_ptr.vmem [resolvable:$false] %s1907_s2 }
  0xe0   : > { %v1689_v23 = vld [vmem:[%s2312_s7 + $0x1c] sm:$0xff]   ;;  %v1698_v29 = vld [vmem:[%s2312_s7 + $0x10] ss:$0 sps:$4 sm:$0xff]   ;;  %v1695_v30 = vld [vmem:[%s2312_s7 + $0x24] ss:$0 sps:$4 sm:$0xff]   ;;  %s1909_s26 = scalar_lea.vmem %s1908_s2, 1280  ;;  %p1910_p3 = scmp.lt.s32.totalorder %s2460_s0, %s1908_s2 }
  0xe1   : > { %v1694_v28 = vld [vmem:[#allocation7 + $0xd8] sm:$0xff]   ;;  %v1696_v31 = vld [vmem:[#allocation7 + $0xa0] sm:$0xff]   ;;  %v1699_v33 = vld [vmem:[#allocation7 + $0xa8] sm:$0xff]   ;;  %p1906_p8 = pneg %p1905_p6  ;;  %p1911_p5 = scmp.lt.s32.totalorder %s1909_s26, %s1903_s4 }
  0xe2   : > { %1451 = vmatpush3.bf16.msra.mxu0 %v1671_v5  ;;  %1479 = vmatpush3.bf16.msra.mxu1 %v1672_v6  ;;  %v1697_v32 = vld [vmem:[#allocation7 + $0xe0] sm:$0xff]   ;;  %v1700_v34 = vld [vmem:[#allocation7 + $0xe8] sm:$0xff]   ;;  %v1701_v35 = vld [vmem:[#allocation7 + $0xb0] sm:$0xff]  }
  0xe3   : > { %1452 = vmatprep.subr.bf16.mxu0 %v1997_v0  ;;  %1480 = vmatprep.subr.bf16.mxu1 %v1997_v0  ;;  %v1702_v36 = vld [vmem:[#allocation7 + $0xf0] sm:$0xff]   ;;  %v1703_v37 = vld [vmem:[#allocation7 + $0xb8] sm:$0xff]   ;;  %p1912_p9 = por %p1911_p5, %p1910_p3 }
  0xe4   : > { %v1704_v38 = vld [vmem:[#allocation7 + $0xf8] sm:$0xff]   ;;  %v1707_v41 = vld [vmem:[%s2312_s7 + $0x30] sm:$0xff]  }
  0xe5   : > { %v1705_v39 = vld [vmem:[%s2312_s7 + $0x28] sm:$0xff]   ;;  %v1706_v40 = vld [vmem:[%s2312_s7 + $0x3c] sm:$0xff]   ;;  %v1709_v43 = vld [vmem:[%s2312_s7 + $0x38] ss:$0 sps:$4 sm:$0xff]   ;;  %p1913_p4 = pnand %p1912_p9, %p1906_p8 }
  0xe6   : > { %1453 = vmatpush3.bf16.msra.mxu0 %v1673_v7  ;;  %1481 = vmatpush3.bf16.msra.mxu1 %v1674_v8  ;;  %v1708_v42 = vld [vmem:[%s2312_s7 + $0x44] sm:$0xff]   ;;  %v1710_v44 = vld [vmem:[%s2312_s7 + $0x4c] ss:$0 sps:$4 sm:$0xff]  }
  0xe7   : > { %1454 = vmatprep.subr.bf16.mxu0 %v1997_v0  ;;  %1482 = vmatprep.subr.bf16.mxu1 %v1997_v0 }
  0xea   : > { %1455 = vmatpush3.bf16.msra.mxu0 %v1675_v9  ;;  %1483 = vmatpush3.bf16.msra.mxu1 %v1676_v10 }
  0xeb   : > { %1456 = vmatprep.subr.bf16.mxu0 %v1997_v0  ;;  %1484 = vmatprep.subr.bf16.mxu1 %v1997_v0 }
  0xee   : > { %1457 = vmatpush3.bf16.msra.mxu0 %v1677_v11  ;;  %1485 = vmatpush3.bf16.msra.mxu1 %v1678_v12 }
  0xef   : > { %1458 = vmatprep.subr.bf16.mxu0 %v1997_v0  ;;  %1486 = vmatprep.subr.bf16.mxu1 %v1997_v0 }
  0xf2   : > { %1459 = vmatpush3.bf16.msra.mxu0 %v1679_v13  ;;  %1487 = vmatpush3.bf16.msra.mxu1 %v1680_v14 }
  0xf3   : > { %1460 = vmatprep.subr.bf16.mxu0 %v1997_v0  ;;  %1488 = vmatprep.subr.bf16.mxu1 %v1997_v0 }
  0xf6   : > { %1461 = vmatpush3.bf16.msra.mxu0 %v1681_v15  ;;  %1489 = vmatpush3.bf16.msra.mxu1 %v1682_v16 }
  0xf7   : > { %1502 = vmatprep.subr.bf16.mxu0 %v1997_v0  ;;  %1530 = vmatprep.subr.bf16.mxu1 %v1997_v0 }
  0xf9   : > { %1463 = vmatmul.mubr.bf16.vlgmr.msra.gmra.mrb[0].mxu0 %v1683_v17  ;;  %1491 = vmatmul.mubr.bf16.vlgmr.msra.gmra.mrb[0].mxu1 %v1684_v18 }
  0xfa   : > { %1503 = vmatpush3.bf16.msra.mxu0 %v1685_v19  ;;  %1531 = vmatpush3.bf16.msra.mxu1 %v1686_v20 }
  0xfb   : > { %1504 = vmatprep.subr.bf16.mxu0 %v1997_v0  ;;  %1532 = vmatprep.subr.bf16.mxu1 %v1997_v0 }
  0xfc   : > { %1494 = vmatprep.mubr.msk.bf16.mxu1 %vm1998_vm0, %v1997_v0  ;;  %1466 = vmatprep.mubr.msk.bf16.mxu0 %vm1998_vm0, %v1997_v0 }
  0xfe   : > { %1505 = vmatpush3.bf16.msra.mxu0 %v1687_v21  ;;  %1533 = vmatpush3.bf16.msra.mxu1 %v1688_v22 }
  0xff   : > { %1506 = vmatprep.subr.bf16.mxu0 %v1997_v0  ;;  %1534 = vmatprep.subr.bf16.mxu1 %v1997_v0 }
 0x101   : > { %1467 = vmatmul.mubr.bf16.gmra.mrb[4].mxu0 %v1692_v24  ;;  %1495 = vmatmul.mubr.bf16.gmra.mrb[4].mxu1 %v1689_v23 }
 0x102   : > { %1507 = vmatpush3.bf16.msra.mxu0 %v1690_v25  ;;  %1535 = vmatpush3.bf16.msra.mxu1 %v1691_v26 }
 0x103   : > { %1508 = vmatprep.subr.bf16.mxu0 %v1997_v0  ;;  %1536 = vmatprep.subr.bf16.mxu1 %v1997_v0 }
 0x104   : > { %1498 = vmatprep.mubr.msk.bf16.mxu1 %vm1998_vm0, %v1997_v0  ;;  %1470 = vmatprep.mubr.msk.bf16.mxu0 %vm1998_vm0, %v1997_v0 }
 0x106   : > { %1509 = vmatpush3.bf16.msra.mxu0 %v1693_v27  ;;  %1537 = vmatpush3.bf16.msra.mxu1 %v1694_v28 }
 0x107   : > { %1510 = vmatprep.subr.bf16.mxu0 %v1997_v0  ;;  %1538 = vmatprep.subr.bf16.mxu1 %v1997_v0 }
 0x109   : > { %1471 = vmatmul.mubr.bf16.gmra.mrb[8].mxu0 %v1698_v29  ;;  %1499 = vmatmul.mubr.bf16.gmra.mrb[8].mxu1 %v1695_v30 }
 0x10a   : > { %1511 = vmatpush3.bf16.msra.mxu0 %v1696_v31  ;;  %1539 = vmatpush3.bf16.msra.mxu1 %v1697_v32 }
 0x10b   : > { %1512 = vmatprep.subr.bf16.mxu0 %v1997_v0  ;;  %1540 = vmatprep.subr.bf16.mxu1 %v1997_v0 }
 0x10c   : > { %1518 = vmatprep.mubr.msk.bf16.mxu0 %vm1998_vm0, %v1997_v0  ;;  %1546 = vmatprep.mubr.msk.bf16.mxu1 %vm1998_vm0, %v1997_v0 }
 0x10e   : > { %1513 = vmatpush3.bf16.msra.mxu0 %v1699_v33  ;;  %1541 = vmatpush3.bf16.msra.mxu1 %v1700_v34 }
 0x10f   : > { %1514 = vmatprep.subr.bf16.mxu0 %v1997_v0  ;;  %1542 = vmatprep.subr.bf16.mxu1 %v1997_v0 }
 0x112   : > { %1515 = vmatpush3.bf16.msra.mxu0 %v1701_v35  ;;  %1543 = vmatpush3.bf16.msra.mxu1 %v1702_v36  ;;  %v1396_v35 = vld [vmem:[#allocation8] ss:$0 sm:$0xff] }
 0x113   : > { %1516 = vmatprep.subr.bf16.mxu0 %v1997_v0  ;;  %1544 = vmatprep.subr.bf16.mxu1 %v1997_v0 }
 0x116   : > { %1517 = vmatpush3.bf16.msra.mxu0 %v1703_v37  ;;  %1545 = vmatpush3.bf16.msra.mxu1 %v1704_v38 }
 0x119   : > { %1519 = vmatmul.mubr.bf16.vlgmr.msra.gmra.mrb[12].mxu0 %v1705_v39  ;;  %1547 = vmatmul.mubr.bf16.vlgmr.msra.gmra.mrb[12].mxu1 %v1706_v40 }
 0x11a   : > { %1522 = vmatprep.mubr.msk.bf16.mxu0 %vm1998_vm0, %v1997_v0  ;;  %1550 = vmatprep.mubr.msk.bf16.mxu1 %vm1998_vm0, %v1997_v0 }
 0x121   : > { %1523 = vmatmul.mubr.bf16.gmra.mrb[16].mxu0 %v1707_v41  ;;  %1551 = vmatmul.mubr.bf16.gmra.mrb[16].mxu1 %v1708_v42 }
 0x122   : > { %1526 = vmatprep.mubr.msk.bf16.mxu0 %vm1998_vm0, %v1997_v0  ;;  %1554 = vmatprep.mubr.msk.bf16.mxu1 %vm1998_vm0, %v1997_v0 }
 0x129   : > { %1527 = vmatmul.mubr.bf16.gmra.mrb[20].mxu0 %v1709_v43  ;;  %1555 = vmatmul.mubr.bf16.gmra.mrb[20].mxu1 %v1710_v44 }
 0x1cc   : > { %v2398_v45 = vpop.f32.mrb[0].mxu0  ;;  %v630_v46 = vpop.f32.mrb[0].mxu1 }
 0x1cd   : > { %v1464_v47 = vpop.f32.mrb[1].mxu0  ;;  %943 = vrot.lane.b32.xlu0 %v630_v46, %s1999_s27  ;;  %v1492_v49 = vpop.f32.mrb[1].mxu1 }
 0x1ce   : > { %v2401_v48 = vpop.f32.mrb[2].mxu0  ;;  %v633_v51 = vpop.f32.mrb[2].mxu1 }
 0x1cf   : > { %v1465_v50 = vpop.f32.mrb[3].mxu0  ;;  %v1493_v52 = vpop.f32.mrb[3].mxu1 }
 0x1d1   : > { %945 = vrot.lane.b32.xlu0 %v633_v51, %s1999_s27 }
 0x1d4   : > { %v2404_v53 = vpop.f32.mrb[4].mxu0  ;;  %v638_v54 = vpop.f32.mrb[4].mxu1 }
 0x1d5   : > { %v1468_v55 = vpop.f32.mrb[5].mxu0  ;;  %947 = vrot.lane.b32.xlu1 %v638_v54, %s1999_s27  ;;  %v1496_v56 = vpop.f32.mrb[5].mxu1 }
 0x1d6   : > { %v2407_v57 = vpop.f32.mrb[6].mxu0  ;;  %v641_v58 = vpop.f32.mrb[6].mxu1 }
 0x1d7   : > { %v1469_v59 = vpop.f32.mrb[7].mxu0  ;;  %v1497_v60 = vpop.f32.mrb[7].mxu1 }
 0x1d9   : > { %949 = vrot.lane.b32.xlu1 %v641_v58, %s1999_s27 }
 0x1dc   : > { %v2410_v61 = vpop.f32.mrb[8].mxu0  ;;  %v646_v62 = vpop.f32.mrb[8].mxu1 }
 0x1dd   : > { %v1472_v63 = vpop.f32.mrb[9].mxu0  ;;  %951 = vrot.lane.b32.xlu0 %v646_v62, %s1999_s27  ;;  %v1500_v1 = vpop.f32.mrb[9].mxu1 }
 0x1de   : > { %v506_v0 = vpop.f32.mrb[10].mxu0  ;;  %v649_v3 = vpop.f32.mrb[10].mxu1 }
 0x1df   : > { %v1473_v2 = vpop.f32.mrb[11].mxu0  ;;  %v1501_v4 = vpop.f32.mrb[11].mxu1 }
 0x1ec   : > { %v773_v5 = vpop.f32.mrb[12].mxu0  ;;  %v916_v6 = vpop.f32.mrb[12].mxu1 }
 0x1ed   : > { %963 = vrot.lane.b32.xlu1 %v773_v5, %s2000_s13  ;;  %v1520_v7 = vpop.f32.mrb[13].mxu0  ;;  %983 = vrot.lane.b32.xlu0 %v916_v6, %s2001_s15  ;;  %v1548_v9 = vpop.f32.mrb[13].mxu1 }
 0x1ee   : > { %v776_v8 = vpop.f32.mrb[14].mxu0  ;;  %v919_v11 = vpop.f32.mrb[14].mxu1 }
 0x1ef   : > { %v1521_v10 = vpop.f32.mrb[15].mxu0  ;;  %v1549_v12 = vpop.f32.mrb[15].mxu1 }
 0x1f1   : > { %985 = vrot.lane.b32.xlu1 %v919_v11, %s2001_s15  ;;  %965 = vrot.lane.b32.xlu0 %v776_v8, %s2000_s13 }
 0x1f4   : > { %v781_v13 = vpop.f32.mrb[16].mxu0  ;;  %v924_v14 = vpop.f32.mrb[16].mxu1 }
 0x1f5   : > { %967 = vrot.lane.b32.xlu1 %v781_v13, %s2000_s13  ;;  %v1524_v15 = vpop.f32.mrb[17].mxu0  ;;  %987 = vrot.lane.b32.xlu0 %v924_v14, %s2001_s15  ;;  %v1552_v17 = vpop.f32.mrb[17].mxu1 }
 0x1f6   : > { %v784_v16 = vpop.f32.mrb[18].mxu0  ;;  %v927_v19 = vpop.f32.mrb[18].mxu1 }
 0x1f7   : > { %v1525_v18 = vpop.f32.mrb[19].mxu0  ;;  %v1553_v20 = vpop.f32.mrb[19].mxu1 }
 0x1f9   : > { %969 = vrot.lane.b32.xlu0 %v784_v16, %s2000_s13 }
 0x1fc   : > { %v789_v21 = vpop.f32.mrb[20].mxu0  ;;  %v932_v22 = vpop.f32.mrb[20].mxu1 }
 0x1fd   : > { %971 = vrot.lane.b32.xlu1 %v789_v21, %s2000_s13  ;;  %v1528_v23 = vpop.f32.mrb[21].mxu0  ;;  %v1556_v24 = vpop.f32.mrb[21].mxu1  ;;  %991 = vrot.lane.b32.xlu0 %v932_v22, %s2001_s15 }
 0x1fe   : > { %v792_v25 = vpop.f32.mrb[22].mxu0  ;;  %v935_v27 = vpop.f32.mrb[22].mxu1  ;;  %v363_v24 = vld [vmem:[%s2304_s11] sm:$0xff] }
 0x1ff   : > { %v1529_v26 = vpop.f32.mrb[23].mxu0  ;;  %v1557_v28 = vpop.f32.mrb[23].mxu1 }
 0x201   : > { %989 = vrot.lane.b32.xlu1 %v927_v19, %s2001_s15 }
 0x23f   : > { %v944_v29 = vpop.permute.xlu0 %943 }
 0x240   : > { %v999_v34 = vsel %vm998_vm1, %v2398_v45, %v944_v29 }
 0x243   : > { %v946_v31 = vpop.permute.xlu0 %945 }
 0x244   : > { %v1000_v42 = vsel %vm998_vm1, %v2401_v48, %v946_v31 }
 0x247   : > { %v948_v30 = vpop.permute.xlu1 %947 }
 0x248   : > { %v1001_v45 = vsel %vm998_vm1, %v2404_v53, %v948_v30 }
 0x24b   : > { %v950_v32 = vpop.permute.xlu1 %949 }
 0x24c   : > { %v1002_v10 = vsel %vm998_vm1, %v2407_v57, %v950_v32 }
 0x24f   : > { %v952_v33 = vpop.permute.xlu0 %951 }
 0x250   : > { %v1003_v53 = vsel %vm998_vm1, %v2410_v61, %v952_v33 }
 0x25f   : > { %v964_v36 = vpop.permute.xlu1 %963  ;;  %v984_v37 = vpop.permute.xlu0 %983 }
 0x260   : > { %v1005_v38 = vsel %vm1004_vm2, %v999_v34, %v964_v36 }
 0x261   : > { %v1011_v39 = vsel %vm1010_vm3, %v1005_v38, %v984_v37 }
 0x262   : > { %v1023_v40 = vadd.f32 %v1396_v35, %v1011_v39 }
 0x263   : > { %v986_v41 = vpop.permute.xlu1 %985  ;;  %v966_v43 = vpop.permute.xlu0 %965 }
 0x264   : > { %v1033_v44 = vmul.f32 0.044715, %v1023_v40  ;;  %v1006_v46 = vsel %vm1004_vm2, %v1000_v42, %v966_v43  ;;  %v1028_v22 = vmul.f32 0.5, %v1023_v40  ;;  %v365_v42 = vld [vmem:[%s2304_s11 + $0x10] sm:$0xff] }
 0x265   : > { %v1012_v47 = vsel %vm1010_vm3, %v1006_v46, %v986_v41 }
 0x266   : > { %v1038_v49 = vmul.f32 %v1033_v44, %v1023_v40  ;;  %v1024_v50 = vadd.f32 %v1396_v35, %v1012_v47 }
 0x267   : > { %v968_v51 = vpop.permute.xlu1 %967  ;;  %v988_v52 = vpop.permute.xlu0 %987 }
 0x268   : > { %v1007_v54 = vsel %vm1004_vm2, %v1001_v45, %v968_v51  ;;  %v1043_v55 = vmul.f32 %v1038_v49, %v1023_v40  ;;  %v1034_v58 = vmul.f32 0.044715, %v1024_v50  ;;  %v1029_v32 = vmul.f32 0.5, %v1024_v50  ;;  %v367_v51 = vld [vmem:[%s2304_s11 + $0x20] sm:$0x7f] }
 0x269   : > { %v1013_v56 = vsel %vm1010_vm3, %v1007_v54, %v988_v52 }
 0x26a   : > { %v1025_v48 = vadd.f32 %v1396_v35, %v1013_v56  ;;  %v1048_v59 = vadd.f32 %v1043_v55, %v1023_v40  ;;  %v1039_v60 = vmul.f32 %v1034_v58, %v1024_v50 }
 0x26b   : > { %v970_v62 = vpop.permute.xlu0 %969 }
 0x26c   : > { %v1053_v63 = vmul.f32 0.7978846, %v1048_v59  ;;  %v1035_v0 = vmul.f32 0.044715, %v1025_v48  ;;  %v1044_v1 = vmul.f32 %v1039_v60, %v1024_v50  ;;  %v1008_v13 = vsel %vm1004_vm2, %v1002_v10, %v970_v62 }
 0x26d   : > { %v1030_v39 = vmul.f32 0.5, %v1025_v48 }
 0x26e   : > { %1711 = vtanh.f32 %v1053_v63  ;;  %v1040_v2 = vmul.f32 %v1035_v0, %v1025_v48  ;;  %v1049_v4 = vadd.f32 %v1044_v1, %v1024_v50 }
 0x26f   : > { %v972_v3 = vpop.permute.xlu1 %971  ;;  %v992_v6 = vpop.permute.xlu0 %991 }
 0x270   : > { %v1009_v5 = vsel %vm1004_vm2, %v1003_v53, %v972_v3  ;;  %v1045_v7 = vmul.f32 %v1040_v2, %v1025_v48  ;;  %v1054_v9 = vmul.f32 0.7978846, %v1049_v4 }
 0x271   : > { %v1015_v8 = vsel %vm1010_vm3, %v1009_v5, %v992_v6 }
 0x272   : > { %v1027_v11 = vadd.f32 %v1396_v35, %v1015_v8  ;;  %v1050_v12 = vadd.f32 %v1045_v7, %v1025_v48  ;;  %1713 = vtanh.f32 %v1054_v9  ;;  %v366_v48 = vld [vmem:[%s2304_s11 + $0x18] sm:$0xff] }
 0x273   : > { %v990_v14 = vpop.permute.xlu1 %989 }
 0x274   : > { %v1037_v61 = vmul.f32 0.044715, %v1027_v11  ;;  %v1014_v15 = vsel %vm1010_vm3, %v1008_v13, %v990_v14  ;;  %v1055_v16 = vmul.f32 0.7978846, %v1050_v12  ;;  %v1032_v45 = vmul.f32 0.5, %v1027_v11 }
 0x275   : > { %v1026_v17 = vadd.f32 %v1396_v35, %v1014_v15  ;;  %v364_v35 = vld [vmem:[%s2304_s11 + $0x8] sm:$0xff] }
 0x276   : > { %1715 = vtanh.f32 %v1055_v16  ;;  %v1042_v18 = vmul.f32 %v1037_v61, %v1027_v11 }
 0x277   : > { %v1036_v19 = vmul.f32 0.044715, %v1026_v17  ;;  %v1031_v55 = vmul.f32 0.5, %v1026_v17 }
 0x278   : > { %v1712_v20 = vpop.eup %1711  ;;  %v1047_v21 = vmul.f32 %v1042_v18, %v1027_v11 }
 0x279   : > { %v1063_v57 = vadd.f32 1.0, %v1712_v20  ;;  %v1041_v23 = vmul.f32 %v1036_v19, %v1026_v17 }
 0x27a   : > { %v1052_v25 = vadd.f32 %v1047_v21, %v1027_v11 }
 0x27b   : > { %v1068_v26 = vmul.f32 %v1063_v57, %v1028_v22  ;;  %v1046_v27 = vmul.f32 %v1041_v23, %v1026_v17 }
 0x27c   : > { %v1057_v28 = vmul.f32 0.7978846, %v1052_v25  ;;  %v1714_v29 = vpop.eup %1713 }
 0x27d   : > { %v1073_v30 = vadd.f32 %v1068_v26, %v363_v24  ;;  %v1051_v31 = vadd.f32 %v1046_v27, %v1026_v17  ;;  %v1064_v33 = vadd.f32 1.0, %v1714_v29 }
 0x27e   : > { %1717 = vtanh.f32 %v1057_v28 }
 0x27f   : > { %v1081_v34 = vsel %vm1080_vm4, %v1073_v30, 0.0  ;;  %v1056_v36 = vmul.f32 0.7978846, %v1051_v31  ;;  %v1069_v38 = vmul.f32 %v1064_v33, %v1029_v32  ;;  %v1397_v32 = vld [vmem:[#allocation10] ss:$0 sm:$0xff] }
 0x280   : > { %v1716_v37 = vpop.eup %1715  ;;  %1082 = vadd.xlane.f32.xlu1 %v1081_v34 }
 0x281   : > { %v1065_v40 = vadd.f32 1.0, %v1716_v37  ;;  %1719 = vtanh.f32 %v1056_v36  ;;  %v1074_v41 = vadd.f32 %v1069_v38, %v364_v35  ;;  %v1398_v35 = vld [vmem:[#allocation11] ss:$0 sm:$0xff] }
 0x283   : > { %v1070_v43 = vmul.f32 %v1065_v40, %v1030_v39  ;;  %v1084_v44 = vsel %vm1080_vm4, %v1074_v41, 0.0 }
 0x284   : > { %1085 = vadd.xlane.f32.xlu0 %v1084_v44 }
 0x285   : > { %v1075_v46 = vadd.f32 %v1070_v43, %v365_v42 }
 0x287   : > { %v1087_v47 = vsel %vm1080_vm4, %v1075_v46, 0.0 }
 0x288   : > { %v1718_v49 = vpop.eup %1717  ;;  %1088 = vadd.xlane.f32.xlu0 %v1087_v47 }
 0x289   : > { %v1067_v50 = vadd.f32 1.0, %v1718_v49 }
 0x28b   : > { %v1720_v52 = vpop.eup %1719  ;;  %v1072_v54 = vmul.f32 %v1067_v50, %v1032_v45 }
 0x28c   : > { %v1066_v56 = vadd.f32 1.0, %v1720_v52 }
 0x28d   : > { %v1077_v58 = vadd.f32 %v1072_v54, %v367_v51 }
 0x28e   : > { %v1071_v59 = vmul.f32 %v1066_v56, %v1031_v55 }
 0x28f   : > { %v1094_v60 = vsel %vm1093_vm5, %v1077_v58, 0.0 }
 0x290   : > { %1095 = vadd.xlane.f32.xlu0 %v1094_v60  ;;  %v1076_v62 = vadd.f32 %v1071_v59, %v366_v48 }
 0x292   : > { %v1090_v63 = vsel %vm1080_vm4, %v1076_v62, 0.0 }
 0x293   : > { %1091 = vadd.xlane.f32.xlu1 %v1090_v63 }
 0x30d   : > { %v1083_v0 = vpop.xlane.xlu1 %1082 }
 0x30e   : > { %v1098_v1 = vmul.f32 0.03125, %v1083_v0 }
 0x310   : > { %v1103_v2 = vsub.f32 %v1073_v30, %v1098_v1 }
 0x311   : > { %v1086_v53 = vpop.xlane.xlu0 %1085 }
 0x312   : > { %v1108_v3 = vmul.f32 %v1103_v2, %v1103_v2  ;;  %v1099_v4 = vmul.f32 0.03125, %v1086_v53 }
 0x314   : > { %v1113_v5 = vsel %vm1080_vm4, %v1108_v3, 0.0  ;;  %v1104_v6 = vsub.f32 %v1074_v41, %v1099_v4 }
 0x315   : > { %1114 = vadd.xlane.f32.xlu1 %v1113_v5  ;;  %v1089_v7 = vpop.xlane.xlu0 %1088 }
 0x316   : > { %v1100_v8 = vmul.f32 0.03125, %v1089_v7  ;;  %v1109_v9 = vmul.f32 %v1104_v6, %v1104_v6 }
 0x318   : > { %v1105_v10 = vsub.f32 %v1075_v46, %v1100_v8  ;;  %v1116_v11 = vsel %vm1080_vm4, %v1109_v9, 0.0 }
 0x319   : > { %1117 = vadd.xlane.f32.xlu0 %v1116_v11 }
 0x31a   : > { %v1110_v12 = vmul.f32 %v1105_v10, %v1105_v10 }
 0x31c   : > { %v1119_v14 = vsel %vm1080_vm4, %v1110_v12, 0.0 }
 0x31d   : > { %v1096_v13 = vpop.xlane.xlu0 %1095  ;;  %1120 = vadd.xlane.f32.xlu1 %v1119_v14 }
 0x31e   : > { %v1102_v61 = vmul.f32 0.03125, %v1096_v13 }
 0x320   : > { %v1107_v15 = vsub.f32 %v1077_v58, %v1102_v61  ;;  %v1092_v16 = vpop.xlane.xlu1 %1091 }
 0x321   : > { %v1101_v17 = vmul.f32 0.03125, %v1092_v16 }
 0x322   : > { %v1112_v18 = vmul.f32 %v1107_v15, %v1107_v15 }
 0x323   : > { %v1106_v19 = vsub.f32 %v1076_v62, %v1101_v17 }
 0x324   : > { %v1125_v20 = vsel %vm1093_vm5, %v1112_v18, 0.0 }
 0x325   : > { %1126 = vadd.xlane.f32.xlu1 %v1125_v20  ;;  %v1111_v21 = vmul.f32 %v1106_v19, %v1106_v19 }
 0x327   : > { %v1122_v22 = vsel %vm1080_vm4, %v1111_v21, 0.0 }
 0x328   : > { %1123 = vadd.xlane.f32.xlu0 %v1122_v22 }
 0x3a2   : > { %v1115_v57 = vpop.xlane.xlu1 %1114 }
 0x3a3   : > { %v1128_v23 = vmul.f32 0.03125, %v1115_v57 }
 0x3a5   : > { %v1133_v24 = vadd.f32 1e-05, %v1128_v23 }
 0x3a6   : > { %v1118_v25 = vpop.xlane.xlu0 %1117 }
 0x3a7   : > { %1721 = vrsqrt.f32 %v1133_v24  ;;  %v1129_v26 = vmul.f32 0.03125, %v1118_v25 }
 0x3a9   : > { %v1134_v27 = vadd.f32 1e-05, %v1129_v26 }
 0x3aa   : > { %v1121_v28 = vpop.xlane.xlu1 %1120 }
 0x3ab   : > { %1723 = vrsqrt.f32 %v1134_v27  ;;  %v1130_v29 = vmul.f32 0.03125, %v1121_v28 }
 0x3ad   : > { %v1135_v30 = vadd.f32 1e-05, %v1130_v29 }
 0x3af   : > { %1725 = vrsqrt.f32 %v1135_v30 }
 0x3b1   : > { %v1722_v31 = vpop.eup %1721 }
 0x3b2   : > { %v1143_v33 = vmul.f32 %v1722_v31, %v1103_v2  ;;  %v1127_v34 = vpop.xlane.xlu1 %1126 }
 0x3b3   : > { %v1132_v36 = vmul.f32 0.03125, %v1127_v34 }
 0x3b4   : > { %v1154_v37 = vmul.f32 %v1397_v32, %v1143_v33 }
 0x3b5   : > { %v1137_v38 = vadd.f32 1e-05, %v1132_v36  ;;  %v1124_v39 = vpop.xlane.xlu0 %1123  ;;  %v1724_v40 = vpop.eup %1723 }
 0x3b6   : > { %v1165_v41 = vadd.f32 %v1398_v35, %v1154_v37  ;;  %v1131_v42 = vmul.f32 0.03125, %v1124_v39  ;;  %v1144_v43 = vmul.f32 %v1724_v40, %v1104_v6 }
 0x3b7   : > { %1727 = vrsqrt.f32 %v1137_v38 }
 0x3b8   : > { %1170 = vst.msk [vmem:[%s361_s8] sm:$0xff] %vm1080_vm4, %v1165_v41  ;;  %v1136_v44 = vadd.f32 1e-05, %v1131_v42  ;;  %v1155_v46 = vmul.f32 %v1397_v32, %v1144_v43 }
 0x3b9   : > { %v1726_v47 = vpop.eup %1725 }
 0x3ba   : > { %1729 = vrsqrt.f32 %v1136_v44  ;;  %v1166_v49 = vadd.f32 %v1398_v35, %v1155_v46  ;;  %v1145_v45 = vmul.f32 %v1726_v47, %v1105_v10 }
 0x3bc   : > { %1171 = vst.msk [vmem:[%s361_s8 + $0x8] sm:$0xff] %vm1080_vm4, %v1166_v49  ;;  %v1156_v50 = vmul.f32 %v1397_v32, %v1145_v45 }
 0x3be   : > { %v1167_v51 = vadd.f32 %v1398_v35, %v1156_v50 }
 0x3c0   : > { %1172 = vst.msk [vmem:[%s361_s8 + $0x10] sm:$0xff] %vm1080_vm4, %v1167_v51 }
 0x3c1   : > { %v1728_v52 = vpop.eup %1727 }
 0x3c2   : > { %v1147_v54 = vmul.f32 %v1728_v52, %v1107_v15 }
 0x3c4   : > { %v1730_v55 = vpop.eup %1729  ;;  %v1158_v56 = vmul.f32 %v1397_v32, %v1147_v54 }
 0x3c5   : > { %v1146_v58 = vmul.f32 %v1730_v55, %v1106_v19 }
 0x3c6   : > { %v1169_v48 = vadd.f32 %v1398_v35, %v1158_v56 }
 0x3c7   : > { %v1157_v59 = vmul.f32 %v1397_v32, %v1146_v58 }
 0x3c8   : > { %1174 = vst.msk [vmem:[%s361_s8 + $0x20] sm:$0x7f] %vm1093_vm5, %v1169_v48 }
 0x3c9   : > { %v1168_v60 = vadd.f32 %v1398_v35, %v1157_v59 }
 0x3cb   : > { %1173 = vst.msk [vmem:[%s361_s8 + $0x18] sm:$0xff] %vm1080_vm4, %v1168_v60 }
 0x3cc   : > { %1916 = shalt.err (!%p1913_p4)
}
 0x3cd   : > { %s1917_s11 = scalar_lea.hbm %s2458_s12, 640  ;;  %s1921_s17 = scalar_lea.hbm %s2512_s6, 1280 }
 0x3ce   : > { %p1918_p11 = scmp.ne.s32.totalorder %s2458_s12, %s1917_s11  ;;  %p1922_p1 = scmp.lt.u32.totalorder %s2458_s12, %s2512_s6 }
 0x3cf   : > { %p1923_p2 = scmp.lt.u32.totalorder %s1921_s17, %s1917_s11  ;;  %p1925_p0 = scmp.lt.u32.totalorder %s1917_s11, %s2458_s12 }
 0x3d0   : > { %p1919_p7 = pnand %p1918_p11, %p2202_p10 }
 0x3d1   : > { %p1924_p13 = por %p1923_p2, %p1922_p1 }
 0x3d2   : > { %p1920_p12 = pneg %p1919_p7 }
 0x3d3   : > { %p1926_p6 = por %p1925_p0, %p1924_p13 }
 0x3d5   : > { %p1927_p8 = pnand %p1926_p6, %p1920_p12 }
 0x3d7   : > { %1930 = shalt.err (!%p1927_p8)
}
 0x3d8   : > { %s2003_s15 = smov 128  }
 0x3d9   : > { %1585 = dma.vmem_to_hbm [thread:$0]  (%p2202_p10), %s2460_s0, 640, %s2458_s12, %s1176_s25, %s2003_s15, %s2003_s15, %s1999_s27  }
 0x3da PF: > { %s1204_s8 = sand.u32 1, %s1973_s21   ;;  %p2545_p3 = scmp.ne.s32.totalorder %s2523_s28, 0 }
 0x3db   : > { %p2546_p5 = scmp.ge.s32.totalorder %s1985_s24, 2  ;;  %s1205_s30 = scalar_lea.sflag [#allocation4], %s1204_s8 }
 0x3dd   : > { %p1608_p9 = pnand %p2546_p5, %p2545_p3 }
 0x3df   : > { %1968 = dma.done.wait (!%p1608_p9), %s1205_s30, 640  }
 0x3e0   : > { %1970 = vsyncadd (!%p1608_p9), %s1205_s30, 4294966656  ;;  %p24_p4 = scmp.ge.s32.totalorder %s2192_s18, 4   ;;  %s2547_s21 = smov %s1977_s22 }
 0x3e1   : > { %s2548_s22 = smov %s1981_s23  ;;  %s2549_s23 = smov %s2208_s20 }
 0x3e2   : > { %s2550_s24 = smov %s2192_s18  ;;  %26 = sbr.rel (!%p24_p4) target bundleno = 14 (0xe), region = 124 }
 0x3e9   :  { %1210 = vsyncpa [#allocation3], 1 }
 0x3ea   :  { %1212 = vsyncpa [#allocation3 + $0x1], 1 }
 0x3eb   :  { %1213 = vsyncpa [#allocation6], 1 }
 0x3ec   :  { %1215 = vsyncpa [#allocation6 + $0x1], 1 }
 0x3ed   :  { %1216 = vsyncpa [#allocation9], 1 }
 0x3ee   :  { %1217 = vsyncpa [#allocation12], 1 }
 0x3ef   :  { %1218 = vsyncpa [#allocation4], 1 }
 0x3f0   :  { %1220 = vsyncpa [#allocation4 + $0x1], 1 }

// kernel: wavlm_ctc_forward.11
= control target key start
LH: loop header
LB: loop body
LE: loop exit
PB: predicated region body
PF: predicated region fallthrough
CT: control target
= control target key end

     0   :  { %8 = vsyncpa [#allocation3], 0  ;;  %s997_s0 = inlined_call_operand.hbm [shape: bf16[2,39,32], index: 0, kind: input, shape index: {}]   ;;  %s998_s1 = inlined_call_operand.hbm [shape: bf16[32,128], index: 1, kind: input, shape index: {}]   ;;  %s999_s2 = inlined_call_operand.hbm [shape: f32[1,128], index: 2, kind: input, shape index: {}]   ;;  %s1000_s3 = inlined_call_operand.hbm [shape: f32[2,39,128], index: 3, kind: output, shape index: {}]  }
   0x1   :  { %10 = vsyncpa [#allocation3 + $0x1], 0 }
   0x2   :  { %11 = vsyncpa [#allocation6], 0 }
   0x3   :  { %12 = vsyncpa [#allocation4], 0 }
   0x4   :  { %14 = vsyncpa [#allocation4 + $0x1], 0  ;;  %s752_s12 = smov 0   ;;  %s754_s13 = smov 0  }
   0x5   :  { %s756_s14 = smov 0   ;;  %s758_s15 = smov 0  }
   0x6 LB: > { %s773_s16 = sadd.s32 4294967295, %s720_s15   ;;  %s435_s17 = sadd.s32 4294967294, %s720_s15   ;;  %s720_s15 = sphi %s758_s15, %s1020_s15   ;;  %s716_s14 = sphi %s756_s14, %s1019_s14   ;;  %s712_s13 = sphi %s754_s13, %s1018_s13   ;;  %s708_s12 = sphi %s752_s12, %s1017_s12  }
   0x7   : > { %p40_p0 = scmp.ne.s32.totalorder %s712_s13, %s708_s12  ;;  %p1001_p1 = scmp.eq.s32.totalorder %s773_s16, 0 }
   0x8   : > { %p112_p3 = scmp.eq.s32.totalorder %s435_s17, 1  ;;  %p436_p5 = scmp.ge.s32.totalorder %s720_s15, 1 }
   0x9   : > { %p782_p4 = por %p1001_p1, %p40_p0  ;;  %p119_p7 = scmp.lt.s32.totalorder %s720_s15, 3 }
   0xa   : > { %p787_p6 = por %p112_p3, %p40_p0  ;;  %s722_s21 = smov [#allocation5]  }
   0xb   : > { %s1004_s18 = scalar_select %p782_p4, 1, 0 }
   0xc   : > { %s1005_s19 = scalar_select %p787_p6, 1, 0 }
   0xd   : > { %p792_p8 = pnand %p436_p5, %p119_p7  ;;  %s131_s22 = sshll.u32 %s722_s21, 4  ;;  %s796_s22 = int_to_ptr.vmem [resolvable:$true] %s131_s22 }
   0xe   : > { %s723_s24 = smov [#allocation7]   ;;  %s564_s28 = scalar_lea.hbm %s998_s1, 256 }
   0xf   : > { %p498_p9 = pneg %p792_p8  ;;  %s145_s25 = sshll.u32 %s723_s24, 4  ;;  %s807_s25 = int_to_ptr.vmem [resolvable:$true] %s145_s25 }
  0x10   : > { %p565_p12 = scmp.ne.s32.totalorder %s998_s1, %s564_s28  ;;  %p571_p5 = scmp.lt.u32.totalorder %s564_s28, %s998_s1 }
  0x11   : > { %p803_p11 = pnand %p498_p9, %p1001_p1 }
  0x13   : > { %p566_p13 = pneg %p803_p11 }
  0x15   : > { %p567_p0 = pnand %p566_p13, %p565_p12 }
  0x17   : > { %p568_p3 = pneg %p567_p0 }
  0x19   : > { %p573_p7 = pnand %p571_p5, %p568_p3 }
  0x1b   : > { %576 = shalt.err (!%p573_p7)
}
  0x1c   : > { %s577_s6 = scalar_lea.vmem %s796_s22, 256  ;;  %p585_p2 = scmp.lt.s32.totalorder %s796_s22, %s796_s22 }
  0x1d   : > { %p578_p9 = scmp.ne.s32.totalorder %s796_s22, %s577_s6  ;;  %p586_p12 = scmp.lt.s32.totalorder %s577_s6, %s577_s6 }
  0x1f   : > { %p580_p10 = pnand %p578_p9, %p566_p13  ;;  %p587_p0 = por %p586_p12, %p585_p2 }
  0x21   : > { %p581_p1 = pneg %p580_p10 }
  0x23   : > { %p588_p6 = pnand %p587_p0, %p581_p1 }
  0x25   : > { %591 = shalt.err (!%p588_p6)
}
  0x26   : > { %s724_s7 = smov 64   ;;  %s725_s8 = smov 4  }
  0x27   : > { %501 = dma.hbm_to_vmem [thread:$0]  (!%p803_p11), %s998_s1, 256, %s796_s22, [#allocation6], %s724_s7, %s724_s7, %s725_s8  }
  0x28   : > { %s592_s21 = scalar_lea.hbm %s999_s2, 16 }
  0x29   : > { %p593_p1 = scmp.ne.s32.totalorder %s999_s2, %s592_s21  ;;  %p599_p10 = scmp.lt.u32.totalorder %s592_s21, %s999_s2 }
  0x2b   : > { %p595_p2 = pnand %p593_p1, %p566_p13 }
  0x2d   : > { %p596_p6 = pneg %p595_p2 }
  0x2f   : > { %p601_p3 = pnand %p599_p10, %p596_p6 }
  0x31   : > { %604 = shalt.err (!%p601_p3)
}
  0x32   : > { %s605_s22 = scalar_lea.vmem %s807_s25, 16  ;;  %s612_s29 = scalar_lea.vmem %s807_s25, 32 }
  0x33   : > { %p606_p5 = scmp.ne.s32.totalorder %s807_s25, %s605_s22  ;;  %p613_p12 = scmp.lt.s32.totalorder %s807_s25, %s807_s25 }
  0x34   : > { %p614_p0 = scmp.lt.s32.totalorder %s612_s29, %s605_s22 }
  0x35   : > { %p608_p7 = pnand %p606_p5, %p566_p13 }
  0x36   : > { %p615_p1 = por %p614_p0, %p613_p12 }
  0x37   : > { %p609_p9 = pneg %p608_p7 }
  0x39   : > { %p616_p2 = pnand %p615_p1, %p609_p9 }
  0x3b   : > { %619 = shalt.err (!%p616_p2)
}
  0x3c   : > { %504 = dma.hbm_to_vmem [thread:$0]  (!%p803_p11), %s999_s2, 16, %s807_s25, [#allocation6]  }
  0x3d   : > { %s866_s5 = sadd.s32 1, %s720_s15   ;;  %s27_s23 = sadd.s32 1, %s716_s14 }
  0x3e   : > { %s24_s6 = ssub.s32 %s720_s15, %s866_s5  ;;  %p34_p13 = scmp.ne.s32.totalorder %s716_s14, %s712_s13 }
  0x3f   : > { %p25_p6 = scmp.eq.s32.totalorder %s24_s6, 0  ;;  %p35_p10 = scmp.eq.s32.totalorder %s720_s15, 0 }
  0x40   : > { %p1008_p3 = scmp.eq.s32.totalorder %s773_s16, 1  ;;  %p515_p7 = scmp.lt.s32.totalorder %s720_s15, 2 }
  0x41   : > { %s882_s10 = scalar_select %p25_p6, %s716_s14, %s27_s23  }
  0x42   : > { %p876_p5 = por %p1008_p3, %p34_p13  ;;  %p36_p9 = por %p35_p10, %p34_p13 }
  0x43   : > { %s156_s11 = sand.u32 1, %s716_s14   ;;  %s482_s25 = smul.u32 320, %s720_s15 }
  0x44   : > { %s1009_s9 = scalar_select %p876_p5, 1, 0 }
  0x45   : > { %s481_s17 = smul.u32 20, %s156_s11  ;;  %p886_p11 = pnand %p515_p7, %p36_p9 }
  0x46   : > { %s893_s27 = scalar_lea.hbm %s997_s0, %s482_s25  ;;  %s897_s29 = scalar_lea.sflag [#allocation3], %s156_s11 }
  0x47   : > { %s160_s28 = scalar_lea.vmem [#allocation2], %s481_s17  ;;  %s620_s30 = scalar_lea.hbm %s893_s27, 320 }
  0x48   : > { %s167_s22 = sshll.u32 %s160_s28, 4  ;;  %p621_p12 = scmp.ne.s32.totalorder %s893_s27, %s620_s30  ;;  %s895_s22 = int_to_ptr.vmem [resolvable:$true] %s167_s22 }
  0x49   : > { %p622_p0 = pneg %p886_p11  ;;  %s625_s6 = scalar_lea.hbm %s997_s0, 640 }
  0x4a   : > { %p626_p13 = scmp.lt.u32.totalorder %s893_s27, %s997_s0  ;;  %p627_p6 = scmp.lt.u32.totalorder %s625_s6, %s620_s30 }
  0x4b   : > { %p623_p1 = pnand %p622_p0, %p621_p12  ;;  %p629_p3 = scmp.lt.u32.totalorder %s620_s30, %s893_s27 }
  0x4c   : > { %p628_p10 = por %p627_p6, %p626_p13 }
  0x4d   : > { %p624_p2 = pneg %p623_p1 }
  0x4e   : > { %p630_p7 = por %p629_p3, %p628_p10 }
  0x50   : > { %p631_p9 = pnand %p630_p7, %p624_p2 }
  0x52   : > { %634 = shalt.err (!%p631_p9)
}
  0x53   : > { %s635_s11 = scalar_lea.vmem %s895_s22, 320  ;;  %s726_s17 = smov [#allocation2]  }
  0x54   : > { %p636_p12 = scmp.ne.s32.totalorder %s895_s22, %s635_s11  ;;  %s640_s26 = sshll.u32 %s726_s17, 4  ;;  %s641_s26 = int_to_ptr.vmem [resolvable:$false] %s640_s26 }
  0x55   : > { %s642_s28 = scalar_lea.vmem %s641_s26, 640  ;;  %p643_p4 = scmp.lt.s32.totalorder %s895_s22, %s641_s26 }
  0x56   : > { %p638_p1 = pnand %p636_p12, %p622_p0  ;;  %p644_p13 = scmp.lt.s32.totalorder %s642_s28, %s635_s11 }
  0x58   : > { %p639_p5 = pneg %p638_p1  ;;  %p645_p6 = por %p644_p13, %p643_p4 }
  0x5a   : > { %p646_p10 = pnand %p645_p6, %p639_p5 }
  0x5c   : > { %649 = shalt.err (!%p646_p10)
}
  0x5d   : > { %508 = dma.hbm_to_vmem [thread:$0]  (!%p886_p11), %s893_s27, 320, %s895_s22, %s897_s29, %s724_s7, %s724_s7, %s725_s8  }
  0x5e   : > { %179 = sbr.rel (%p792_p8) target bundleno = 352 (0x160), region = 32  ;;  %s931_s30 = sand.u32 (!%p792_p8), 1, %s712_s13  }
  0x5f   : > { %s483_s4 = smul.u32 (!%p792_p8), 20, %s931_s30  ;;  %s182_s23 = scalar_lea.sflag (!%p792_p8), [#allocation3], %s931_s30 }
  0x60   : > { %p1011_p4 = scmp.ne.s32.totalorder (!%p792_p8), %s1004_s18, 0 }
  0x61   : > { %s185_s6 = scalar_lea.vmem (!%p792_p8), [#allocation2], %s483_s4 }
  0x65   : > { %695 = dma.done.wait (%p1011_p4), %s182_s23, 320  }
  0x66   : > { %697 = vsyncadd (%p1011_p4), %s182_s23, 4294966976  ;;  %p1012_p5 = scmp.eq.s32.totalorder %s773_s16, 0 }
  0x68   : > { %699 = dma.done.wait (%p1012_p5), [#allocation6], 272   ;;  %p1013_p11 = pmov %p1012_p5 }
  0x69   : > { %v727_v0 = vmov 0.0   ;;  %vm728_vm0 = vmmov 0   ;;  %v559_v1 = vld [vmem:[#allocation5] sm:$0xff]   ;;  %v560_v2 = vld [vmem:[#allocation5 + $0x8] sm:$0xff]   ;;  %vm258_vm1 = vcmask 261120   ;;  %s484_s18 = smul.u32 40, %s931_s30 }
  0x6a   : > { %701 = vsyncadd (%p1013_p11), [#allocation6], 4294967024  ;;  %477 = vmatprep.subr.bf16.mxu1 %v727_v0  ;;  %461 = vmatprep.subr.bf16.mxu0 %v727_v0  ;;  %v561_v3 = vld [vmem:[%s185_s6 + $0x8] sm:$0xff]   ;;  %v562_v4 = vld [vmem:[%s185_s6] sm:$0xff]   ;;  %s485_s8 = smul.u32 640, %s773_s16  ;;  %s330_s29 = scalar_lea.sflag [#allocation4], %s931_s30 }
  0x6b   : > { %469 = vmatprep.mubr.msk.bf16.mxu1 %vm728_vm0, %v727_v0  ;;  %465 = vmatprep.mubr.msk.bf16.mxu0 %vm728_vm0, %v727_v0  ;;  %v563_v5 = vld [vmem:[%s185_s6 + $0x10] ss:$0 sps:$4 sm:$0xff]   ;;  %v444_v6 = vld [vmem:[#allocation7] ss:$0 sm:$0xff]  ;;  %s215_s20 = scalar_lea.vmem [#allocation8], %s484_s18  ;;  %p1014_p0 = scmp.ne.s32.totalorder %s1009_s9, 0 }
  0x6c   : > { %479 = vmatpush3.bf16.msra.mxu1 %v559_v1  ;;  %462 = vmatpush3.bf16.msra.mxu0 %v559_v1  ;;  %s343_s7 = sshll.u32 %s215_s20, 4  ;;  %s953_s22 = scalar_lea.hbm %s1000_s3, %s485_s8  ;;  %s948_s7 = int_to_ptr.vmem [resolvable:$true] %s343_s7 }
  0x6d   : > { %478 = vmatprep.subr.bf16.mxu1 %v727_v0  ;;  %463 = vmatprep.subr.bf16.mxu0 %v727_v0  ;;  %s650_s16 = scalar_lea.vmem %s948_s7, 640  ;;  %s729_s25 = smov [#allocation8]  }
  0x6e   : > { %p651_p8 = scmp.ne.s32.totalorder %s948_s7, %s650_s16  ;;  %s654_s24 = sshll.u32 %s729_s25, 4  ;;  %s655_s24 = int_to_ptr.vmem [resolvable:$false] %s654_s24 }
  0x6f   : > { %s656_s11 = scalar_lea.vmem %s655_s24, 1280  ;;  %p657_p7 = scmp.lt.s32.totalorder %s948_s7, %s655_s24 }
  0x70   : > { %480 = vmatpush3.bf16.msra.mxu1 %v560_v2  ;;  %464 = vmatpush3.bf16.msra.mxu0 %v560_v2  ;;  %p652_p2 = pnand %p651_p8, %p1014_p0  ;;  %p658_p9 = scmp.lt.s32.totalorder %s656_s11, %s650_s16 }
  0x72   : > { %p653_p3 = pneg %p652_p2  ;;  %p659_p12 = por %p658_p9, %p657_p7 }
  0x73   : > { %470 = vmatmul.mubr.msk.bf16.vlgmr.msra.gmra.mrb[0].mxu1 %vm258_vm1, %v561_v3  ;;  %466 = vmatmul.mubr.msk.bf16.vlgmr.msra.gmra.mrb[0].mxu0 %vm258_vm1, %v562_v4 }
  0x74   : > { %473 = vmatprep.mubr.msk.bf16.mxu1 %vm728_vm0, %v727_v0  ;;  %p660_p1 = pnand %p659_p12, %p653_p3 }
  0x7b   : > { %474 = vmatmul.mubr.msk.bf16.gmra.mrb[4].mxu1 %vm258_vm1, %v563_v5 }
 0x146   : > { %v310_v7 = vpop.f32.mrb[0].mxu1  ;;  %v302_v8 = vpop.f32.mrb[0].mxu0 }
 0x147   : > { %v311_v9 = vadd.f32 %v444_v6, %v310_v7  ;;  %v471_v10 = vpop.f32.mrb[1].mxu1  ;;  %v303_v11 = vadd.f32 %v444_v6, %v302_v8  ;;  %v467_v12 = vpop.f32.mrb[1].mxu0 }
 0x148   : > { %v313_v13 = vpop.f32.mrb[2].mxu1  ;;  %v305_v14 = vpop.f32.mrb[2].mxu0 }
 0x149   : > { %326 = vst [vmem:[%s215_s20 + $0x10] sm:$0xff] %v311_v9  ;;  %v314_v15 = vadd.f32 %v444_v6, %v313_v13  ;;  %324 = vst [vmem:[%s215_s20] sm:$0xff] %v303_v11  ;;  %v472_v16 = vpop.f32.mrb[3].mxu1  ;;  %v306_v17 = vadd.f32 %v444_v6, %v305_v14  ;;  %v468_v18 = vpop.f32.mrb[3].mxu0 }
 0x14b   : > { %327 = vst [vmem:[%s215_s20 + $0x18] sm:$0xff] %v314_v15  ;;  %325 = vst [vmem:[%s215_s20 + $0x8] sm:$0xff] %v306_v17 }
 0x14e   : > { %v318_v19 = vpop.f32.mrb[4].mxu1 }
 0x14f   : > { %v319_v20 = vadd.f32 %v444_v6, %v318_v19  ;;  %v475_v21 = vpop.f32.mrb[5].mxu1 }
 0x150   : > { %v321_v22 = vpop.f32.mrb[6].mxu1 }
 0x151   : > { %328 = vst [vmem:[%s215_s20 + $0x20] sm:$0x7f] %v319_v20  ;;  %v476_v23 = vpop.f32.mrb[7].mxu1 }
 0x152   : > { %663 = shalt.err (!%p660_p1)
}
 0x153   : > { %s664_s17 = scalar_lea.hbm %s953_s22, 640  ;;  %s668_s4 = scalar_lea.hbm %s1000_s3, 1280 }
 0x154   : > { %p665_p13 = scmp.ne.s32.totalorder %s953_s22, %s664_s17  ;;  %p669_p4 = scmp.lt.u32.totalorder %s953_s22, %s1000_s3 }
 0x155   : > { %p670_p5 = scmp.lt.u32.totalorder %s668_s4, %s664_s17  ;;  %p672_p8 = scmp.lt.u32.totalorder %s664_s17, %s953_s22 }
 0x156   : > { %p666_p6 = pnand %p665_p13, %p1014_p0 }
 0x157   : > { %p671_p11 = por %p670_p5, %p669_p4 }
 0x158   : > { %p667_p10 = pneg %p666_p6 }
 0x159   : > { %p673_p2 = por %p672_p8, %p671_p11 }
 0x15b   : > { %p674_p3 = pnand %p673_p2, %p667_p10 }
 0x15d   : > { %677 = shalt.err (!%p674_p3)
}
 0x15e   : > { %s730_s18 = smov 128   ;;  %s731_s20 = smov 8  }
 0x15f   : > { %496 = dma.vmem_to_hbm [thread:$0]  (%p1014_p0), %s948_s7, 640, %s953_s22, %s330_s29, %s730_s18, %s730_s18, %s731_s20  }
 0x160 PF: > { %s358_s8 = sand.u32 1, %s708_s12   ;;  %p1015_p7 = scmp.ne.s32.totalorder %s1005_s19, 0 }
 0x161   : > { %p1016_p9 = scmp.ge.s32.totalorder %s720_s15, 2  ;;  %s359_s21 = scalar_lea.sflag [#allocation4], %s358_s8 }
 0x163   : > { %p510_p12 = pnand %p1016_p9, %p1015_p7 }
 0x165   : > { %703 = dma.done.wait (!%p510_p12), %s359_s21, 640  }
 0x166   : > { %705 = vsyncadd (!%p510_p12), %s359_s21, 4294966656  ;;  %p17_p1 = scmp.ge.s32.totalorder %s866_s5, 4   ;;  %s1017_s12 = smov %s712_s13 }
 0x167   : > { %s1018_s13 = smov %s716_s14  ;;  %s1019_s14 = smov %s882_s10 }
 0x168   : > { %s1020_s15 = smov %s866_s5  ;;  %19 = sbr.rel (!%p17_p1) target bundleno = 6 (0x6), region = 85 }
 0x16f   :  { %364 = vsyncpa [#allocation3], 1 }
 0x170   :  { %366 = vsyncpa [#allocation3 + $0x1], 1 }
 0x171   :  { %367 = vsyncpa [#allocation6], 1 }
 0x172   :  { %368 = vsyncpa [#allocation4], 1 }
 0x173   :  { %370 = vsyncpa [#allocation4 + $0x1], 1 }

// kernel: wavlm_ctc_forward.9
= control target key start
LH: loop header
LB: loop body
LE: loop exit
PB: predicated region body
PF: predicated region fallthrough
CT: control target
= control target key end

     0   :  { %s6979_s0 = inlined_call_operand.hbm [shape: f32[2,39,32], index: 0, kind: input, shape index: {}, may-alias: {0,17}]   ;;  %s6980_s1 = inlined_call_operand.hbm [shape: bf16[32,96], index: 1, kind: input, shape index: {}]   ;;  %s6981_s2 = inlined_call_operand.hbm [shape: f32[1,96], index: 2, kind: input, shape index: {}]   ;;  %s6982_s3 = inlined_call_operand.hbm [shape: f32[2,8], index: 3, kind: input, shape index: {}]   ;;  %s6983_s4 = inlined_call_operand.hbm [shape: f32[1,2], index: 4, kind: input, shape index: {}]   ;;  %s6984_s5 = inlined_call_operand.hbm [shape: f32[1,4], index: 5, kind: input, shape index: {}]   ;;  %s6985_s6 = inlined_call_operand.hbm [shape: bf16[4,39,39], index: 6, kind: input, shape index: {}]   ;;  %s6986_s7 = inlined_call_operand.hbm [shape: bf16[32,32], index: 7, kind: input, shape index: {}]   ;;  %s6987_s8 = inlined_call_operand.hbm [shape: f32[1,32], index: 8, kind: input, shape index: {}]   ;;  %s6988_s9 = inlined_call_operand.hbm [shape: f32[1,32], index: 9, kind: input, shape index: {}]   ;;  %s6989_s10 = inlined_call_operand.hbm [shape: f32[1,32], index: 10, kind: input, shape index: {}]   ;;  %s6990_s11 = inlined_call_operand.hbm [shape: bf16[32,64], index: 11, kind: input, shape index: {}]   ;;  %s6991_s12 = inlined_call_operand.hbm [shape: f32[1,64], index: 12, kind: input, shape index: {}]   ;;  %s6992_s13 = inlined_call_operand.hbm [shape: bf16[64,32], index: 13, kind: input, shape index: {}]   ;;  %s6993_s14 = inlined_call_operand.hbm [shape: f32[1,32], index: 14, kind: input, shape index: {}]   ;;  %s6994_s15 = inlined_call_operand.hbm [shape: f32[1,32], index: 15, kind: input, shape index: {}]   ;;  %s6995_s16 = inlined_call_operand.hbm [shape: f32[1,32], index: 16, kind: input, shape index: {}]   ;;  %s6996_s17 = inlined_call_operand.hbm [shape: f32[2,39,32], index: 17, kind: output, shape index: {}, may-alias: {0,17}]  }
   0x1   :  { %7017 = sst [smem:[#allocation46_spill]] %s6979_s0 }
   0x2   :  { %7018 = sst [smem:[#allocation47_spill]] %s6980_s1 }
   0x3   :  { %7019 = sst [smem:[#allocation48_spill]] %s6981_s2 }
   0x4   :  { %7020 = sst [smem:[#allocation49_spill]] %s6982_s3 }
   0x5   :  { %7021 = sst [smem:[#allocation50_spill]] %s6983_s4 }
   0x6   :  { %7022 = sst [smem:[#allocation51_spill]] %s6995_s16 }
   0x7   :  { %7023 = sst [smem:[#allocation52_spill]] %s6996_s17 }
   0x8   :  { %22 = vsyncpa [#allocation3], 0 }
   0x9   :  { %24 = vsyncpa [#allocation3 + $0x1], 0 }
   0xa   :  { %25 = vsyncpa [#allocation6], 0 }
   0xb   :  { %26 = vsyncpa [#allocation9], 0 }
   0xc   :  { %27 = vsyncpa [#allocation12], 0 }
   0xd   :  { %28 = vsyncpa [#allocation15], 0 }
   0xe   :  { %29 = vsyncpa [#allocation18], 0 }
   0xf   :  { %30 = vsyncpa [#allocation21], 0 }
  0x10   :  { %31 = vsyncpa [#allocation24], 0 }
  0x11   :  { %32 = vsyncpa [#allocation27], 0 }
  0x12   :  { %33 = vsyncpa [#allocation4], 0 }
  0x13   :  { %35 = vsyncpa [#allocation4 + $0x1], 0  ;;  %s5553_s24 = smov 0   ;;  %s5555_s25 = smov 0  }
  0x14   :  { %s5557_s26 = smov 0   ;;  %s5559_s27 = smov 0  }
  0x15 LB: > { %7024 = sst [smem:[#allocation40_spill]] %s5405_s24  ;;  %s5419_s28 = smov [#allocation5]   ;;  %s5417_s27 = sphi %s5559_s27, %s7085_s27   ;;  %s5413_s26 = sphi %s5557_s26, %s7084_s26   ;;  %s5409_s25 = sphi %s5555_s25, %s7083_s25   ;;  %s5405_s24 = sphi %s5553_s24, %s7082_s24  }
  0x16   : > { %7025 = sst [smem:[#allocation41_spill]] %s5409_s25  ;;  %s446_s29 = sshll.u32 %s5419_s28, 4  ;;  %s5579_s29 = int_to_ptr.vmem [resolvable:$true] %s446_s29 }
  0x17   : > { %7026 = sst [smem:[#allocation42_spill]] %s5413_s26  ;;  %s5574_s0 = sadd.s32 4294967295, %s5417_s27  }
  0x18   : > { %7027 = sst [smem:[#allocation43_spill]] %s5417_s27  ;;  %p3733_p0 = scmp.ge.s32.totalorder %s5417_s27, 1 }
  0x19   : > { %7028 = sst [smem:[#allocation44_spill]] %s5574_s0  ;;  %p7011_p1 = scmp.eq.s32.totalorder %s5574_s0, 0 }
  0x1a   : > { %p434_p2 = scmp.lt.s32.totalorder %s5417_s27, 3  ;;  %s5420_s18 = smov [#allocation8]  }
  0x1b   : > { %s471_s19 = sshll.u32 %s5420_s18, 4  ;;  %s5421_s20 = smov [#allocation11]   ;;  %s5594_s19 = int_to_ptr.vmem [resolvable:$true] %s471_s19 }
  0x1c   : > { %p5581_p3 = pnand %p3733_p0, %p434_p2  ;;  %s493_s21 = sshll.u32 %s5421_s20, 4  ;;  %s5596_s21 = int_to_ptr.vmem [resolvable:$true] %s493_s21 }
  0x1d   : > { %s7032_s28 = sld [smem:[#allocation47_spill]] }
  0x1e   : > { %s7029_s30 = scalar_select %p5581_p3, 1, 0 }
  0x1f   : > { %p4381_p5 = pneg %p5581_p3 }
  0x20   : > { %7030 = sst [smem:[#allocation45_spill]] %s7029_s30 }
  0x21   : > { %p5590_p6 = pnand %p4381_p5, %p7011_p1 }
  0x23   : > { %s4841_s17 = scalar_lea.hbm %s7032_s28, 256  ;;  %p5606_p8 = pneg %p5590_p6 }
  0x24   : > { %p4842_p7 = scmp.ne.s32.totalorder %s7032_s28, %s4841_s17  ;;  %p4848_p11 = scmp.lt.u32.totalorder %s4841_s17, %s7032_s28 }
  0x26   : > { %p4844_p9 = pnand %p5606_p8, %p4842_p7 }
  0x28   : > { %p4845_p10 = pneg %p4844_p9 }
  0x2a   : > { %p4850_p12 = pnand %p4848_p11, %p4845_p10 }
  0x2c   : > { %4853 = shalt.err (!%p4850_p12)
}
  0x2d   : > { %s4854_s24 = scalar_lea.vmem %s5579_s29, 256  ;;  %p4862_p5 = scmp.lt.s32.totalorder %s5579_s29, %s5579_s29 }
  0x2e   : > { %p4855_p13 = scmp.ne.s32.totalorder %s5579_s29, %s4854_s24  ;;  %p4863_p4 = scmp.lt.s32.totalorder %s4854_s24, %s4854_s24 }
  0x30   : > { %p4857_p0 = pnand %p4855_p13, %p5606_p8  ;;  %p4864_p7 = por %p4863_p4, %p4862_p5 }
  0x32   : > { %p4858_p2 = pneg %p4857_p0 }
  0x34   : > { %p4865_p9 = pnand %p4864_p7, %p4858_p2 }
  0x36   : > { %4868 = shalt.err (!%p4865_p9)
}
  0x37   : > { %s7009_s30 = smov 64   ;;  %s7013_s17 = smov 4  }
  0x38   : > { %4384 = dma.hbm_to_vmem [thread:$0]  (!%p5590_p6), %s7032_s28, 256, %s5579_s29, [#allocation6], %s7009_s30, %s7009_s30, %s7013_s17  }
  0x39   : > { %s7034_s3 = sld [smem:[#allocation49_spill]] }
  0x3f   : > { %s4869_s24 = scalar_lea.hbm %s7034_s3, 32 }
  0x40   : > { %p4870_p4 = scmp.ne.s32.totalorder %s7034_s3, %s4869_s24  ;;  %p4876_p12 = scmp.lt.u32.totalorder %s4869_s24, %s7034_s3 }
  0x42   : > { %p4872_p10 = pnand %p4870_p4, %p5606_p8 }
  0x44   : > { %p4873_p11 = pneg %p4872_p10 }
  0x46   : > { %p4878_p13 = pnand %p4876_p12, %p4873_p11 }
  0x48   : > { %4881 = shalt.err (!%p4878_p13)
}
  0x49   : > { %s4882_s29 = scalar_lea.vmem %s5594_s19, 32  ;;  %p4890_p7 = scmp.lt.s32.totalorder %s5594_s19, %s5594_s19 }
  0x4a   : > { %p4883_p0 = scmp.ne.s32.totalorder %s5594_s19, %s4882_s29  ;;  %p4891_p9 = scmp.lt.s32.totalorder %s4882_s29, %s4882_s29 }
  0x4c   : > { %p4885_p2 = pnand %p4883_p0, %p5606_p8  ;;  %p4892_p4 = por %p4891_p9, %p4890_p7 }
  0x4e   : > { %p4886_p5 = pneg %p4885_p2 }
  0x50   : > { %p4893_p10 = pnand %p4892_p4, %p4886_p5 }
  0x52   : > { %4896 = shalt.err (!%p4893_p10)
}
  0x53   : > { %4390 = dma.hbm_to_vmem [thread:$0]  (!%p5590_p6), %s7034_s3, 32, %s5594_s19, [#allocation9]  }
  0x54   : > { %s4897_s0 = scalar_lea.hbm %s6984_s5, 16 }
  0x55   : > { %p4898_p11 = scmp.ne.s32.totalorder %s6984_s5, %s4897_s0  ;;  %p4904_p0 = scmp.lt.u32.totalorder %s4897_s0, %s6984_s5 }
  0x57   : > { %p4900_p12 = pnand %p4898_p11, %p5606_p8 }
  0x59   : > { %p4901_p13 = pneg %p4900_p12 }
  0x5b   : > { %p4906_p2 = pnand %p4904_p0, %p4901_p13 }
  0x5d   : > { %4909 = shalt.err (!%p4906_p2)
}
  0x5e   : > { %s4910_s19 = scalar_lea.vmem %s5596_s21, 16  ;;  %s4917_s29 = scalar_lea.vmem %s5596_s21, 32 }
  0x5f   : > { %p4911_p5 = scmp.ne.s32.totalorder %s5596_s21, %s4910_s19  ;;  %p4918_p4 = scmp.lt.s32.totalorder %s5596_s21, %s5596_s21 }
  0x60   : > { %p4919_p10 = scmp.lt.s32.totalorder %s4917_s29, %s4910_s19 }
  0x61   : > { %p4913_p7 = pnand %p4911_p5, %p5606_p8 }
  0x62   : > { %p4920_p11 = por %p4919_p10, %p4918_p4 }
  0x63   : > { %p4914_p9 = pneg %p4913_p7 }
  0x65   : > { %p4921_p12 = pnand %p4920_p11, %p4914_p9 }
  0x67   : > { %4924 = shalt.err (!%p4921_p12)
}
  0x68   : > { %4396 = dma.hbm_to_vmem [thread:$0]  (!%p5590_p6), %s6984_s5, 16, %s5596_s21, [#allocation12]  }
  0x69   : > { %s5424_s26 = smov [#allocation14]   ;;  %s5425_s0 = smov [#allocation17]  }
  0x6a   : > { %s516_s27 = sshll.u32 %s5424_s26, 4  ;;  %s541_s22 = sshll.u32 %s5425_s0, 4  ;;  %s517_s27 = int_to_ptr.vmem [resolvable:$true] %s516_s27  ;;  %s542_s22 = int_to_ptr.vmem [resolvable:$true] %s541_s22 }
  0x6b   : > { %s4925_s24 = scalar_lea.hbm %s6986_s7, 256 }
  0x6c   : > { %p4926_p13 = scmp.ne.s32.totalorder %s6986_s7, %s4925_s24  ;;  %p4932_p5 = scmp.lt.u32.totalorder %s4925_s24, %s6986_s7 }
  0x6e   : > { %p4928_p0 = pnand %p4926_p13, %p5606_p8 }
  0x70   : > { %p4929_p2 = pneg %p4928_p0 }
  0x72   : > { %p4934_p7 = pnand %p4932_p5, %p4929_p2 }
  0x74   : > { %4937 = shalt.err (!%p4934_p7)
}
  0x75   : > { %s4938_s21 = scalar_lea.vmem %s517_s27, 256  ;;  %p4946_p11 = scmp.lt.s32.totalorder %s517_s27, %s517_s27 }
  0x76   : > { %p4939_p9 = scmp.ne.s32.totalorder %s517_s27, %s4938_s21  ;;  %p4947_p12 = scmp.lt.s32.totalorder %s4938_s21, %s4938_s21 }
  0x78   : > { %p4941_p4 = pnand %p4939_p9, %p5606_p8  ;;  %p4948_p1 = por %p4947_p12, %p4946_p11 }
  0x7a   : > { %p4942_p10 = pneg %p4941_p4 }
  0x7c   : > { %p4949_p3 = pnand %p4948_p1, %p4942_p10 }
  0x7e   : > { %4952 = shalt.err (!%p4949_p3)
}
  0x7f   : > { %s7035_s25 = smov 64   ;;  %s4953_s20 = scalar_lea.hbm %s6988_s9, 16 }
  0x80   : > { %4402 = dma.hbm_to_vmem [thread:$0]  (!%p5590_p6), %s6986_s7, 256, %s517_s27, [#allocation15], %s7035_s25, %s7035_s25, %s7013_s17  }
  0x81   : > { %p4954_p1 = scmp.ne.s32.totalorder %s6988_s9, %s4953_s20  ;;  %p4960_p0 = scmp.lt.u32.totalorder %s4953_s20, %s6988_s9 }
  0x83   : > { %p4956_p3 = pnand %p4954_p1, %p5606_p8 }
  0x85   : > { %p4957_p13 = pneg %p4956_p3 }
  0x87   : > { %p4962_p2 = pnand %p4960_p0, %p4957_p13 }
  0x89   : > { %4965 = shalt.err (!%p4962_p2)
}
  0x8a   : > { %s4966_s21 = scalar_lea.vmem %s542_s22, 16  ;;  %s4973_s27 = scalar_lea.vmem %s542_s22, 32 }
  0x8b   : > { %p4967_p5 = scmp.ne.s32.totalorder %s542_s22, %s4966_s21  ;;  %p4974_p4 = scmp.lt.s32.totalorder %s542_s22, %s542_s22 }
  0x8c   : > { %p4975_p10 = scmp.lt.s32.totalorder %s4973_s27, %s4966_s21 }
  0x8d   : > { %p4969_p7 = pnand %p4967_p5, %p5606_p8 }
  0x8e   : > { %p4976_p11 = por %p4975_p10, %p4974_p4 }
  0x8f   : > { %p4970_p9 = pneg %p4969_p7 }
  0x91   : > { %p4977_p12 = pnand %p4976_p11, %p4970_p9 }
  0x93   : > { %4980 = shalt.err (!%p4977_p12)
}
  0x94   : > { %4408 = dma.hbm_to_vmem [thread:$0]  (!%p5590_p6), %s6988_s9, 16, %s542_s22, [#allocation18]  }
  0x95   : > { %s5426_s0 = smov [#allocation20]   ;;  %s5427_s20 = smov [#allocation23]  }
  0x96   : > { %s562_s23 = sshll.u32 %s5426_s0, 4  ;;  %s586_s24 = sshll.u32 %s5427_s20, 4  ;;  %s563_s23 = int_to_ptr.vmem [resolvable:$true] %s562_s23  ;;  %s587_s24 = int_to_ptr.vmem [resolvable:$true] %s586_s24 }
  0x97   : > { %s4981_s16 = scalar_lea.hbm %s6990_s11, 256 }
  0x98   : > { %p4982_p1 = scmp.ne.s32.totalorder %s6990_s11, %s4981_s16  ;;  %p4988_p0 = scmp.lt.u32.totalorder %s4981_s16, %s6990_s11 }
  0x9a   : > { %p4984_p3 = pnand %p4982_p1, %p5606_p8 }
  0x9c   : > { %p4985_p13 = pneg %p4984_p3 }
  0x9e   : > { %p4990_p2 = pnand %p4988_p0, %p4985_p13 }
  0xa0   : > { %4993 = shalt.err (!%p4990_p2)
}
  0xa1   : > { %s4994_s22 = scalar_lea.vmem %s563_s23, 256  ;;  %p5002_p4 = scmp.lt.s32.totalorder %s563_s23, %s563_s23 }
  0xa2   : > { %p4995_p5 = scmp.ne.s32.totalorder %s563_s23, %s4994_s22  ;;  %p5003_p10 = scmp.lt.s32.totalorder %s4994_s22, %s4994_s22 }
  0xa4   : > { %p4997_p7 = pnand %p4995_p5, %p5606_p8  ;;  %p5004_p11 = por %p5003_p10, %p5002_p4 }
  0xa6   : > { %p4998_p9 = pneg %p4997_p7 }
  0xa8   : > { %p5005_p12 = pnand %p5004_p11, %p4998_p9 }
  0xaa   : > { %5008 = shalt.err (!%p5005_p12)
}
  0xab   : > { %s7036_s26 = smov 4   ;;  %s5009_s29 = scalar_lea.hbm %s6992_s13, 512 }
  0xac   : > { %4414 = dma.hbm_to_vmem [thread:$0]  (!%p5590_p6), %s6990_s11, 256, %s563_s23, [#allocation21], %s7035_s25, %s7035_s25, %s7036_s26  }
  0xad   : > { %p5010_p1 = scmp.ne.s32.totalorder %s6992_s13, %s5009_s29  ;;  %p5016_p0 = scmp.lt.u32.totalorder %s5009_s29, %s6992_s13 }
  0xaf   : > { %p5012_p3 = pnand %p5010_p1, %p5606_p8 }
  0xb1   : > { %p5013_p13 = pneg %p5012_p3 }
  0xb3   : > { %p5018_p2 = pnand %p5016_p0, %p5013_p13 }
  0xb5   : > { %5021 = shalt.err (!%p5018_p2)
}
  0xb6   : > { %s5022_s22 = scalar_lea.vmem %s587_s24, 512  ;;  %p5030_p4 = scmp.lt.s32.totalorder %s587_s24, %s587_s24 }
  0xb7   : > { %p5023_p5 = scmp.ne.s32.totalorder %s587_s24, %s5022_s22  ;;  %p5031_p10 = scmp.lt.s32.totalorder %s5022_s22, %s5022_s22 }
  0xb9   : > { %p5025_p7 = pnand %p5023_p5, %p5606_p8  ;;  %p5032_p11 = por %p5031_p10, %p5030_p4 }
  0xbb   : > { %p5026_p9 = pneg %p5025_p7 }
  0xbd   : > { %p5033_p12 = pnand %p5032_p11, %p5026_p9 }
  0xbf   : > { %5036 = shalt.err (!%p5033_p12)
}
  0xc0   : > { %4420 = dma.hbm_to_vmem [thread:$0]  (!%p5590_p6), %s6992_s13, 512, %s587_s24, [#allocation24], %s7035_s25, %s7035_s25, %s7036_s26  }
  0xc1   : > { %s5428_s0 = smov [#allocation26]   ;;  %s5429_s19 = smov [#allocation7]  }
  0xc2   : > { %s611_s20 = sshll.u32 %s5428_s0, 4  ;;  %s460_s29 = sshll.u32 %s5429_s19, 4  ;;  %s612_s20 = int_to_ptr.vmem [resolvable:$true] %s611_s20  ;;  %s461_s29 = int_to_ptr.vmem [resolvable:$true] %s460_s29 }
  0xc3   : > { %s5037_s27 = scalar_lea.hbm %s6994_s15, 16 }
  0xc4   : > { %p5038_p1 = scmp.ne.s32.totalorder %s6994_s15, %s5037_s27  ;;  %p5044_p0 = scmp.lt.u32.totalorder %s5037_s27, %s6994_s15 }
  0xc6   : > { %p5040_p3 = pnand %p5038_p1, %p5606_p8 }
  0xc8   : > { %p5041_p13 = pneg %p5040_p3 }
  0xca   : > { %p5046_p2 = pnand %p5044_p0, %p5041_p13 }
  0xcc   : > { %5049 = shalt.err (!%p5046_p2)
}
  0xcd   : > { %s5050_s24 = scalar_lea.vmem %s612_s20, 16  ;;  %s5057_s17 = scalar_lea.vmem %s612_s20, 32 }
  0xce   : > { %p5051_p5 = scmp.ne.s32.totalorder %s612_s20, %s5050_s24  ;;  %p5058_p4 = scmp.lt.s32.totalorder %s612_s20, %s612_s20 }
  0xcf   : > { %p5059_p10 = scmp.lt.s32.totalorder %s5057_s17, %s5050_s24 }
  0xd0   : > { %p5053_p7 = pnand %p5051_p5, %p5606_p8 }
  0xd1   : > { %p5060_p11 = por %p5059_p10, %p5058_p4 }
  0xd2   : > { %p5054_p9 = pneg %p5053_p7 }
  0xd4   : > { %p5061_p12 = pnand %p5060_p11, %p5054_p9 }
  0xd6   : > { %5064 = shalt.err (!%p5061_p12)
}
  0xd7   : > { %4426 = dma.hbm_to_vmem [thread:$0]  (!%p5590_p6), %s6994_s15, 16, %s612_s20, [#allocation27]  }
  0xd8   : > { %s7037_s2 = sld [smem:[#allocation48_spill]] }
  0xde   : > { %s5065_s21 = scalar_lea.hbm %s7037_s2, 16 }
  0xdf   : > { %p5066_p1 = scmp.ne.s32.totalorder %s7037_s2, %s5065_s21  ;;  %p5072_p0 = scmp.lt.u32.totalorder %s5065_s21, %s7037_s2 }
  0xe1   : > { %p5068_p3 = pnand %p5066_p1, %p5606_p8 }
  0xe3   : > { %p5069_p13 = pneg %p5068_p3 }
  0xe5   : > { %p5074_p2 = pnand %p5072_p0, %p5069_p13 }
  0xe7   : > { %5077 = shalt.err (!%p5074_p2)
}
  0xe8   : > { %s5078_s24 = scalar_lea.vmem %s461_s29, 16  ;;  %s5085_s20 = scalar_lea.vmem %s461_s29, 32 }
  0xe9   : > { %p5079_p5 = scmp.ne.s32.totalorder %s461_s29, %s5078_s24  ;;  %p5086_p4 = scmp.lt.s32.totalorder %s461_s29, %s461_s29 }
  0xea   : > { %p5087_p10 = scmp.lt.s32.totalorder %s5085_s20, %s5078_s24 }
  0xeb   : > { %p5081_p7 = pnand %p5079_p5, %p5606_p8 }
  0xec   : > { %p5088_p11 = por %p5087_p10, %p5086_p4 }
  0xed   : > { %p5082_p9 = pneg %p5081_p7 }
  0xef   : > { %p5089_p12 = pnand %p5088_p11, %p5082_p9 }
  0xf1   : > { %5092 = shalt.err (!%p5089_p12)
}
  0xf2   : > { %4387 = dma.hbm_to_vmem [thread:$0]  (!%p5590_p6), %s7037_s2, 16, %s461_s29, [#allocation6]  }
  0xf3   : > { %s5430_s19 = smov [#allocation10]   ;;  %s5431_s16 = smov [#allocation13]  }
  0xf4   : > { %s482_s3 = sshll.u32 %s5430_s19, 4  ;;  %s503_s21 = sshll.u32 %s5431_s16, 4  ;;  %s483_s3 = int_to_ptr.vmem [resolvable:$true] %s482_s3  ;;  %s504_s21 = int_to_ptr.vmem [resolvable:$true] %s503_s21 }
  0xf5   : > { %s7038_s4 = sld [smem:[#allocation50_spill]] }
  0xfb   : > { %s5093_s22 = scalar_lea.hbm %s7038_s4, 16 }
  0xfc   : > { %p5094_p1 = scmp.ne.s32.totalorder %s7038_s4, %s5093_s22  ;;  %p5100_p0 = scmp.lt.u32.totalorder %s5093_s22, %s7038_s4 }
  0xfe   : > { %p5096_p3 = pnand %p5094_p1, %p5606_p8 }
 0x100   : > { %p5097_p13 = pneg %p5096_p3 }
 0x102   : > { %p5102_p2 = pnand %p5100_p0, %p5097_p13 }
 0x104   : > { %5105 = shalt.err (!%p5102_p2)
}
 0x105   : > { %s5106_s29 = scalar_lea.vmem %s483_s3, 16  ;;  %s5113_s0 = scalar_lea.vmem %s483_s3, 32 }
 0x106   : > { %p5107_p5 = scmp.ne.s32.totalorder %s483_s3, %s5106_s29  ;;  %p5114_p4 = scmp.lt.s32.totalorder %s483_s3, %s483_s3 }
 0x107   : > { %p5115_p10 = scmp.lt.s32.totalorder %s5113_s0, %s5106_s29 }
 0x108   : > { %p5109_p7 = pnand %p5107_p5, %p5606_p8 }
 0x109   : > { %p5116_p11 = por %p5115_p10, %p5114_p4 }
 0x10a   : > { %p5110_p9 = pneg %p5109_p7 }
 0x10c   : > { %p5117_p12 = pnand %p5116_p11, %p5110_p9 }
 0x10e   : > { %5120 = shalt.err (!%p5117_p12)
}
 0x10f   : > { %4393 = dma.hbm_to_vmem [thread:$0]  (!%p5590_p6), %s7038_s4, 16, %s483_s3, [#allocation9]  }
 0x110   : > { %s5121_s22 = scalar_lea.hbm %s6985_s6, 1280 }
 0x111   : > { %p5122_p1 = scmp.ne.s32.totalorder %s6985_s6, %s5121_s22  ;;  %p5128_p0 = scmp.lt.u32.totalorder %s5121_s22, %s6985_s6 }
 0x113   : > { %p5124_p3 = pnand %p5122_p1, %p5606_p8 }
 0x115   : > { %p5125_p13 = pneg %p5124_p3 }
 0x117   : > { %p5130_p2 = pnand %p5128_p0, %p5125_p13 }
 0x119   : > { %5133 = shalt.err (!%p5130_p2)
}
 0x11a   : > { %s5134_s29 = scalar_lea.vmem %s504_s21, 1280  ;;  %p5142_p4 = scmp.lt.s32.totalorder %s504_s21, %s504_s21 }
 0x11b   : > { %p5135_p5 = scmp.ne.s32.totalorder %s504_s21, %s5134_s29  ;;  %p5143_p10 = scmp.lt.s32.totalorder %s5134_s29, %s5134_s29 }
 0x11d   : > { %p5137_p7 = pnand %p5135_p5, %p5606_p8  ;;  %p5144_p11 = por %p5143_p10, %p5142_p4 }
 0x11f   : > { %p5138_p9 = pneg %p5137_p7 }
 0x121   : > { %p5145_p12 = pnand %p5144_p11, %p5138_p9 }
 0x123   : > { %5148 = shalt.err (!%p5145_p12)
}
 0x124   : > { %4399 = dma.hbm_to_vmem [thread:$0]  (!%p5590_p6), %s6985_s6, 1280, %s504_s21, [#allocation12], %s7035_s25, %s7035_s25, %s7036_s26  }
 0x125   : > { %s5432_s19 = smov [#allocation16]   ;;  %s5433_s27 = smov [#allocation19]  }
 0x126   : > { %s530_s16 = sshll.u32 %s5432_s19, 4  ;;  %s552_s30 = sshll.u32 %s5433_s27, 4  ;;  %s531_s16 = int_to_ptr.vmem [resolvable:$true] %s530_s16  ;;  %s553_s30 = int_to_ptr.vmem [resolvable:$true] %s552_s30 }
 0x127   : > { %s5149_s24 = scalar_lea.hbm %s6987_s8, 16 }
 0x128   : > { %p5150_p1 = scmp.ne.s32.totalorder %s6987_s8, %s5149_s24  ;;  %p5156_p0 = scmp.lt.u32.totalorder %s5149_s24, %s6987_s8 }
 0x12a   : > { %p5152_p3 = pnand %p5150_p1, %p5606_p8 }
 0x12c   : > { %p5153_p13 = pneg %p5152_p3 }
 0x12e   : > { %p5158_p2 = pnand %p5156_p0, %p5153_p13 }
 0x130   : > { %5161 = shalt.err (!%p5158_p2)
}
 0x131   : > { %s5162_s25 = scalar_lea.vmem %s531_s16, 16  ;;  %s5169_s26 = scalar_lea.vmem %s531_s16, 32 }
 0x132   : > { %p5163_p5 = scmp.ne.s32.totalorder %s531_s16, %s5162_s25  ;;  %p5170_p4 = scmp.lt.s32.totalorder %s531_s16, %s531_s16 }
 0x133   : > { %p5171_p10 = scmp.lt.s32.totalorder %s5169_s26, %s5162_s25 }
 0x134   : > { %p5165_p7 = pnand %p5163_p5, %p5606_p8 }
 0x135   : > { %p5172_p11 = por %p5171_p10, %p5170_p4 }
 0x136   : > { %p5166_p9 = pneg %p5165_p7 }
 0x138   : > { %p5173_p12 = pnand %p5172_p11, %p5166_p9 }
 0x13a   : > { %5176 = shalt.err (!%p5173_p12)
}
 0x13b   : > { %4405 = dma.hbm_to_vmem [thread:$0]  (!%p5590_p6), %s6987_s8, 16, %s531_s16, [#allocation15]  }
 0x13c   : > { %s5177_s22 = scalar_lea.hbm %s6989_s10, 16 }
 0x13d   : > { %p5178_p1 = scmp.ne.s32.totalorder %s6989_s10, %s5177_s22  ;;  %p5184_p0 = scmp.lt.u32.totalorder %s5177_s22, %s6989_s10 }
 0x13f   : > { %p5180_p3 = pnand %p5178_p1, %p5606_p8 }
 0x141   : > { %p5181_p13 = pneg %p5180_p3 }
 0x143   : > { %p5186_p2 = pnand %p5184_p0, %p5181_p13 }
 0x145   : > { %5189 = shalt.err (!%p5186_p2)
}
 0x146   : > { %s5190_s29 = scalar_lea.vmem %s553_s30, 16  ;;  %s5197_s16 = scalar_lea.vmem %s553_s30, 32 }
 0x147   : > { %p5191_p5 = scmp.ne.s32.totalorder %s553_s30, %s5190_s29  ;;  %p5198_p4 = scmp.lt.s32.totalorder %s553_s30, %s553_s30 }
 0x148   : > { %p5199_p10 = scmp.lt.s32.totalorder %s5197_s16, %s5190_s29 }
 0x149   : > { %p5193_p7 = pnand %p5191_p5, %p5606_p8 }
 0x14a   : > { %p5200_p11 = por %p5199_p10, %p5198_p4 }
 0x14b   : > { %p5194_p9 = pneg %p5193_p7 }
 0x14d   : > { %p5201_p12 = pnand %p5200_p11, %p5194_p9 }
 0x14f   : > { %5204 = shalt.err (!%p5201_p12)
}
 0x150   : > { %4411 = dma.hbm_to_vmem [thread:$0]  (!%p5590_p6), %s6989_s10, 16, %s553_s30, [#allocation18]  }
 0x151   : > { %s5434_s26 = smov [#allocation22]   ;;  %s5435_s0 = smov [#allocation25]  }
 0x152   : > { %s576_s21 = sshll.u32 %s5434_s26, 4  ;;  %s600_s19 = sshll.u32 %s5435_s0, 4  ;;  %s577_s21 = int_to_ptr.vmem [resolvable:$true] %s576_s21  ;;  %s601_s19 = int_to_ptr.vmem [resolvable:$true] %s600_s19 }
 0x153   : > { %s5205_s23 = scalar_lea.hbm %s6991_s12, 16 }
 0x154   : > { %p5206_p1 = scmp.ne.s32.totalorder %s6991_s12, %s5205_s23  ;;  %p5212_p0 = scmp.lt.u32.totalorder %s5205_s23, %s6991_s12 }
 0x156   : > { %p5208_p3 = pnand %p5206_p1, %p5606_p8 }
 0x158   : > { %p5209_p13 = pneg %p5208_p3 }
 0x15a   : > { %p5214_p2 = pnand %p5212_p0, %p5209_p13 }
 0x15c   : > { %5217 = shalt.err (!%p5214_p2)
}
 0x15d   : > { %s5218_s30 = scalar_lea.vmem %s577_s21, 16  ;;  %s5225_s16 = scalar_lea.vmem %s577_s21, 32 }
 0x15e   : > { %p5219_p5 = scmp.ne.s32.totalorder %s577_s21, %s5218_s30  ;;  %p5226_p4 = scmp.lt.s32.totalorder %s577_s21, %s577_s21 }
 0x15f   : > { %p5227_p10 = scmp.lt.s32.totalorder %s5225_s16, %s5218_s30 }
 0x160   : > { %p5221_p7 = pnand %p5219_p5, %p5606_p8 }
 0x161   : > { %p5228_p11 = por %p5227_p10, %p5226_p4 }
 0x162   : > { %p5222_p9 = pneg %p5221_p7 }
 0x164   : > { %p5229_p12 = pnand %p5228_p11, %p5222_p9 }
 0x166   : > { %5232 = shalt.err (!%p5229_p12)
}
 0x167   : > { %4417 = dma.hbm_to_vmem [thread:$0]  (!%p5590_p6), %s6991_s12, 16, %s577_s21, [#allocation21]  }
 0x168   : > { %s5233_s27 = scalar_lea.hbm %s6993_s14, 16 }
 0x169   : > { %p5234_p1 = scmp.ne.s32.totalorder %s6993_s14, %s5233_s27  ;;  %p5240_p0 = scmp.lt.u32.totalorder %s5233_s27, %s6993_s14 }
 0x16b   : > { %p5236_p3 = pnand %p5234_p1, %p5606_p8 }
 0x16d   : > { %p5237_p13 = pneg %p5236_p3 }
 0x16f   : > { %p5242_p2 = pnand %p5240_p0, %p5237_p13 }
 0x171   : > { %5245 = shalt.err (!%p5242_p2)
}
 0x172   : > { %s5246_s17 = scalar_lea.vmem %s601_s19, 16  ;;  %s5253_s21 = scalar_lea.vmem %s601_s19, 32 }
 0x173   : > { %p5247_p5 = scmp.ne.s32.totalorder %s601_s19, %s5246_s17  ;;  %p5254_p4 = scmp.lt.s32.totalorder %s601_s19, %s601_s19 }
 0x174   : > { %p5255_p10 = scmp.lt.s32.totalorder %s5253_s21, %s5246_s17 }
 0x175   : > { %p5249_p7 = pnand %p5247_p5, %p5606_p8 }
 0x176   : > { %p5256_p11 = por %p5255_p10, %p5254_p4 }
 0x177   : > { %p5250_p9 = pneg %p5249_p7 }
 0x179   : > { %p5257_p12 = pnand %p5256_p11, %p5250_p9 }
 0x17b   : > { %5260 = shalt.err (!%p5257_p12)
}
 0x17c   : > { %4423 = dma.hbm_to_vmem [thread:$0]  (!%p5590_p6), %s6993_s14, 16, %s601_s19, [#allocation24]  }
 0x17d   : > { %s5436_s16 = smov [#allocation28]   ;;  %s7039_s0 = sld [smem:[#allocation51_spill]] }
 0x17e   : > { %s622_s3 = sshll.u32 %s5436_s16, 4  ;;  %s623_s3 = int_to_ptr.vmem [resolvable:$true] %s622_s3 }
 0x183   : > { %s5261_s27 = scalar_lea.hbm %s7039_s0, 16 }
 0x184   : > { %p5262_p1 = scmp.ne.s32.totalorder %s7039_s0, %s5261_s27  ;;  %p5268_p0 = scmp.lt.u32.totalorder %s5261_s27, %s7039_s0 }
 0x186   : > { %p5264_p3 = pnand %p5262_p1, %p5606_p8 }
 0x188   : > { %p5265_p13 = pneg %p5264_p3 }
 0x18a   : > { %p5270_p2 = pnand %p5268_p0, %p5265_p13 }
 0x18c   : > { %5273 = shalt.err (!%p5270_p2)
}
 0x18d   : > { %s5274_s19 = scalar_lea.vmem %s623_s3, 16  ;;  %s5281_s17 = scalar_lea.vmem %s623_s3, 32 }
 0x18e   : > { %p5275_p5 = scmp.ne.s32.totalorder %s623_s3, %s5274_s19  ;;  %p5282_p4 = scmp.lt.s32.totalorder %s623_s3, %s623_s3 }
 0x18f   : > { %p5283_p10 = scmp.lt.s32.totalorder %s5281_s17, %s5274_s19 }
 0x190   : > { %p5277_p7 = pnand %p5275_p5, %p5606_p8 }
 0x191   : > { %p5284_p11 = por %p5283_p10, %p5282_p4 }
 0x192   : > { %p5278_p9 = pneg %p5277_p7 }
 0x194   : > { %p5285_p12 = pnand %p5284_p11, %p5278_p9 }
 0x196   : > { %5288 = shalt.err (!%p5285_p12)
}
 0x197   : > { %s7040_s30 = sld [smem:[#allocation43_spill]]  ;;  %s7041_s16 = sld [smem:[#allocation42_spill]] }
 0x198   : > { %s7042_s25 = sld [smem:[#allocation41_spill]]  ;;  %s7043_s18 = sld [smem:[#allocation40_spill]] }
 0x199   : > { %s7044_s26 = sld [smem:[#allocation44_spill]] }
 0x19a   : > { %4429 = dma.hbm_to_vmem [thread:$0]  (!%p5590_p6), %s7039_s0, 16, %s623_s3, [#allocation27]  }
 0x19d   : > { %s3732_s27 = sadd.s32 4294967294, %s7040_s30   ;;  %s5925_s1 = sadd.s32 1, %s7040_s30  }
 0x19e   : > { %s45_s22 = ssub.s32 %s7040_s30, %s5925_s1  ;;  %s48_s23 = sadd.s32 1, %s7041_s16 }
 0x19f   : > { %p46_p8 = scmp.eq.s32.totalorder %s45_s22, 0  ;;  %p55_p1 = scmp.ne.s32.totalorder %s7041_s16, %s7042_s25 }
 0x1a0   : > { %p56_p3 = scmp.eq.s32.totalorder %s7040_s30, 0  ;;  %p61_p13 = scmp.ne.s32.totalorder %s7042_s25, %s7043_s18 }
 0x1a1   : > { %s5936_s24 = scalar_select %p46_p8, %s7041_s16, %s48_s23  }
 0x1a2   : > { %p57_p0 = por %p56_p3, %p55_p1  ;;  %p7045_p2 = scmp.eq.s32.totalorder %s7044_s26, 0 }
 0x1a3   : > { %p421_p6 = scmp.eq.s32.totalorder %s7044_s26, 1  ;;  %p427_p7 = scmp.eq.s32.totalorder %s3732_s27, 1 }
 0x1a4   : > { %p5940_p5 = por %p7045_p2, %p61_p13  ;;  %p4454_p9 = scmp.lt.s32.totalorder %s7040_s30, 2 }
 0x1a5   : > { %s633_s3 = sand.u32 1, %s7041_s16   ;;  %p5947_p4 = por %p421_p6, %p55_p1 }
 0x1a6   : > { %p5951_p10 = por %p427_p7, %p61_p13  ;;  %s4309_s21 = smul.u32 40, %s633_s3 }
 0x1a7   : > { %s7047_s19 = scalar_select %p5947_p4, 1, 0 }
 0x1a8   : > { %s7048_s17 = scalar_select %p5951_p10, 1, 0 }
 0x1a9   : > { %s4310_s29 = smul.u32 640, %s7040_s30  ;;  %p5956_p11 = pnand %p4454_p9, %p57_p0 }
 0x1aa   : > { %s7050_s26 = sld [smem:[#allocation46_spill]]  ;;  %s637_s27 = scalar_lea.vmem [#allocation2], %s4309_s21 }
 0x1ab   : > { %s644_s0 = sshll.u32 %s637_s27, 4  ;;  %s5967_s30 = scalar_lea.sflag [#allocation3], %s633_s3  ;;  %s5965_s0 = int_to_ptr.vmem [resolvable:$true] %s644_s0 }
 0x1ac   : > { %p5291_p8 = pneg %p5956_p11 }
 0x1b0   : > { %s7051_s23 = smov %s7050_s26  ;;  %s5963_s16 = scalar_lea.hbm %s7050_s26, %s4310_s29 }
 0x1b1   : > { %s5289_s2 = scalar_lea.hbm %s5963_s16, 640  ;;  %s5294_s22 = scalar_lea.hbm %s7051_s23, 1280 }
 0x1b2   : > { %p5290_p12 = scmp.ne.s32.totalorder %s5963_s16, %s5289_s2  ;;  %p5295_p13 = scmp.lt.u32.totalorder %s5963_s16, %s7051_s23 }
 0x1b3   : > { %p5296_p0 = scmp.lt.u32.totalorder %s5294_s22, %s5289_s2  ;;  %p5298_p6 = scmp.lt.u32.totalorder %s5289_s2, %s5963_s16 }
 0x1b4   : > { %p5292_p1 = pnand %p5291_p8, %p5290_p12 }
 0x1b5   : > { %p5297_p2 = por %p5296_p0, %p5295_p13 }
 0x1b6   : > { %p5293_p3 = pneg %p5292_p1 }
 0x1b7   : > { %p5299_p7 = por %p5298_p6, %p5297_p2 }
 0x1b9   : > { %p5300_p9 = pnand %p5299_p7, %p5293_p3 }
 0x1bb   : > { %5303 = shalt.err (!%p5300_p9)
}
 0x1bc   : > { %s5304_s3 = scalar_lea.vmem %s5965_s0, 640  ;;  %s5437_s21 = smov [#allocation2]  }
 0x1bd   : > { %p5305_p12 = scmp.ne.s32.totalorder %s5965_s0, %s5304_s3  ;;  %s5309_s27 = sshll.u32 %s5437_s21, 4  ;;  %s5310_s27 = int_to_ptr.vmem [resolvable:$false] %s5309_s27 }
 0x1be   : > { %s5311_s4 = scalar_lea.vmem %s5310_s27, 1280  ;;  %p5312_p4 = scmp.lt.s32.totalorder %s5965_s0, %s5310_s27 }
 0x1bf   : > { %p5307_p1 = pnand %p5305_p12, %p5291_p8  ;;  %p5313_p13 = scmp.lt.s32.totalorder %s5311_s4, %s5304_s3 }
 0x1c1   : > { %p5308_p10 = pneg %p5307_p1  ;;  %p5314_p0 = por %p5313_p13, %p5312_p4 }
 0x1c3   : > { %p5315_p2 = pnand %p5314_p0, %p5308_p10 }
 0x1c5   : > { %5318 = shalt.err (!%p5315_p2)
}
 0x1c6   : > { %s5438_s2 = smov 128   ;;  %s5439_s29 = smov 8  }
 0x1c7   : > { %4433 = dma.hbm_to_vmem [thread:$0]  (!%p5956_p11), %s5963_s16, 640, %s5965_s0, %s5967_s30, %s5438_s2, %s5438_s2, %s5439_s29  }
 0x1c8   : > { %s7052_s18 = sld [smem:[#allocation45_spill]] }
 0x1ce   : > { %p7053_p8 = scmp.ne.s32.totalorder %s7052_s18, 0 }
 0x1cf   : > { %s7054_s22 = sld [smem:[#allocation41_spill]] (!%p7053_p8) }
 0x1d0   : > { %656 = sbr.rel (%p7053_p8) target bundleno = 4726 (0x1276), region = 88 }
 0x1d5   : > { %s5998_s26 = sand.u32 (!%p7053_p8), 1, %s7054_s22  }
 0x1d6   : > { %s4311_s3 = smul.u32 (!%p7053_p8), 40, %s5998_s26  ;;  %s659_s21 = scalar_lea.sflag (!%p7053_p8), [#allocation3], %s5998_s26 }
 0x1d8   : > { %s6004_s27 = scalar_lea.vmem [#allocation2], %s4311_s3 }
 0x1d9   : > { %5364 = dma.done.wait (%p5940_p5), %s659_s21, 640  }
 0x1da   : > { %5366 = vsyncadd (%p5940_p5), %s659_s21, 4294966656  ;;  %s7055_s0 = sld [smem:[#allocation44_spill]] }
 0x1e0   : > { %p7056_p4 = scmp.eq.s32.totalorder %s7055_s0, 0 }
 0x1e2   : > { %5368 = dma.done.wait (%p7056_p4), [#allocation6], 272   ;;  %p7057_p10 = pmov %p7056_p4 }
 0x1e3   : > { %p7058_p11 = pmov %p7056_p4 }
 0x1e4   : > { %5370 = vsyncadd (%p7057_p10), [#allocation6], 4294967024 }
 0x1e5   : > { %5372 = dma.done.wait (%p7058_p11), [#allocation9], 48   ;;  %p7059_p3 = pmov %p7056_p4 }
 0x1e7   : > { %5374 = vsyncadd (%p7059_p3), [#allocation9], 4294967248  ;;  %p7060_p6 = pmov %p7059_p3 }
 0x1e8   : > { %p7061_p7 = pmov %p7059_p3 }
 0x1e9   : > { %5376 = dma.done.wait (%p7060_p6), [#allocation12], 1296  }
 0x1ea   : > { %5378 = vsyncadd (%p7061_p7), [#allocation12], 4294966000  ;;  %p7062_p5 = pmov %p7059_p3 }
 0x1eb   : > { %p7063_p9 = pmov %p7059_p3 }
 0x1ec   : > { %5380 = dma.done.wait (%p7062_p5), [#allocation15], 272  }
 0x1ed   : > { %5382 = vsyncadd (%p7063_p9), [#allocation15], 4294967024  ;;  %p7064_p12 = pmov %p7059_p3 }
 0x1ee   : > { %p7065_p1 = pmov %p7059_p3 }
 0x1ef   : > { %5384 = dma.done.wait (%p7064_p12), [#allocation18], 32  }
 0x1f0   : > { %5386 = vsyncadd (%p7065_p1), [#allocation18], 4294967264  ;;  %p7066_p13 = pmov %p7065_p1 }
 0x1f1   : > { %p7067_p0 = pmov %p7065_p1 }
 0x1f2   : > { %5388 = dma.done.wait (%p7066_p13), [#allocation21], 272  }
 0x1f3   : > { %5390 = vsyncadd (%p7067_p0), [#allocation21], 4294967024  ;;  %p7068_p2 = pmov %p7067_p0 }
 0x1f4   : > { %p7069_p8 = pmov %p7067_p0 }
 0x1f5   : > { %5392 = dma.done.wait (%p7068_p2), [#allocation24], 528  }
 0x1f6   : > { %5394 = vsyncadd (%p7069_p8), [#allocation24], 4294966768  ;;  %p7070_p4 = pmov %p7067_p0 }
 0x1f7   : > { %p7071_p10 = pmov %p7067_p0 }
 0x1f8   : > { %5396 = dma.done.wait (%p7070_p4), [#allocation27], 32  }
 0x1f9   : > { %5398 = vsyncadd (%p7071_p10), [#allocation27], 4294967264  ;;  %v5440_v0 = vmov 0.0   ;;  %vm5441_vm0 = vmmov 0   ;;  %v4548_v1 = vld [vmem:[#allocation5] sm:$0xff]   ;;  %v4549_v2 = vld [vmem:[#allocation5 + $0x8] sm:$0xff]  }
 0x1fa   : > { %4016 = vmatprep.subr.bf16.mxu0 %v5440_v0  ;;  %4020 = vmatprep.mubr.msk.bf16.mxu0 %vm5441_vm0, %v5440_v0  ;;  %v6049_v3 = vld [vmem:[%s6004_s27] sm:$0xff]  ;;  %v6052_v4 = vld [vmem:[%s6004_s27 + $0x8] sm:$0xff]  ;;  %vm809_vm1 = vcmask 261120   ;;  %v6062_v6 = vld [vmem:[%s6004_s27 + $0x10] sm:$0xff]  ;;  %s5442_s20 = smov 96   ;;  %vm897_vm2 = vcmask 64512  }
 0x1fb   : > { %4032 = vmatprep.subr.bf16.mxu1 %v5440_v0  ;;  %4038 = vmatprep.mubr.msk.bf16.mxu1 %vm5441_vm0, %v5440_v0  ;;  %v783_v5 = vpack.c.bf16 %v6052_v4, %v6049_v3  ;;  %v6065_v7 = vld [vmem:[%s6004_s27 + $0x18] sm:$0xff]  ;;  %v6073_v9 = vld [vmem:[%s6004_s27 + $0x20] sm:$0x7f]  ;;  %vm910_vm3 = vcmask 63488   ;;  %s5443_s25 = smov 1   ;;  %s5444_s16 = smov 64  }
 0x1fc   : > { %4017 = vmatpush3.bf16.msra.mxu0 %v4548_v1  ;;  %v784_v8 = vpack.c.bf16 %v6065_v7, %v6062_v6  ;;  %v785_v10 = vpack.c.bf16 %v6073_v9, %v6073_v9  ;;  %v3769_v11 = vld [vmem:[#allocation7] ss:$0 sm:$0xff]  ;;  %v6089_v32 = vld [vmem:[#allocation8 + $0x1] ss:$0 sm:$0xff]  ;;  %v6101_v39 = vld [vmem:[#allocation8] ss:$0 sm:$0xff] }
 0x1fd   : > { %4018 = vmatprep.subr.bf16.mxu0 %v5440_v0  ;;  %v932_v33 = vmul.f32 %v6089_v32, %v6052_v4  ;;  %v933_v35 = vmul.f32 %v6089_v32, %v6062_v6  ;;  %v935_v37 = vmul.f32 %v6089_v32, %v6073_v9  ;;  %v931_v38 = vmul.f32 %v6089_v32, %v6049_v3  ;;  %v6120_v52 = vld [vmem:[#allocation11] ss:$0 sm:$0xff]  ;;  %s5445_s30 = smov 88   ;;  %v6150_v61 = vld [vmem:[#allocation10] ss:$0 sm:$0xff]  ;;  %s5447_s4 = smov 127  }
 0x1fe   : > { %v892_v41 = vmul.f32 %v6101_v39, %v6049_v3  ;;  %v934_v43 = vmul.f32 %v6089_v32, %v6065_v7  ;;  %v893_v45 = vmul.f32 %v6101_v39, %v6052_v4  ;;  %v894_v48 = vmul.f32 %v6101_v39, %v6062_v6  ;;  %s5448_s2 = smov 16   ;;  %s5449_s29 = smov 120  }
 0x1ff   : > { %v939_v34 = vsel %vm897_vm2, %v932_v33, 0.0  ;;  %v942_v36 = vsel %vm897_vm2, %v933_v35, 0.0  ;;  %v948_v40 = vsel %vm910_vm3, %v935_v37, 0.0  ;;  %v936_v42 = vsel %vm897_vm2, %v931_v38, 0.0  ;;  %s5451_s18 = smov 80   ;;  %s5452_s22 = smov 112  }
 0x200   : > { %4019 = vmatpush3.bf16.msra.mxu0 %v4549_v2  ;;  %v898_v44 = vsel %vm897_vm2, %v892_v41, 0.0  ;;  %v945_v46 = vsel %vm897_vm2, %v934_v43, 0.0  ;;  %v901_v47 = vsel %vm897_vm2, %v893_v45, 0.0  ;;  %v904_v49 = vsel %vm897_vm2, %v894_v48, 0.0  ;;  %s5453_s21 = smov 8   ;;  %p7074_p3 = scmp.ne.s32.totalorder %s7047_s19, 0 }
 0x201   : > { %4050 = vmatprep.subr.bf16.mxu0 %v5440_v0  ;;  %v895_v50 = vmul.f32 %v6101_v39, %v6065_v7  ;;  %v896_v53 = vmul.f32 %v6101_v39, %v6073_v9  ;;  %vm1278_vm4 = vcmask 1042432   ;;  %vm1279_vm5 = vcmask 1043456  }
 0x202   : > { %vm1201_vm6 = vcmask 318464   ;;  %vm1214_vm7 = vcmask 317440   ;;  %vm3073_vm8 = vcmask 260096   ;;  %vm3328_vm9 = vcmask 523264  }
 0x203   : > { %4021 = vmatmul.mubr.msk.bf16.vlgmr.msra.gmra.mrb[0].mxu0 %vm809_vm1, %v783_v5  ;;  %v907_v51 = vsel %vm897_vm2, %v895_v50, 0.0  ;;  %v911_v54 = vsel %vm910_vm3, %v896_v53, 0.0 }
 0x204   : > { %4024 = vmatprep.mubr.msk.bf16.mxu0 %vm5441_vm0, %v5440_v0 }
 0x20b   : > { %4025 = vmatmul.mubr.msk.bf16.gmra.mrb[4].mxu0 %vm809_vm1, %v784_v8 }
 0x20c   : > { %4028 = vmatprep.mubr.msk.bf16.mxu0 %vm5441_vm0, %v5440_v0 }
 0x213   : > { %4029 = vmatmul.mubr.msk.bf16.gmra.mrb[8].mxu0 %vm809_vm1, %v785_v10 }
 0x214   : > { %4056 = vmatprep.mubr.msk.bf16.mxu0 %vm5441_vm0, %v5440_v0 }
 0x2d6   : > { %v853_v12 = vpop.f32.mrb[0].mxu0 }
 0x2d7   : > { %v4022_v13 = vpop.f32.mrb[1].mxu0  ;;  %v854_v15 = vadd.f32 %v3769_v11, %v853_v12 }
 0x2d8   : > { %v856_v14 = vpop.f32.mrb[2].mxu0 }
 0x2d9   : > { %v857_v16 = vadd.f32 %v3769_v11, %v856_v14  ;;  %v4023_v17 = vpop.f32.mrb[3].mxu0 }
 0x2db   : > { %v6080_v18 = vpack.c.bf16 %v857_v16, %v854_v15 }
 0x2dd   : > { %1111 = vrot.lane.b32.xlu0 %v6080_v18, %s5442_s20 }
 0x2de   : > { %v861_v19 = vpop.f32.mrb[4].mxu0 }
 0x2df   : > { %v4026_v20 = vpop.f32.mrb[5].mxu0  ;;  %v862_v22 = vadd.f32 %v3769_v11, %v861_v19 }
 0x2e0   : > { %v864_v21 = vpop.f32.mrb[6].mxu0 }
 0x2e1   : > { %v865_v23 = vadd.f32 %v3769_v11, %v864_v21  ;;  %v4027_v24 = vpop.f32.mrb[7].mxu0 }
 0x2e3   : > { %v6083_v25 = vpack.c.bf16 %v865_v23, %v862_v22 }
 0x2e5   : > { %1113 = vrot.lane.b32.xlu0 %v6083_v25, %s5442_s20 }
 0x2e6   : > { %v869_v26 = vpop.f32.mrb[8].mxu0 }
 0x2e7   : > { %v870_v27 = vadd.f32 %v3769_v11, %v869_v26  ;;  %v4030_v28 = vpop.f32.mrb[9].mxu0 }
 0x2e8   : > { %v872_v29 = vpop.f32.mrb[10].mxu0 }
 0x2e9   : > { %v6086_v30 = vpack.c.bf16 %v870_v27, %v870_v27  ;;  %v4031_v31 = vpop.f32.mrb[11].mxu0 }
 0x2ea   : > { %v5446_v31 = vmov 0  }
 0x2eb   : > { %1115 = vrot.lane.b32.xlu1 %v6086_v30, %s5442_s20  ;;  %4547 = vset.pattern.permute.xlu0 %v5446_v31  ;;  %s5454_s20 = smov 24  }
 0x2ec   : > { %4546 = vset.pattern.permute.xlu1 %v5446_v31 }
 0x304   : > { %940 = vadd.xlane.f32.xlu0 %v939_v34 }
 0x308   : > { %943 = vadd.xlane.f32.xlu0 %v942_v36 }
 0x30c   : > { %949 = vadd.xlane.f32.xlu0 %v948_v40 }
 0x30f   : > { %937 = vadd.xlane.f32.xlu1 %v936_v42 }
 0x310   : > { %899 = vadd.xlane.f32.xlu0 %v898_v44 }
 0x313   : > { %946 = vadd.xlane.f32.xlu1 %v945_v46 }
 0x314   : > { %902 = vadd.xlane.f32.xlu0 %v901_v47 }
 0x318   : > { %905 = vadd.xlane.f32.xlu0 %v904_v49 }
 0x31c   : > { %908 = vadd.xlane.f32.xlu0 %v907_v51 }
 0x324   : > { %1022 = vrot.lane.b32.xlu1 %v6120_v52, %s5443_s25  ;;  %s5455_s25 = smov 48  }
 0x348   : > { %912 = vadd.xlane.f32.xlu1 %v911_v54 }
 0x34f   : > { %v1112_v55 = vpop.permute.xlu0 %1111 }
 0x350   : > { %v1127_v56 = vsel %vm897_vm2, %v1112_v55, 0 }
 0x351   : > { %4033 = vmatpush3.bf16.xpose.msra.mxu1 %v1127_v56  ;;  %v5450_v56 = vmov 65535  }
 0x352   : > { %4034 = vmatprep.subr.bf16.mxu1 %v5440_v0 }
 0x357   : > { %v1114_v57 = vpop.permute.xlu0 %1113 }
 0x358   : > { %v1130_v58 = vsel %vm897_vm2, %v1114_v57, 0  ;;  %v1280_v57 = vsel %vm1278_vm4, 4294967295, %v5450_v56 }
 0x359   : > { %4035 = vmatpush3.bf16.xpose.msra.mxu1 %v1130_v58  ;;  %1261 = vrot.lane.b32.xlu1 %v6080_v18, %s5444_s16 }
 0x35a   : > { %4036 = vmatprep.subr.bf16.mxu1 %v5440_v0 }
 0x35d   : > { %1263 = vrot.lane.b32.xlu1 %v6083_v25, %s5444_s16  ;;  %v1116_v59 = vpop.permute.xlu1 %1115 }
 0x35e   : > { %v1133_v60 = vsel %vm897_vm2, %v1116_v59, 0  ;;  %v6173_v59 = vsel %vm1279_vm5, %v1280_v57, 0 }
 0x361   : > { %1664 = vrot.lane.b32.xlu1 %v6080_v18, %s5445_s30  ;;  %4037 = vmatpush3.bf16.xpose.msra.mxu1 %v1133_v60 }
 0x362   : > { %4068 = vmatprep.subr.bf16.mxu1 %v5440_v0 }
 0x365   : > { %1666 = vrot.lane.b32.xlu1 %v6083_v25, %s5445_s30 }
 0x368   : > { %4039 = vmatmul.mubr.msk.bf16.vlgmr.msra.gmra.mrb[0].mxu1 %vm897_vm2, %v6080_v18 }
 0x369   : > { %1265 = vrot.lane.b32.xlu1 %v6086_v30, %s5444_s16  ;;  %4042 = vmatprep.mubr.msk.bf16.mxu1 %vm5441_vm0, %v5440_v0  ;;  %s5456_s16 = smov 72  }
 0x36d   : > { %1668 = vrot.lane.b32.xlu1 %v6086_v30, %s5445_s30  ;;  %s5457_s30 = smov 104  }
 0x370   : > { %4043 = vmatmul.mubr.msk.bf16.gmra.mrb[4].mxu1 %vm897_vm2, %v6083_v25 }
 0x371   : > { %4046 = vmatprep.mubr.msk.bf16.mxu1 %vm5441_vm0, %v5440_v0 }
 0x378   : > { %4047 = vmatmul.mubr.msk.bf16.gmra.mrb[8].mxu1 %vm897_vm2, %v6086_v30 }
 0x379   : > { %4070 = vmatprep.mubr.msk.bf16.mxu1 %vm5441_vm0, %v5440_v0 }
 0x391   : > { %v941_v62 = vpop.xlane.xlu0 %940 }
 0x392   : > { %v952_v63 = vadd.f32 %v6150_v61, %v941_v62 }
 0x394   : > { %v3785_v2 = vmul.f32 -1.442695, %v952_v63 }
 0x395   : > { %v944_v1 = vpop.xlane.xlu0 %943 }
 0x396   : > { %v953_v5 = vadd.f32 %v6150_v61, %v944_v1  ;;  %4556 = vpow2.f32 %v3785_v2 }
 0x398   : > { %v3786_v8 = vmul.f32 -1.442695, %v953_v5 }
 0x399   : > { %v950_v12 = vpop.xlane.xlu0 %949 }
 0x39a   : > { %4558 = vpow2.f32 %v3786_v8  ;;  %v955_v15 = vadd.f32 %v6150_v61, %v950_v12 }
 0x39c   : > { %v938_v10 = vpop.xlane.xlu1 %937  ;;  %v3788_v19 = vmul.f32 -1.442695, %v955_v15 }
 0x39d   : > { %v951_v11 = vadd.f32 %v6150_v61, %v938_v10  ;;  %v900_v63 = vpop.xlane.xlu0 %899 }
 0x39e   : > { %v921_v2 = vadd.f32 %v6150_v61, %v900_v63 }
 0x39f   : > { %v3784_v13 = vmul.f32 -1.442695, %v951_v11 }
 0x3a0   : > { %v947_v14 = vpop.xlane.xlu1 %946  ;;  %v4557_v20 = vpop.eup %4556  ;;  %v3779_v8 = vmul.f32 -1.442695, %v921_v2 }
 0x3a1   : > { %4560 = vpow2.f32 %v3784_v13  ;;  %v954_v16 = vadd.f32 %v6150_v61, %v947_v14  ;;  %v1002_v21 = vadd.f32 1.0, %v4557_v20  ;;  %v903_v1 = vpop.xlane.xlu0 %902 }
 0x3a2   : > { %v922_v10 = vadd.f32 %v6150_v61, %v903_v1 }
 0x3a3   : > { %v3787_v17 = vmul.f32 -1.442695, %v954_v16 }
 0x3a4   : > { %v4559_v22 = vpop.eup %4558  ;;  %v1023_v34 = vpop.permute.xlu1 %1022  ;;  %v3780_v11 = vmul.f32 -1.442695, %v922_v10 }
 0x3a5   : > { %4562 = vpow2.f32 %v3787_v17  ;;  %v1003_v26 = vadd.f32 1.0, %v4559_v22  ;;  %v906_v5 = vpop.xlane.xlu0 %905 }
 0x3a6   : > { %4564 = vpow2.f32 %v3788_v19  ;;  %v923_v12 = vadd.f32 %v6150_v61, %v906_v5 }
 0x3a7   : > { %4566 = vrcp.f32 %v1002_v21 }
 0x3a8   : > { %v3781_v14 = vmul.f32 -1.442695, %v923_v12 }
 0x3a9   : > { %v909_v13 = vpop.xlane.xlu0 %908 }
 0x3aa   : > { %v924_v15 = vadd.f32 %v6150_v61, %v909_v13 }
 0x3ab   : > { %v4561_v23 = vpop.eup %4560 }
 0x3ac   : > { %v1001_v24 = vadd.f32 1.0, %v4561_v23  ;;  %v3782_v16 = vmul.f32 -1.442695, %v924_v15 }
 0x3ae   : > { %4568 = vrcp.f32 %v1001_v24 }
 0x3af   : > { %v4563_v27 = vpop.eup %4562  ;;  %4570 = vrcp.f32 %v1003_v26 }
 0x3b0   : > { %v1004_v28 = vadd.f32 1.0, %v4563_v27  ;;  %v4565_v29 = vpop.eup %4564 }
 0x3b1   : > { %v1005_v33 = vadd.f32 1.0, %v4565_v29  ;;  %v4567_v35 = vpop.eup %4566 }
 0x3b2   : > { %4572 = vrcp.f32 %v1004_v28  ;;  %v1026_v40 = vmul.f32 %v4567_v35, %v1023_v34 }
 0x3b3   : > { %4574 = vrcp.f32 %v1005_v33 }
 0x3b4   : > { %v3791_v42 = vadd.f32 -1.0, %v1026_v40  ;;  %4576 = vpow2.f32 %v3779_v8 }
 0x3b5   : > { %4578 = vpow2.f32 %v3780_v11 }
 0x3b6   : > { %4580 = vpow2.f32 %v3781_v14 }
 0x3b7   : > { %4582 = vpow2.f32 %v3782_v16 }
 0x3b8   : > { %v4569_v36 = vpop.eup %4568 }
 0x3b9   : > { %v1025_v37 = vmul.f32 %v4569_v36, %v1023_v34  ;;  %v4571_v41 = vpop.eup %4570 }
 0x3ba   : > { %v1027_v43 = vmul.f32 %v4571_v41, %v1023_v34 }
 0x3bb   : > { %v3790_v38 = vadd.f32 -1.0, %v1025_v37 }
 0x3bc   : > { %v4573_v44 = vpop.eup %4572  ;;  %v3792_v45 = vadd.f32 -1.0, %v1027_v43 }
 0x3bd   : > { %1040 = vrot.lane.b32.xlu0 %v3790_v38, %s5447_s4  ;;  %v1028_v46 = vmul.f32 %v4573_v44, %v1023_v34  ;;  %v4575_v47 = vpop.eup %4574 }
 0x3be   : > { %v1029_v49 = vmul.f32 %v4575_v47, %v1023_v34  ;;  %v4577_v17 = vpop.eup %4576 }
 0x3bf   : > { %v3793_v48 = vadd.f32 -1.0, %v1028_v46  ;;  %v971_v19 = vadd.f32 1.0, %v4577_v17  ;;  %v4579_v20 = vpop.eup %4578 }
 0x3c0   : > { %v3794_v50 = vadd.f32 -1.0, %v1029_v49  ;;  %v972_v22 = vadd.f32 1.0, %v4579_v20  ;;  %v4581_v23 = vpop.eup %4580 }
 0x3c1   : > { %1042 = vrot.lane.b32.xlu0 %v3791_v42, %s5447_s4  ;;  %4584 = vrcp.f32 %v971_v19  ;;  %v973_v26 = vadd.f32 1.0, %v4581_v23  ;;  %v4583_v27 = vpop.eup %4582 }
 0x3c2   : > { %4586 = vrcp.f32 %v972_v22  ;;  %v974_v28 = vadd.f32 1.0, %v4583_v27  ;;  %v3898_v22 = vld [vmem:[#allocation13] sm:$0xff]  }
 0x3c5   : > { %1044 = vrot.lane.b32.xlu0 %v3792_v45, %s5447_s4 }
 0x3c9   : > { %1046 = vrot.lane.b32.xlu0 %v3793_v48, %s5447_s4 }
 0x3cb   : > { %v4585_v29 = vpop.eup %4584 }
 0x3cc   : > { %v4587_v34 = vpop.eup %4586 }
 0x3cd   : > { %1048 = vrot.lane.b32.xlu0 %v3794_v50, %s5447_s4 }
 0x3d1   : > { %2013 = vrot.lane.b32.xlu0 %v6089_v32, %s5448_s2 }
 0x3d5   : > { %1658 = vrot.lane.b32.xlu0 %v6080_v18, %s5449_s29  ;;  %v913_v51 = vpop.xlane.xlu1 %912 }
 0x3d6   : > { %v925_v21 = vadd.f32 %v6150_v61, %v913_v51 }
 0x3d8   : > { %v3783_v24 = vmul.f32 -1.442695, %v925_v21 }
 0x3d9   : > { %v1262_v53 = vpop.permute.xlu1 %1261 }
 0x3da   : > { %4051 = vmatpush3.bf16.msra.mxu0 %v1262_v53  ;;  %4588 = vpow2.f32 %v3783_v24  ;;  %v3900_v24 = vunpack.c.h.bf16 %v3898_v22 }
 0x3db   : > { %4052 = vmatprep.subr.bf16.mxu0 %v5440_v0  ;;  %4590 = vrcp.f32 %v973_v26 }
 0x3dc   : > { %4592 = vrcp.f32 %v974_v28  ;;  %v3899_v28 = vunpack.c.l.bf16 %v3898_v22 }
 0x3dd   : > { %v1264_v54 = vpop.permute.xlu1 %1263 }
 0x3de   : > { %4053 = vmatpush3.bf16.msra.mxu0 %v1264_v54 }
 0x3df   : > { %4054 = vmatprep.subr.bf16.mxu0 %v5440_v0 }
 0x3e1   : > { %v6168_v55 = vpop.permute.xlu1 %1664 }
 0x3e4   : > { %v4589_v37 = vpop.eup %4588 }
 0x3e5   : > { %v6170_v58 = vpop.permute.xlu1 %1666  ;;  %v4591_v40 = vpop.eup %4590  ;;  %v975_v42 = vadd.f32 1.0, %v4589_v37 }
 0x3e6   : > { %v4593_v45 = vpop.eup %4592 }
 0x3e7   : > { %4594 = vrcp.f32 %v975_v42 }
 0x3e9   : > { %v1266_v60 = vpop.permute.xlu1 %1265 }
 0x3ea   : > { %v1283_v62 = vand.u32 %v6173_v59, %v1266_v60 }
 0x3ec   : > { %4055 = vmatpush3.bf16.msra.mxu0 %v1283_v62 }
 0x3ed   : > { %4082 = vmatprep.subr.bf16.mxu0 %v5440_v0  ;;  %v6210_v20 = vpop.permute.xlu1 %1668 }
 0x3f1   : > { %v4595_v2 = vpop.eup %4594 }
 0x42f   : > { %v1041_v31 = vpop.permute.xlu0 %1040 }
 0x430   : > { %v1055_v33 = vmul.f32 %v4585_v29, %v1041_v31  ;;  %v3929_v31 = vld [vmem:[#allocation13 + $0x8] sm:$0xff]  }
 0x431   : > { %v3903_v37 = vunpack.c.l.bf16 %v3929_v31  ;;  %v3904_v42 = vunpack.c.h.bf16 %v3929_v31 }
 0x432   : > { %v1060_v35 = vadd.f32 2.0, %v1055_v33 }
 0x433   : > { %v1043_v36 = vpop.permute.xlu0 %1042 }
 0x434   : > { %v1056_v38 = vmul.f32 %v4587_v34, %v1043_v36  ;;  %1077 = vperm.xlu1 %4546, %v1060_v35  }
 0x436   : > { %v1061_v41 = vadd.f32 2.0, %v1056_v38 }
 0x437   : > { %v1045_v43 = vpop.permute.xlu0 %1044 }
 0x438   : > { %v1057_v44 = vmul.f32 %v4591_v40, %v1045_v43  ;;  %2211 = vrot.lane.b32.xlu1 %v6080_v18, %s5451_s18  ;;  %1082 = vperm.xlu0 %4547, %v1061_v41  }
 0x43a   : > { %v1062_v46 = vadd.f32 2.0, %v1057_v44 }
 0x43b   : > { %v1169_v47 = vpop.f32.mrb[0].mxu1  ;;  %v1047_v48 = vpop.permute.xlu0 %1046 }
 0x43c   : > { %v1058_v49 = vmul.f32 %v4593_v45, %v1047_v48  ;;  %v4040_v50 = vpop.f32.mrb[1].mxu1  ;;  %1087 = vperm.xlu0 %4547, %v1062_v46   ;;  %v1191_v41 = vmul.f32 0.35355338, %v1169_v47 }
 0x43d   : > { %v1172_v51 = vpop.f32.mrb[2].mxu1 }
 0x43e   : > { %v1063_v53 = vadd.f32 2.0, %v1058_v49  ;;  %v4041_v54 = vpop.f32.mrb[3].mxu1  ;;  %v1192_v33 = vmul.f32 0.35355338, %v1172_v51 }
 0x43f   : > { %v1049_v56 = vpop.permute.xlu0 %1048 }
 0x440   : > { %1092 = vperm.xlu0 %4547, %v1063_v53   ;;  %v1059_v11 = vmul.f32 %v4595_v2, %v1049_v56  ;;  %v1069_v56 = vld [vmem:[#allocation13 + $0x10] sm:$0xf] }
 0x442   : > { %v1064_v13 = vadd.f32 2.0, %v1059_v11 }
 0x443   : > { %v1177_v57 = vpop.f32.mrb[4].mxu1  ;;  %v2014_v60 = vpop.permute.xlu0 %2013 }
 0x444   : > { %v4044_v62 = vpop.f32.mrb[5].mxu1  ;;  %2213 = vrot.lane.b32.xlu0 %v6083_v25, %s5451_s18  ;;  %v2016_v63 = vmul.f32 %v2014_v60, %v6049_v3  ;;  %v2019_v1 = vmul.f32 %v2014_v60, %v6065_v7  ;;  %v2017_v10 = vmul.f32 %v2014_v60, %v6052_v4  ;;  %v2018_v17 = vmul.f32 %v2014_v60, %v6062_v6 }
 0x445   : > { %v1180_v5 = vpop.f32.mrb[6].mxu1  ;;  %v2020_v19 = vmul.f32 %v2014_v60, %v6073_v9  ;;  %v1193_v50 = vmul.f32 0.35355338, %v1177_v57 }
 0x446   : > { %v4045_v8 = vpop.f32.mrb[7].mxu1  ;;  %2026 = vrot.lane.b32.xlu1 %v2016_v63, %s5452_s22  ;;  %v1194_v47 = vmul.f32 0.35355338, %v1180_v5  ;;  %v1074_v63 = vunpack.c.l.bf16 %v1069_v56 }
 0x447   : > { %v6212_v21 = vpop.permute.xlu0 %1658 }
 0x448   : > { %2032 = vrot.lane.b32.xlu0 %v2019_v1, %s5452_s22 }
 0x44a   : > { %2028 = vrot.lane.b32.xlu1 %v2017_v10, %s5452_s22 }
 0x44b   : > { %v1185_v12 = vpop.f32.mrb[8].mxu1 }
 0x44c   : > { %v4048_v14 = vpop.f32.mrb[9].mxu1  ;;  %2215 = vrot.lane.b32.xlu0 %v6086_v30, %s5451_s18  ;;  %v1195_v8 = vmul.f32 0.35355338, %v1185_v12  ;;  %s4312_s18 = smul.u32 640, %s7055_s0 }
 0x44d   : > { %v1188_v15 = vpop.f32.mrb[10].mxu1 }
 0x44e   : > { %v4049_v16 = vpop.f32.mrb[11].mxu1  ;;  %1097 = vperm.xlu1 %4546, %v1064_v13  }
 0x450   : > { %2205 = vrot.lane.b32.xlu0 %v6080_v18, %s5452_s22 }
 0x452   : > { %1660 = vrot.lane.b32.xlu1 %v6083_v25, %s5449_s29 }
 0x454   : > { %2209 = vrot.lane.b32.xlu0 %v6086_v30, %s5452_s22 }
 0x456   : > { %1965 = vrot.lane.b32.xlu1 %v6101_v39, %s5448_s2  ;;  %s5458_s2 = smov 126  }
 0x45a   : > { %2030 = vrot.lane.b32.xlu1 %v2018_v17, %s5452_s22 }
 0x45e   : > { %1662 = vrot.lane.b32.xlu1 %v6086_v30, %s5449_s29 }
 0x462   : > { %2034 = vrot.lane.b32.xlu1 %v2020_v19, %s5452_s22 }
 0x466   : > { %2207 = vrot.lane.b32.xlu1 %v6083_v25, %s5452_s22 }
 0x4b3   : > { %v1078_v23 = vpop.permute.xlu1 %1077 }
 0x4b4   : > { %v1100_v36 = vmul.f32 %v3899_v28, %v1078_v23 }
 0x4b6   : > { %v1196_v48 = vadd.f32 %v1191_v41, %v1100_v36 }
 0x4b7   : > { %v1083_v26 = vpop.permute.xlu0 %1082  ;;  %v6214_v27 = vpop.permute.xlu1 %2211 }
 0x4b8   : > { %v1101_v29 = vmul.f32 %v3900_v24, %v1083_v26  ;;  %v1202_v53 = vsel %vm1201_vm6, %v1196_v48, -inf }
 0x4ba   : > { %v6217_v40 = vadd.f32 %v1192_v33, %v1101_v29 }
 0x4bb   : > { %v1088_v34 = vpop.permute.xlu0 %1087  ;;  %v2027_v35 = vpop.permute.xlu1 %2026 }
 0x4bc   : > { %v2041_v38 = vsel %vm897_vm2, %v2027_v35, 0.0  ;;  %v1102_v44 = vmul.f32 %v3903_v37, %v1088_v34  ;;  %v1205_v45 = vsel %vm1201_vm6, %v6217_v40, -inf }
 0x4bd   : > { %2042 = vadd.xlane.f32.xlu1 %v2041_v38 }
 0x4be   : > { %v1198_v54 = vadd.f32 %v1193_v50, %v1102_v44 }
 0x4bf   : > { %v2029_v43 = vpop.permute.xlu1 %2028  ;;  %v1093_v49 = vpop.permute.xlu0 %1092 }
 0x4c0   : > { %v2044_v46 = vsel %vm897_vm2, %v2029_v43, 0.0  ;;  %v1103_v51 = vmul.f32 %v3904_v42, %v1093_v49  ;;  %v1208_v60 = vsel %vm1201_vm6, %v1198_v54, -inf }
 0x4c1   : > { %1206 = vmax.xlane.f32.xlu1 %v1205_v45  ;;  %2045 = vadd.xlane.f32.xlu0 %v2044_v46 }
 0x4c2   : > { %v1199_v62 = vadd.f32 %v1194_v47, %v1103_v51 }
 0x4c3   : > { %v6232_v16 = vpop.permute.xlu0 %2213 }
 0x4c4   : > { %v1211_v1 = vsel %vm1201_vm6, %v1199_v62, -inf }
 0x4c5   : > { %1203 = vmax.xlane.f32.xlu0 %v1202_v53 }
 0x4c7   : > { %v2033_v12 = vpop.permute.xlu0 %2032 }
 0x4c8   : > { %v2050_v17 = vsel %vm897_vm2, %v2033_v12, 0.0 }
 0x4c9   : > { %1209 = vmax.xlane.f32.xlu0 %v1208_v60 }
 0x4cb   : > { %v6244_v28 = vpop.permute.xlu0 %2215 }
 0x4cd   : > { %1212 = vmax.xlane.f32.xlu0 %v1211_v1  ;;  %v1098_v2 = vpop.permute.xlu1 %1097 }
 0x4ce   : > { %v1104_v10 = vmul.f32 %v1098_v2, %v1074_v63 }
 0x4cf   : > { %v6246_v31 = vpop.permute.xlu0 %2205 }
 0x4d0   : > { %v1200_v57 = vadd.f32 %v1195_v8, %v1104_v10 }
 0x4d1   : > { %v6226_v13 = vpop.permute.xlu1 %1660 }
 0x4d2   : > { %v1215_v11 = vsel %vm1214_vm7, %v1200_v57, -inf }
 0x4d3   : > { %1216 = vmax.xlane.f32.xlu1 %v1215_v11  ;;  %v6250_v34 = vpop.permute.xlu0 %2209 }
 0x4d5   : > { %v1966_v5 = vpop.permute.xlu1 %1965 }
 0x4d6   : > { %v1968_v14 = vmul.f32 %v1966_v5, %v6049_v3  ;;  %v1969_v15 = vmul.f32 %v1966_v5, %v6052_v4  ;;  %v1970_v23 = vmul.f32 %v1966_v5, %v6062_v6  ;;  %v1972_v24 = vmul.f32 %v1966_v5, %v6073_v9 }
 0x4d9   : > { %v2031_v19 = vpop.permute.xlu1 %2030 }
 0x4da   : > { %v2047_v22 = vsel %vm897_vm2, %v2031_v19, 0.0 }
 0x4dd   : > { %v6242_v26 = vpop.permute.xlu1 %1662 }
 0x4e1   : > { %v2035_v29 = vpop.permute.xlu1 %2034 }
 0x4e2   : > { %v2053_v12 = vsel %vm910_vm3, %v2035_v29, 0.0 }
 0x4e3   : > { %1978 = vrot.lane.b32.xlu0 %v1968_v14, %s5452_s22 }
 0x4e4   : > { %1980 = vrot.lane.b32.xlu1 %v1969_v15, %s5452_s22 }
 0x4e5   : > { %v6248_v33 = vpop.permute.xlu1 %2207 }
 0x502   : > { %2051 = vadd.xlane.f32.xlu0 %v2050_v17 }
 0x508   : > { %2048 = vadd.xlane.f32.xlu1 %v2047_v22 }
 0x518   : > { %1982 = vrot.lane.b32.xlu0 %v1970_v23, %s5452_s22 }
 0x51c   : > { %1986 = vrot.lane.b32.xlu0 %v1972_v24, %s5452_s22 }
 0x520   : > { %1468 = vrot.lane.b32.xlu0 %v6089_v32, %s5453_s21 }
 0x54a   : > { %v6252_v35 = vpop.xlane.xlu1 %2042 }
 0x54e   : > { %v2046_v36 = vpop.xlane.xlu0 %2045  ;;  %v1207_v37 = vpop.xlane.xlu1 %1206 }
 0x54f   : > { %v1219_v38 = vsub.f32 %v6217_v40, %v1207_v37 }
 0x551   : > { %v1225_v32 = vmul.f32 1.442695, %v1219_v38  ;;  %v2057_v38 = vadd.f32 %v6150_v61, %v2046_v36 }
 0x552   : > { %v1204_v41 = vpop.xlane.xlu0 %1203 }
 0x553   : > { %v1218_v42 = vsub.f32 %v1196_v48, %v1204_v41 }
 0x555   : > { %v1223_v43 = vmul.f32 1.442695, %v1218_v42  ;;  %v3834_v42 = vmul.f32 -1.442695, %v2057_v38 }
 0x556   : > { %v1210_v44 = vpop.xlane.xlu0 %1209 }
 0x557   : > { %4596 = vpow2.f32 %v1223_v43  ;;  %v1220_v45 = vsub.f32 %v1198_v54, %v1210_v44 }
 0x558   : > { %4598 = vpow2.f32 %v1225_v32 }
 0x559   : > { %v1227_v46 = vmul.f32 1.442695, %v1220_v45 }
 0x55a   : > { %v1213_v49 = vpop.xlane.xlu0 %1212 }
 0x55b   : > { %v1221_v50 = vsub.f32 %v1199_v62, %v1213_v49  ;;  %4600 = vpow2.f32 %v1227_v46 }
 0x55d   : > { %v1229_v51 = vmul.f32 1.442695, %v1221_v50 }
 0x55e   : > { %v1979_v11 = vpop.permute.xlu0 %1978 }
 0x55f   : > { %4602 = vpow2.f32 %v1229_v51  ;;  %v1993_v19 = vsel %vm897_vm2, %v1979_v11, 0.0 }
 0x560   : > { %v1217_v53 = vpop.xlane.xlu1 %1216 }
 0x561   : > { %v6255_v47 = vpop.eup %4596  ;;  %v1222_v56 = vsub.f32 %v1200_v57, %v1217_v53  ;;  %v1971_v57 = vmul.f32 %v1966_v5, %v6065_v7 }
 0x562   : > { %v1233_v40 = vsel %vm1201_vm6, %v6255_v47, 0.0  ;;  %v6259_v48 = vpop.eup %4598 }
 0x563   : > { %v1231_v60 = vmul.f32 1.442695, %v1222_v56  ;;  %1234 = vadd.xlane.f32.xlu1 %v1233_v40  ;;  %v1236_v54 = vsel %vm1201_vm6, %v6259_v48, 0.0 }
 0x564   : > { %v1981_v17 = vpop.permute.xlu1 %1980 }
 0x565   : > { %4604 = vpow2.f32 %v1231_v60  ;;  %v6263_v63 = vpop.eup %4600  ;;  %v1996_v23 = vsel %vm897_vm2, %v1981_v17, 0.0 }
 0x566   : > { %v1239_v62 = vsel %vm1201_vm6, %v6263_v63, 0.0  ;;  %4606 = vpow2.f32 %v3834_v42 }
 0x567   : > { %1237 = vadd.xlane.f32.xlu1 %v1236_v54 }
 0x569   : > { %v6267_v1 = vpop.eup %4602 }
 0x56a   : > { %v1242_v2 = vsel %vm1201_vm6, %v6267_v1, 0.0 }
 0x56b   : > { %1240 = vadd.xlane.f32.xlu1 %v1239_v62 }
 0x56f   : > { %v6271_v8 = vpop.eup %4604  ;;  %1243 = vadd.xlane.f32.xlu1 %v1242_v2 }
 0x570   : > { %v1245_v10 = vsel %vm1214_vm7, %v6271_v8, 0.0  ;;  %v4607_v45 = vpop.eup %4606 }
 0x571   : > { %1246 = vadd.xlane.f32.xlu0 %v1245_v10  ;;  %v2107_v49 = vadd.f32 1.0, %v4607_v45 }
 0x580   : > { %1984 = vrot.lane.b32.xlu1 %v1971_v57, %s5452_s22 }
 0x587   : > { %2121 = vrot.lane.b32.xlu0 %v6120_v52, %s5447_s4 }
 0x58f   : > { %v2052_v14 = vpop.xlane.xlu0 %2051 }
 0x590   : > { %v2059_v41 = vadd.f32 %v6150_v61, %v2052_v14 }
 0x592   : > { %v3836_v32 = vmul.f32 -1.442695, %v2059_v41 }
 0x593   : > { %v1983_v15 = vpop.permute.xlu0 %1982 }
 0x594   : > { %v1999_v24 = vsel %vm897_vm2, %v1983_v15, 0.0  ;;  %4608 = vpow2.f32 %v3836_v32  ;;  %v1683_v32 = vsel %vm897_vm2, %v6170_v58, 0  ;;  %v1686_v58 = vsel %vm897_vm2, %v6210_v20, 0 }
 0x595   : > { %v2049_v43 = vpop.xlane.xlu1 %2048 }
 0x596   : > { %v2058_v36 = vadd.f32 %v6150_v61, %v2049_v43 }
 0x597   : > { %v1987_v22 = vpop.permute.xlu0 %1986 }
 0x598   : > { %v2005_v5 = vsel %vm910_vm3, %v1987_v22, 0.0  ;;  %v3835_v56 = vmul.f32 -1.442695, %v2058_v36 }
 0x59b   : > { %v6284_v52 = vpop.permute.xlu0 %1468 }
 0x59c   : > { %v1472_v29 = vmul.f32 %v6284_v52, %v6052_v4  ;;  %v1474_v37 = vmul.f32 %v6284_v52, %v6065_v7  ;;  %v2056_v4 = vadd.f32 %v6150_v61, %v6252_v35  ;;  %v1471_v43 = vmul.f32 %v6284_v52, %v6049_v3 }
 0x59d   : > { %v1473_v3 = vmul.f32 %v6284_v52, %v6062_v6 }
 0x59e   : > { %v4609_v46 = vpop.eup %4608  ;;  %v3833_v51 = vmul.f32 -1.442695, %v2056_v4 }
 0x59f   : > { %v2109_v50 = vadd.f32 1.0, %v4609_v46  ;;  %v2227_v46 = vsel %vm897_vm2, %v6214_v27, 0  ;;  %v2230_v27 = vsel %vm897_vm2, %v6232_v16, 0 }
 0x5a4   : > { %2054 = vadd.xlane.f32.xlu1 %v2053_v12 }
 0x5a6   : > { %1994 = vadd.xlane.f32.xlu0 %v1993_v19  ;;  %v1680_v19 = vsel %vm897_vm2, %v6168_v55, 0 }
 0x5a8   : > { %1997 = vadd.xlane.f32.xlu1 %v1996_v23 }
 0x5aa   : > { %2006 = vadd.xlane.f32.xlu0 %v2005_v5 }
 0x5ac   : > { %2000 = vadd.xlane.f32.xlu1 %v1999_v24 }
 0x5c0   : > { %1483 = vrot.lane.b32.xlu0 %v1472_v29, %s5449_s29 }
 0x5c4   : > { %1487 = vrot.lane.b32.xlu0 %v1474_v37, %s5449_s29 }
 0x5f0   : > { %v1235_v44 = vpop.xlane.xlu1 %1234 }
 0x5f1   : > { %4610 = vrcp.f32 %v1235_v44 }
 0x5f4   : > { %v1238_v7 = vpop.xlane.xlu1 %1237 }
 0x5f5   : > { %4612 = vrcp.f32 %v1238_v7 }
 0x5f6   : > { %4614 = vrcp.f32 %v2107_v49  ;;  %v2233_v49 = vsel %vm897_vm2, %v6244_v28, 0 }
 0x5f7   : > { %4616 = vrcp.f32 %v2109_v50  ;;  %v1344_v50 = vld [vmem:[#allocation14] sm:$0xf] }
 0x5f8   : > { %v1241_v53 = vpop.xlane.xlu1 %1240 }
 0x5f9   : > { %4618 = vrcp.f32 %v1241_v53 }
 0x5fa   : > { %4620 = vpow2.f32 %v3833_v51 }
 0x5fb   : > { %v4611_v60 = vpop.eup %4610 }
 0x5fc   : > { %v1244_v40 = vpop.xlane.xlu1 %1243  ;;  %v1253_v35 = vmul.f32 %v4611_v60, %v6255_v47 }
 0x5fd   : > { %4622 = vrcp.f32 %v1244_v40 }
 0x5fe   : > { %v1247_v54 = vpop.xlane.xlu0 %1246  ;;  %4624 = vpow2.f32 %v3835_v56 }
 0x5ff   : > { %v4613_v62 = vpop.eup %4612  ;;  %4626 = vrcp.f32 %v1247_v54 }
 0x600   : > { %v1254_v2 = vmul.f32 %v4613_v62, %v6259_v48  ;;  %v1985_v10 = vpop.permute.xlu1 %1984  ;;  %v4615_v11 = vpop.eup %4614 }
 0x601   : > { %v2002_v57 = vsel %vm897_vm2, %v1985_v10, 0.0  ;;  %v4617_v17 = vpop.eup %4616 }
 0x602   : > { %v1258_v14 = vpack.c.bf16 %v1254_v2, %v1253_v35  ;;  %v6300_v15 = vpop.permute.xlu0 %2121  ;;  %2003 = vadd.xlane.f32.xlu1 %v2002_v57  ;;  %v6391_v2 = vld [vmem:[%s6004_s27] sm:$0xff]  ;;  %v6396_v57 = vld [vmem:[%s6004_s27 + $0x8] sm:$0xff] }
 0x603   : > { %v2125_v12 = vmul.f32 %v4615_v11, %v6300_v15  ;;  %v4619_v47 = vpop.eup %4618  ;;  %v2127_v22 = vmul.f32 %v4617_v17, %v6300_v15 }
 0x604   : > { %4057 = vmatmul.mubr.msk.bf16.vlgmr.msra.gmra.mrb[12].mxu0 %vm1201_vm6, %v1258_v14  ;;  %v4621_v23 = vpop.eup %4620  ;;  %v1255_v24 = vmul.f32 %v4619_v47, %v6263_v63 }
 0x605   : > { %4083 = vmatpush3.bf16.xpose.msra.mxu0 %v1680_v19  ;;  %v3839_v48 = vadd.f32 -1.0, %v2125_v12  ;;  %4060 = vmatprep.mubr.msk.bf16.mxu0 %vm5441_vm0, %v5440_v0  ;;  %v3841_v29 = vadd.f32 -1.0, %v2127_v22  ;;  %v2106_v38 = vadd.f32 1.0, %v4621_v23  ;;  %v6403_v19 = vld [vmem:[%s6004_s27 + $0x10] sm:$0xff] }
 0x606   : > { %4084 = vmatprep.subr.bf16.mxu0 %v5440_v0 }
 0x607   : > { %v4623_v5 = vpop.eup %4622  ;;  %2141 = vrot.lane.b32.xlu0 %v3839_v48, %s5447_s4  ;;  %4628 = vrcp.f32 %v2106_v38  ;;  %v6408_v48 = vld [vmem:[%s6004_s27 + $0x20] sm:$0x7f] }
 0x608   : > { %v1256_v55 = vmul.f32 %v4623_v5, %v6267_v1  ;;  %v4625_v37 = vpop.eup %4624 }
 0x609   : > { %v4627_v42 = vpop.eup %4626  ;;  %v2108_v63 = vadd.f32 1.0, %v4625_v37 }
 0x60a   : > { %v1259_v41 = vpack.c.bf16 %v1256_v55, %v1255_v24  ;;  %v1257_v1 = vmul.f32 %v4627_v42, %v6271_v8  ;;  %v6413_v55 = vld [vmem:[%s6004_s27 + $0x18] sm:$0xff] }
 0x60b   : > { %2145 = vrot.lane.b32.xlu0 %v3841_v29, %s5447_s4  ;;  %4630 = vrcp.f32 %v2108_v63 }
 0x60c   : > { %4061 = vmatmul.mubr.msk.bf16.gmra.mrb[16].mxu0 %vm1201_vm6, %v1259_v41  ;;  %v1260_v44 = vpack.c.bf16 %v1257_v1, %v1257_v1 }
 0x60d   : > { %4085 = vmatpush3.bf16.xpose.msra.mxu0 %v1683_v32  ;;  %4064 = vmatprep.mubr.msk.bf16.mxu0 %vm5441_vm0, %v5440_v0 }
 0x60e   : > { %4086 = vmatprep.subr.bf16.mxu0 %v5440_v0 }
 0x611   : > { %v4629_v8 = vpop.eup %4628 }
 0x612   : > { %v2124_v45 = vmul.f32 %v4629_v8, %v6300_v15 }
 0x613   : > { %1481 = vrot.lane.b32.xlu1 %v1471_v43, %s5449_s29 }
 0x614   : > { %4065 = vmatmul.mubr.msk.bf16.gmra.mrb[20].mxu0 %vm1201_vm6, %v1260_v44  ;;  %v3838_v4 = vadd.f32 -1.0, %v2124_v45 }
 0x615   : > { %4087 = vmatpush3.bf16.xpose.msra.mxu0 %v1686_v58  ;;  %4088 = vmatprep.mubr.msk.bf16.mxu0 %vm5441_vm0, %v5440_v0  ;;  %v4631_v20 = vpop.eup %4630 }
 0x616   : > { %4132 = vmatprep.subr.bf16.mxu0 %v5440_v0 }
 0x617   : > { %1419 = vrot.lane.b32.xlu1 %v6101_v39, %s5453_s21  ;;  %v2126_v39 = vmul.f32 %v4631_v20, %v6300_v15 }
 0x619   : > { %v3840_v6 = vadd.f32 -1.0, %v2126_v39 }
 0x61b   : > { %1485 = vrot.lane.b32.xlu1 %v1473_v3, %s5449_s29 }
 0x61c   : > { %4089 = vmatmul.mubr.msk.bf16.vlgmr.msra.gmra.mrb[24].mxu0 %vm897_vm2, %v6212_v21  ;;  %v1475_v21 = vmul.f32 %v6284_v52, %v6073_v9 }
 0x61d   : > { %4133 = vmatpush3.bf16.xpose.msra.mxu0 %v2227_v46  ;;  %4092 = vmatprep.mubr.msk.bf16.mxu0 %vm5441_vm0, %v5440_v0 }
 0x61e   : > { %4134 = vmatprep.subr.bf16.mxu0 %v5440_v0 }
 0x61f   : > { %2139 = vrot.lane.b32.xlu1 %v3838_v4, %s5447_s4 }
 0x623   : > { %2143 = vrot.lane.b32.xlu1 %v3840_v6, %s5447_s4 }
 0x624   : > { %4093 = vmatmul.mubr.msk.bf16.gmra.mrb[28].mxu0 %vm897_vm2, %v6226_v13 }
 0x625   : > { %4135 = vmatpush3.bf16.xpose.msra.mxu0 %v2230_v27  ;;  %4096 = vmatprep.mubr.msk.bf16.mxu0 %vm5441_vm0, %v5440_v0 }
 0x626   : > { %4136 = vmatprep.subr.bf16.mxu0 %v5440_v0 }
 0x627   : > { %1489 = vrot.lane.b32.xlu1 %v1475_v21, %s5449_s29 }
 0x62c   : > { %4097 = vmatmul.mubr.msk.bf16.gmra.mrb[32].mxu0 %vm897_vm2, %v6242_v26 }
 0x62d   : > { %4137 = vmatpush3.bf16.xpose.msra.mxu0 %v2233_v49  ;;  %4138 = vmatprep.mubr.msk.bf16.mxu0 %vm5441_vm0, %v5440_v0 }
 0x62e   : > { %4150 = vmatprep.subr.bf16.mxu0 %v5440_v0 }
 0x631   : > { %v2055_v9 = vpop.xlane.xlu1 %2054 }
 0x632   : > { %v2060_v13 = vadd.f32 %v6150_v61, %v2055_v9 }
 0x633   : > { %v6380_v51 = vpop.xlane.xlu0 %1994 }
 0x634   : > { %v3837_v16 = vmul.f32 -1.442695, %v2060_v13  ;;  %4139 = vmatmul.mubr.msk.bf16.vlgmr.msra.gmra.mrb[36].mxu0 %vm897_vm2, %v6246_v31 }
 0x635   : > { %4142 = vmatprep.mubr.msk.bf16.mxu0 %vm5441_vm0, %v5440_v0  ;;  %v1998_v56 = vpop.xlane.xlu1 %1997 }
 0x636   : > { %4632 = vpow2.f32 %v3837_v16  ;;  %v2009_v13 = vadd.f32 %v6150_v61, %v1998_v56 }
 0x639   : > { %v6385_v40 = vpop.xlane.xlu1 %2000 }
 0x63c   : > { %4143 = vmatmul.mubr.msk.bf16.gmra.mrb[40].mxu0 %vm897_vm2, %v6248_v33  ;;  %v1355_v33 = vsel %vm1279_vm5, %v1344_v50, 0 }
 0x63d   : > { %4146 = vmatprep.mubr.msk.bf16.mxu0 %vm5441_vm0, %v5440_v0  ;;  %4069 = vmatpush3.bf16.msra.mxu1 %v1355_v33 }
 0x63e   : > { %4100 = vmatprep.subr.bf16.mxu1 %v5440_v0 }
 0x640   : > { %v4633_v26 = vpop.eup %4632 }
 0x641   : > { %v2110_v28 = vadd.f32 1.0, %v4633_v26 }
 0x643   : > { %4634 = vrcp.f32 %v2110_v28 }
 0x644   : > { %4147 = vmatmul.mubr.msk.bf16.gmra.mrb[44].mxu0 %vm897_vm2, %v6250_v34  ;;  %v6382_v34 = vpop.xlane.xlu0 %2006 }
 0x645   : > { %4156 = vmatprep.mubr.msk.bf16.mxu0 %vm5441_vm0, %v5440_v0 }
 0x648   : > { %v1484_v36 = vpop.permute.xlu0 %1483 }
 0x649   : > { %v1499_v53 = vsel %vm897_vm2, %v1484_v36, 0.0 }
 0x64c   : > { %v1488_v14 = vpop.permute.xlu0 %1487 }
 0x64d   : > { %v4635_v31 = vpop.eup %4634 }
 0x64e   : > { %v2128_v52 = vmul.f32 %v4635_v31, %v6300_v15  ;;  %v1505_v15 = vsel %vm897_vm2, %v1488_v14, 0.0  ;;  %v3829_v31 = vmul.f32 -1.442695, %v2009_v13 }
 0x650   : > { %v3842_v7 = vadd.f32 -1.0, %v2128_v52  ;;  %v2010_v52 = vadd.f32 %v6150_v61, %v6385_v40  ;;  %4636 = vpow2.f32 %v3829_v31 }
 0x652   : > { %2147 = vrot.lane.b32.xlu0 %v3842_v7, %s5447_s4  ;;  %v3830_v56 = vmul.f32 -1.442695, %v2010_v52 }
 0x654   : > { %4638 = vpow2.f32 %v3830_v56 }
 0x671   : > { %1500 = vadd.xlane.f32.xlu0 %v1499_v53 }
 0x679   : > { %v2142_v27 = vpop.permute.xlu0 %2141 }
 0x67d   : > { %v6439_v28 = vpop.permute.xlu0 %2145 }
 0x68f   : > { %v6387_v60 = vpop.xlane.xlu1 %2003 }
 0x690   : > { %v2011_v33 = vadd.f32 %v6150_v61, %v6387_v60 }
 0x693   : > { %v1482_v54 = vpop.permute.xlu1 %1481 }
 0x694   : > { %v1496_v62 = vsel %vm897_vm2, %v1482_v54, 0.0 }
 0x695   : > { %1497 = vadd.xlane.f32.xlu1 %v1496_v62 }
 0x697   : > { %v1420_v35 = vpop.permute.xlu1 %1419 }
 0x698   : > { %v1422_v10 = vmul.f32 %v6391_v2, %v1420_v35  ;;  %v1423_v11 = vmul.f32 %v6396_v57, %v1420_v35  ;;  %v1424_v47 = vmul.f32 %v6403_v19, %v1420_v35  ;;  %v1426_v22 = vmul.f32 %v6408_v48, %v1420_v35 }
 0x699   : > { %v1425_v29 = vmul.f32 %v6413_v55, %v1420_v35  ;;  %v3831_v35 = vmul.f32 -1.442695, %v2011_v33 }
 0x69a   : > { %1432 = vrot.lane.b32.xlu0 %v1422_v10, %s5449_s29  ;;  %v6448_v10 = vld [vmem:[#allocation10] ss:$0 sm:$0xff] }
 0x69b   : > { %v1486_v12 = vpop.permute.xlu1 %1485  ;;  %v2012_v40 = vadd.f32 %v6448_v10, %v6382_v34  ;;  %4640 = vpow2.f32 %v3831_v35 }
 0x69c   : > { %v1502_v17 = vsel %vm897_vm2, %v1486_v12, 0.0 }
 0x69d   : > { %v3832_v60 = vmul.f32 -1.442695, %v2012_v40 }
 0x69f   : > { %v6426_v45 = vpop.permute.xlu1 %2139  ;;  %4642 = vpow2.f32 %v3832_v60 }
 0x6a3   : > { %v6432_v6 = vpop.permute.xlu1 %2143 }
 0x6a6   : > { %1434 = vrot.lane.b32.xlu1 %v1423_v11, %s5449_s29 }
 0x6a7   : > { %v1490_v26 = vpop.permute.xlu1 %1489 }
 0x6a8   : > { %v1508_v7 = vsel %vm910_vm3, %v1490_v26, 0.0 }
 0x6b9   : > { %1506 = vadd.xlane.f32.xlu0 %v1505_v15 }
 0x6c4   : > { %v2148_v53 = vpop.permute.xlu0 %2147 }
 0x6ca   : > { %1503 = vadd.xlane.f32.xlu1 %v1502_v17 }
 0x6cf   : > { %1436 = vrot.lane.b32.xlu0 %v1424_v47, %s5449_s29 }
 0x6d3   : > { %1440 = vrot.lane.b32.xlu0 %v1426_v22, %s5449_s29  ;;  %v4637_v22 = vpop.eup %4636 }
 0x6d4   : > { %v2077_v34 = vadd.f32 1.0, %v4637_v22 }
 0x6d7   : > { %v1319_v23 = vpop.f32.mrb[12].mxu0 }
 0x6d8   : > { %v4058_v5 = vpop.f32.mrb[13].mxu0 }
 0x6d9   : > { %v1322_v24 = vpop.f32.mrb[14].mxu0 }
 0x6da   : > { %v1341_v37 = vpack.c.bf16 %v1322_v24, %v1319_v23  ;;  %v4059_v38 = vpop.f32.mrb[15].mxu0 }
 0x6db   : > { %1438 = vrot.lane.b32.xlu1 %v1425_v29, %s5449_s29  ;;  %v4639_v29 = vpop.eup %4638  ;;  %s5459_s29 = smov 56  }
 0x6dc   : > { %4071 = vmatmul.mubr.msk.bf16.vlgmr.msra.gmra.mrb[12].mxu1 %vm897_vm2, %v1341_v37 }
 0x6dd   : > { %4074 = vmatprep.mubr.msk.bf16.mxu1 %vm5441_vm0, %v5440_v0 }
 0x6df   : > { %v1327_v41 = vpop.f32.mrb[16].mxu0 }
 0x6e0   : > { %v4062_v42 = vpop.f32.mrb[17].mxu0 }
 0x6e1   : > { %v1330_v32 = vpop.f32.mrb[18].mxu0 }
 0x6e2   : > { %v1342_v63 = vpack.c.bf16 %v1330_v32, %v1327_v41  ;;  %v4063_v1 = vpop.f32.mrb[19].mxu0  ;;  %v4641_v41 = vpop.eup %4640  ;;  %v2078_v32 = vadd.f32 1.0, %v4639_v29 }
 0x6e3   : > { %v4643_v1 = vpop.eup %4642 }
 0x6e4   : > { %4075 = vmatmul.mubr.msk.bf16.gmra.mrb[16].mxu1 %vm897_vm2, %v1342_v63  ;;  %v2079_v63 = vadd.f32 1.0, %v4641_v41 }
 0x6e5   : > { %4078 = vmatprep.mubr.msk.bf16.mxu1 %vm5441_vm0, %v5440_v0 }
 0x6e7   : > { %v1335_v43 = vpop.f32.mrb[20].mxu0 }
 0x6e8   : > { %v4066_v44 = vpop.f32.mrb[21].mxu0  ;;  %v1343_v8 = vpack.c.bf16 %v1335_v43, %v1335_v43 }
 0x6e9   : > { %v1338_v58 = vpop.f32.mrb[22].mxu0 }
 0x6ea   : > { %v4067_v3 = vpop.f32.mrb[23].mxu0 }
 0x6eb   : > { %v2080_v3 = vadd.f32 1.0, %v4643_v1 }
 0x6ec   : > { %4079 = vmatmul.mubr.msk.bf16.gmra.mrb[20].mxu1 %vm897_vm2, %v1343_v8 }
 0x6ed   : > { %4106 = vmatprep.mubr.msk.bf16.mxu1 %vm5441_vm0, %v5440_v0 }
 0x6ef   : > { %v6428_v20 = vpop.f32.mrb[24].mxu0 }
 0x6f0   : > { %v4090_v46 = vpop.f32.mrb[25].mxu0 }
 0x6f1   : > { %v6430_v4 = vpop.f32.mrb[26].mxu0 }
 0x6f2   : > { %v4091_v39 = vpop.f32.mrb[27].mxu0 }
 0x6f7   : > { %v6434_v21 = vpop.f32.mrb[28].mxu0 }
 0x6f8   : > { %v4094_v49 = vpop.f32.mrb[29].mxu0 }
 0x6f9   : > { %v6436_v9 = vpop.f32.mrb[30].mxu0 }
 0x6fa   : > { %v4095_v16 = vpop.f32.mrb[31].mxu0 }
 0x6fe   : > { %v1501_v11 = vpop.xlane.xlu0 %1500 }
 0x6ff   : > { %1509 = vadd.xlane.f32.xlu1 %v1508_v7  ;;  %v6444_v50 = vpop.f32.mrb[32].mxu0  ;;  %v1512_v14 = vadd.f32 %v6448_v10, %v1501_v11  ;;  %v6467_v11 = vld [vmem:[#allocation11] ss:$0 sm:$0xff] }
 0x700   : > { %v4098_v36 = vpop.f32.mrb[33].mxu0 }
 0x701   : > { %v1741_v54 = vpop.f32.mrb[34].mxu0  ;;  %v3810_v17 = vmul.f32 -1.442695, %v1512_v14 }
 0x702   : > { %v4099_v62 = vpop.f32.mrb[35].mxu0 }
 0x703   : > { %4644 = vpow2.f32 %v3810_v17 }
 0x704   : > { %4646 = vrcp.f32 %v2077_v34 }
 0x705   : > { %4648 = vrcp.f32 %v2078_v32 }
 0x706   : > { %4650 = vrcp.f32 %v2079_v63 }
 0x707   : > { %v6453_v15 = vpop.f32.mrb[36].mxu0  ;;  %4652 = vrcp.f32 %v2080_v3 }
 0x708   : > { %v4140_v61 = vpop.f32.mrb[37].mxu0 }
 0x709   : > { %v6455_v12 = vpop.f32.mrb[38].mxu0 }
 0x70a   : > { %v4141_v47 = vpop.f32.mrb[39].mxu0 }
 0x70c   : > { %v1433_v23 = vpop.permute.xlu0 %1432 }
 0x70d   : > { %v1447_v5 = vsel %vm897_vm2, %v1433_v23, 0.0  ;;  %v4645_v44 = vpop.eup %4644 }
 0x70e   : > { %1448 = vadd.xlane.f32.xlu0 %v1447_v5  ;;  %v1562_v39 = vadd.f32 1.0, %v4645_v44  ;;  %v4647_v49 = vpop.eup %4646 }
 0x70f   : > { %v6458_v24 = vpop.f32.mrb[40].mxu0  ;;  %v2155_v13 = vmul.f32 %v4647_v49, %v2142_v27  ;;  %v4649_v16 = vpop.eup %4648 }
 0x710   : > { %v4144_v37 = vpop.f32.mrb[41].mxu0  ;;  %4654 = vrcp.f32 %v1562_v39  ;;  %v2156_v31 = vmul.f32 %v4649_v16, %v6432_v6  ;;  %v4651_v7 = vpop.eup %4650 }
 0x711   : > { %v6460_v38 = vpop.f32.mrb[42].mxu0  ;;  %v2160_v26 = vadd.f32 2.0, %v2155_v13  ;;  %v2157_v54 = vmul.f32 %v4651_v7, %v6439_v28  ;;  %v4653_v62 = vpop.eup %4652  ;;  %v2008_v28 = vadd.f32 %v6448_v10, %v6380_v51 }
 0x712   : > { %v4145_v42 = vpop.f32.mrb[43].mxu0  ;;  %v2161_v33 = vadd.f32 2.0, %v2156_v31  ;;  %v2158_v40 = vmul.f32 %v4653_v62, %v2148_v53 }
 0x713   : > { %v2162_v27 = vadd.f32 2.0, %v2157_v54  ;;  %v3828_v22 = vmul.f32 -1.442695, %v2008_v28 }
 0x714   : > { %v2163_v14 = vadd.f32 2.0, %v2158_v40 }
 0x715   : > { %4656 = vpow2.f32 %v3828_v22 }
 0x717   : > { %v6462_v43 = vpop.f32.mrb[44].mxu0 }
 0x718   : > { %v4148_v58 = vpop.f32.mrb[45].mxu0 }
 0x719   : > { %v2288_v8 = vpop.f32.mrb[46].mxu0 }
 0x71a   : > { %v4149_v46 = vpop.f32.mrb[47].mxu0  ;;  %v4655_v35 = vpop.eup %4654 }
 0x71b   : > { %v1578_v6 = vmul.f32 %v6467_v11, %v4655_v35 }
 0x71d   : > { %v3815_v61 = vadd.f32 -1.0, %v1578_v6 }
 0x71f   : > { %v4657_v41 = vpop.eup %4656 }
 0x720   : > { %v2076_v1 = vadd.f32 1.0, %v4657_v41 }
 0x722   : > { %v1498_v52 = vpop.xlane.xlu1 %1497 }
 0x723   : > { %v1511_v17 = vadd.f32 %v6448_v10, %v1498_v52 }
 0x724   : > { %2182 = vperm.xlu0 %4547, %v2160_v26  }
 0x725   : > { %v3809_v23 = vmul.f32 -1.442695, %v1511_v17  ;;  %v6490_v17 = vld [vmem:[#allocation13 + $0x30] sm:$0xff]  }
 0x726   : > { %v1435_v36 = vpop.permute.xlu1 %1434  ;;  %v3920_v22 = vunpack.c.h.bf16 %v6490_v17 }
 0x727   : > { %v1450_v56 = vsel %vm897_vm2, %v1435_v36, 0.0  ;;  %4658 = vpow2.f32 %v3809_v23 }
 0x728   : > { %2187 = vperm.xlu0 %4547, %v2161_v33   ;;  %1451 = vadd.xlane.f32.xlu1 %v1450_v56 }
 0x72c   : > { %2192 = vperm.xlu0 %4547, %v2162_v27  }
 0x730   : > { %2197 = vperm.xlu0 %4547, %v2163_v14  }
 0x731   : > { %v4659_v32 = vpop.eup %4658 }
 0x732   : > { %v1561_v58 = vadd.f32 1.0, %v4659_v32 }
 0x734   : > { %1594 = vrot.lane.b32.xlu0 %v3815_v61, %s5447_s4 }
 0x746   : > { %v1507_v60 = vpop.xlane.xlu0 %1506 }
 0x747   : > { %v1514_v5 = vadd.f32 %v6448_v10, %v1507_v60 }
 0x749   : > { %v3812_v34 = vmul.f32 -1.442695, %v1514_v5 }
 0x74a   : > { %v1437_v47 = vpop.permute.xlu0 %1436 }
 0x74b   : > { %v1453_v53 = vsel %vm897_vm2, %v1437_v47, 0.0  ;;  %4660 = vpow2.f32 %v3812_v34 }
 0x74c   : > { %1454 = vadd.xlane.f32.xlu1 %v1453_v53 }
 0x74e   : > { %v1441_v44 = vpop.permute.xlu0 %1440 }
 0x74f   : > { %v1459_v8 = vsel %vm910_vm3, %v1441_v44, 0.0 }
 0x755   : > { %v4661_v3 = vpop.eup %4660 }
 0x756   : > { %v1564_v39 = vadd.f32 1.0, %v4661_v3 }
 0x757   : > { %v1504_v29 = vpop.xlane.xlu1 %1503 }
 0x758   : > { %v1513_v37 = vadd.f32 %v6448_v10, %v1504_v29  ;;  %v2294_v29 = vmul.f32 0.35355338, %v6460_v38 }
 0x75a   : > { %v3811_v42 = vmul.f32 -1.442695, %v1513_v37 }
 0x75b   : > { %v1439_v51 = vpop.permute.xlu1 %1438 }
 0x75c   : > { %4662 = vpow2.f32 %v3811_v42  ;;  %v1456_v63 = vsel %vm897_vm2, %v1439_v51, 0.0 }
 0x75d   : > { %1457 = vadd.xlane.f32.xlu1 %v1456_v63  ;;  %4664 = vrcp.f32 %v2076_v1 }
 0x75e   : > { %4666 = vrcp.f32 %v1561_v58 }
 0x761   : > { %1460 = vadd.xlane.f32.xlu1 %v1459_v8 }
 0x766   : > { %v4663_v46 = vpop.eup %4662 }
 0x767   : > { %v1563_v49 = vadd.f32 1.0, %v4663_v46  ;;  %v4665_v13 = vpop.eup %4664 }
 0x768   : > { %v2154_v16 = vmul.f32 %v4665_v13, %v6426_v45  ;;  %v4667_v26 = vpop.eup %4666  ;;  %v4833_v45 = vld [vmem:[#allocation8 + $0x1] ss:$0 sm:$0xff] }
 0x769   : > { %4668 = vrcp.f32 %v1563_v49  ;;  %v1577_v52 = vmul.f32 %v6467_v11, %v4667_v26 }
 0x76a   : > { %4670 = vrcp.f32 %v1564_v39  ;;  %v2159_v31 = vadd.f32 2.0, %v2154_v16 }
 0x76b   : > { %v3814_v33 = vadd.f32 -1.0, %v1577_v52 }
 0x772   : > { %2177 = vperm.xlu1 %4546, %v2159_v31  }
 0x773   : > { %v4669_v7 = vpop.eup %4668 }
 0x774   : > { %v1579_v36 = vmul.f32 %v6467_v11, %v4669_v7  ;;  %v4671_v54 = vpop.eup %4670 }
 0x775   : > { %v1580_v62 = vmul.f32 %v6467_v11, %v4671_v54 }
 0x776   : > { %1592 = vrot.lane.b32.xlu1 %v3814_v33, %s5447_s4  ;;  %v3816_v56 = vadd.f32 -1.0, %v1579_v36 }
 0x777   : > { %v3817_v35 = vadd.f32 -1.0, %v1580_v62 }
 0x77a   : > { %1596 = vrot.lane.b32.xlu1 %v3816_v56, %s5447_s4 }
 0x77e   : > { %1598 = vrot.lane.b32.xlu1 %v3817_v35, %s5447_s4 }
 0x782   : > { %2560 = vrot.lane.b32.xlu1 %v4833_v45, %s5454_s20 }
 0x78c   : > { %v1510_v40 = vpop.xlane.xlu1 %1509 }
 0x78d   : > { %v1515_v27 = vadd.f32 %v6448_v10, %v1510_v40 }
 0x78f   : > { %v3813_v6 = vmul.f32 -1.442695, %v1515_v27 }
 0x791   : > { %4672 = vpow2.f32 %v3813_v6 }
 0x79b   : > { %v4673_v14 = vpop.eup %4672  ;;  %v1449_v60 = vpop.xlane.xlu0 %1448 }
 0x79c   : > { %v1565_v61 = vadd.f32 1.0, %v4673_v14  ;;  %v1462_v38 = vadd.f32 %v6448_v10, %v1449_v60 }
 0x79e   : > { %4674 = vrcp.f32 %v1565_v61  ;;  %v3804_v39 = vmul.f32 -1.442695, %v1462_v38  ;;  %v2291_v38 = vmul.f32 0.35355338, %v6453_v15  ;;  %v2295_v15 = vmul.f32 0.35355338, %v6462_v43 }
 0x7a3   : > { %v6488_v28 = vpop.permute.xlu0 %2182 }
 0x7a7   : > { %v6492_v47 = vpop.permute.xlu0 %2187 }
 0x7a8   : > { %v4675_v53 = vpop.eup %4674 }
 0x7a9   : > { %v1581_v23 = vmul.f32 %v6467_v11, %v4675_v53 }
 0x7ab   : > { %v2193_v5 = vpop.permute.xlu0 %2192  ;;  %v3818_v34 = vadd.f32 -1.0, %v1581_v23 }
 0x7ac   : > { %v2203_v37 = vmul.f32 %v3920_v22, %v2193_v5 }
 0x7ad   : > { %1600 = vrot.lane.b32.xlu0 %v3818_v34, %s5447_s4 }
 0x7ae   : > { %v6498_v41 = vadd.f32 %v2294_v29, %v2203_v37 }
 0x7af   : > { %v6501_v44 = vpop.permute.xlu0 %2197 }
 0x7b3   : > { %v1595_v8 = vpop.permute.xlu0 %1594 }
 0x7b5   : > { %v1452_v42 = vpop.xlane.xlu1 %1451 }
 0x7b6   : > { %v1463_v51 = vadd.f32 %v6448_v10, %v1452_v42 }
 0x7b8   : > { %v3805_v32 = vmul.f32 -1.442695, %v1463_v51 }
 0x7ba   : > { %4676 = vpow2.f32 %v3805_v32 }
 0x7c4   : > { %v4677_v63 = vpop.eup %4676 }
 0x7c5   : > { %v1532_v1 = vadd.f32 1.0, %v4677_v63  ;;  %v3914_v63 = vld [vmem:[#allocation13 + $0x28] sm:$0xff]  }
 0x7c7   : > { %4678 = vrcp.f32 %v1532_v1  ;;  %v3915_v1 = vunpack.c.l.bf16 %v3914_v63 }
 0x7c8   : > { %4680 = vpow2.f32 %v3804_v39 }
 0x7d1   : > { %v4679_v58 = vpop.eup %4678 }
 0x7d2   : > { %v1608_v3 = vmul.f32 %v4679_v58, %v1595_v8  ;;  %v4681_v26 = vpop.eup %4680  ;;  %v3919_v58 = vunpack.c.l.bf16 %v6490_v17 }
 0x7d3   : > { %v1531_v31 = vadd.f32 1.0, %v4681_v26 }
 0x7d4   : > { %v1613_v46 = vadd.f32 2.0, %v1608_v3  ;;  %v6510_v3 = vld [vmem:[#allocation13 + $0x14] ss:$36 sps:$4 sm:$0xff]  }
 0x7d5   : > { %v2174_v39 = vunpack.c.h.bf16 %v6510_v3 }
 0x7d6   : > { %1635 = vperm.xlu1 %4546, %v1613_v46   ;;  %v2202_v46 = vmul.f32 %v3919_v58, %v6492_v47  ;;  %v1623_v58 = vunpack.c.l.bf16 %v6510_v3 }
 0x7d9   : > { %v1455_v49 = vpop.xlane.xlu1 %1454 }
 0x7da   : > { %v1464_v13 = vadd.f32 %v6448_v10, %v1455_v49 }
 0x7dc   : > { %v3806_v16 = vmul.f32 -1.442695, %v1464_v13 }
 0x7de   : > { %4682 = vpow2.f32 %v3806_v16  ;;  %v2293_v16 = vmul.f32 0.35355338, %v6458_v24 }
 0x7df   : > { %4684 = vrcp.f32 %v1531_v31 }
 0x7e8   : > { %v4683_v52 = vpop.eup %4682 }
 0x7e9   : > { %v1533_v36 = vadd.f32 1.0, %v4683_v52  ;;  %v4685_v35 = vpop.eup %4684  ;;  %v2204_v52 = vmul.f32 %v6501_v44, %v2174_v39 }
 0x7ea   : > { %v1458_v7 = vpop.xlane.xlu1 %1457 }
 0x7eb   : > { %v1465_v33 = vadd.f32 %v6448_v10, %v1458_v7  ;;  %v6521_v7 = vadd.f32 %v2293_v16, %v2202_v46 }
 0x7ed   : > { %v3807_v54 = vmul.f32 -1.442695, %v1465_v33  ;;  %v2307_v47 = vsel %vm1201_vm6, %v6521_v7, -inf }
 0x7ee   : > { %v1461_v56 = vpop.xlane.xlu1 %1460 }
 0x7ef   : > { %4686 = vpow2.f32 %v3807_v54  ;;  %v1466_v22 = vadd.f32 %v6448_v10, %v1461_v56  ;;  %v4834_v56 = vld [vmem:[#allocation8] ss:$0 sm:$0xff] }
 0x7f0   : > { %4688 = vrcp.f32 %v1533_v36  ;;  %v6526_v36 = vadd.f32 %v2295_v15, %v2204_v52 }
 0x7f1   : > { %v3808_v5 = vmul.f32 -1.442695, %v1466_v22 }
 0x7f2   : > { %v2178_v62 = vpop.permute.xlu1 %2177  ;;  %v2313_v24 = vsel %vm1214_vm7, %v6526_v36, -inf }
 0x7f3   : > { %v2200_v8 = vmul.f32 %v3915_v1, %v2178_v62 }
 0x7f5   : > { %v6515_v49 = vadd.f32 %v2291_v38, %v2200_v8  ;;  %v3931_v8 = vld [vmem:[#allocation13 + $0x20] sm:$0xff]  }
 0x7f6   : > { %v1593_v45 = vpop.permute.xlu1 %1592  ;;  %v3911_v39 = vunpack.c.l.bf16 %v3931_v8 }
 0x7f7   : > { %v1607_v40 = vmul.f32 %v4685_v35, %v1593_v45  ;;  %v2301_v17 = vsel %vm1201_vm6, %v6515_v49, -inf  ;;  %v3930_v45 = vld [vmem:[#allocation13 + $0x18] sm:$0xff]  }
 0x7f9   : > { %v4687_v27 = vpop.eup %4686  ;;  %v1612_v6 = vadd.f32 2.0, %v1607_v40  ;;  %v3907_v40 = vunpack.c.l.bf16 %v3930_v45 }
 0x7fa   : > { %v4689_v14 = vpop.eup %4688  ;;  %v1534_v61 = vadd.f32 1.0, %v4687_v27  ;;  %v1597_v60 = vpop.permute.xlu1 %1596 }
 0x7fb   : > { %v1609_v53 = vmul.f32 %v4689_v14, %v1597_v60  ;;  %1630 = vperm.xlu0 %4547, %v1612_v6   ;;  %v1745_v14 = vmul.f32 0.35355338, %v6430_v4  ;;  %v3916_v60 = vunpack.c.h.bf16 %v3914_v63  ;;  %v2310_v4 = vsel %vm1201_vm6, %v6498_v41, -inf }
 0x7fc   : > { %4690 = vrcp.f32 %v1534_v61 }
 0x7fd   : > { %v1614_v23 = vadd.f32 2.0, %v1609_v53  ;;  %4692 = vpow2.f32 %v3808_v5  ;;  %v2201_v22 = vmul.f32 %v3916_v60, %v6488_v28  ;;  %v1746_v28 = vmul.f32 0.35355338, %v6434_v21 }
 0x7fe   : > { %v1599_v29 = vpop.permute.xlu1 %1598 }
 0x7ff   : > { %1640 = vperm.xlu0 %4547, %v1614_v23   ;;  %v2292_v23 = vmul.f32 0.35355338, %v6455_v12 }
 0x801   : > { %v6554_v5 = vadd.f32 %v2292_v23, %v2201_v22 }
 0x802   : > { %v2561_v44 = vpop.permute.xlu1 %2560 }
 0x803   : > { %2359 = vrot.lane.b32.xlu0 %v6080_v18, %s5455_s25  ;;  %v2563_v43 = vmul.f32 %v6391_v2, %v2561_v44  ;;  %v2564_v54 = vmul.f32 %v6396_v57, %v2561_v44  ;;  %v2566_v62 = vmul.f32 %v6413_v55, %v2561_v44  ;;  %v2565_v35 = vmul.f32 %v6403_v19, %v2561_v44 }
 0x804   : > { %v2567_v1 = vmul.f32 %v6408_v48, %v2561_v44 }
 0x806   : > { %v4691_v34 = vpop.eup %4690 }
 0x807   : > { %v1610_v37 = vmul.f32 %v4691_v34, %v1599_v29  ;;  %v4693_v51 = vpop.eup %4692  ;;  %v2304_v34 = vsel %vm1201_vm6, %v6554_v5, -inf }
 0x808   : > { %v1535_v32 = vadd.f32 1.0, %v4693_v51 }
 0x809   : > { %v1615_v42 = vadd.f32 2.0, %v1610_v37  ;;  %v3908_v37 = vunpack.c.h.bf16 %v3930_v45 }
 0x80a   : > { %4694 = vrcp.f32 %v1535_v32 }
 0x80b   : > { %1645 = vperm.xlu1 %4546, %v1615_v42  }
 0x814   : > { %v4695_v13 = vpop.eup %4694 }
 0x81f   : > { %v1601_v26 = vpop.permute.xlu0 %1600 }
 0x820   : > { %v1611_v31 = vmul.f32 %v4695_v13, %v1601_v26  ;;  %v1744_v13 = vmul.f32 0.35355338, %v6428_v20  ;;  %v1748_v20 = vmul.f32 0.35355338, %v6444_v50 }
 0x822   : > { %v1616_v33 = vadd.f32 2.0, %v1611_v31  ;;  %2302 = vmax.xlane.f32.xlu0 %v2301_v17  ;;  %v3912_v31 = vunpack.c.h.bf16 %v3931_v8  ;;  %v1747_v17 = vmul.f32 0.35355338, %v6436_v9 }
 0x824   : > { %1650 = vperm.xlu1 %4546, %v1616_v33  }
 0x826   : > { %2308 = vmax.xlane.f32.xlu0 %v2307_v47 }
 0x828   : > { %2361 = vrot.lane.b32.xlu1 %v6083_v25, %s5455_s25 }
 0x82a   : > { %2314 = vmax.xlane.f32.xlu0 %v2313_v24 }
 0x82c   : > { %2363 = vrot.lane.b32.xlu1 %v6086_v30, %s5455_s25  ;;  %s7072_s25 = sld [smem:[#allocation52_spill]] }
 0x830   : > { %2758 = vrot.lane.b32.xlu1 %v6080_v18, %s5456_s16 }
 0x834   : > { %2573 = vrot.lane.b32.xlu1 %v2563_v43, %s5457_s30 }
 0x838   : > { %2575 = vrot.lane.b32.xlu1 %v2564_v54, %s5457_s30 }
 0x83c   : > { %2512 = vrot.lane.b32.xlu1 %v4834_v56, %s5454_s20 }
 0x840   : > { %2760 = vrot.lane.b32.xlu1 %v6083_v25, %s5456_s16  ;;  %2579 = vrot.lane.b32.xlu0 %v2566_v62, %s5457_s30 }
 0x844   : > { %2577 = vrot.lane.b32.xlu1 %v2565_v35, %s5457_s30 }
 0x855   : > { %v1636_v27 = vpop.permute.xlu1 %1635 }
 0x856   : > { %v1654_v6 = vmul.f32 %v3907_v40, %v1636_v27 }
 0x858   : > { %v6548_v61 = vadd.f32 %v1745_v14, %v1654_v6 }
 0x85a   : > { %v1757_v53 = vsel %vm1201_vm6, %v6548_v61, -inf }
 0x85f   : > { %1758 = vmax.xlane.f32.xlu0 %v1757_v53 }
 0x868   : > { %2305 = vmax.xlane.f32.xlu1 %v2304_v34 }
 0x86c   : > { %2311 = vmax.xlane.f32.xlu1 %v2310_v4 }
 0x87a   : > { %v1631_v29 = vpop.permute.xlu0 %1630 }
 0x87b   : > { %v1653_v46 = vmul.f32 %v1631_v29, %v1623_v58 }
 0x87d   : > { %2762 = vrot.lane.b32.xlu1 %v6086_v30, %s5456_s16  ;;  %v6576_v52 = vadd.f32 %v1744_v13, %v1653_v46  ;;  %s7073_s16 = smov %s7072_s25 }
 0x87e   : > { %v1641_v42 = vpop.permute.xlu0 %1640 }
 0x87f   : > { %v1655_v51 = vmul.f32 %v3908_v37, %v1641_v42  ;;  %v1754_v24 = vsel %vm1201_vm6, %v6576_v52, -inf }
 0x881   : > { %2752 = vrot.lane.b32.xlu1 %v6080_v18, %s5457_s30  ;;  %v6565_v12 = vadd.f32 %v1746_v28, %v1655_v51 }
 0x882   : > { %v2360_v32 = vpop.permute.xlu0 %2359 }
 0x883   : > { %4151 = vmatpush3.bf16.msra.mxu0 %v2360_v32  ;;  %v1760_v63 = vsel %vm1201_vm6, %v6565_v12, -inf }
 0x884   : > { %1761 = vmax.xlane.f32.xlu0 %v1760_v63  ;;  %4152 = vmatprep.subr.bf16.mxu0 %v5440_v0 }
 0x885   : > { %2581 = vrot.lane.b32.xlu1 %v2567_v1, %s5457_s30 }
 0x889   : > { %2754 = vrot.lane.b32.xlu1 %v6083_v25, %s5457_s30 }
 0x88a   : > { %v1646_v21 = vpop.permute.xlu1 %1645 }
 0x88b   : > { %v1656_v26 = vmul.f32 %v3911_v39, %v1646_v21 }
 0x88d   : > { %v6580_v15 = vadd.f32 %v1747_v17, %v1656_v26 }
 0x88f   : > { %v1763_v56 = vsel %vm1201_vm6, %v6580_v15, -inf }
 0x8a3   : > { %v1651_v38 = vpop.permute.xlu1 %1650 }
 0x8a4   : > { %v1657_v3 = vmul.f32 %v3912_v31, %v1651_v38 }
 0x8a6   : > { %v6589_v54 = vadd.f32 %v1748_v20, %v1657_v3 }
 0x8a7   : > { %v2362_v16 = vpop.permute.xlu1 %2361 }
 0x8a8   : > { %4153 = vmatpush3.bf16.msra.mxu0 %v2362_v16  ;;  %v1766_v50 = vsel %vm1214_vm7, %v6589_v54, -inf }
 0x8a9   : > { %4154 = vmatprep.subr.bf16.mxu0 %v5440_v0 }
 0x8ab   : > { %v2364_v33 = vpop.permute.xlu1 %2363 }
 0x8ac   : > { %v2377_v47 = vand.u32 %v2364_v33, %v6173_v59 }
 0x8ad   : > { %1755 = vmax.xlane.f32.xlu1 %v1754_v24 }
 0x8ae   : > { %4155 = vmatpush3.bf16.msra.mxu0 %v2377_v47 }
 0x8af   : > { %v6586_v44 = vpop.permute.xlu1 %2758  ;;  %v2303_v43 = vpop.xlane.xlu0 %2302  ;;  %4182 = vmatprep.subr.bf16.mxu0 %v5440_v0 }
 0x8b0   : > { %v2316_v9 = vsub.f32 %v6515_v49, %v2303_v43 }
 0x8b1   : > { %1764 = vmax.xlane.f32.xlu1 %v1763_v56 }
 0x8b2   : > { %v2321_v62 = vmul.f32 1.442695, %v2316_v9 }
 0x8b3   : > { %v2574_v35 = vpop.permute.xlu1 %2573  ;;  %v2309_v14 = vpop.xlane.xlu0 %2308 }
 0x8b4   : > { %4696 = vpow2.f32 %v2321_v62  ;;  %v2588_v45 = vsel %vm897_vm2, %v2574_v35, 0.0  ;;  %v2318_v60 = vsub.f32 %v6521_v7, %v2309_v14 }
 0x8b5   : > { %1767 = vmax.xlane.f32.xlu1 %v1766_v50 }
 0x8b6   : > { %v2325_v22 = vmul.f32 1.442695, %v2318_v60 }
 0x8b7   : > { %v2576_v40 = vpop.permute.xlu1 %2575  ;;  %v2315_v53 = vpop.xlane.xlu0 %2314 }
 0x8b8   : > { %v2591_v27 = vsel %vm897_vm2, %v2576_v40, 0.0  ;;  %v2320_v23 = vsub.f32 %v6526_v36, %v2315_v53  ;;  %4698 = vpow2.f32 %v2325_v22 }
 0x8b9   : > { %2589 = vadd.xlane.f32.xlu1 %v2588_v45 }
 0x8ba   : > { %v2329_v34 = vmul.f32 1.442695, %v2320_v23 }
 0x8bb   : > { %v2513_v4 = vpop.permute.xlu1 %2512  ;;  %v2580_v16 = vpop.permute.xlu0 %2579 }
 0x8bc   : > { %4700 = vpow2.f32 %v2329_v34  ;;  %v2516_v39 = vmul.f32 %v6396_v57, %v2513_v4  ;;  %v2597_v26 = vsel %vm897_vm2, %v2580_v16, 0.0  ;;  %v2517_v31 = vmul.f32 %v6403_v19, %v2513_v4 }
 0x8bd   : > { %2592 = vadd.xlane.f32.xlu1 %v2591_v27  ;;  %v2518_v33 = vmul.f32 %v6413_v55, %v2513_v4  ;;  %v2519_v3 = vmul.f32 %v6408_v48, %v2513_v4 }
 0x8be   : > { %v6598_v6 = vpop.eup %4696 }
 0x8bf   : > { %v2331_v49 = vsel %vm1201_vm6, %v6598_v6, 0.0  ;;  %v6606_v29 = vpop.permute.xlu1 %2760 }
 0x8c0   : > { %2332 = vadd.xlane.f32.xlu0 %v2331_v49 }
 0x8c2   : > { %v6608_v37 = vpop.eup %4698 }
 0x8c3   : > { %v2578_v42 = vpop.permute.xlu1 %2577  ;;  %v2337_v28 = vsel %vm1201_vm6, %v6608_v37, 0.0 }
 0x8c4   : > { %v2594_v13 = vsel %vm897_vm2, %v2578_v42, 0.0 }
 0x8c6   : > { %v6612_v51 = vpop.eup %4700 }
 0x8c7   : > { %v2343_v36 = vsel %vm1214_vm7, %v6612_v51, 0.0 }
 0x8d6   : > { %2756 = vrot.lane.b32.xlu0 %v6086_v30, %s5457_s30 }
 0x8ec   : > { %v1759_v57 = vpop.xlane.xlu0 %1758 }
 0x8f5   : > { %v2306_v32 = vpop.xlane.xlu1 %2305  ;;  %2338 = vadd.xlane.f32.xlu0 %v2337_v28 }
 0x8f6   : > { %v2317_v7 = vsub.f32 %v6554_v5, %v2306_v32 }
 0x8f8   : > { %v2323_v63 = vmul.f32 1.442695, %v2317_v7 }
 0x8f9   : > { %v2312_v1 = vpop.xlane.xlu1 %2311  ;;  %2344 = vadd.xlane.f32.xlu0 %v2343_v36 }
 0x8fa   : > { %4702 = vpow2.f32 %v2323_v63  ;;  %v2319_v21 = vsub.f32 %v6498_v41, %v2312_v1  ;;  %v2515_v41 = vmul.f32 %v6391_v2, %v2513_v4  ;;  %v1770_v2 = vsub.f32 %v6548_v61, %v1759_v57 }
 0x8fc   : > { %v2327_v58 = vmul.f32 1.442695, %v2319_v21  ;;  %v1776_v24 = vmul.f32 1.442695, %v1770_v2 }
 0x8fd   : > { %v6634_v17 = vpop.permute.xlu1 %2762 }
 0x8fe   : > { %4704 = vpow2.f32 %v2327_v58 }
 0x8ff   : > { %4706 = vpow2.f32 %v1776_v24 }
 0x901   : > { %v6640_v47 = vpop.permute.xlu1 %2752 }
 0x904   : > { %v6618_v8 = vpop.eup %4702 }
 0x905   : > { %v2334_v38 = vsel %vm1201_vm6, %v6618_v8, 0.0  ;;  %v2582_v19 = vpop.permute.xlu1 %2581 }
 0x906   : > { %2335 = vadd.xlane.f32.xlu1 %v2334_v38  ;;  %v2600_v55 = vsel %vm910_vm3, %v2582_v19, 0.0 }
 0x908   : > { %v6622_v46 = vpop.eup %4704 }
 0x909   : > { %v2340_v5 = vsel %vm1201_vm6, %v6622_v46, 0.0  ;;  %v6644_v20 = vpop.permute.xlu1 %2754  ;;  %v6647_v43 = vpop.eup %4706 }
 0x90a   : > { %2341 = vadd.xlane.f32.xlu1 %v2340_v5  ;;  %v1787_v61 = vsel %vm1201_vm6, %v6647_v43, 0.0  ;;  %v2774_v5 = vsel %vm897_vm2, %v6586_v44, 0 }
 0x90f   : > { %2527 = vrot.lane.b32.xlu0 %v2516_v39, %s5457_s30 }
 0x911   : > { %v1762_v50 = vpop.xlane.xlu0 %1761 }
 0x91b   : > { %2525 = vrot.lane.b32.xlu1 %v2515_v41, %s5457_s30 }
 0x92e   : > { %2595 = vadd.xlane.f32.xlu0 %v2594_v13 }
 0x93a   : > { %v1756_v9 = vpop.xlane.xlu1 %1755 }
 0x93b   : > { %v1769_v48 = vsub.f32 %v6576_v52, %v1756_v9  ;;  %v1771_v52 = vsub.f32 %v6565_v12, %v1762_v50 }
 0x93d   : > { %v1774_v56 = vmul.f32 1.442695, %v1769_v48  ;;  %v1778_v53 = vmul.f32 1.442695, %v1771_v52 }
 0x93e   : > { %v1765_v35 = vpop.xlane.xlu1 %1764 }
 0x93f   : > { %2598 = vadd.xlane.f32.xlu1 %v2597_v26  ;;  %4708 = vpow2.f32 %v1774_v56  ;;  %v1772_v22 = vsub.f32 %v6580_v15, %v1765_v35 }
 0x941   : > { %v1780_v34 = vmul.f32 1.442695, %v1772_v22 }
 0x942   : > { %v1768_v45 = vpop.xlane.xlu1 %1767 }
 0x944   : > { %2529 = vrot.lane.b32.xlu0 %v2517_v31, %s5457_s30  ;;  %v2777_v31 = vsel %vm897_vm2, %v6606_v29, 0 }
 0x946   : > { %v6656_v27 = vpop.xlane.xlu1 %2589 }
 0x949   : > { %v6652_v62 = vpop.eup %4708 }
 0x94a   : > { %v6661_v14 = vpop.xlane.xlu1 %2592 }
 0x94b   : > { %v2604_v19 = vadd.f32 %v6448_v10, %v6661_v14 }
 0x94d   : > { %v2333_v40 = vpop.xlane.xlu0 %2332  ;;  %v3858_v9 = vmul.f32 -1.442695, %v2604_v19 }
 0x94e   : > { %4710 = vrcp.f32 %v2333_v40 }
 0x950   : > { %2531 = vrot.lane.b32.xlu1 %v2518_v33, %s5457_s30  ;;  %v2780_v33 = vsel %vm897_vm2, %v6634_v17, 0 }
 0x951   : > { %v6658_v49 = vpop.permute.xlu0 %2756 }
 0x954   : > { %2533 = vrot.lane.b32.xlu1 %v2519_v3, %s5457_s30  ;;  %v2603_v3 = vadd.f32 %v6448_v10, %v6656_v27  ;;  %s6931_s30 = scalar_lea.hbm %s7072_s25, %s4312_s18 }
 0x958   : > { %2668 = vrot.lane.b32.xlu1 %v6467_v11, %s5458_s2  ;;  %v1784_v11 = vsel %vm1201_vm6, %v6652_v62, 0.0  ;;  %v4711_v32 = vpop.eup %4710  ;;  %s3494_s2 = scalar_lea.sflag [#allocation4], %s5998_s26 }
 0x959   : > { %v2351_v36 = vmul.f32 %v4711_v32, %v6598_v6 }
 0x963   : > { %2601 = vadd.xlane.f32.xlu0 %v2600_v55 }
 0x967   : > { %1788 = vadd.xlane.f32.xlu0 %v1787_v61 }
 0x97c   : > { %1785 = vadd.xlane.f32.xlu1 %v1784_v11 }
 0x982   : > { %v2339_v60 = vpop.xlane.xlu0 %2338 }
 0x986   : > { %v2345_v4 = vpop.xlane.xlu0 %2344 }
 0x98a   : > { %v2528_v7 = vpop.permute.xlu0 %2527 }
 0x98b   : > { %v2543_v1 = vsel %vm897_vm2, %v2528_v7, 0.0 }
 0x993   : > { %v2336_v23 = vpop.xlane.xlu1 %2335 }
 0x994   : > { %4712 = vrcp.f32 %v2336_v23 }
 0x995   : > { %4714 = vpow2.f32 %v1778_v53 }
 0x997   : > { %v2342_v42 = vpop.xlane.xlu1 %2341 }
 0x998   : > { %4716 = vrcp.f32 %v2342_v42 }
 0x999   : > { %4718 = vrcp.f32 %v2339_v60 }
 0x99a   : > { %4720 = vpow2.f32 %v1780_v34 }
 0x99b   : > { %v2526_v28 = vpop.permute.xlu1 %2525  ;;  %4722 = vrcp.f32 %v2345_v4 }
 0x99c   : > { %v2540_v12 = vsel %vm897_vm2, %v2526_v28, 0.0 }
 0x99d   : > { %2541 = vadd.xlane.f32.xlu0 %v2540_v12 }
 0x99e   : > { %v4713_v63 = vpop.eup %4712 }
 0x99f   : > { %v2352_v15 = vmul.f32 %v4713_v63, %v6618_v8  ;;  %v6668_v21 = vpop.eup %4714 }
 0x9a0   : > { %v1790_v6 = vsel %vm1201_vm6, %v6668_v21, 0.0 }
 0x9a1   : > { %v2356_v58 = vpack.c.bf16 %v2352_v15, %v2351_v36  ;;  %2544 = vadd.xlane.f32.xlu0 %v2543_v1 }
 0x9a2   : > { %v4717_v38 = vpop.eup %4716 }
 0x9a3   : > { %4157 = vmatmul.mubr.msk.bf16.vlgmr.msra.gmra.mrb[48].mxu0 %vm1201_vm6, %v2356_v58  ;;  %v4719_v39 = vpop.eup %4718  ;;  %v2354_v41 = vmul.f32 %v4717_v38, %v6622_v46 }
 0x9a4   : > { %4183 = vmatpush3.bf16.xpose.msra.mxu0 %v2774_v5  ;;  %4160 = vmatprep.mubr.msk.bf16.mxu0 %vm5441_vm0, %v5440_v0  ;;  %v6677_v8 = vpop.eup %4720  ;;  %v2353_v13 = vmul.f32 %v4719_v39, %v6608_v37  ;;  %v1773_v37 = vsub.f32 %v6589_v54, %v1768_v45 }
 0x9a5   : > { %1791 = vadd.xlane.f32.xlu0 %v1790_v6  ;;  %4184 = vmatprep.subr.bf16.mxu0 %v5440_v0  ;;  %v1793_v44 = vsel %vm1201_vm6, %v6677_v8, 0.0  ;;  %v4723_v26 = vpop.eup %4722 }
 0x9a6   : > { %v2357_v16 = vpack.c.bf16 %v2354_v41, %v2353_v13  ;;  %v2355_v46 = vmul.f32 %v4723_v26, %v6612_v51  ;;  %v1782_v2 = vmul.f32 1.442695, %v1773_v37 }
 0x9a8   : > { %v2358_v57 = vpack.c.bf16 %v2355_v46, %v2355_v46  ;;  %4724 = vpow2.f32 %v1782_v2 }
 0x9a9   : > { %1794 = vadd.xlane.f32.xlu0 %v1793_v44 }
 0x9ab   : > { %4161 = vmatmul.mubr.msk.bf16.gmra.mrb[52].mxu0 %vm1201_vm6, %v2357_v16 }
 0x9ac   : > { %4185 = vmatpush3.bf16.xpose.msra.mxu0 %v2777_v31  ;;  %4164 = vmatprep.mubr.msk.bf16.mxu0 %vm5441_vm0, %v5440_v0  ;;  %v6732_v31 = vld [vmem:[#allocation10] ss:$0 sm:$0xff] }
 0x9ad   : > { %4186 = vmatprep.subr.bf16.mxu0 %v5440_v0 }
 0x9b2   : > { %v6703_v17 = vpop.eup %4724 }
 0x9b3   : > { %4165 = vmatmul.mubr.msk.bf16.gmra.mrb[56].mxu0 %vm1201_vm6, %v2358_v57  ;;  %v1796_v24 = vsel %vm1214_vm7, %v6703_v17, 0.0 }
 0x9b4   : > { %4187 = vmatpush3.bf16.xpose.msra.mxu0 %v2780_v33  ;;  %4188 = vmatprep.mubr.msk.bf16.mxu0 %vm5441_vm0, %v5440_v0 }
 0x9b5   : > { %4232 = vmatprep.subr.bf16.mxu0 %v5440_v0 }
 0x9bb   : > { %4189 = vmatmul.mubr.msk.bf16.vlgmr.msra.gmra.mrb[60].mxu0 %vm897_vm2, %v6640_v47  ;;  %v2596_v29 = vpop.xlane.xlu0 %2595  ;;  %v3857_v47 = vmul.f32 -1.442695, %v2603_v3 }
 0x9bc   : > { %4192 = vmatprep.mubr.msk.bf16.mxu0 %vm5441_vm0, %v5440_v0  ;;  %v2605_v55 = vadd.f32 %v6448_v10, %v2596_v29 }
 0x9bd   : > { %4726 = vpow2.f32 %v3857_v47 }
 0x9be   : > { %v3859_v48 = vmul.f32 -1.442695, %v2605_v55  ;;  %4728 = vpow2.f32 %v3858_v9 }
 0x9bf   : > { %v2530_v54 = vpop.permute.xlu0 %2529 }
 0x9c0   : > { %v2546_v51 = vsel %vm897_vm2, %v2530_v54, 0.0  ;;  %4730 = vpow2.f32 %v3859_v48 }
 0x9c1   : > { %2547 = vadd.xlane.f32.xlu1 %v2546_v51 }
 0x9c3   : > { %4193 = vmatmul.mubr.msk.bf16.gmra.mrb[64].mxu0 %vm897_vm2, %v6644_v20 }
 0x9c4   : > { %4196 = vmatprep.mubr.msk.bf16.mxu0 %vm5441_vm0, %v5440_v0 }
 0x9c5   : > { %1797 = vadd.xlane.f32.xlu1 %v1796_v24 }
 0x9c7   : > { %v4727_v50 = vpop.eup %4726 }
 0x9c8   : > { %v2653_v45 = vadd.f32 1.0, %v4727_v50  ;;  %v4729_v40 = vpop.eup %4728 }
 0x9ca   : > { %v4731_v27 = vpop.eup %4730 }
 0x9cb   : > { %4197 = vmatmul.mubr.msk.bf16.gmra.mrb[68].mxu0 %vm897_vm2, %v6658_v49  ;;  %v2654_v49 = vadd.f32 1.0, %v4729_v40  ;;  %v2655_v52 = vadd.f32 1.0, %v4731_v27 }
 0x9cc   : > { %v2599_v20 = vpop.xlane.xlu1 %2598  ;;  %4236 = vmatprep.mubr.msk.bf16.mxu0 %vm5441_vm0, %v5440_v0 }
 0x9cd   : > { %v2606_v61 = vadd.f32 %v6448_v10, %v2599_v20 }
 0x9cf   : > { %v3860_v56 = vmul.f32 -1.442695, %v2606_v61 }
 0x9d0   : > { %v2532_v11 = vpop.permute.xlu1 %2531 }
 0x9d1   : > { %v2549_v35 = vsel %vm897_vm2, %v2532_v11, 0.0  ;;  %4732 = vpow2.f32 %v3860_v56 }
 0x9d2   : > { %2550 = vadd.xlane.f32.xlu0 %v2549_v35  ;;  %4734 = vrcp.f32 %v2653_v45 }
 0x9d3   : > { %4736 = vrcp.f32 %v2654_v49 }
 0x9d4   : > { %v2534_v14 = vpop.permute.xlu1 %2533  ;;  %4738 = vrcp.f32 %v2655_v52 }
 0x9d5   : > { %v2552_v39 = vsel %vm910_vm3, %v2534_v14, 0.0 }
 0x9d6   : > { %1814 = vrot.lane.b32.xlu1 %v6083_v25, %s5459_s29 }
 0x9d8   : > { %v2669_v22 = vpop.permute.xlu1 %2668 }
 0x9da   : > { %1816 = vrot.lane.b32.xlu1 %v6086_v30, %s5459_s29 }
 0x9db   : > { %v4733_v60 = vpop.eup %4732 }
 0x9dc   : > { %v2656_v53 = vadd.f32 1.0, %v4733_v60  ;;  %v4735_v23 = vpop.eup %4734 }
 0x9dd   : > { %v2671_v34 = vmul.f32 %v4735_v23, %v2669_v22  ;;  %v4737_v4 = vpop.eup %4736 }
 0x9de   : > { %4740 = vrcp.f32 %v2656_v53  ;;  %v2672_v28 = vmul.f32 %v4737_v4, %v2669_v22  ;;  %v4739_v32 = vpop.eup %4738 }
 0x9df   : > { %v3862_v42 = vadd.f32 -1.0, %v2671_v34  ;;  %v2673_v7 = vmul.f32 %v4739_v32, %v2669_v22 }
 0x9e0   : > { %v3863_v12 = vadd.f32 -1.0, %v2672_v28 }
 0x9e1   : > { %v3864_v1 = vadd.f32 -1.0, %v2673_v7 }
 0x9e8   : > { %1812 = vrot.lane.b32.xlu0 %v6080_v18, %s5459_s29  ;;  %v4741_v63 = vpop.eup %4740  ;;  %s5461_s29 = smov [#allocation29]  }
 0x9e9   : > { %v2674_v58 = vmul.f32 %v4741_v63, %v2669_v22 }
 0x9eb   : > { %v3865_v5 = vadd.f32 -1.0, %v2674_v58 }
 0x9ec   : > { %2686 = vrot.lane.b32.xlu0 %v3862_v42, %s5447_s4 }
 0x9f0   : > { %2688 = vrot.lane.b32.xlu0 %v3863_v12, %s5447_s4  ;;  %v2602_v36 = vpop.xlane.xlu0 %2601 }
 0x9f1   : > { %v2607_v15 = vadd.f32 %v6448_v10, %v2602_v36 }
 0x9f3   : > { %v3861_v38 = vmul.f32 -1.442695, %v2607_v15 }
 0x9f4   : > { %2690 = vrot.lane.b32.xlu0 %v3864_v1, %s5447_s4  ;;  %v1789_v10 = vpop.xlane.xlu0 %1788 }
 0x9f5   : > { %4742 = vpow2.f32 %v3861_v38 }
 0x9f8   : > { %2692 = vrot.lane.b32.xlu0 %v3865_v5, %s5447_s4 }
 0x9fe   : > { %2553 = vadd.xlane.f32.xlu1 %v2552_v39 }
 0x9ff   : > { %v4743_v6 = vpop.eup %4742 }
 0xa00   : > { %v2657_v41 = vadd.f32 1.0, %v4743_v6 }
 0xa02   : > { %4744 = vrcp.f32 %v2657_v41 }
 0xa09   : > { %v1786_v2 = vpop.xlane.xlu1 %1785 }
 0xa0c   : > { %v4745_v13 = vpop.eup %4744 }
 0xa0d   : > { %v2675_v44 = vmul.f32 %v4745_v13, %v2669_v22 }
 0xa0f   : > { %v3866_v16 = vadd.f32 -1.0, %v2675_v44 }
 0xa11   : > { %2694 = vrot.lane.b32.xlu0 %v3866_v16, %s5447_s4  ;;  %s5460_s4 = smov 40  }
 0xa2a   : > { %v2542_v26 = vpop.xlane.xlu0 %2541 }
 0xa2b   : > { %v2555_v46 = vadd.f32 %v6732_v31, %v2542_v26 }
 0xa2d   : > { %v3852_v57 = vmul.f32 -1.442695, %v2555_v46 }
 0xa2e   : > { %v2545_v37 = vpop.xlane.xlu0 %2544 }
 0xa2f   : > { %v2556_v33 = vadd.f32 %v6732_v31, %v2545_v37  ;;  %4746 = vpow2.f32 %v3852_v57 }
 0xa31   : > { %v3853_v29 = vmul.f32 -1.442695, %v2556_v33 }
 0xa32   : > { %v1792_v24 = vpop.xlane.xlu0 %1791 }
 0xa33   : > { %4748 = vpow2.f32 %v3853_v29 }
 0xa36   : > { %v1795_v9 = vpop.xlane.xlu0 %1794 }
 0xa39   : > { %v4747_v47 = vpop.eup %4746 }
 0xa3a   : > { %v2623_v19 = vadd.f32 1.0, %v4747_v47 }
 0xa3d   : > { %v4749_v55 = vpop.eup %4748 }
 0xa3e   : > { %v2624_v20 = vadd.f32 1.0, %v4749_v55 }
 0xa4e   : > { %v2548_v54 = vpop.xlane.xlu1 %2547 }
 0xa4f   : > { %v2557_v51 = vadd.f32 %v6732_v31, %v2548_v54 }
 0xa51   : > { %v3854_v3 = vmul.f32 -1.442695, %v2557_v51 }
 0xa52   : > { %v1798_v48 = vpop.xlane.xlu1 %1797 }
 0xa53   : > { %4750 = vpow2.f32 %v3854_v3 }
 0xa54   : > { %4752 = vrcp.f32 %v1786_v2 }
 0xa55   : > { %4754 = vrcp.f32 %v2623_v19 }
 0xa56   : > { %4756 = vrcp.f32 %v1789_v10  ;;  %v1815_v50 = vpop.permute.xlu1 %1814 }
 0xa57   : > { %4758 = vrcp.f32 %v2624_v20 }
 0xa58   : > { %4760 = vrcp.f32 %v1795_v9 }
 0xa5a   : > { %v1817_v52 = vpop.permute.xlu1 %1816 }
 0xa5b   : > { %v1830_v23 = vand.u32 %v1817_v52, %v6173_v59 }
 0xa5d   : > { %v4751_v61 = vpop.eup %4750 }
 0xa5e   : > { %v2625_v35 = vadd.f32 1.0, %v4751_v61  ;;  %v4753_v27 = vpop.eup %4752 }
 0xa5f   : > { %v2551_v56 = vpop.xlane.xlu0 %2550  ;;  %v4755_v49 = vpop.eup %4754  ;;  %v1804_v22 = vmul.f32 %v4753_v27, %v6652_v62 }
 0xa60   : > { %v2558_v11 = vadd.f32 %v6732_v31, %v2551_v56  ;;  %v4757_v60 = vpop.eup %4756 }
 0xa61   : > { %v4759_v4 = vpop.eup %4758  ;;  %v1805_v42 = vmul.f32 %v4757_v60, %v6647_v43 }
 0xa62   : > { %v3855_v45 = vmul.f32 -1.442695, %v2558_v11  ;;  %v4761_v12 = vpop.eup %4760 }
 0xa63   : > { %v1813_v40 = vpop.permute.xlu0 %1812  ;;  %v1809_v7 = vpack.c.bf16 %v1805_v42, %v1804_v22  ;;  %v1807_v43 = vmul.f32 %v4761_v12, %v6677_v8  ;;  %v3933_v12 = vld [vmem:[#allocation13 + $0x40] sm:$0xff]  }
 0xa64   : > { %4762 = vpow2.f32 %v3855_v45  ;;  %4101 = vmatpush3.bf16.msra.mxu1 %v1813_v40 }
 0xa65   : > { %4764 = vrcp.f32 %v2625_v35  ;;  %4102 = vmatprep.subr.bf16.mxu1 %v5440_v0 }
 0xa66   : > { %4766 = vrcp.f32 %v1792_v24 }
 0xa67   : > { %v2687_v14 = vpop.permute.xlu0 %2686  ;;  %4768 = vrcp.f32 %v1798_v48 }
 0xa68   : > { %v2701_v53 = vmul.f32 %v4755_v49, %v2687_v14  ;;  %4103 = vmatpush3.bf16.msra.mxu1 %v1815_v50 }
 0xa69   : > { %4104 = vmatprep.subr.bf16.mxu1 %v5440_v0 }
 0xa6a   : > { %v2706_v34 = vadd.f32 2.0, %v2701_v53 }
 0xa6b   : > { %v2689_v28 = vpop.permute.xlu0 %2688 }
 0xa6c   : > { %v2702_v32 = vmul.f32 %v4759_v4, %v2689_v28  ;;  %4105 = vmatpush3.bf16.msra.mxu1 %v1830_v23  ;;  %2724 = vperm.xlu0 %4547, %v2706_v34   ;;  %v1891_v4 = vld [vmem:[#allocation14 + $0x4] sm:$0xf]  ;;  %v2712_v28 = vld [vmem:[#allocation13 + $0x3c] sm:$0xf] }
 0xa6d   : > { %4118 = vmatprep.subr.bf16.mxu1 %v5440_v0  ;;  %v1902_v42 = vsel %vm1279_vm5, %v1891_v4, 0 }
 0xa6e   : > { %v4763_v63 = vpop.eup %4762  ;;  %v2707_v36 = vadd.f32 2.0, %v2702_v32  ;;  %v2717_v32 = vunpack.c.l.bf16 %v2712_v28 }
 0xa6f   : > { %v4765_v62 = vpop.eup %4764  ;;  %v2626_v15 = vadd.f32 1.0, %v4763_v63  ;;  %4107 = vmatmul.mubr.msk.bf16.vlgmr.msra.gmra.mrb[24].mxu1 %vm1201_vm6, %v1809_v7  ;;  %v2691_v1 = vpop.permute.xlu0 %2690 }
 0xa70   : > { %v4767_v58 = vpop.eup %4766  ;;  %v2703_v38 = vmul.f32 %v4765_v62, %v2691_v1  ;;  %2729 = vperm.xlu0 %4547, %v2707_v36   ;;  %4110 = vmatprep.mubr.msk.bf16.mxu1 %vm5441_vm0, %v5440_v0  ;;  %v3923_v62 = vunpack.c.l.bf16 %v3933_v12 }
 0xa71   : > { %4770 = vrcp.f32 %v2626_v15  ;;  %v1806_v39 = vmul.f32 %v4767_v58, %v6668_v21  ;;  %v4769_v41 = vpop.eup %4768  ;;  %4119 = vmatpush3.bf16.msra.mxu1 %v1902_v42 }
 0xa72   : > { %v2708_v5 = vadd.f32 2.0, %v2703_v38  ;;  %v1808_v26 = vmul.f32 %v4769_v41, %v6703_v17  ;;  %4168 = vmatprep.subr.bf16.mxu1 %v5440_v0 }
 0xa73   : > { %v1810_v6 = vpack.c.bf16 %v1807_v43, %v1806_v39  ;;  %v2693_v46 = vpop.permute.xlu0 %2692 }
 0xa74   : > { %2734 = vperm.xlu0 %4547, %v2708_v5   ;;  %v1811_v57 = vpack.c.bf16 %v1808_v26, %v1808_v26  ;;  %v3924_v5 = vunpack.c.h.bf16 %v3933_v12 }
 0xa76   : > { %v6749_v13 = vpop.f32.mrb[48].mxu0 }
 0xa77   : > { %4111 = vmatmul.mubr.msk.bf16.gmra.mrb[28].mxu1 %vm1201_vm6, %v1810_v6  ;;  %v4158_v44 = vpop.f32.mrb[49].mxu0 }
 0xa78   : > { %v6752_v16 = vpop.f32.mrb[50].mxu0  ;;  %4114 = vmatprep.mubr.msk.bf16.mxu1 %vm5441_vm0, %v5440_v0 }
 0xa79   : > { %v2435_v10 = vpack.c.bf16 %v6752_v16, %v6749_v13  ;;  %v4159_v8 = vpop.f32.mrb[51].mxu0 }
 0xa7b   : > { %v4771_v21 = vpop.eup %4770 }
 0xa7c   : > { %v2704_v37 = vmul.f32 %v4771_v21, %v2693_v46  ;;  %v3934_v46 = vld [vmem:[#allocation13 + $0x48] sm:$0xff]  }
 0xa7e   : > { %v2709_v33 = vadd.f32 2.0, %v2704_v37  ;;  %v6759_v2 = vpop.f32.mrb[52].mxu0  ;;  %v3927_v37 = vunpack.c.l.bf16 %v3934_v46 }
 0xa7f   : > { %4115 = vmatmul.mubr.msk.bf16.gmra.mrb[32].mxu1 %vm1201_vm6, %v1811_v57  ;;  %v4162_v29 = vpop.f32.mrb[53].mxu0 }
 0xa80   : > { %2739 = vperm.xlu0 %4547, %v2709_v33   ;;  %v6762_v54 = vpop.f32.mrb[54].mxu0  ;;  %4120 = vmatprep.mubr.msk.bf16.mxu1 %vm5441_vm0, %v5440_v0 }
 0xa81   : > { %v2436_v51 = vpack.c.bf16 %v6762_v54, %v6759_v2  ;;  %v4163_v17 = vpop.f32.mrb[55].mxu0 }
 0xa83   : > { %v2695_v23 = vpop.permute.xlu0 %2694 }
 0xa86   : > { %v6768_v3 = vpop.f32.mrb[56].mxu0 }
 0xa87   : > { %v4166_v24 = vpop.f32.mrb[57].mxu0 }
 0xa88   : > { %v2432_v47 = vpop.f32.mrb[58].mxu0 }
 0xa89   : > { %v4167_v19 = vpop.f32.mrb[59].mxu0  ;;  %v3928_v47 = vunpack.c.h.bf16 %v3934_v46 }
 0xa8b   : > { %v2554_v55 = vpop.xlane.xlu1 %2553 }
 0xa8c   : > { %v2559_v9 = vadd.f32 %v6732_v31, %v2554_v55 }
 0xa8e   : > { %v3856_v48 = vmul.f32 -1.442695, %v2559_v9  ;;  %v2816_v20 = vpop.f32.mrb[60].mxu0 }
 0xa8f   : > { %v4190_v61 = vpop.f32.mrb[61].mxu0  ;;  %v2838_v63 = vmul.f32 0.35355338, %v2816_v20 }
 0xa90   : > { %4772 = vpow2.f32 %v3856_v48  ;;  %v2819_v56 = vpop.f32.mrb[62].mxu0 }
 0xa91   : > { %v4191_v11 = vpop.f32.mrb[63].mxu0  ;;  %v2839_v58 = vmul.f32 0.35355338, %v2819_v56  ;;  %v2438_v56 = vld [vmem:[#allocation14 + $0x8] sm:$0xf] }
 0xa96   : > { %v2824_v35 = vpop.f32.mrb[64].mxu0 }
 0xa97   : > { %v4194_v50 = vpop.f32.mrb[65].mxu0  ;;  %v2840_v41 = vmul.f32 0.35355338, %v2824_v35 }
 0xa98   : > { %v2827_v45 = vpop.f32.mrb[66].mxu0 }
 0xa99   : > { %v4195_v40 = vpop.f32.mrb[67].mxu0  ;;  %v2841_v33 = vmul.f32 0.35355338, %v2827_v45 }
 0xa9a   : > { %v4773_v27 = vpop.eup %4772  ;;  %v2449_v40 = vsel %vm1279_vm5, %v2438_v56, 0 }
 0xa9b   : > { %v2627_v49 = vadd.f32 1.0, %v4773_v27 }
 0xa9d   : > { %4774 = vrcp.f32 %v2627_v49 }
 0xa9e   : > { %v2832_v52 = vpop.f32.mrb[68].mxu0 }
 0xa9f   : > { %v4198_v14 = vpop.f32.mrb[69].mxu0  ;;  %v2842_v55 = vmul.f32 0.35355338, %v2832_v52 }
 0xaa0   : > { %v2835_v60 = vpop.f32.mrb[70].mxu0 }
 0xaa1   : > { %v4199_v53 = vpop.f32.mrb[71].mxu0 }
 0xaa7   : > { %v4775_v22 = vpop.eup %4774 }
 0xaa8   : > { %v2705_v31 = vmul.f32 %v4775_v22, %v2695_v23 }
 0xaaa   : > { %v2710_v34 = vadd.f32 2.0, %v2705_v31 }
 0xaac   : > { %2744 = vperm.xlu1 %4546, %v2710_v34   ;;  %v2437_v34 = vpack.c.bf16 %v6768_v3, %v6768_v3 }
 0xaeb   : > { %v2725_v7 = vpop.permute.xlu0 %2724 }
 0xaec   : > { %v2747_v36 = vmul.f32 %v2725_v7, %v2717_v32 }
 0xaee   : > { %v6773_v15 = vadd.f32 %v2838_v63, %v2747_v36 }
 0xaef   : > { %v2730_v1 = vpop.permute.xlu0 %2729 }
 0xaf0   : > { %v2748_v38 = vmul.f32 %v3923_v62, %v2730_v1  ;;  %v2848_v43 = vsel %vm1201_vm6, %v6773_v15, -inf }
 0xaf1   : > { %2849 = vmax.xlane.f32.xlu0 %v2848_v43 }
 0xaf2   : > { %v6777_v39 = vadd.f32 %v2839_v58, %v2748_v38 }
 0xaf3   : > { %v2735_v6 = vpop.permute.xlu0 %2734 }
 0xaf4   : > { %v2749_v44 = vmul.f32 %v3924_v5, %v2735_v6  ;;  %v2851_v8 = vsel %vm1201_vm6, %v6777_v39, -inf }
 0xaf5   : > { %2852 = vmax.xlane.f32.xlu1 %v2851_v8 }
 0xaf6   : > { %v2845_v26 = vadd.f32 %v2840_v41, %v2749_v44 }
 0xaf8   : > { %v2854_v21 = vsel %vm1201_vm6, %v2845_v26, -inf }
 0xaf9   : > { %2855 = vmax.xlane.f32.xlu0 %v2854_v21 }
 0xaff   : > { %v2740_v57 = vpop.permute.xlu0 %2739 }
 0xb00   : > { %v2750_v29 = vmul.f32 %v3927_v37, %v2740_v57 }
 0xb02   : > { %v6782_v17 = vadd.f32 %v2841_v33, %v2750_v29 }
 0xb04   : > { %v2857_v24 = vsel %vm1201_vm6, %v6782_v17, -inf }
 0xb05   : > { %2858 = vmax.xlane.f32.xlu0 %v2857_v24 }
 0xb2b   : > { %v2745_v19 = vpop.permute.xlu1 %2744 }
 0xb2c   : > { %v2751_v9 = vmul.f32 %v3928_v47, %v2745_v19 }
 0xb2e   : > { %v6786_v48 = vadd.f32 %v2842_v55, %v2751_v9 }
 0xb30   : > { %v2860_v20 = vsel %vm1214_vm7, %v6786_v48, -inf }
 0xb31   : > { %2861 = vmax.xlane.f32.xlu0 %v2860_v20 }
 0xb42   : > { %v1866_v61 = vpop.f32.mrb[24].mxu1 }
 0xb43   : > { %v4108_v11 = vpop.f32.mrb[25].mxu1 }
 0xb44   : > { %v1869_v35 = vpop.f32.mrb[26].mxu1 }
 0xb45   : > { %v1888_v50 = vpack.c.bf16 %v1869_v35, %v1866_v61  ;;  %v4109_v45 = vpop.f32.mrb[27].mxu1 }
 0xb47   : > { %4121 = vmatmul.mubr.msk.bf16.vlgmr.msra.gmra.mrb[12].mxu1 %vm897_vm2, %v1888_v50  ;;  %2906 = vrot.lane.b32.xlu0 %v6080_v18, %s5460_s4 }
 0xb48   : > { %4124 = vmatprep.mubr.msk.bf16.mxu1 %vm5441_vm0, %v5440_v0  ;;  %4169 = vmatpush3.bf16.msra.mxu1 %v2449_v40 }
 0xb49   : > { %4200 = vmatprep.subr.bf16.mxu1 %v5440_v0 }
 0xb4a   : > { %v1874_v27 = vpop.f32.mrb[28].mxu1 }
 0xb4b   : > { %v4112_v49 = vpop.f32.mrb[29].mxu1 }
 0xb4c   : > { %v1877_v52 = vpop.f32.mrb[30].mxu1 }
 0xb4d   : > { %v1889_v14 = vpack.c.bf16 %v1877_v52, %v1874_v27  ;;  %v4113_v60 = vpop.f32.mrb[31].mxu1 }
 0xb4f   : > { %4125 = vmatmul.mubr.msk.bf16.gmra.mrb[16].mxu1 %vm897_vm2, %v1889_v14 }
 0xb50   : > { %4128 = vmatprep.mubr.msk.bf16.mxu1 %vm5441_vm0, %v5440_v0 }
 0xb52   : > { %v1882_v53 = vpop.f32.mrb[32].mxu1 }
 0xb53   : > { %v4116_v22 = vpop.f32.mrb[33].mxu1  ;;  %v1890_v18 = vpack.c.bf16 %v1882_v53, %v1882_v53 }
 0xb54   : > { %v1885_v23 = vpop.f32.mrb[34].mxu1 }
 0xb55   : > { %v4117_v31 = vpop.f32.mrb[35].mxu1 }
 0xb57   : > { %4129 = vmatmul.mubr.msk.bf16.gmra.mrb[20].mxu1 %vm897_vm2, %v1890_v18 }
 0xb58   : > { %4170 = vmatprep.mubr.msk.bf16.mxu1 %vm5441_vm0, %v5440_v0 }
 0xb5f   : > { %4171 = vmatmul.mubr.msk.bf16.vlgmr.msra.gmra.mrb[12].mxu1 %vm897_vm2, %v2435_v10 }
 0xb60   : > { %4174 = vmatprep.mubr.msk.bf16.mxu1 %vm5441_vm0, %v5440_v0 }
 0xb67   : > { %4175 = vmatmul.mubr.msk.bf16.gmra.mrb[16].mxu1 %vm897_vm2, %v2436_v51 }
 0xb68   : > { %4178 = vmatprep.mubr.msk.bf16.mxu1 %vm5441_vm0, %v5440_v0 }
 0xb6f   : > { %4179 = vmatmul.mubr.msk.bf16.gmra.mrb[20].mxu1 %vm897_vm2, %v2437_v34 }
 0xb70   : > { %4206 = vmatprep.mubr.msk.bf16.mxu1 %vm5441_vm0, %v5440_v0 }
 0xb7e   : > { %v2850_v13 = vpop.xlane.xlu0 %2849 }
 0xb7f   : > { %v2863_v16 = vsub.f32 %v6773_v15, %v2850_v13 }
 0xb81   : > { %v2868_v10 = vmul.f32 1.442695, %v2863_v16  ;;  %v3775_v16 = vld [vmem:[#allocation16] ss:$0 sm:$0xff] }
 0xb82   : > { %v2853_v4 = vpop.xlane.xlu1 %2852 }
 0xb83   : > { %4776 = vpow2.f32 %v2868_v10  ;;  %v2864_v2 = vsub.f32 %v6777_v39, %v2853_v4  ;;  %v4836_v10 = vld [vmem:[%s6004_s27] sm:$0xff] }
 0xb84   : > { %v882_v4 = vadd.f32 %v4836_v10, %v3775_v16 }
 0xb85   : > { %v2870_v54 = vmul.f32 1.442695, %v2864_v2  ;;  %v4837_v2 = vld [vmem:[%s6004_s27 + $0x8] sm:$0xff] }
 0xb86   : > { %v2856_v51 = vpop.xlane.xlu0 %2855 }
 0xb87   : > { %4778 = vpow2.f32 %v2870_v54  ;;  %v2865_v42 = vsub.f32 %v2845_v26, %v2856_v51  ;;  %v883_v54 = vadd.f32 %v4837_v2, %v3775_v16 }
 0xb89   : > { %v2872_v28 = vmul.f32 1.442695, %v2865_v42 }
 0xb8b   : > { %4780 = vpow2.f32 %v2872_v28 }
 0xb8d   : > { %v4777_v3 = vpop.eup %4776 }
 0xb8e   : > { %v2878_v32 = vsel %vm1201_vm6, %v4777_v3, 0.0 }
 0xb8f   : > { %2879 = vadd.xlane.f32.xlu0 %v2878_v32 }
 0xb91   : > { %v4779_v12 = vpop.eup %4778 }
 0xb92   : > { %v2859_v7 = vpop.xlane.xlu0 %2858  ;;  %v2881_v63 = vsel %vm1201_vm6, %v4779_v12, 0.0 }
 0xb93   : > { %v2866_v36 = vsub.f32 %v6782_v17, %v2859_v7  ;;  %2882 = vadd.xlane.f32.xlu0 %v2881_v63 }
 0xb95   : > { %v4781_v62 = vpop.eup %4780  ;;  %v2874_v15 = vmul.f32 1.442695, %v2866_v36  ;;  %v4838_v36 = vld [vmem:[%s6004_s27 + $0x10] sm:$0xff] }
 0xb96   : > { %v2884_v1 = vsel %vm1201_vm6, %v4781_v62, 0.0 }
 0xb97   : > { %4782 = vpow2.f32 %v2874_v15  ;;  %2885 = vadd.xlane.f32.xlu0 %v2884_v1  ;;  %v4839_v15 = vld [vmem:[%s6004_s27 + $0x18] sm:$0xff] }
 0xb98   : > { %v885_v1 = vadd.f32 %v4839_v15, %v3775_v16 }
 0xba1   : > { %v4783_v58 = vpop.eup %4782 }
 0xba2   : > { %v2887_v38 = vsel %vm1201_vm6, %v4783_v58, 0.0 }
 0xba3   : > { %2888 = vadd.xlane.f32.xlu1 %v2887_v38 }
 0xbad   : > { %2910 = vrot.lane.b32.xlu0 %v6086_v30, %s5460_s4 }
 0xbbe   : > { %v2862_v43 = vpop.xlane.xlu0 %2861 }
 0xbbf   : > { %v2867_v5 = vsub.f32 %v6786_v48, %v2862_v43 }
 0xbc1   : > { %v2876_v39 = vmul.f32 1.442695, %v2867_v5 }
 0xbc2   : > { %v2907_v6 = vpop.permute.xlu0 %2906 }
 0xbc3   : > { %4784 = vpow2.f32 %v2876_v39  ;;  %4201 = vmatpush3.bf16.msra.mxu1 %v2907_v6 }
 0xbc4   : > { %4202 = vmatprep.subr.bf16.mxu1 %v5440_v0 }
 0xbcd   : > { %v4785_v41 = vpop.eup %4784 }
 0xbce   : > { %v2890_v44 = vsel %vm1214_vm7, %v4785_v41, 0.0 }
 0xbcf   : > { %2891 = vadd.xlane.f32.xlu1 %v2890_v44 }
 0xbe0   : > { %2908 = vrot.lane.b32.xlu1 %v6083_v25, %s5460_s4  ;;  %v2985_v25 = vld [vmem:[#allocation14 + $0xc] sm:$0xf]  ;;  %s5323_s4 = sshll.u32 %s5461_s29, 4  ;;  %s5324_s4 = int_to_ptr.vmem [resolvable:$false] %s5323_s4 }
 0xbe1   : > { %v2996_v55 = vsel %vm1279_vm5, %v2985_v25, 0  ;;  %s5325_s22 = scalar_lea.vmem %s5324_s4, 1280 }
 0xc1c   : > { %v2880_v8 = vpop.xlane.xlu0 %2879 }
 0xc20   : > { %v2883_v26 = vpop.xlane.xlu0 %2882 }
 0xc21   : > { %4786 = vrcp.f32 %v2883_v26 }
 0xc22   : > { %4788 = vrcp.f32 %v2880_v8  ;;  %v4840_v8 = vld [vmem:[%s6004_s27 + $0x20] sm:$0x7f]  ;;  %s776_s27 = scalar_lea.vmem [#allocation29], %s4311_s3 }
 0xc23   : > { %v886_v26 = vadd.f32 %v4840_v8, %v3775_v16  ;;  %s3507_s3 = sshll.u32 %s776_s27, 4  ;;  %s6933_s3 = int_to_ptr.vmem [resolvable:$true] %s3507_s3 }
 0xc24   : > { %v2886_v21 = vpop.xlane.xlu0 %2885  ;;  %s5319_s0 = scalar_lea.vmem %s6933_s3, 640  ;;  %p5326_p5 = scmp.lt.s32.totalorder %s6933_s3, %s5324_s4 }
 0xc25   : > { %p5320_p11 = scmp.ne.s32.totalorder %s6933_s3, %s5319_s0  ;;  %p5327_p9 = scmp.lt.s32.totalorder %s5325_s22, %s5319_s0 }
 0xc27   : > { %p5321_p6 = pnand %p5320_p11, %p7074_p3  ;;  %p5328_p12 = por %p5327_p9, %p5326_p5 }
 0xc28   : > { %v2911_v57 = vpop.permute.xlu0 %2910 }
 0xc29   : > { %v2924_v24 = vand.u32 %v2911_v57, %v6173_v59  ;;  %p5322_p7 = pneg %p5321_p6 }
 0xc2b   : > { %v4787_v37 = vpop.eup %4786  ;;  %p5329_p1 = pnand %p5328_p12, %p5322_p7 }
 0xc2c   : > { %v4789_v29 = vpop.eup %4788  ;;  %v2899_v17 = vmul.f32 %v4787_v37, %v4779_v12 }
 0xc2d   : > { %v2898_v47 = vmul.f32 %v4789_v29, %v4777_v3 }
 0xc2f   : > { %v2903_v19 = vpack.c.bf16 %v2899_v17, %v2898_v47 }
 0xc30   : > { %v2889_v30 = vpop.xlane.xlu1 %2888 }
 0xc31   : > { %4790 = vrcp.f32 %v2889_v30 }
 0xc32   : > { %4792 = vrcp.f32 %v2886_v21 }
 0xc3b   : > { %v4791_v9 = vpop.eup %4790 }
 0xc3c   : > { %v4793_v48 = vpop.eup %4792  ;;  %v2901_v20 = vmul.f32 %v4791_v9, %v4783_v58 }
 0xc3d   : > { %v2900_v61 = vmul.f32 %v4793_v48, %v4781_v62  ;;  %v884_v62 = vadd.f32 %v4838_v36, %v3775_v16 }
 0xc3f   : > { %v2904_v59 = vpack.c.bf16 %v2901_v20, %v2900_v61 }
 0xc5c   : > { %v2892_v46 = vpop.xlane.xlu1 %2891 }
 0xc5d   : > { %4794 = vrcp.f32 %v2892_v46 }
 0xc60   : > { %v2909_v33 = vpop.permute.xlu1 %2908 }
 0xc61   : > { %4203 = vmatpush3.bf16.msra.mxu1 %v2909_v33 }
 0xc62   : > { %4204 = vmatprep.subr.bf16.mxu1 %v5440_v0 }
 0xc65   : > { %4205 = vmatpush3.bf16.msra.mxu1 %v2924_v24 }
 0xc66   : > { %4218 = vmatprep.subr.bf16.mxu1 %v5440_v0 }
 0xc67   : > { %v4795_v56 = vpop.eup %4794 }
 0xc68   : > { %4207 = vmatmul.mubr.msk.bf16.vlgmr.msra.gmra.mrb[36].mxu1 %vm1201_vm6, %v2903_v19  ;;  %v2902_v11 = vmul.f32 %v4795_v56, %v4785_v41 }
 0xc69   : > { %4210 = vmatprep.mubr.msk.bf16.mxu1 %vm5441_vm0, %v5440_v0  ;;  %4219 = vmatpush3.bf16.msra.mxu1 %v2996_v55 }
 0xc6a   : > { %v2905_v35 = vpack.c.bf16 %v2902_v11, %v2902_v11 }
 0xc70   : > { %4211 = vmatmul.mubr.msk.bf16.gmra.mrb[40].mxu1 %vm1201_vm6, %v2904_v59 }
 0xc71   : > { %4214 = vmatprep.mubr.msk.bf16.mxu1 %vm5441_vm0, %v5440_v0 }
 0xc78   : > { %4215 = vmatmul.mubr.msk.bf16.gmra.mrb[44].mxu1 %vm1201_vm6, %v2905_v35 }
 0xc79   : > { %4220 = vmatprep.mubr.msk.bf16.mxu1 %vm5441_vm0, %v5440_v0 }
 0xd3b   : > { %v2960_v50 = vpop.f32.mrb[36].mxu1 }
 0xd3c   : > { %v4208_v45 = vpop.f32.mrb[37].mxu1 }
 0xd3d   : > { %v2963_v40 = vpop.f32.mrb[38].mxu1 }
 0xd3e   : > { %v2982_v27 = vpack.c.bf16 %v2963_v40, %v2960_v50  ;;  %v4209_v49 = vpop.f32.mrb[39].mxu1 }
 0xd40   : > { %4221 = vmatmul.mubr.msk.bf16.vlgmr.msra.gmra.mrb[12].mxu1 %vm897_vm2, %v2982_v27 }
 0xd41   : > { %4224 = vmatprep.mubr.msk.bf16.mxu1 %vm5441_vm0, %v5440_v0 }
 0xd43   : > { %v2968_v52 = vpop.f32.mrb[40].mxu1 }
 0xd44   : > { %v4212_v14 = vpop.f32.mrb[41].mxu1 }
 0xd45   : > { %v2971_v60 = vpop.f32.mrb[42].mxu1 }
 0xd46   : > { %v2983_v53 = vpack.c.bf16 %v2971_v60, %v2968_v52  ;;  %v4213_v22 = vpop.f32.mrb[43].mxu1 }
 0xd48   : > { %4225 = vmatmul.mubr.msk.bf16.gmra.mrb[16].mxu1 %vm897_vm2, %v2983_v53 }
 0xd49   : > { %4228 = vmatprep.mubr.msk.bf16.mxu1 %vm5441_vm0, %v5440_v0 }
 0xd4b   : > { %v2976_v23 = vpop.f32.mrb[44].mxu1 }
 0xd4c   : > { %v4216_v18 = vpop.f32.mrb[45].mxu1  ;;  %v2984_v34 = vpack.c.bf16 %v2976_v23, %v2976_v23  ;;  %v4550_v23 = vld [vmem:[#allocation20] sm:$0xff]  }
 0xd4d   : > { %v2979_v31 = vpop.f32.mrb[46].mxu1  ;;  %4233 = vmatpush3.bf16.msra.mxu0 %v4550_v23  ;;  %v4551_v18 = vld [vmem:[#allocation20 + $0x8] sm:$0xff]  }
 0xd4e   : > { %v4217_v13 = vpop.f32.mrb[47].mxu1  ;;  %4234 = vmatprep.subr.bf16.mxu0 %v5440_v0 }
 0xd50   : > { %4229 = vmatmul.mubr.msk.bf16.gmra.mrb[20].mxu1 %vm897_vm2, %v2984_v34 }
 0xd51   : > { %4235 = vmatpush3.bf16.msra.mxu0 %v4551_v18 }
 0xd52   : > { %4248 = vmatprep.subr.bf16.mxu0 %v5440_v0 }
 0xe13   : > { %v3032_v51 = vpop.f32.mrb[12].mxu1 }
 0xe14   : > { %v4268_v42 = vadd.f32 %v3032_v51, %v882_v4  ;;  %v4222_v28 = vpop.f32.mrb[13].mxu1 }
 0xe15   : > { %v3035_v3 = vpop.f32.mrb[14].mxu1 }
 0xe16   : > { %v4269_v32 = vadd.f32 %v3035_v3, %v883_v54  ;;  %v4223_v12 = vpop.f32.mrb[15].mxu1  ;;  %v3061_v7 = vsel %vm809_vm1, %v4268_v42, 0.0 }
 0xe17   : > { %3062 = vadd.xlane.f32.xlu1 %v3061_v7  ;;  %v3876_v12 = vld [vmem:[#allocation17] ss:$0 sm:$0xff] }
 0xe18   : > { %v3064_v63 = vsel %vm809_vm1, %v4269_v32, 0.0 }
 0xe19   : > { %3065 = vadd.xlane.f32.xlu0 %v3064_v63 }
 0xe1b   : > { %v3040_v58 = vpop.f32.mrb[16].mxu1 }
 0xe1c   : > { %v4270_v38 = vadd.f32 %v3040_v58, %v884_v62  ;;  %v4226_v43 = vpop.f32.mrb[17].mxu1  ;;  %v3877_v58 = vld [vmem:[#allocation19] ss:$0 sm:$0xff] }
 0xe1d   : > { %v3043_v5 = vpop.f32.mrb[18].mxu1 }
 0xe1e   : > { %v4271_v39 = vadd.f32 %v3043_v5, %v885_v1  ;;  %v4227_v6 = vpop.f32.mrb[19].mxu1  ;;  %v3067_v41 = vsel %vm809_vm1, %v4270_v38, 0.0 }
 0xe1f   : > { %3068 = vadd.xlane.f32.xlu0 %v3067_v41 }
 0xe20   : > { %v3070_v44 = vsel %vm809_vm1, %v4271_v39, 0.0 }
 0xe21   : > { %3071 = vadd.xlane.f32.xlu1 %v3070_v44 }
 0xe23   : > { %v3048_v30 = vpop.f32.mrb[20].mxu1 }
 0xe24   : > { %v4272_v21 = vadd.f32 %v3048_v30, %v886_v26  ;;  %v4230_v46 = vpop.f32.mrb[21].mxu1 }
 0xe25   : > { %v3051_v37 = vpop.f32.mrb[22].mxu1 }
 0xe26   : > { %v4231_v57 = vpop.f32.mrb[23].mxu1  ;;  %v3074_v33 = vsel %vm3073_vm8, %v4272_v21, 0.0 }
 0xe27   : > { %3075 = vadd.xlane.f32.xlu0 %v3074_v33 }
 0xea4   : > { %v3063_v29 = vpop.xlane.xlu1 %3062 }
 0xea5   : > { %v3078_v17 = vmul.f32 0.03125, %v3063_v29 }
 0xea6   : > { %v3066_v24 = vpop.xlane.xlu0 %3065 }
 0xea7   : > { %v3083_v25 = vsub.f32 %v4268_v42, %v3078_v17  ;;  %v3079_v47 = vmul.f32 0.03125, %v3066_v24 }
 0xea9   : > { %v3084_v19 = vsub.f32 %v4269_v32, %v3079_v47  ;;  %v3088_v55 = vmul.f32 %v3083_v25, %v3083_v25  ;;  %v4552_v47 = vld [vmem:[#allocation23] sm:$0xff]  }
 0xeab   : > { %v3093_v9 = vsel %vm809_vm1, %v3088_v55, 0.0  ;;  %v3089_v48 = vmul.f32 %v3084_v19, %v3084_v19  ;;  %v4554_v55 = vld [vmem:[#allocation23 + $0x10] sm:$0xff]  }
 0xeac   : > { %v3069_v20 = vpop.xlane.xlu0 %3068  ;;  %3094 = vadd.xlane.f32.xlu1 %v3093_v9  ;;  %v4555_v9 = vld [vmem:[#allocation23 + $0x18] sm:$0xff]  }
 0xead   : > { %v3080_v61 = vmul.f32 0.03125, %v3069_v20  ;;  %v3096_v59 = vsel %vm809_vm1, %v3089_v48, 0.0  ;;  %v3878_v48 = vld [vmem:[#allocation22] ss:$0 sm:$0xff] }
 0xeae   : > { %v3072_v56 = vpop.xlane.xlu1 %3071  ;;  %3097 = vadd.xlane.f32.xlu0 %v3096_v59 }
 0xeaf   : > { %v3085_v11 = vsub.f32 %v4270_v38, %v3080_v61  ;;  %v3081_v35 = vmul.f32 0.03125, %v3072_v56 }
 0xeb1   : > { %v3086_v50 = vsub.f32 %v4271_v39, %v3081_v35  ;;  %v3090_v45 = vmul.f32 %v3085_v11, %v3085_v11 }
 0xeb3   : > { %v3099_v40 = vsel %vm809_vm1, %v3090_v45, 0.0  ;;  %v3091_v27 = vmul.f32 %v3086_v50, %v3086_v50 }
 0xeb4   : > { %3100 = vadd.xlane.f32.xlu1 %v3099_v40  ;;  %v3076_v49 = vpop.xlane.xlu0 %3075 }
 0xeb5   : > { %v3082_v52 = vmul.f32 0.03125, %v3076_v49  ;;  %v3102_v14 = vsel %vm809_vm1, %v3091_v27, 0.0 }
 0xeb6   : > { %3103 = vadd.xlane.f32.xlu0 %v3102_v14 }
 0xeb7   : > { %v3087_v60 = vsub.f32 %v4272_v21, %v3082_v52 }
 0xeb9   : > { %v3092_v53 = vmul.f32 %v3087_v60, %v3087_v60 }
 0xebb   : > { %v3105_v22 = vsel %vm3073_vm8, %v3092_v53, 0.0 }
 0xebc   : > { %3106 = vadd.xlane.f32.xlu1 %v3105_v22 }
 0xf39   : > { %v3095_v31 = vpop.xlane.xlu1 %3094 }
 0xf3a   : > { %v3108_v34 = vmul.f32 0.03125, %v3095_v31 }
 0xf3b   : > { %v3098_v13 = vpop.xlane.xlu0 %3097 }
 0xf3c   : > { %v3113_v16 = vadd.f32 1e-05, %v3108_v34  ;;  %v3109_v10 = vmul.f32 0.03125, %v3098_v13 }
 0xf3e   : > { %4796 = vrsqrt.f32 %v3113_v16  ;;  %v3114_v4 = vadd.f32 1e-05, %v3109_v10 }
 0xf40   : > { %4798 = vrsqrt.f32 %v3114_v4 }
 0xf41   : > { %v3101_v2 = vpop.xlane.xlu1 %3100 }
 0xf42   : > { %v3110_v54 = vmul.f32 0.03125, %v3101_v2 }
 0xf43   : > { %v3104_v51 = vpop.xlane.xlu0 %3103 }
 0xf44   : > { %v3115_v42 = vadd.f32 1e-05, %v3110_v54  ;;  %v3111_v28 = vmul.f32 0.03125, %v3104_v51 }
 0xf46   : > { %4800 = vrsqrt.f32 %v3115_v42  ;;  %v3116_v3 = vadd.f32 1e-05, %v3111_v28 }
 0xf48   : > { %v4797_v32 = vpop.eup %4796  ;;  %4802 = vrsqrt.f32 %v3116_v3 }
 0xf49   : > { %v3123_v7 = vmul.f32 %v4797_v32, %v3083_v25  ;;  %v3107_v63 = vpop.xlane.xlu1 %3106 }
 0xf4a   : > { %v4799_v36 = vpop.eup %4798  ;;  %v3112_v62 = vmul.f32 0.03125, %v3107_v63 }
 0xf4b   : > { %v3134_v15 = vmul.f32 %v3876_v12, %v3123_v7  ;;  %v3124_v1 = vmul.f32 %v4799_v36, %v3084_v19  ;;  %v4553_v19 = vld [vmem:[#allocation23 + $0x8] sm:$0xff]  }
 0xf4c   : > { %v3117_v38 = vadd.f32 1e-05, %v3112_v62 }
 0xf4d   : > { %v3135_v43 = vmul.f32 %v3876_v12, %v3124_v1  ;;  %v6871_v5 = vadd.f32 %v3877_v58, %v3134_v15 }
 0xf4e   : > { %4804 = vrsqrt.f32 %v3117_v38 }
 0xf4f   : > { %v6873_v39 = vadd.f32 %v3877_v58, %v3135_v43 }
 0xf50   : > { %v4801_v6 = vpop.eup %4800 }
 0xf51   : > { %v3125_v41 = vmul.f32 %v4801_v6, %v3085_v11  ;;  %v3150_v44 = vpack.c.bf16 %v6873_v39, %v6871_v5 }
 0xf52   : > { %v4803_v8 = vpop.eup %4802 }
 0xf53   : > { %v3126_v26 = vmul.f32 %v4803_v8, %v3086_v50  ;;  %4237 = vmatmul.mubr.msk.bf16.vlgmr.msra.gmra.mrb[72].mxu0 %vm809_vm1, %v3150_v44  ;;  %v3136_v30 = vmul.f32 %v3876_v12, %v3125_v41 }
 0xf54   : > { %4240 = vmatprep.mubr.msk.bf16.mxu0 %vm5441_vm0, %v5440_v0  ;;  %4249 = vmatpush3.bf16.msra.mxu0 %v4552_v47 }
 0xf55   : > { %v3137_v21 = vmul.f32 %v3876_v12, %v3126_v26  ;;  %v6880_v46 = vadd.f32 %v3877_v58, %v3136_v30  ;;  %4250 = vmatprep.subr.bf16.mxu0 %v5440_v0 }
 0xf57   : > { %v6882_v37 = vadd.f32 %v3877_v58, %v3137_v21 }
 0xf58   : > { %v4805_v57 = vpop.eup %4804  ;;  %4251 = vmatpush3.bf16.msra.mxu0 %v4553_v19 }
 0xf59   : > { %v3127_v33 = vmul.f32 %v4805_v57, %v3087_v60  ;;  %v3151_v29 = vpack.c.bf16 %v6882_v37, %v6880_v46  ;;  %4252 = vmatprep.subr.bf16.mxu0 %v5440_v0 }
 0xf5b   : > { %4241 = vmatmul.mubr.msk.bf16.gmra.mrb[76].mxu0 %vm809_vm1, %v3151_v29  ;;  %v3138_v17 = vmul.f32 %v3876_v12, %v3127_v33 }
 0xf5c   : > { %4244 = vmatprep.mubr.msk.bf16.mxu0 %vm5441_vm0, %v5440_v0  ;;  %4253 = vmatpush3.bf16.msra.mxu0 %v4554_v55 }
 0xf5d   : > { %v6889_v24 = vadd.f32 %v3877_v58, %v3138_v17  ;;  %4254 = vmatprep.subr.bf16.mxu0 %v5440_v0 }
 0xf5f   : > { %v3152_v25 = vpack.c.bf16 %v6889_v24, %v6889_v24 }
 0xf60   : > { %4255 = vmatpush3.bf16.msra.mxu0 %v4555_v9 }
 0xf63   : > { %4245 = vmatmul.mubr.msk.bf16.gmra.mrb[80].mxu0 %vm809_vm1, %v3152_v25 }
 0xf64   : > { %4256 = vmatprep.mubr.msk.bf16.mxu0 %vm5441_vm0, %v5440_v0 }
0x1026   : > { %v3219_v20 = vpop.f32.mrb[72].mxu0 }
0x1027   : > { %v3220_v61 = vadd.f32 %v3878_v48, %v3219_v20  ;;  %v4238_v59 = vpop.f32.mrb[73].mxu0 }
0x1028   : > { %v3222_v56 = vpop.f32.mrb[74].mxu0 }
0x1029   : > { %v3246_v11 = vmul.f32 0.044715, %v3220_v61  ;;  %v3223_v35 = vadd.f32 %v3878_v48, %v3222_v56  ;;  %v4239_v50 = vpop.f32.mrb[75].mxu0  ;;  %v3241_v8 = vmul.f32 0.5, %v3220_v61 }
0x102b   : > { %v3251_v45 = vmul.f32 %v3246_v11, %v3220_v61  ;;  %v3247_v40 = vmul.f32 0.044715, %v3223_v35  ;;  %v3242_v26 = vmul.f32 0.5, %v3223_v35 }
0x102d   : > { %v3256_v27 = vmul.f32 %v3251_v45, %v3220_v61  ;;  %v3252_v49 = vmul.f32 %v3247_v40, %v3223_v35  ;;  %v3884_v45 = vld [vmem:[#allocation25] ss:$0 sm:$0xff] }
0x102e   : > { %v3227_v52 = vpop.f32.mrb[76].mxu0 }
0x102f   : > { %v3261_v14 = vadd.f32 %v3256_v27, %v3220_v61  ;;  %v3257_v60 = vmul.f32 %v3252_v49, %v3223_v35  ;;  %v3228_v53 = vadd.f32 %v3878_v48, %v3227_v52  ;;  %v4242_v22 = vpop.f32.mrb[77].mxu0 }
0x1030   : > { %v3230_v23 = vpop.f32.mrb[78].mxu0 }
0x1031   : > { %v3266_v18 = vmul.f32 0.7978846, %v3261_v14  ;;  %v3262_v31 = vadd.f32 %v3257_v60, %v3223_v35  ;;  %v3248_v34 = vmul.f32 0.044715, %v3228_v53  ;;  %v3231_v13 = vadd.f32 %v3878_v48, %v3230_v23  ;;  %v4243_v16 = vpop.f32.mrb[79].mxu0 }
0x1032   : > { %v3243_v19 = vmul.f32 0.5, %v3228_v53 }
0x1033   : > { %4806 = vtanh.f32 %v3266_v18  ;;  %v3267_v10 = vmul.f32 0.7978846, %v3262_v31  ;;  %v3253_v4 = vmul.f32 %v3248_v34, %v3228_v53  ;;  %v3249_v2 = vmul.f32 0.044715, %v3231_v13 }
0x1034   : > { %v3244_v55 = vmul.f32 0.5, %v3231_v13 }
0x1035   : > { %4808 = vtanh.f32 %v3267_v10  ;;  %v3258_v54 = vmul.f32 %v3253_v4, %v3228_v53  ;;  %v3254_v51 = vmul.f32 %v3249_v2, %v3231_v13 }
0x1036   : > { %v3235_v42 = vpop.f32.mrb[80].mxu0 }
0x1037   : > { %v3263_v28 = vadd.f32 %v3258_v54, %v3228_v53  ;;  %v3259_v3 = vmul.f32 %v3254_v51, %v3231_v13  ;;  %v3236_v32 = vadd.f32 %v3878_v48, %v3235_v42  ;;  %v4246_v12 = vpop.f32.mrb[81].mxu0 }
0x1038   : > { %v3238_v7 = vpop.f32.mrb[82].mxu0 }
0x1039   : > { %v3268_v63 = vmul.f32 0.7978846, %v3263_v28  ;;  %v3264_v36 = vadd.f32 %v3259_v3, %v3231_v13  ;;  %v3250_v62 = vmul.f32 0.044715, %v3236_v32  ;;  %v4247_v15 = vpop.f32.mrb[83].mxu0  ;;  %v3245_v56 = vmul.f32 0.5, %v3236_v32 }
0x103b   : > { %4810 = vtanh.f32 %v3268_v63  ;;  %v3269_v1 = vmul.f32 0.7978846, %v3264_v36  ;;  %v3255_v58 = vmul.f32 %v3250_v62, %v3236_v32 }
0x103d   : > { %v4807_v38 = vpop.eup %4806  ;;  %4812 = vtanh.f32 %v3269_v1  ;;  %v3260_v43 = vmul.f32 %v3255_v58, %v3236_v32 }
0x103e   : > { %v3276_v6 = vadd.f32 1.0, %v4807_v38 }
0x103f   : > { %v4809_v41 = vpop.eup %4808  ;;  %v3265_v44 = vadd.f32 %v3260_v43, %v3236_v32 }
0x1040   : > { %v3277_v30 = vadd.f32 1.0, %v4809_v41  ;;  %v3281_v57 = vmul.f32 %v3276_v6, %v3241_v8 }
0x1041   : > { %v3270_v21 = vmul.f32 0.7978846, %v3265_v44 }
0x1042   : > { %v3282_v33 = vmul.f32 %v3277_v30, %v3242_v26 }
0x1043   : > { %4814 = vtanh.f32 %v3270_v21 }
0x1044   : > { %v3286_v29 = vpack.c.bf16 %v3282_v33, %v3281_v57 }
0x1045   : > { %v4811_v17 = vpop.eup %4810 }
0x1046   : > { %4257 = vmatmul.mubr.msk.bf16.vlgmr.msra.gmra.mrb[84].mxu0 %vm3328_vm9, %v3286_v29  ;;  %v3278_v25 = vadd.f32 1.0, %v4811_v17 }
0x1047   : > { %v4813_v47 = vpop.eup %4812  ;;  %4260 = vmatprep.mubr.msk.bf16.mxu0 %vm5441_vm0, %v5440_v0 }
0x1048   : > { %v3279_v9 = vadd.f32 1.0, %v4813_v47  ;;  %v3283_v48 = vmul.f32 %v3278_v25, %v3243_v19 }
0x104a   : > { %v3284_v20 = vmul.f32 %v3279_v9, %v3244_v55 }
0x104c   : > { %v3287_v61 = vpack.c.bf16 %v3284_v20, %v3283_v48 }
0x104d   : > { %v4815_v59 = vpop.eup %4814 }
0x104e   : > { %4261 = vmatmul.mubr.msk.bf16.gmra.mrb[88].mxu0 %vm3328_vm9, %v3287_v61  ;;  %v3280_v11 = vadd.f32 1.0, %v4815_v59 }
0x104f   : > { %4264 = vmatprep.mubr.msk.bf16.mxu0 %vm5441_vm0, %v5440_v0 }
0x1050   : > { %v3285_v35 = vmul.f32 %v3280_v11, %v3245_v56 }
0x1052   : > { %v3288_v50 = vpack.c.bf16 %v3285_v35, %v3285_v35 }
0x1056   : > { %4265 = vmatmul.mubr.msk.bf16.gmra.mrb[92].mxu0 %vm3328_vm9, %v3288_v50 }
0x1119   : > { %v3372_v40 = vpop.f32.mrb[84].mxu0 }
0x111a   : > { %v3373_v27 = vadd.f32 %v3884_v45, %v3372_v40  ;;  %v4258_v49 = vpop.f32.mrb[85].mxu0 }
0x111b   : > { %v3375_v52 = vpop.f32.mrb[86].mxu0 }
0x111c   : > { %v3394_v14 = vadd.f32 %v3373_v27, %v6871_v5  ;;  %v3376_v60 = vadd.f32 %v3884_v45, %v3375_v52  ;;  %v4259_v53 = vpop.f32.mrb[87].mxu0  ;;  %v3892_v27 = vld [vmem:[#allocation26] ss:$0 sm:$0xff] }
0x111e   : > { %v3395_v22 = vadd.f32 %v3376_v60, %v6873_v39  ;;  %v3401_v23 = vsel %vm809_vm1, %v3394_v14, 0.0  ;;  %v3893_v60 = vld [vmem:[#allocation28] ss:$0 sm:$0xff] }
0x111f   : > { %3402 = vadd.xlane.f32.xlu0 %v3401_v23 }
0x1120   : > { %v3404_v0 = vsel %vm809_vm1, %v3395_v22, 0.0 }
0x1121   : > { %3405 = vadd.xlane.f32.xlu1 %v3404_v0  ;;  %v3380_v18 = vpop.f32.mrb[88].mxu0 }
0x1122   : > { %v3381_v31 = vadd.f32 %v3884_v45, %v3380_v18  ;;  %v4262_v34 = vpop.f32.mrb[89].mxu0 }
0x1123   : > { %v3383_v13 = vpop.f32.mrb[90].mxu0 }
0x1124   : > { %v3396_v16 = vadd.f32 %v3381_v31, %v6880_v46  ;;  %v3384_v10 = vadd.f32 %v3884_v45, %v3383_v13  ;;  %v4263_v4 = vpop.f32.mrb[91].mxu0 }
0x1126   : > { %v3397_v5 = vadd.f32 %v3384_v10, %v6882_v37  ;;  %v3407_v2 = vsel %vm809_vm1, %v3396_v16, 0.0 }
0x1127   : > { %3408 = vadd.xlane.f32.xlu0 %v3407_v2 }
0x1128   : > { %v3410_v39 = vsel %vm809_vm1, %v3397_v5, 0.0 }
0x1129   : > { %3411 = vadd.xlane.f32.xlu1 %v3410_v39  ;;  %v3388_v54 = vpop.f32.mrb[92].mxu0 }
0x112a   : > { %v3389_v51 = vadd.f32 %v3884_v45, %v3388_v54  ;;  %v4266_v42 = vpop.f32.mrb[93].mxu0 }
0x112b   : > { %v3391_v28 = vpop.f32.mrb[94].mxu0 }
0x112c   : > { %v3398_v3 = vadd.f32 %v3389_v51, %v6889_v24  ;;  %v4267_v32 = vpop.f32.mrb[95].mxu0 }
0x112e   : > { %v3413_v12 = vsel %vm3073_vm8, %v3398_v3, 0.0 }
0x112f   : > { %3414 = vadd.xlane.f32.xlu0 %v3413_v12 }
0x11ac   : > { %v3403_v46 = vpop.xlane.xlu0 %3402 }
0x11ad   : > { %v3416_v7 = vmul.f32 0.03125, %v3403_v46 }
0x11ae   : > { %v3406_v63 = vpop.xlane.xlu1 %3405 }
0x11af   : > { %v3421_v37 = vsub.f32 %v3394_v14, %v3416_v7  ;;  %v3417_v36 = vmul.f32 0.03125, %v3406_v63 }
0x11b1   : > { %v3422_v62 = vsub.f32 %v3395_v22, %v3417_v36  ;;  %v3426_v15 = vmul.f32 %v3421_v37, %v3421_v37 }
0x11b3   : > { %v3431_v1 = vsel %vm809_vm1, %v3426_v15, 0.0  ;;  %v3427_v58 = vmul.f32 %v3422_v62, %v3422_v62 }
0x11b4   : > { %v3409_v38 = vpop.xlane.xlu0 %3408  ;;  %3432 = vadd.xlane.f32.xlu1 %v3431_v1 }
0x11b5   : > { %v3418_v43 = vmul.f32 0.03125, %v3409_v38  ;;  %v3434_v6 = vsel %vm809_vm1, %v3427_v58, 0.0 }
0x11b6   : > { %v3412_v24 = vpop.xlane.xlu1 %3411  ;;  %3435 = vadd.xlane.f32.xlu0 %v3434_v6 }
0x11b7   : > { %v3423_v41 = vsub.f32 %v3396_v16, %v3418_v43  ;;  %v3419_v44 = vmul.f32 0.03125, %v3412_v24 }
0x11b9   : > { %v3424_v8 = vsub.f32 %v3397_v5, %v3419_v44  ;;  %v3428_v26 = vmul.f32 %v3423_v41, %v3423_v41 }
0x11bb   : > { %v3437_v30 = vsel %vm809_vm1, %v3428_v26, 0.0  ;;  %v3429_v21 = vmul.f32 %v3424_v8, %v3424_v8 }
0x11bc   : > { %3438 = vadd.xlane.f32.xlu1 %v3437_v30  ;;  %v3415_v57 = vpop.xlane.xlu0 %3414 }
0x11bd   : > { %v3420_v33 = vmul.f32 0.03125, %v3415_v57  ;;  %v3440_v29 = vsel %vm809_vm1, %v3429_v21, 0.0 }
0x11be   : > { %3441 = vadd.xlane.f32.xlu0 %v3440_v29 }
0x11bf   : > { %v3425_v17 = vsub.f32 %v3398_v3, %v3420_v33 }
0x11c1   : > { %v3430_v25 = vmul.f32 %v3425_v17, %v3425_v17 }
0x11c3   : > { %v3443_v47 = vsel %vm3073_vm8, %v3430_v25, 0.0 }
0x11c4   : > { %3444 = vadd.xlane.f32.xlu1 %v3443_v47 }
0x1241   : > { %v3433_v19 = vpop.xlane.xlu1 %3432 }
0x1242   : > { %v3446_v55 = vmul.f32 0.03125, %v3433_v19 }
0x1243   : > { %v3436_v9 = vpop.xlane.xlu0 %3435 }
0x1244   : > { %v3451_v48 = vadd.f32 1e-05, %v3446_v55  ;;  %v3447_v20 = vmul.f32 0.03125, %v3436_v9 }
0x1246   : > { %4816 = vrsqrt.f32 %v3451_v48  ;;  %v3452_v61 = vadd.f32 1e-05, %v3447_v20 }
0x1248   : > { %4818 = vrsqrt.f32 %v3452_v61 }
0x1249   : > { %v3439_v59 = vpop.xlane.xlu1 %3438 }
0x124a   : > { %v3448_v56 = vmul.f32 0.03125, %v3439_v59 }
0x124b   : > { %v3442_v11 = vpop.xlane.xlu0 %3441 }
0x124c   : > { %v3453_v35 = vadd.f32 1e-05, %v3448_v56  ;;  %v3449_v50 = vmul.f32 0.03125, %v3442_v11 }
0x124e   : > { %4820 = vrsqrt.f32 %v3453_v35  ;;  %v3454_v45 = vadd.f32 1e-05, %v3449_v50 }
0x1250   : > { %v4817_v40 = vpop.eup %4816  ;;  %4822 = vrsqrt.f32 %v3454_v45 }
0x1251   : > { %v3461_v49 = vmul.f32 %v4817_v40, %v3421_v37  ;;  %v3445_v52 = vpop.xlane.xlu1 %3444 }
0x1252   : > { %v4819_v14 = vpop.eup %4818  ;;  %v3450_v53 = vmul.f32 0.03125, %v3445_v52 }
0x1253   : > { %v3472_v22 = vmul.f32 %v3892_v27, %v3461_v49  ;;  %v3462_v23 = vmul.f32 %v4819_v14, %v3422_v62 }
0x1254   : > { %v3455_v0 = vadd.f32 1e-05, %v3450_v53 }
0x1255   : > { %v3483_v18 = vadd.f32 %v3893_v60, %v3472_v22  ;;  %v3473_v31 = vmul.f32 %v3892_v27, %v3462_v23 }
0x1256   : > { %4824 = vrsqrt.f32 %v3455_v0 }
0x1257   : > { %3488 = vst.msk [vmem:[%s776_s27] sm:$0xff] %vm809_vm1, %v3483_v18  ;;  %v3484_v34 = vadd.f32 %v3893_v60, %v3473_v31 }
0x1258   : > { %v4821_v13 = vpop.eup %4820 }
0x1259   : > { %3489 = vst.msk [vmem:[%s776_s27 + $0x8] sm:$0xff] %vm809_vm1, %v3484_v34  ;;  %v3463_v16 = vmul.f32 %v4821_v13, %v3423_v41 }
0x125a   : > { %v4823_v10 = vpop.eup %4822 }
0x125b   : > { %v3474_v4 = vmul.f32 %v3892_v27, %v3463_v16  ;;  %v3464_v5 = vmul.f32 %v4823_v10, %v3424_v8 }
0x125d   : > { %v3485_v2 = vadd.f32 %v3893_v60, %v3474_v4  ;;  %v3475_v39 = vmul.f32 %v3892_v27, %v3464_v5 }
0x125f   : > { %3490 = vst.msk [vmem:[%s776_s27 + $0x10] sm:$0xff] %vm809_vm1, %v3485_v2  ;;  %v3486_v54 = vadd.f32 %v3893_v60, %v3475_v39 }
0x1260   : > { %v4825_v51 = vpop.eup %4824 }
0x1261   : > { %3491 = vst.msk [vmem:[%s776_s27 + $0x18] sm:$0xff] %vm809_vm1, %v3486_v54  ;;  %v3465_v42 = vmul.f32 %v4825_v51, %v3425_v17 }
0x1263   : > { %v3476_v28 = vmul.f32 %v3892_v27, %v3465_v42 }
0x1265   : > { %v3487_v3 = vadd.f32 %v3893_v60, %v3476_v28 }
0x1267   : > { %3492 = vst.msk [vmem:[%s776_s27 + $0x20] sm:$0x7f] %vm3073_vm8, %v3487_v3 }
0x1268   : > { %5332 = shalt.err (!%p5329_p1)
}
0x1269   : > { %s5333_s27 = scalar_lea.hbm %s6931_s30, 640  ;;  %s5337_s25 = scalar_lea.hbm %s7073_s16, 1280 }
0x126a   : > { %p5334_p13 = scmp.ne.s32.totalorder %s6931_s30, %s5333_s27  ;;  %p5338_p8 = scmp.lt.u32.totalorder %s6931_s30, %s7073_s16 }
0x126b   : > { %p5339_p4 = scmp.lt.u32.totalorder %s5337_s25, %s5333_s27  ;;  %p5341_p11 = scmp.lt.u32.totalorder %s5333_s27, %s6931_s30 }
0x126c   : > { %p5335_p0 = pnand %p5334_p13, %p7074_p3 }
0x126d   : > { %p5340_p10 = por %p5339_p4, %p5338_p8 }
0x126e   : > { %p5336_p2 = pneg %p5335_p0 }
0x126f   : > { %p5342_p6 = por %p5341_p11, %p5340_p10 }
0x1271   : > { %p5343_p7 = pnand %p5342_p6, %p5336_p2 }
0x1273   : > { %5346 = shalt.err (!%p5343_p7)
}
0x1274   : > { %s5462_s0 = smov 128  }
0x1275   : > { %4379 = dma.vmem_to_hbm [thread:$0]  (%p7074_p3), %s6933_s3, 640, %s6931_s30, %s3494_s2, %s5462_s0, %s5462_s0, %s5453_s21  }
0x1276 PF: > { %s7075_s22 = sld [smem:[#allocation40_spill]]  ;;  %s7076_s18 = sld [smem:[#allocation43_spill]] }
0x1277   : > { %p7077_p5 = scmp.ne.s32.totalorder %s7048_s17, 0 }
0x127c   : > { %s3522_s20 = sand.u32 1, %s7075_s22   ;;  %p7078_p9 = scmp.ge.s32.totalorder %s7076_s18, 2 }
0x127d   : > { %s3523_s27 = scalar_lea.sflag [#allocation4], %s3522_s20 }
0x127e   : > { %p4435_p12 = pnand %p7078_p9, %p7077_p5 }
0x1280   : > { %5400 = dma.done.wait (!%p4435_p12), %s3523_s27, 640  }
0x1281   : > { %5402 = vsyncadd (!%p4435_p12), %s3523_s27, 4294966656  ;;  %s7079_s25 = sld [smem:[#allocation41_spill]]  ;;  %s7080_s19 = sld [smem:[#allocation42_spill]] }
0x1282   : > { %s7081_s29 = smov %s5936_s24  ;;  %p38_p1 = scmp.ge.s32.totalorder %s5925_s1, 4  }
0x1283   : > { %s7084_s26 = smov %s7081_s29  ;;  %s7085_s27 = smov %s5925_s1 }
0x1284   :  { %40 = sbr.rel (!%p38_p1) target bundleno = 21 (0x15), region = 200 }
0x1287   : > { %s7082_s24 = smov %s7079_s25  ;;  %s7083_s25 = smov %s7080_s19 }
0x128b   :  { %3528 = vsyncpa [#allocation3], 1 }
0x128c   :  { %3530 = vsyncpa [#allocation3 + $0x1], 1 }
0x128d   :  { %3531 = vsyncpa [#allocation6], 1 }
0x128e   :  { %3532 = vsyncpa [#allocation9], 1 }
0x128f   :  { %3533 = vsyncpa [#allocation12], 1 }
0x1290   :  { %3534 = vsyncpa [#allocation15], 1 }
0x1291   :  { %3535 = vsyncpa [#allocation18], 1 }
0x1292   :  { %3536 = vsyncpa [#allocation21], 1 }
0x1293   :  { %3537 = vsyncpa [#allocation24], 1 }
0x1294   :  { %3538 = vsyncpa [#allocation27], 1 }
0x1295   :  { %3539 = vsyncpa [#allocation4], 1 }
0x1296   :  { %3541 = vsyncpa [#allocation4 + $0x1], 1 }

</bundles_post_ra>
